<compile_context>
chip_gen: v6e
topology: v6e:2x2x1
jax: 0.10.0
libtpu: 0.0.40
codegen_flags: <defaults>
</compile_context>

<pallas_src>
import functools

import jax
import jax.numpy as jnp
from jax import lax
from jax.experimental import pallas as pl
from jax.experimental.pallas import tpu as pltpu


# ------------------------------ fused kernel -------------------------------

def fused_forward_kernel(img_ref, wc_ref, bc_ref, w1q_ref, s1_ref, b1_ref,
                         wh_ref, bh_ref, out_ref, xpad_ref, feat_ref, fc_ref,
                         *, C, H, W, KH, KW, Cout, A, TK):
    # img_ref : [B, C, H*W] uint8 (VMEM, resident)   raw image, flat spatial dim
    # wc_ref  : [Cout*C*KH*KW] f32 (SMEM)   conv weights * (1/15), (co,c,kh,kw) order
    # bc_ref  : [Cout] f32 (SMEM)
    # w1q_ref : [TK, hidden] int8 (VMEM, streamed per grid step)  padded/permuted FC1 chunk
    # s1_ref  : [1, hidden] f32   per-output-column int8 dequant scale
    # b1_ref  : [1, hidden] f32
    # wh_ref  : [hidden, A+1] bf16   merged [wpi | wv] head
    # bh_ref  : [1, A+1] f32         merged [bpi | bv]
    # out_ref : [B, A+1] f32         (pi | v), written at the last grid step
    # xpad_ref: [B, C, HW+pad] f32   scratch, zero-padded image
    # feat_ref: [NK, B, TK] bf16     scratch, conv features, grid-step-major
    # fc_ref  : [B, hidden] f32      scratch, un-scaled FC1 accumulator
    B = img_ref.shape[0]
    HW = H * W
    OH = H - KH + 1
    OHW = OH * W            # per-channel feature width; columns with w >= OW are
                            # masked by the exact-zero rows of the padded/quantized w1
    CKK = C * KH * KW
    k = pl.program_id(0)
    nk = pl.num_programs(0)

    # ---- k == 0: uint8 -> f32 cast, conv(2x2, stride 1) + ReLU as 16x16
    #      scalar-broadcast VPU multiply-adds on lane-dense slabs; zero the
    #      fc accumulator. All of this overlaps the DMA of the next w1 chunk.
    @pl.when(k == 0)
    def _():
        xpad_ref[...] = jnp.zeros_like(xpad_ref)                    # finite pad (masked positions)
        xpad_ref[:, :, :HW] = img_ref[...].astype(jnp.int32).astype(jnp.float32)
        xp = xpad_ref[...]                                          # [B, C, HW+pad]
        # one shifted slab per (c, kh, kw): slab[b, h*W + w] = x[b, c, h+kh, w+kw]
        slabs = []
        for c in range(C):
            for kh in range(KH):
                for kw in range(KW):
                    s = kh * W + kw
                    slabs.append(xp[:, c, s:s + OHW])               # [B, OHW]
        for co in range(Cout):
            acc = slabs[0] * wc_ref[co * CKK]
            for j in range(1, CKK):
                acc = acc + slabs[j] * wc_ref[co * CKK + j]
            chunk = jnp.maximum(acc + bc_ref[co], 0.0).astype(jnp.bfloat16)   # [B, OHW]
            # scatter the channel chunk into the grid-step-major feature layout
            g, done = co * OHW, 0
            while done < OHW:                                       # static Python loop
                step, off = divmod(g, TK)
                n = min(TK - off, OHW - done)
                feat_ref[step, :, off:off + n] = chunk[:, done:done + n]
                g += n
                done += n
        fc_ref[...] = jnp.zeros_like(fc_ref)

    # ---- every step: one int8 (TK, hidden) w1 chunk -> bf16 MXU matmul, f32 acc.
    #      (column scale is applied once in the epilogue, not per chunk)
    w_chunk = w1q_ref[...].astype(jnp.float32).astype(jnp.bfloat16)
    fc_ref[...] += jnp.dot(feat_ref[k], w_chunk, preferred_element_type=jnp.float32)

    # ---- k == last: dequant scale + bias + ReLU, merged pi|v head, exact softmax.
    @pl.when(k == nk - 1)
    def _():
        fc = jnp.maximum(fc_ref[...] * s1_ref[...] + b1_ref[...], 0.0)        # [B, hidden]
        logits = jnp.dot(fc.astype(jnp.bfloat16), wh_ref[...],
                         preferred_element_type=jnp.float32) + bh_ref[...]     # [B, A+1]
        pi_logits = logits[:, :A]
        m = jnp.max(pi_logits, axis=-1, keepdims=True)
        e = jnp.exp(pi_logits - m)
        out_ref[:, :A] = e / jnp.sum(e, axis=-1, keepdims=True)   # exact normalization
        out_ref[:, A:A + 1] = logits[:, A:A + 1]


# ------------------------------ wrapper -------------------------------------

def _pick_tk(K):
    """Largest-ish K-chunk (multiple of 128, dividing K) near 768 rows."""
    cands = [t for t in range(512, 1025, 128) if K % t == 0]
    if not cands:
        cands = [t for t in range(128, K + 1, 128) if K % t == 0]
    return min(cands, key=lambda t: abs(t - 768)) if cands else K


def forward(image_u8, kp, *, KH=2, KW=2):
    """CategoricalPgLsfFfModel.forward: uint8 NCHW image (any leading dims) -> (pi, v)."""
    lead = image_u8.shape[:-3]
    C, H, W = image_u8.shape[-3:]
    HW = H * W
    img = image_u8.reshape((-1, C, HW))          # free view of contiguous uint8
    B = img.shape[0]
    Cout = kp["bc"].shape[0]
    hidden = kp["b1"].shape[1]
    A = kp["wh"].shape[1] - 1
    K = kp["w1q"].shape[0]                       # = Cout * OH * W (w-padded, h-trimmed)
    OH = H - KH + 1
    assert K == Cout * OH * W, "w1q layout does not match the image shape"
    TK = _pick_tk(K)
    NK = K // TK
    XPW = HW + 128                               # lane-friendly pad; only needs >= HW + KW - 1

    kernel = functools.partial(fused_forward_kernel, C=C, H=H, W=W, KH=KH, KW=KW,
                               Cout=Cout, A=A, TK=TK)
    smem = pl.BlockSpec(memory_space=pltpu.MemorySpace.SMEM)
    grid_spec = pltpu.PrefetchScalarGridSpec(
        num_scalar_prefetch=0,
        grid=(NK,),                                              # FC reduction axis
        in_specs=[
            pl.BlockSpec((B, C, HW), lambda k: (0, 0, 0)),       # image: resident in VMEM
            smem,                                                # conv weights (SMEM scalars)
            smem,                                                # conv bias
            pl.BlockSpec((TK, hidden), lambda k: (k, 0)),        # int8 w1: streamed / double-buffered
            pl.BlockSpec((1, hidden), lambda k: (0, 0)),         # dequant scales
            pl.BlockSpec((1, hidden), lambda k: (0, 0)),         # b1
            pl.BlockSpec((hidden, A + 1), lambda k: (0, 0)),     # merged [wpi | wv] head
            pl.BlockSpec((1, A + 1), lambda k: (0, 0)),          # merged [bpi | bv]
        ],
        out_specs=pl.BlockSpec((B, A + 1), lambda k: (0, 0)),
        scratch_shapes=[
            pltpu.VMEM((B, C, XPW), jnp.float32),                # zero-padded image
            pltpu.VMEM((NK, B, TK), jnp.bfloat16),               # conv features (step-major)
            pltpu.VMEM((B, hidden), jnp.float32),                # fc accumulator
        ],
    )
    flops = (2 * B * K * hidden + 2 * B * hidden * (A + 1)
             + 2 * B * OH * W * Cout * C * KH * KW)
    bytes_accessed = (kp["w1q"].size + img.size + 2 * kp["wh"].size
                      + 4 * (kp["s1"].size + kp["b1"].size + kp["bh"].size
                             + kp["wc"].size + kp["bc"].size) + 4 * B * (A + 1))
    out = pl.pallas_call(
        kernel,
        out_shape=jax.ShapeDtypeStruct((B, A + 1), jnp.float32),
        grid_spec=grid_spec,
        compiler_params=pltpu.CompilerParams(
            dimension_semantics=("arbitrary",),                  # reduction axis
            vmem_limit_bytes=32 * 1024 * 1024),
        cost_estimate=pl.CostEstimate(flops=flops, transcendentals=B * A,
                                      bytes_accessed=bytes_accessed),
    )(img, kp["wc"], kp["bc"], kp["w1q"], kp["s1"], kp["b1"], kp["wh"], kp["bh"])
    pi = out[:, :A].reshape(lead + (A,))
    v = out[:, A].reshape(lead)
    return pi, v


# ---------------------- parameters (PyTorch layout) --------------------------

def init_torch_params(key, C, H, W, Cout, KH, KW, hidden, out_size):
    OH, OW = H - KH + 1, W - KW + 1
    F = Cout * OH * OW
    ks = jax.random.split(key, 8)

    def unif(k, shape, fan_in):
        b = 1.0 / jnp.sqrt(float(fan_in))
        return jax.random.uniform(k, shape, jnp.float32, -b, b)

    return dict(
        wc_oihw=unif(ks[0], (Cout, C, KH, KW), C * KH * KW),
        bc=unif(ks[1], (Cout,), C * KH * KW),
        w1=unif(ks[2], (F, hidden), F),            # [in, out] = PyTorch weight.T
        b1=unif(ks[3], (hidden,), F),
        wpi=unif(ks[4], (hidden, out_size), hidden),
        bpi=unif(ks[5], (out_size,), hidden),
        wv=unif(ks[6], (hidden, 1), hidden),
        bv=unif(ks[7], (1,), hidden),
    )


def prepare_kernel_params(tp, C, H, W, KH, KW):
    """One-time host-side repack of PyTorch-layout params into kernel layout."""
    Cout = tp["wc_oihw"].shape[0]
    OH, OW = H - KH + 1, W - KW + 1
    hidden = tp["w1"].shape[1]
    # conv weights: fold the 1/15 image scale (conv is linear in the image);
    # flat (co, c, kh, kw) scalar order for SMEM. Bias is unscaled.
    wc = (tp["wc_oihw"] * (1.0 / 15.0)).reshape(-1).astype(jnp.float32)
    bc = tp["bc"].astype(jnp.float32)
    # FC1: fold the channel-major flatten and pad ONLY the w-dim (OW -> W) with
    # exact-zero rows, so the kernel feature index is co*(OH*W) + h*W + w with
    # w >= OW positions masked. (h >= OH rows are trimmed entirely.)
    w1_4d = tp["w1"].reshape(Cout, OH, OW, hidden)
    w1_pad = jnp.zeros((Cout, OH, W, hidden), jnp.float32).at[:, :, :OW, :].set(w1_4d)
    w1_pad = w1_pad.reshape(Cout * OH * W, hidden)
    # symmetric per-output-column int8 quantization; padded zero rows stay exact zero.
    absmax = jnp.max(jnp.abs(w1_pad), axis=0)
    s1 = jnp.maximum(absmax, 1e-30) / 127.0
    w1q = jnp.clip(jnp.round(w1_pad / s1), -127.0, 127.0).astype(jnp.int8)
    b1 = tp["b1"].reshape(1, hidden).astype(jnp.float32)
    # merge the value head into the pi head: one [hidden, A+1] bf16 matmul.
    wh = jnp.concatenate([tp["wpi"], tp["wv"]], axis=1).astype(jnp.bfloat16)
    bh = jnp.concatenate([tp["bpi"], tp["bv"]]).reshape(1, -1).astype(jnp.float32)
    return dict(wc=wc, bc=bc, w1q=w1q, s1=s1.reshape(1, hidden).astype(jnp.float32),
                b1=b1, wh=wh, bh=bh)


# ------------------------------ references ----------------------------------

def ref_forward(image_u8, tp):
    """Pure-f32 PyTorch-semantics reference."""
    x = image_u8.astype(jnp.float32) * (1.0 / 15.0)
    y = lax.conv_general_dilated(x, tp["wc_oihw"], (1, 1), "VALID",
                                 dimension_numbers=("NCHW", "OIHW", "NCHW"))
    y = jnp.maximum(y + tp["bc"].reshape(1, -1, 1, 1), 0.0)
    flat = y.reshape(y.shape[0], -1)
    fc = jnp.maximum(flat @ tp["w1"] + tp["b1"], 0.0)
    pi = jax.nn.softmax(fc @ tp["wpi"] + tp["bpi"], axis=-1)
    v = (fc @ tp["wv"] + tp["bv"]).squeeze(-1)
    return pi, v


def ref_forward_quant(image_u8, tp, kp):
    """Plain-JAX reference replicating the kernel's int8/bf16 numerics."""
    B = image_u8.shape[0]
    Cout, _, KH, KW = tp["wc_oihw"].shape
    H, W = image_u8.shape[2], image_u8.shape[3]
    OH, OW = H - KH + 1, W - KW + 1
    hidden = kp["b1"].shape[1]
    A = kp["wh"].shape[1] - 1
    x = image_u8.astype(jnp.float32)
    y = lax.conv_general_dilated(x, tp["wc_oihw"] * (1.0 / 15.0), (1, 1), "VALID",
                                 dimension_numbers=("NCHW", "OIHW", "NCHW"),
                                 precision=lax.Precision.HIGHEST)
    y = jnp.maximum(y + tp["bc"].reshape(1, -1, 1, 1), 0.0)
    feat = y.reshape(B, -1).astype(jnp.bfloat16)            # PyTorch (co, oh, ow) flatten
    # valid (non-padded) rows of the kernel's quantized w1, in the same order
    w1q_valid = (kp["w1q"].reshape(Cout, OH, W, hidden)[:, :, :OW, :]
                 .reshape(Cout * OH * OW, hidden))
    acc = jnp.dot(feat, w1q_valid.astype(jnp.float32).astype(jnp.bfloat16),
                  preferred_element_type=jnp.float32)
    fc = jnp.maximum(acc * kp["s1"] + kp["b1"], 0.0)
    logits = jnp.dot(fc.astype(jnp.bfloat16), kp["wh"],
                     preferred_element_type=jnp.float32) + kp["bh"]
    return jax.nn.softmax(logits[:, :A], axis=-1), logits[:, A]


# --------------------------------- main --------------------------------------

if __name__ == "__main__":
    B, C, H, W = 2, 4, 16, 16          # image_shape = (4, 16, 16)
    Cout, KH, KW = 16, 2, 2            # channels=[16], kernel=2, stride=1, pad=0
    HIDDEN = 512                       # fc_sizes (conv.output_size)
    OUT_SIZE = 6                       # action space size

    key = jax.random.PRNGKey(0)
    k_img, k_par = jax.random.split(key)
    image = jax.random.randint(k_img, (B, C, H, W), 0, 256, dtype=jnp.int32)
    image = image.astype(jnp.uint8)

    tp = init_torch_params(k_par, C, H, W, Cout, KH, KW, HIDDEN, OUT_SIZE)
    kp = prepare_kernel_params(tp, C, H, W, KH, KW)

    fwd = jax.jit(forward)
    pi, v = jax.block_until_ready(fwd(image, kp))

    assert pi.shape == (B, OUT_SIZE) and v.shape == (B,)

    # tight structural check vs. a plain-JAX reference with identical int8/bf16 numerics
    pi_q, v_q = ref_forward_quant(image, tp, kp)
    assert jnp.allclose(pi, pi_q, rtol=1e-2, atol=1e-2)
    assert jnp.allclose(v, v_q, rtol=1e-2, atol=2e-2)

    # loose semantic check vs. the pure-f32 PyTorch-semantics reference
    pi_f, v_f = ref_forward(image, tp)
    assert jnp.allclose(pi, pi_f, rtol=5e-2, atol=5e-2)
    assert jnp.allclose(v, v_f, rtol=1e-1, atol=2e-1)

    # TODO(synk): compute_pi_v_sf_r_lsfv (sf_fn / reward_layer / lsf_v heads) is
    # not part of forward(); only forward() is implemented here. prev_action /
    # reward args are unused by the original forward() as well.
    print("KERNEL_OK")
</pallas_src>

<mosaic_0001>
module attributes {stable_mosaic.version = 11 : i64} {
  func.func @fused_forward_kernel(%arg0: i32, %arg1: memref<2x4x256xi8, #tpu.memory_space<vmem>>, %arg2: memref<256xf32, #tpu.memory_space<smem>>, %arg3: memref<16xf32, #tpu.memory_space<smem>>, %arg4: memref<768x512xi8, #tpu.memory_space<vmem>>, %arg5: memref<1x512xf32, #tpu.memory_space<vmem>>, %arg6: memref<1x512xf32, #tpu.memory_space<vmem>>, %arg7: memref<512x7xbf16, #tpu.memory_space<vmem>>, %arg8: memref<1x7xf32, #tpu.memory_space<vmem>>, %arg9: memref<2x7xf32, #tpu.memory_space<vmem>>, %arg10: memref<2x4x384xf32, #tpu.memory_space<vmem>>, %arg11: memref<5x2x768xbf16, #tpu.memory_space<vmem>>, %arg12: memref<2x512xf32, #tpu.memory_space<vmem>>) attributes {dimension_semantics = [#tpu.dimension_semantics<arbitrary>], iteration_bounds = array<i64: 5>, scalar_prefetch = 0 : i64, scratch_operands = 3 : i64, tpu.core_type = #tpu.core_type<tc>, window_params = [{pipeline_mode = #tpu.pipeline_mode<synchronous>, transform_indices = @transform_0, window_bounds = array<i64: 2, 4, 256>}, {transform_indices = @transform_1, window_bounds = array<i64: 256>}, {transform_indices = @transform_2, window_bounds = array<i64: 16>}, {transform_indices = @transform_3, window_bounds = array<i64: 768, 512>}, {pipeline_mode = #tpu.pipeline_mode<synchronous>, transform_indices = @transform_4, window_bounds = array<i64: 1, 512>}, {pipeline_mode = #tpu.pipeline_mode<synchronous>, transform_indices = @transform_5, window_bounds = array<i64: 1, 512>}, {pipeline_mode = #tpu.pipeline_mode<synchronous>, transform_indices = @transform_6, window_bounds = array<i64: 512, 7>}, {pipeline_mode = #tpu.pipeline_mode<synchronous>, transform_indices = @transform_7, window_bounds = array<i64: 1, 7>}, {pipeline_mode = #tpu.pipeline_mode<synchronous>, transform_indices = @transform_8, window_bounds = array<i64: 2, 7>}]} {
    %c0_i32 = arith.constant 0 : i32
    %0 = arith.cmpi eq, %arg0, %c0_i32 : i32
    %1 = arith.extui %0 : i1 to i32
    %c0_i32_0 = arith.constant 0 : i32
    %2 = arith.cmpi ne, %1, %c0_i32_0 : i32
    scf.if %2 {
      %cst_9 = arith.constant 0.000000e+00 : f32
      %16 = vector.broadcast %cst_9 : f32 to vector<2x4x384xf32>
      %c0_10 = arith.constant 0 : index
      %c0_11 = arith.constant 0 : index
      %c0_12 = arith.constant 0 : index
      %17 = vector.load %arg10[%c0_10, %c0_11, %c0_12] : memref<2x4x384xf32, #tpu.memory_space<vmem>>, vector<2x4x384xf32>
      tpu.vector_store %arg10[%c0_10, %c0_11, %c0_12], %16 {strides = array<i32>} : memref<2x4x384xf32, #tpu.memory_space<vmem>>, vector<2x4x384xf32>,
      %c0_13 = arith.constant 0 : index
      %c0_14 = arith.constant 0 : index
      %c0_15 = arith.constant 0 : index
      %18 = vector.load %arg1[%c0_13, %c0_14, %c0_15] : memref<2x4x256xi8, #tpu.memory_space<vmem>>, vector<2x4x256xi8>
      %19 = arith.extui %18 : vector<2x4x256xi8> to vector<2x4x256xi32>
      %20 = arith.sitofp %19 : vector<2x4x256xi32> to vector<2x4x256xf32>
      %c0_16 = arith.constant 0 : index
      %c0_17 = arith.constant 0 : index
      %c0_18 = arith.constant 0 : index
      %21 = vector.load %arg10[%c0_16, %c0_17, %c0_18] : memref<2x4x384xf32, #tpu.memory_space<vmem>>, vector<2x4x256xf32>
      tpu.vector_store %arg10[%c0_16, %c0_17, %c0_18], %20 {strides = array<i32>} : memref<2x4x384xf32, #tpu.memory_space<vmem>>, vector<2x4x256xf32>,
      %c0_19 = arith.constant 0 : index
      %c0_20 = arith.constant 0 : index
      %c0_21 = arith.constant 0 : index
      %22 = vector.load %arg10[%c0_19, %c0_20, %c0_21] : memref<2x4x384xf32, #tpu.memory_space<vmem>>, vector<2x4x384xf32>
      %23 = vector.extract_strided_slice %22 {offsets = [0, 0, 0], sizes = [2, 1, 240], strides = [1, 1, 1]} : vector<2x4x384xf32> to vector<2x1x240xf32>
      %24 = vector.shape_cast %23 : vector<2x1x240xf32> to vector<2x240xf32>
      %25 = vector.extract_strided_slice %22 {offsets = [0, 0, 1], sizes = [2, 1, 240], strides = [1, 1, 1]} : vector<2x4x384xf32> to vector<2x1x240xf32>
      %26 = vector.shape_cast %25 : vector<2x1x240xf32> to vector<2x240xf32>
      %27 = vector.extract_strided_slice %22 {offsets = [0, 0, 16], sizes = [2, 1, 240], strides = [1, 1, 1]} : vector<2x4x384xf32> to vector<2x1x240xf32>
      %28 = vector.shape_cast %27 : vector<2x1x240xf32> to vector<2x240xf32>
      %29 = vector.extract_strided_slice %22 {offsets = [0, 0, 17], sizes = [2, 1, 240], strides = [1, 1, 1]} : vector<2x4x384xf32> to vector<2x1x240xf32>
      %30 = vector.shape_cast %29 : vector<2x1x240xf32> to vector<2x240xf32>
      %31 = vector.extract_strided_slice %22 {offsets = [0, 1, 0], sizes = [2, 1, 240], strides = [1, 1, 1]} : vector<2x4x384xf32> to vector<2x1x240xf32>
      %32 = vector.shape_cast %31 : vector<2x1x240xf32> to vector<2x240xf32>
      %33 = vector.extract_strided_slice %22 {offsets = [0, 1, 1], sizes = [2, 1, 240], strides = [1, 1, 1]} : vector<2x4x384xf32> to vector<2x1x240xf32>
      %34 = vector.shape_cast %33 : vector<2x1x240xf32> to vector<2x240xf32>
      %35 = vector.extract_strided_slice %22 {offsets = [0, 1, 16], sizes = [2, 1, 240], strides = [1, 1, 1]} : vector<2x4x384xf32> to vector<2x1x240xf32>
      %36 = vector.shape_cast %35 : vector<2x1x240xf32> to vector<2x240xf32>
      %37 = vector.extract_strided_slice %22 {offsets = [0, 1, 17], sizes = [2, 1, 240], strides = [1, 1, 1]} : vector<2x4x384xf32> to vector<2x1x240xf32>
      %38 = vector.shape_cast %37 : vector<2x1x240xf32> to vector<2x240xf32>
      %39 = vector.extract_strided_slice %22 {offsets = [0, 2, 0], sizes = [2, 1, 240], strides = [1, 1, 1]} : vector<2x4x384xf32> to vector<2x1x240xf32>
      %40 = vector.shape_cast %39 : vector<2x1x240xf32> to vector<2x240xf32>
      %41 = vector.extract_strided_slice %22 {offsets = [0, 2, 1], sizes = [2, 1, 240], strides = [1, 1, 1]} : vector<2x4x384xf32> to vector<2x1x240xf32>
      %42 = vector.shape_cast %41 : vector<2x1x240xf32> to vector<2x240xf32>
      %43 = vector.extract_strided_slice %22 {offsets = [0, 2, 16], sizes = [2, 1, 240], strides = [1, 1, 1]} : vector<2x4x384xf32> to vector<2x1x240xf32>
      %44 = vector.shape_cast %43 : vector<2x1x240xf32> to vector<2x240xf32>
      %45 = vector.extract_strided_slice %22 {offsets = [0, 2, 17], sizes = [2, 1, 240], strides = [1, 1, 1]} : vector<2x4x384xf32> to vector<2x1x240xf32>
      %46 = vector.shape_cast %45 : vector<2x1x240xf32> to vector<2x240xf32>
      %47 = vector.extract_strided_slice %22 {offsets = [0, 3, 0], sizes = [2, 1, 240], strides = [1, 1, 1]} : vector<2x4x384xf32> to vector<2x1x240xf32>
      %48 = vector.shape_cast %47 : vector<2x1x240xf32> to vector<2x240xf32>
      %49 = vector.extract_strided_slice %22 {offsets = [0, 3, 1], sizes = [2, 1, 240], strides = [1, 1, 1]} : vector<2x4x384xf32> to vector<2x1x240xf32>
      %50 = vector.shape_cast %49 : vector<2x1x240xf32> to vector<2x240xf32>
      %51 = vector.extract_strided_slice %22 {offsets = [0, 3, 16], sizes = [2, 1, 240], strides = [1, 1, 1]} : vector<2x4x384xf32> to vector<2x1x240xf32>
      %52 = vector.shape_cast %51 : vector<2x1x240xf32> to vector<2x240xf32>
      %53 = vector.extract_strided_slice %22 {offsets = [0, 3, 17], sizes = [2, 1, 240], strides = [1, 1, 1]} : vector<2x4x384xf32> to vector<2x1x240xf32>
      %54 = vector.shape_cast %53 : vector<2x1x240xf32> to vector<2x240xf32>
      %c0_22 = arith.constant 0 : index
      %55 = memref.load %arg2[%c0_22] : memref<256xf32, #tpu.memory_space<smem>>
      %56 = vector.broadcast %55 : f32 to vector<2x240xf32>
      %57 = arith.mulf %24, %56 : vector<2x240xf32>
      %c1 = arith.constant 1 : index
      %58 = memref.load %arg2[%c1] : memref<256xf32, #tpu.memory_space<smem>>
      %59 = vector.broadcast %58 : f32 to vector<2x240xf32>
      %60 = arith.mulf %26, %59 : vector<2x240xf32>
      %61 = arith.addf %57, %60 : vector<2x240xf32>
      %c2 = arith.constant 2 : index
      %62 = memref.load %arg2[%c2] : memref<256xf32, #tpu.memory_space<smem>>
      %63 = vector.broadcast %62 : f32 to vector<2x240xf32>
      %64 = arith.mulf %28, %63 : vector<2x240xf32>
      %65 = arith.addf %61, %64 : vector<2x240xf32>
      %c3 = arith.constant 3 : index
      %66 = memref.load %arg2[%c3] : memref<256xf32, #tpu.memory_space<smem>>
      %67 = vector.broadcast %66 : f32 to vector<2x240xf32>
      %68 = arith.mulf %30, %67 : vector<2x240xf32>
      %69 = arith.addf %65, %68 : vector<2x240xf32>
      %c4 = arith.constant 4 : index
      %70 = memref.load %arg2[%c4] : memref<256xf32, #tpu.memory_space<smem>>
      %71 = vector.broadcast %70 : f32 to vector<2x240xf32>
      %72 = arith.mulf %32, %71 : vector<2x240xf32>
      %73 = arith.addf %69, %72 : vector<2x240xf32>
      %c5 = arith.constant 5 : index
      %74 = memref.load %arg2[%c5] : memref<256xf32, #tpu.memory_space<smem>>
      %75 = vector.broadcast %74 : f32 to vector<2x240xf32>
      %76 = arith.mulf %34, %75 : vector<2x240xf32>
      %77 = arith.addf %73, %76 : vector<2x240xf32>
      %c6 = arith.constant 6 : index
      %78 = memref.load %arg2[%c6] : memref<256xf32, #tpu.memory_space<smem>>
      %79 = vector.broadcast %78 : f32 to vector<2x240xf32>
      %80 = arith.mulf %36, %79 : vector<2x240xf32>
      %81 = arith.addf %77, %80 : vector<2x240xf32>
      %c7 = arith.constant 7 : index
      %82 = memref.load %arg2[%c7] : memref<256xf32, #tpu.memory_space<smem>>
      %83 = vector.broadcast %82 : f32 to vector<2x240xf32>
      %84 = arith.mulf %38, %83 : vector<2x240xf32>
      %85 = arith.addf %81, %84 : vector<2x240xf32>
      %c8 = arith.constant 8 : index
      %86 = memref.load %arg2[%c8] : memref<256xf32, #tpu.memory_space<smem>>
      %87 = vector.broadcast %86 : f32 to vector<2x240xf32>
      %88 = arith.mulf %40, %87 : vector<2x240xf32>
      %89 = arith.addf %85, %88 : vector<2x240xf32>
      %c9 = arith.constant 9 : index
      %90 = memref.load %arg2[%c9] : memref<256xf32, #tpu.memory_space<smem>>
      %91 = vector.broadcast %90 : f32 to vector<2x240xf32>
      %92 = arith.mulf %42, %91 : vector<2x240xf32>
      %93 = arith.addf %89, %92 : vector<2x240xf32>
      %c10 = arith.constant 10 : index
      %94 = memref.load %arg2[%c10] : memref<256xf32, #tpu.memory_space<smem>>
      %95 = vector.broadcast %94 : f32 to vector<2x240xf32>
      %96 = arith.mulf %44, %95 : vector<2x240xf32>
      %97 = arith.addf %93, %96 : vector<2x240xf32>
      %c11 = arith.constant 11 : index
      %98 = memref.load %arg2[%c11] : memref<256xf32, #tpu.memory_space<smem>>
      %99 = vector.broadcast %98 : f32 to vector<2x240xf32>
      %100 = arith.mulf %46, %99 : vector<2x240xf32>
      %101 = arith.addf %97, %100 : vector<2x240xf32>
      %c12 = arith.constant 12 : index
      %102 = memref.load %arg2[%c12] : memref<256xf32, #tpu.memory_space<smem>>
      %103 = vector.broadcast %102 : f32 to vector<2x240xf32>
      %104 = arith.mulf %48, %103 : vector<2x240xf32>
      %105 = arith.addf %101, %104 : vector<2x240xf32>
      %c13 = arith.constant 13 : index
      %106 = memref.load %arg2[%c13] : memref<256xf32, #tpu.memory_space<smem>>
      %107 = vector.broadcast %106 : f32 to vector<2x240xf32>
      %108 = arith.mulf %50, %107 : vector<2x240xf32>
      %109 = arith.addf %105, %108 : vector<2x240xf32>
      %c14 = arith.constant 14 : index
      %110 = memref.load %arg2[%c14] : memref<256xf32, #tpu.memory_space<smem>>
      %111 = vector.broadcast %110 : f32 to vector<2x240xf32>
      %112 = arith.mulf %52, %111 : vector<2x240xf32>
      %113 = arith.addf %109, %112 : vector<2x240xf32>
      %c15 = arith.constant 15 : index
      %114 = memref.load %arg2[%c15] : memref<256xf32, #tpu.memory_space<smem>>
      %115 = vector.broadcast %114 : f32 to vector<2x240xf32>
      %116 = arith.mulf %54, %115 : vector<2x240xf32>
      %117 = arith.addf %113, %116 : vector<2x240xf32>
      %c0_23 = arith.constant 0 : index
      %118 = memref.load %arg3[%c0_23] : memref<16xf32, #tpu.memory_space<smem>>
      %119 = vector.broadcast %118 : f32 to vector<2x240xf32>
      %120 = arith.addf %117, %119 : vector<2x240xf32>
      %cst_24 = arith.constant 0.000000e+00 : f32
      %121 = vector.broadcast %cst_24 : f32 to vector<2x240xf32>
      %122 = arith.maximumf %120, %121 : vector<2x240xf32>
      %123 = arith.truncf %122 : vector<2x240xf32> to vector<2x240xbf16>
      %c0_25 = arith.constant 0 : index
      %c0_26 = arith.constant 0 : index
      %c0_27 = arith.constant 0 : index
      %124 = vector.load %arg11[%c0_25, %c0_26, %c0_27] : memref<5x2x768xbf16, #tpu.memory_space<vmem>>, vector<1x2x240xbf16>
      %125 = vector.shape_cast %124 : vector<1x2x240xbf16> to vector<2x240xbf16>
      %126 = vector.shape_cast %123 : vector<2x240xbf16> to vector<1x2x240xbf16>
      tpu.vector_store %arg11[%c0_25, %c0_26, %c0_27], %126 {strides = array<i32>} : memref<5x2x768xbf16, #tpu.memory_space<vmem>>, vector<1x2x240xbf16>,
      %c16 = arith.constant 16 : index
      %127 = memref.load %arg2[%c16] : memref<256xf32, #tpu.memory_space<smem>>
      %128 = vector.broadcast %127 : f32 to vector<2x240xf32>
      %129 = arith.mulf %24, %128 : vector<2x240xf32>
      %c17 = arith.constant 17 : index
      %130 = memref.load %arg2[%c17] : memref<256xf32, #tpu.memory_space<smem>>
      %131 = vector.broadcast %130 : f32 to vector<2x240xf32>
      %132 = arith.mulf %26, %131 : vector<2x240xf32>
      %133 = arith.addf %129, %132 : vector<2x240xf32>
      %c18 = arith.constant 18 : index
      %134 = memref.load %arg2[%c18] : memref<256xf32, #tpu.memory_space<smem>>
      %135 = vector.broadcast %134 : f32 to vector<2x240xf32>
      %136 = arith.mulf %28, %135 : vector<2x240xf32>
      %137 = arith.addf %133, %136 : vector<2x240xf32>
      %c19 = arith.constant 19 : index
      %138 = memref.load %arg2[%c19] : memref<256xf32, #tpu.memory_space<smem>>
      %139 = vector.broadcast %138 : f32 to vector<2x240xf32>
      %140 = arith.mulf %30, %139 : vector<2x240xf32>
      %141 = arith.addf %137, %140 : vector<2x240xf32>
      %c20 = arith.constant 20 : index
      %142 = memref.load %arg2[%c20] : memref<256xf32, #tpu.memory_space<smem>>
      %143 = vector.broadcast %142 : f32 to vector<2x240xf32>
      %144 = arith.mulf %32, %143 : vector<2x240xf32>
      %145 = arith.addf %141, %144 : vector<2x240xf32>
      %c21 = arith.constant 21 : index
      %146 = memref.load %arg2[%c21] : memref<256xf32, #tpu.memory_space<smem>>
      %147 = vector.broadcast %146 : f32 to vector<2x240xf32>
      %148 = arith.mulf %34, %147 : vector<2x240xf32>
      %149 = arith.addf %145, %148 : vector<2x240xf32>
      %c22 = arith.constant 22 : index
      %150 = memref.load %arg2[%c22] : memref<256xf32, #tpu.memory_space<smem>>
      %151 = vector.broadcast %150 : f32 to vector<2x240xf32>
      %152 = arith.mulf %36, %151 : vector<2x240xf32>
      %153 = arith.addf %149, %152 : vector<2x240xf32>
      %c23 = arith.constant 23 : index
      %154 = memref.load %arg2[%c23] : memref<256xf32, #tpu.memory_space<smem>>
      %155 = vector.broadcast %154 : f32 to vector<2x240xf32>
      %156 = arith.mulf %38, %155 : vector<2x240xf32>
      %157 = arith.addf %153, %156 : vector<2x240xf32>
      %c24 = arith.constant 24 : index
      %158 = memref.load %arg2[%c24] : memref<256xf32, #tpu.memory_space<smem>>
      %159 = vector.broadcast %158 : f32 to vector<2x240xf32>
      %160 = arith.mulf %40, %159 : vector<2x240xf32>
      %161 = arith.addf %157, %160 : vector<2x240xf32>
      %c25 = arith.constant 25 : index
      %162 = memref.load %arg2[%c25] : memref<256xf32, #tpu.memory_space<smem>>
      %163 = vector.broadcast %162 : f32 to vector<2x240xf32>
      %164 = arith.mulf %42, %163 : vector<2x240xf32>
      %165 = arith.addf %161, %164 : vector<2x240xf32>
      %c26 = arith.constant 26 : index
      %166 = memref.load %arg2[%c26] : memref<256xf32, #tpu.memory_space<smem>>
      %167 = vector.broadcast %166 : f32 to vector<2x240xf32>
      %168 = arith.mulf %44, %167 : vector<2x240xf32>
      %169 = arith.addf %165, %168 : vector<2x240xf32>
      %c27 = arith.constant 27 : index
      %170 = memref.load %arg2[%c27] : memref<256xf32, #tpu.memory_space<smem>>
      %171 = vector.broadcast %170 : f32 to vector<2x240xf32>
      %172 = arith.mulf %46, %171 : vector<2x240xf32>
      %173 = arith.addf %169, %172 : vector<2x240xf32>
      %c28 = arith.constant 28 : index
      %174 = memref.load %arg2[%c28] : memref<256xf32, #tpu.memory_space<smem>>
      %175 = vector.broadcast %174 : f32 to vector<2x240xf32>
      %176 = arith.mulf %48, %175 : vector<2x240xf32>
      %177 = arith.addf %173, %176 : vector<2x240xf32>
      %c29 = arith.constant 29 : index
      %178 = memref.load %arg2[%c29] : memref<256xf32, #tpu.memory_space<smem>>
      %179 = vector.broadcast %178 : f32 to vector<2x240xf32>
      %180 = arith.mulf %50, %179 : vector<2x240xf32>
      %181 = arith.addf %177, %180 : vector<2x240xf32>
      %c30 = arith.constant 30 : index
      %182 = memref.load %arg2[%c30] : memref<256xf32, #tpu.memory_space<smem>>
      %183 = vector.broadcast %182 : f32 to vector<2x240xf32>
      %184 = arith.mulf %52, %183 : vector<2x240xf32>
      %185 = arith.addf %181, %184 : vector<2x240xf32>
      %c31 = arith.constant 31 : index
      %186 = memref.load %arg2[%c31] : memref<256xf32, #tpu.memory_space<smem>>
      %187 = vector.broadcast %186 : f32 to vector<2x240xf32>
      %188 = arith.mulf %54, %187 : vector<2x240xf32>
      %189 = arith.addf %185, %188 : vector<2x240xf32>
      %c1_28 = arith.constant 1 : index
      %190 = memref.load %arg3[%c1_28] : memref<16xf32, #tpu.memory_space<smem>>
      %191 = vector.broadcast %190 : f32 to vector<2x240xf32>
      %192 = arith.addf %189, %191 : vector<2x240xf32>
      %cst_29 = arith.constant 0.000000e+00 : f32
      %193 = vector.broadcast %cst_29 : f32 to vector<2x240xf32>
      %194 = arith.maximumf %192, %193 : vector<2x240xf32>
      %195 = arith.truncf %194 : vector<2x240xf32> to vector<2x240xbf16>
      %c0_30 = arith.constant 0 : index
      %c0_31 = arith.constant 0 : index
      %c240 = arith.constant 240 : index
      %196 = vector.load %arg11[%c0_30, %c0_31, %c240] : memref<5x2x768xbf16, #tpu.memory_space<vmem>>, vector<1x2x240xbf16>
      %197 = vector.shape_cast %196 : vector<1x2x240xbf16> to vector<2x240xbf16>
      %198 = vector.shape_cast %195 : vector<2x240xbf16> to vector<1x2x240xbf16>
      tpu.vector_store %arg11[%c0_30, %c0_31, %c240], %198 {strides = array<i32>} : memref<5x2x768xbf16, #tpu.memory_space<vmem>>, vector<1x2x240xbf16>,
      %c32 = arith.constant 32 : index
      %199 = memref.load %arg2[%c32] : memref<256xf32, #tpu.memory_space<smem>>
      %200 = vector.broadcast %199 : f32 to vector<2x240xf32>
      %201 = arith.mulf %24, %200 : vector<2x240xf32>
      %c33 = arith.constant 33 : index
      %202 = memref.load %arg2[%c33] : memref<256xf32, #tpu.memory_space<smem>>
      %203 = vector.broadcast %202 : f32 to vector<2x240xf32>
      %204 = arith.mulf %26, %203 : vector<2x240xf32>
      %205 = arith.addf %201, %204 : vector<2x240xf32>
      %c34 = arith.constant 34 : index
      %206 = memref.load %arg2[%c34] : memref<256xf32, #tpu.memory_space<smem>>
      %207 = vector.broadcast %206 : f32 to vector<2x240xf32>
      %208 = arith.mulf %28, %207 : vector<2x240xf32>
      %209 = arith.addf %205, %208 : vector<2x240xf32>
      %c35 = arith.constant 35 : index
      %210 = memref.load %arg2[%c35] : memref<256xf32, #tpu.memory_space<smem>>
      %211 = vector.broadcast %210 : f32 to vector<2x240xf32>
      %212 = arith.mulf %30, %211 : vector<2x240xf32>
      %213 = arith.addf %209, %212 : vector<2x240xf32>
      %c36 = arith.constant 36 : index
      %214 = memref.load %arg2[%c36] : memref<256xf32, #tpu.memory_space<smem>>
      %215 = vector.broadcast %214 : f32 to vector<2x240xf32>
      %216 = arith.mulf %32, %215 : vector<2x240xf32>
      %217 = arith.addf %213, %216 : vector<2x240xf32>
      %c37 = arith.constant 37 : index
      %218 = memref.load %arg2[%c37] : memref<256xf32, #tpu.memory_space<smem>>
      %219 = vector.broadcast %218 : f32 to vector<2x240xf32>
      %220 = arith.mulf %34, %219 : vector<2x240xf32>
      %221 = arith.addf %217, %220 : vector<2x240xf32>
      %c38 = arith.constant 38 : index
      %222 = memref.load %arg2[%c38] : memref<256xf32, #tpu.memory_space<smem>>
      %223 = vector.broadcast %222 : f32 to vector<2x240xf32>
      %224 = arith.mulf %36, %223 : vector<2x240xf32>
      %225 = arith.addf %221, %224 : vector<2x240xf32>
      %c39 = arith.constant 39 : index
      %226 = memref.load %arg2[%c39] : memref<256xf32, #tpu.memory_space<smem>>
      %227 = vector.broadcast %226 : f32 to vector<2x240xf32>
      %228 = arith.mulf %38, %227 : vector<2x240xf32>
      %229 = arith.addf %225, %228 : vector<2x240xf32>
      %c40 = arith.constant 40 : index
      %230 = memref.load %arg2[%c40] : memref<256xf32, #tpu.memory_space<smem>>
      %231 = vector.broadcast %230 : f32 to vector<2x240xf32>
      %232 = arith.mulf %40, %231 : vector<2x240xf32>
      %233 = arith.addf %229, %232 : vector<2x240xf32>
      %c41 = arith.constant 41 : index
      %234 = memref.load %arg2[%c41] : memref<256xf32, #tpu.memory_space<smem>>
      %235 = vector.broadcast %234 : f32 to vector<2x240xf32>
      %236 = arith.mulf %42, %235 : vector<2x240xf32>
      %237 = arith.addf %233, %236 : vector<2x240xf32>
      %c42 = arith.constant 42 : index
      %238 = memref.load %arg2[%c42] : memref<256xf32, #tpu.memory_space<smem>>
      %239 = vector.broadcast %238 : f32 to vector<2x240xf32>
      %240 = arith.mulf %44, %239 : vector<2x240xf32>
      %241 = arith.addf %237, %240 : vector<2x240xf32>
      %c43 = arith.constant 43 : index
      %242 = memref.load %arg2[%c43] : memref<256xf32, #tpu.memory_space<smem>>
      %243 = vector.broadcast %242 : f32 to vector<2x240xf32>
      %244 = arith.mulf %46, %243 : vector<2x240xf32>
      %245 = arith.addf %241, %244 : vector<2x240xf32>
      %c44 = arith.constant 44 : index
      %246 = memref.load %arg2[%c44] : memref<256xf32, #tpu.memory_space<smem>>
      %247 = vector.broadcast %246 : f32 to vector<2x240xf32>
      %248 = arith.mulf %48, %247 : vector<2x240xf32>
      %249 = arith.addf %245, %248 : vector<2x240xf32>
      %c45 = arith.constant 45 : index
      %250 = memref.load %arg2[%c45] : memref<256xf32, #tpu.memory_space<smem>>
      %251 = vector.broadcast %250 : f32 to vector<2x240xf32>
      %252 = arith.mulf %50, %251 : vector<2x240xf32>
      %253 = arith.addf %249, %252 : vector<2x240xf32>
      %c46 = arith.constant 46 : index
      %254 = memref.load %arg2[%c46] : memref<256xf32, #tpu.memory_space<smem>>
      %255 = vector.broadcast %254 : f32 to vector<2x240xf32>
      %256 = arith.mulf %52, %255 : vector<2x240xf32>
      %257 = arith.addf %253, %256 : vector<2x240xf32>
      %c47 = arith.constant 47 : index
      %258 = memref.load %arg2[%c47] : memref<256xf32, #tpu.memory_space<smem>>
      %259 = vector.broadcast %258 : f32 to vector<2x240xf32>
      %260 = arith.mulf %54, %259 : vector<2x240xf32>
      %261 = arith.addf %257, %260 : vector<2x240xf32>
      %c2_32 = arith.constant 2 : index
      %262 = memref.load %arg3[%c2_32] : memref<16xf32, #tpu.memory_space<smem>>
      %263 = vector.broadcast %262 : f32 to vector<2x240xf32>
      %264 = arith.addf %261, %263 : vector<2x240xf32>
      %cst_33 = arith.constant 0.000000e+00 : f32
      %265 = vector.broadcast %cst_33 : f32 to vector<2x240xf32>
      %266 = arith.maximumf %264, %265 : vector<2x240xf32>
      %267 = arith.truncf %266 : vector<2x240xf32> to vector<2x240xbf16>
      %c0_34 = arith.constant 0 : index
      %c0_35 = arith.constant 0 : index
      %c480 = arith.constant 480 : index
      %268 = vector.load %arg11[%c0_34, %c0_35, %c480] : memref<5x2x768xbf16, #tpu.memory_space<vmem>>, vector<1x2x240xbf16>
      %269 = vector.shape_cast %268 : vector<1x2x240xbf16> to vector<2x240xbf16>
      %270 = vector.shape_cast %267 : vector<2x240xbf16> to vector<1x2x240xbf16>
      tpu.vector_store %arg11[%c0_34, %c0_35, %c480], %270 {strides = array<i32>} : memref<5x2x768xbf16, #tpu.memory_space<vmem>>, vector<1x2x240xbf16>,
      %c48 = arith.constant 48 : index
      %271 = memref.load %arg2[%c48] : memref<256xf32, #tpu.memory_space<smem>>
      %272 = vector.broadcast %271 : f32 to vector<2x240xf32>
      %273 = arith.mulf %24, %272 : vector<2x240xf32>
      %c49 = arith.constant 49 : index
      %274 = memref.load %arg2[%c49] : memref<256xf32, #tpu.memory_space<smem>>
      %275 = vector.broadcast %274 : f32 to vector<2x240xf32>
      %276 = arith.mulf %26, %275 : vector<2x240xf32>
      %277 = arith.addf %273, %276 : vector<2x240xf32>
      %c50 = arith.constant 50 : index
      %278 = memref.load %arg2[%c50] : memref<256xf32, #tpu.memory_space<smem>>
      %279 = vector.broadcast %278 : f32 to vector<2x240xf32>
      %280 = arith.mulf %28, %279 : vector<2x240xf32>
      %281 = arith.addf %277, %280 : vector<2x240xf32>
      %c51 = arith.constant 51 : index
      %282 = memref.load %arg2[%c51] : memref<256xf32, #tpu.memory_space<smem>>
      %283 = vector.broadcast %282 : f32 to vector<2x240xf32>
      %284 = arith.mulf %30, %283 : vector<2x240xf32>
      %285 = arith.addf %281, %284 : vector<2x240xf32>
      %c52 = arith.constant 52 : index
      %286 = memref.load %arg2[%c52] : memref<256xf32, #tpu.memory_space<smem>>
      %287 = vector.broadcast %286 : f32 to vector<2x240xf32>
      %288 = arith.mulf %32, %287 : vector<2x240xf32>
      %289 = arith.addf %285, %288 : vector<2x240xf32>
      %c53 = arith.constant 53 : index
      %290 = memref.load %arg2[%c53] : memref<256xf32, #tpu.memory_space<smem>>
      %291 = vector.broadcast %290 : f32 to vector<2x240xf32>
      %292 = arith.mulf %34, %291 : vector<2x240xf32>
      %293 = arith.addf %289, %292 : vector<2x240xf32>
      %c54 = arith.constant 54 : index
      %294 = memref.load %arg2[%c54] : memref<256xf32, #tpu.memory_space<smem>>
      %295 = vector.broadcast %294 : f32 to vector<2x240xf32>
      %296 = arith.mulf %36, %295 : vector<2x240xf32>
      %297 = arith.addf %293, %296 : vector<2x240xf32>
      %c55 = arith.constant 55 : index
      %298 = memref.load %arg2[%c55] : memref<256xf32, #tpu.memory_space<smem>>
      %299 = vector.broadcast %298 : f32 to vector<2x240xf32>
      %300 = arith.mulf %38, %299 : vector<2x240xf32>
      %301 = arith.addf %297, %300 : vector<2x240xf32>
      %c56 = arith.constant 56 : index
      %302 = memref.load %arg2[%c56] : memref<256xf32, #tpu.memory_space<smem>>
      %303 = vector.broadcast %302 : f32 to vector<2x240xf32>
      %304 = arith.mulf %40, %303 : vector<2x240xf32>
      %305 = arith.addf %301, %304 : vector<2x240xf32>
      %c57 = arith.constant 57 : index
      %306 = memref.load %arg2[%c57] : memref<256xf32, #tpu.memory_space<smem>>
      %307 = vector.broadcast %306 : f32 to vector<2x240xf32>
      %308 = arith.mulf %42, %307 : vector<2x240xf32>
      %309 = arith.addf %305, %308 : vector<2x240xf32>
      %c58 = arith.constant 58 : index
      %310 = memref.load %arg2[%c58] : memref<256xf32, #tpu.memory_space<smem>>
      %311 = vector.broadcast %310 : f32 to vector<2x240xf32>
      %312 = arith.mulf %44, %311 : vector<2x240xf32>
      %313 = arith.addf %309, %312 : vector<2x240xf32>
      %c59 = arith.constant 59 : index
      %314 = memref.load %arg2[%c59] : memref<256xf32, #tpu.memory_space<smem>>
      %315 = vector.broadcast %314 : f32 to vector<2x240xf32>
      %316 = arith.mulf %46, %315 : vector<2x240xf32>
      %317 = arith.addf %313, %316 : vector<2x240xf32>
      %c60 = arith.constant 60 : index
      %318 = memref.load %arg2[%c60] : memref<256xf32, #tpu.memory_space<smem>>
      %319 = vector.broadcast %318 : f32 to vector<2x240xf32>
      %320 = arith.mulf %48, %319 : vector<2x240xf32>
      %321 = arith.addf %317, %320 : vector<2x240xf32>
      %c61 = arith.constant 61 : index
      %322 = memref.load %arg2[%c61] : memref<256xf32, #tpu.memory_space<smem>>
      %323 = vector.broadcast %322 : f32 to vector<2x240xf32>
      %324 = arith.mulf %50, %323 : vector<2x240xf32>
      %325 = arith.addf %321, %324 : vector<2x240xf32>
      %c62 = arith.constant 62 : index
      %326 = memref.load %arg2[%c62] : memref<256xf32, #tpu.memory_space<smem>>
      %327 = vector.broadcast %326 : f32 to vector<2x240xf32>
      %328 = arith.mulf %52, %327 : vector<2x240xf32>
      %329 = arith.addf %325, %328 : vector<2x240xf32>
      %c63 = arith.constant 63 : index
      %330 = memref.load %arg2[%c63] : memref<256xf32, #tpu.memory_space<smem>>
      %331 = vector.broadcast %330 : f32 to vector<2x240xf32>
      %332 = arith.mulf %54, %331 : vector<2x240xf32>
      %333 = arith.addf %329, %332 : vector<2x240xf32>
      %c3_36 = arith.constant 3 : index
      %334 = memref.load %arg3[%c3_36] : memref<16xf32, #tpu.memory_space<smem>>
      %335 = vector.broadcast %334 : f32 to vector<2x240xf32>
      %336 = arith.addf %333, %335 : vector<2x240xf32>
      %cst_37 = arith.constant 0.000000e+00 : f32
      %337 = vector.broadcast %cst_37 : f32 to vector<2x240xf32>
      %338 = arith.maximumf %336, %337 : vector<2x240xf32>
      %339 = arith.truncf %338 : vector<2x240xf32> to vector<2x240xbf16>
      %340 = vector.extract_strided_slice %339 {offsets = [0, 0], sizes = [2, 48], strides = [1, 1]} : vector<2x240xbf16> to vector<2x48xbf16>
      %c0_38 = arith.constant 0 : index
      %c0_39 = arith.constant 0 : index
      %c720 = arith.constant 720 : index
      %341 = vector.load %arg11[%c0_38, %c0_39, %c720] : memref<5x2x768xbf16, #tpu.memory_space<vmem>>, vector<1x2x48xbf16>
      %342 = vector.shape_cast %341 : vector<1x2x48xbf16> to vector<2x48xbf16>
      %343 = vector.shape_cast %340 : vector<2x48xbf16> to vector<1x2x48xbf16>
      tpu.vector_store %arg11[%c0_38, %c0_39, %c720], %343 {strides = array<i32>} : memref<5x2x768xbf16, #tpu.memory_space<vmem>>, vector<1x2x48xbf16>,
      %344 = vector.extract_strided_slice %339 {offsets = [0, 48], sizes = [2, 192], strides = [1, 1]} : vector<2x240xbf16> to vector<2x192xbf16>
      %c1_40 = arith.constant 1 : index
      %c0_41 = arith.constant 0 : index
      %c0_42 = arith.constant 0 : index
      %345 = vector.load %arg11[%c1_40, %c0_41, %c0_42] : memref<5x2x768xbf16, #tpu.memory_space<vmem>>, vector<1x2x192xbf16>
      %346 = vector.shape_cast %345 : vector<1x2x192xbf16> to vector<2x192xbf16>
      %347 = vector.shape_cast %344 : vector<2x192xbf16> to vector<1x2x192xbf16>
      tpu.vector_store %arg11[%c1_40, %c0_41, %c0_42], %347 {strides = array<i32>} : memref<5x2x768xbf16, #tpu.memory_space<vmem>>, vector<1x2x192xbf16>,
      %c64 = arith.constant 64 : index
      %348 = memref.load %arg2[%c64] : memref<256xf32, #tpu.memory_space<smem>>
      %349 = vector.broadcast %348 : f32 to vector<2x240xf32>
      %350 = arith.mulf %24, %349 : vector<2x240xf32>
      %c65 = arith.constant 65 : index
      %351 = memref.load %arg2[%c65] : memref<256xf32, #tpu.memory_space<smem>>
      %352 = vector.broadcast %351 : f32 to vector<2x240xf32>
      %353 = arith.mulf %26, %352 : vector<2x240xf32>
      %354 = arith.addf %350, %353 : vector<2x240xf32>
      %c66 = arith.constant 66 : index
      %355 = memref.load %arg2[%c66] : memref<256xf32, #tpu.memory_space<smem>>
      %356 = vector.broadcast %355 : f32 to vector<2x240xf32>
      %357 = arith.mulf %28, %356 : vector<2x240xf32>
      %358 = arith.addf %354, %357 : vector<2x240xf32>
      %c67 = arith.constant 67 : index
      %359 = memref.load %arg2[%c67] : memref<256xf32, #tpu.memory_space<smem>>
      %360 = vector.broadcast %359 : f32 to vector<2x240xf32>
      %361 = arith.mulf %30, %360 : vector<2x240xf32>
      %362 = arith.addf %358, %361 : vector<2x240xf32>
      %c68 = arith.constant 68 : index
      %363 = memref.load %arg2[%c68] : memref<256xf32, #tpu.memory_space<smem>>
      %364 = vector.broadcast %363 : f32 to vector<2x240xf32>
      %365 = arith.mulf %32, %364 : vector<2x240xf32>
      %366 = arith.addf %362, %365 : vector<2x240xf32>
      %c69 = arith.constant 69 : index
      %367 = memref.load %arg2[%c69] : memref<256xf32, #tpu.memory_space<smem>>
      %368 = vector.broadcast %367 : f32 to vector<2x240xf32>
      %369 = arith.mulf %34, %368 : vector<2x240xf32>
      %370 = arith.addf %366, %369 : vector<2x240xf32>
      %c70 = arith.constant 70 : index
      %371 = memref.load %arg2[%c70] : memref<256xf32, #tpu.memory_space<smem>>
      %372 = vector.broadcast %371 : f32 to vector<2x240xf32>
      %373 = arith.mulf %36, %372 : vector<2x240xf32>
      %374 = arith.addf %370, %373 : vector<2x240xf32>
      %c71 = arith.constant 71 : index
      %375 = memref.load %arg2[%c71] : memref<256xf32, #tpu.memory_space<smem>>
      %376 = vector.broadcast %375 : f32 to vector<2x240xf32>
      %377 = arith.mulf %38, %376 : vector<2x240xf32>
      %378 = arith.addf %374, %377 : vector<2x240xf32>
      %c72 = arith.constant 72 : index
      %379 = memref.load %arg2[%c72] : memref<256xf32, #tpu.memory_space<smem>>
      %380 = vector.broadcast %379 : f32 to vector<2x240xf32>
      %381 = arith.mulf %40, %380 : vector<2x240xf32>
      %382 = arith.addf %378, %381 : vector<2x240xf32>
      %c73 = arith.constant 73 : index
      %383 = memref.load %arg2[%c73] : memref<256xf32, #tpu.memory_space<smem>>
      %384 = vector.broadcast %383 : f32 to vector<2x240xf32>
      %385 = arith.mulf %42, %384 : vector<2x240xf32>
      %386 = arith.addf %382, %385 : vector<2x240xf32>
      %c74 = arith.constant 74 : index
      %387 = memref.load %arg2[%c74] : memref<256xf32, #tpu.memory_space<smem>>
      %388 = vector.broadcast %387 : f32 to vector<2x240xf32>
      %389 = arith.mulf %44, %388 : vector<2x240xf32>
      %390 = arith.addf %386, %389 : vector<2x240xf32>
      %c75 = arith.constant 75 : index
      %391 = memref.load %arg2[%c75] : memref<256xf32, #tpu.memory_space<smem>>
      %392 = vector.broadcast %391 : f32 to vector<2x240xf32>
      %393 = arith.mulf %46, %392 : vector<2x240xf32>
      %394 = arith.addf %390, %393 : vector<2x240xf32>
      %c76 = arith.constant 76 : index
      %395 = memref.load %arg2[%c76] : memref<256xf32, #tpu.memory_space<smem>>
      %396 = vector.broadcast %395 : f32 to vector<2x240xf32>
      %397 = arith.mulf %48, %396 : vector<2x240xf32>
      %398 = arith.addf %394, %397 : vector<2x240xf32>
      %c77 = arith.constant 77 : index
      %399 = memref.load %arg2[%c77] : memref<256xf32, #tpu.memory_space<smem>>
      %400 = vector.broadcast %399 : f32 to vector<2x240xf32>
      %401 = arith.mulf %50, %400 : vector<2x240xf32>
      %402 = arith.addf %398, %401 : vector<2x240xf32>
      %c78 = arith.constant 78 : index
      %403 = memref.load %arg2[%c78] : memref<256xf32, #tpu.memory_space<smem>>
      %404 = vector.broadcast %403 : f32 to vector<2x240xf32>
      %405 = arith.mulf %52, %404 : vector<2x240xf32>
      %406 = arith.addf %402, %405 : vector<2x240xf32>
      %c79 = arith.constant 79 : index
      %407 = memref.load %arg2[%c79] : memref<256xf32, #tpu.memory_space<smem>>
      %408 = vector.broadcast %407 : f32 to vector<2x240xf32>
      %409 = arith.mulf %54, %408 : vector<2x240xf32>
      %410 = arith.addf %406, %409 : vector<2x240xf32>
      %c4_43 = arith.constant 4 : index
      %411 = memref.load %arg3[%c4_43] : memref<16xf32, #tpu.memory_space<smem>>
      %412 = vector.broadcast %411 : f32 to vector<2x240xf32>
      %413 = arith.addf %410, %412 : vector<2x240xf32>
      %cst_44 = arith.constant 0.000000e+00 : f32
      %414 = vector.broadcast %cst_44 : f32 to vector<2x240xf32>
      %415 = arith.maximumf %413, %414 : vector<2x240xf32>
      %416 = arith.truncf %415 : vector<2x240xf32> to vector<2x240xbf16>
      %c1_45 = arith.constant 1 : index
      %c0_46 = arith.constant 0 : index
      %c192 = arith.constant 192 : index
      %417 = vector.load %arg11[%c1_45, %c0_46, %c192] : memref<5x2x768xbf16, #tpu.memory_space<vmem>>, vector<1x2x240xbf16>
      %418 = vector.shape_cast %417 : vector<1x2x240xbf16> to vector<2x240xbf16>
      %419 = vector.shape_cast %416 : vector<2x240xbf16> to vector<1x2x240xbf16>
      tpu.vector_store %arg11[%c1_45, %c0_46, %c192], %419 {strides = array<i32>} : memref<5x2x768xbf16, #tpu.memory_space<vmem>>, vector<1x2x240xbf16>,
      %c80 = arith.constant 80 : index
      %420 = memref.load %arg2[%c80] : memref<256xf32, #tpu.memory_space<smem>>
      %421 = vector.broadcast %420 : f32 to vector<2x240xf32>
      %422 = arith.mulf %24, %421 : vector<2x240xf32>
      %c81 = arith.constant 81 : index
      %423 = memref.load %arg2[%c81] : memref<256xf32, #tpu.memory_space<smem>>
      %424 = vector.broadcast %423 : f32 to vector<2x240xf32>
      %425 = arith.mulf %26, %424 : vector<2x240xf32>
      %426 = arith.addf %422, %425 : vector<2x240xf32>
      %c82 = arith.constant 82 : index
      %427 = memref.load %arg2[%c82] : memref<256xf32, #tpu.memory_space<smem>>
      %428 = vector.broadcast %427 : f32 to vector<2x240xf32>
      %429 = arith.mulf %28, %428 : vector<2x240xf32>
      %430 = arith.addf %426, %429 : vector<2x240xf32>
      %c83 = arith.constant 83 : index
      %431 = memref.load %arg2[%c83] : memref<256xf32, #tpu.memory_space<smem>>
      %432 = vector.broadcast %431 : f32 to vector<2x240xf32>
      %433 = arith.mulf %30, %432 : vector<2x240xf32>
      %434 = arith.addf %430, %433 : vector<2x240xf32>
      %c84 = arith.constant 84 : index
      %435 = memref.load %arg2[%c84] : memref<256xf32, #tpu.memory_space<smem>>
      %436 = vector.broadcast %435 : f32 to vector<2x240xf32>
      %437 = arith.mulf %32, %436 : vector<2x240xf32>
      %438 = arith.addf %434, %437 : vector<2x240xf32>
      %c85 = arith.constant 85 : index
      %439 = memref.load %arg2[%c85] : memref<256xf32, #tpu.memory_space<smem>>
      %440 = vector.broadcast %439 : f32 to vector<2x240xf32>
      %441 = arith.mulf %34, %440 : vector<2x240xf32>
      %442 = arith.addf %438, %441 : vector<2x240xf32>
      %c86 = arith.constant 86 : index
      %443 = memref.load %arg2[%c86] : memref<256xf32, #tpu.memory_space<smem>>
      %444 = vector.broadcast %443 : f32 to vector<2x240xf32>
      %445 = arith.mulf %36, %444 : vector<2x240xf32>
      %446 = arith.addf %442, %445 : vector<2x240xf32>
      %c87 = arith.constant 87 : index
      %447 = memref.load %arg2[%c87] : memref<256xf32, #tpu.memory_space<smem>>
      %448 = vector.broadcast %447 : f32 to vector<2x240xf32>
      %449 = arith.mulf %38, %448 : vector<2x240xf32>
      %450 = arith.addf %446, %449 : vector<2x240xf32>
      %c88 = arith.constant 88 : index
      %451 = memref.load %arg2[%c88] : memref<256xf32, #tpu.memory_space<smem>>
      %452 = vector.broadcast %451 : f32 to vector<2x240xf32>
      %453 = arith.mulf %40, %452 : vector<2x240xf32>
      %454 = arith.addf %450, %453 : vector<2x240xf32>
      %c89 = arith.constant 89 : index
      %455 = memref.load %arg2[%c89] : memref<256xf32, #tpu.memory_space<smem>>
      %456 = vector.broadcast %455 : f32 to vector<2x240xf32>
      %457 = arith.mulf %42, %456 : vector<2x240xf32>
      %458 = arith.addf %454, %457 : vector<2x240xf32>
      %c90 = arith.constant 90 : index
      %459 = memref.load %arg2[%c90] : memref<256xf32, #tpu.memory_space<smem>>
      %460 = vector.broadcast %459 : f32 to vector<2x240xf32>
      %461 = arith.mulf %44, %460 : vector<2x240xf32>
      %462 = arith.addf %458, %461 : vector<2x240xf32>
      %c91 = arith.constant 91 : index
      %463 = memref.load %arg2[%c91] : memref<256xf32, #tpu.memory_space<smem>>
      %464 = vector.broadcast %463 : f32 to vector<2x240xf32>
      %465 = arith.mulf %46, %464 : vector<2x240xf32>
      %466 = arith.addf %462, %465 : vector<2x240xf32>
      %c92 = arith.constant 92 : index
      %467 = memref.load %arg2[%c92] : memref<256xf32, #tpu.memory_space<smem>>
      %468 = vector.broadcast %467 : f32 to vector<2x240xf32>
      %469 = arith.mulf %48, %468 : vector<2x240xf32>
      %470 = arith.addf %466, %469 : vector<2x240xf32>
      %c93 = arith.constant 93 : index
      %471 = memref.load %arg2[%c93] : memref<256xf32, #tpu.memory_space<smem>>
      %472 = vector.broadcast %471 : f32 to vector<2x240xf32>
      %473 = arith.mulf %50, %472 : vector<2x240xf32>
      %474 = arith.addf %470, %473 : vector<2x240xf32>
      %c94 = arith.constant 94 : index
      %475 = memref.load %arg2[%c94] : memref<256xf32, #tpu.memory_space<smem>>
      %476 = vector.broadcast %475 : f32 to vector<2x240xf32>
      %477 = arith.mulf %52, %476 : vector<2x240xf32>
      %478 = arith.addf %474, %477 : vector<2x240xf32>
      %c95 = arith.constant 95 : index
      %479 = memref.load %arg2[%c95] : memref<256xf32, #tpu.memory_space<smem>>
      %480 = vector.broadcast %479 : f32 to vector<2x240xf32>
      %481 = arith.mulf %54, %480 : vector<2x240xf32>
      %482 = arith.addf %478, %481 : vector<2x240xf32>
      %c5_47 = arith.constant 5 : index
      %483 = memref.load %arg3[%c5_47] : memref<16xf32, #tpu.memory_space<smem>>
      %484 = vector.broadcast %483 : f32 to vector<2x240xf32>
      %485 = arith.addf %482, %484 : vector<2x240xf32>
      %cst_48 = arith.constant 0.000000e+00 : f32
      %486 = vector.broadcast %cst_48 : f32 to vector<2x240xf32>
      %487 = arith.maximumf %485, %486 : vector<2x240xf32>
      %488 = arith.truncf %487 : vector<2x240xf32> to vector<2x240xbf16>
      %c1_49 = arith.constant 1 : index
      %c0_50 = arith.constant 0 : index
      %c432 = arith.constant 432 : index
      %489 = vector.load %arg11[%c1_49, %c0_50, %c432] : memref<5x2x768xbf16, #tpu.memory_space<vmem>>, vector<1x2x240xbf16>
      %490 = vector.shape_cast %489 : vector<1x2x240xbf16> to vector<2x240xbf16>
      %491 = vector.shape_cast %488 : vector<2x240xbf16> to vector<1x2x240xbf16>
      tpu.vector_store %arg11[%c1_49, %c0_50, %c432], %491 {strides = array<i32>} : memref<5x2x768xbf16, #tpu.memory_space<vmem>>, vector<1x2x240xbf16>,
      %c96 = arith.constant 96 : index
      %492 = memref.load %arg2[%c96] : memref<256xf32, #tpu.memory_space<smem>>
      %493 = vector.broadcast %492 : f32 to vector<2x240xf32>
      %494 = arith.mulf %24, %493 : vector<2x240xf32>
      %c97 = arith.constant 97 : index
      %495 = memref.load %arg2[%c97] : memref<256xf32, #tpu.memory_space<smem>>
      %496 = vector.broadcast %495 : f32 to vector<2x240xf32>
      %497 = arith.mulf %26, %496 : vector<2x240xf32>
      %498 = arith.addf %494, %497 : vector<2x240xf32>
      %c98 = arith.constant 98 : index
      %499 = memref.load %arg2[%c98] : memref<256xf32, #tpu.memory_space<smem>>
      %500 = vector.broadcast %499 : f32 to vector<2x240xf32>
      %501 = arith.mulf %28, %500 : vector<2x240xf32>
      %502 = arith.addf %498, %501 : vector<2x240xf32>
      %c99 = arith.constant 99 : index
      %503 = memref.load %arg2[%c99] : memref<256xf32, #tpu.memory_space<smem>>
      %504 = vector.broadcast %503 : f32 to vector<2x240xf32>
      %505 = arith.mulf %30, %504 : vector<2x240xf32>
      %506 = arith.addf %502, %505 : vector<2x240xf32>
      %c100 = arith.constant 100 : index
      %507 = memref.load %arg2[%c100] : memref<256xf32, #tpu.memory_space<smem>>
      %508 = vector.broadcast %507 : f32 to vector<2x240xf32>
      %509 = arith.mulf %32, %508 : vector<2x240xf32>
      %510 = arith.addf %506, %509 : vector<2x240xf32>
      %c101 = arith.constant 101 : index
      %511 = memref.load %arg2[%c101] : memref<256xf32, #tpu.memory_space<smem>>
      %512 = vector.broadcast %511 : f32 to vector<2x240xf32>
      %513 = arith.mulf %34, %512 : vector<2x240xf32>
      %514 = arith.addf %510, %513 : vector<2x240xf32>
      %c102 = arith.constant 102 : index
      %515 = memref.load %arg2[%c102] : memref<256xf32, #tpu.memory_space<smem>>
      %516 = vector.broadcast %515 : f32 to vector<2x240xf32>
      %517 = arith.mulf %36, %516 : vector<2x240xf32>
      %518 = arith.addf %514, %517 : vector<2x240xf32>
      %c103 = arith.constant 103 : index
      %519 = memref.load %arg2[%c103] : memref<256xf32, #tpu.memory_space<smem>>
      %520 = vector.broadcast %519 : f32 to vector<2x240xf32>
      %521 = arith.mulf %38, %520 : vector<2x240xf32>
      %522 = arith.addf %518, %521 : vector<2x240xf32>
      %c104 = arith.constant 104 : index
      %523 = memref.load %arg2[%c104] : memref<256xf32, #tpu.memory_space<smem>>
      %524 = vector.broadcast %523 : f32 to vector<2x240xf32>
      %525 = arith.mulf %40, %524 : vector<2x240xf32>
      %526 = arith.addf %522, %525 : vector<2x240xf32>
      %c105 = arith.constant 105 : index
      %527 = memref.load %arg2[%c105] : memref<256xf32, #tpu.memory_space<smem>>
      %528 = vector.broadcast %527 : f32 to vector<2x240xf32>
      %529 = arith.mulf %42, %528 : vector<2x240xf32>
      %530 = arith.addf %526, %529 : vector<2x240xf32>
      %c106 = arith.constant 106 : index
      %531 = memref.load %arg2[%c106] : memref<256xf32, #tpu.memory_space<smem>>
      %532 = vector.broadcast %531 : f32 to vector<2x240xf32>
      %533 = arith.mulf %44, %532 : vector<2x240xf32>
      %534 = arith.addf %530, %533 : vector<2x240xf32>
      %c107 = arith.constant 107 : index
      %535 = memref.load %arg2[%c107] : memref<256xf32, #tpu.memory_space<smem>>
      %536 = vector.broadcast %535 : f32 to vector<2x240xf32>
      %537 = arith.mulf %46, %536 : vector<2x240xf32>
      %538 = arith.addf %534, %537 : vector<2x240xf32>
      %c108 = arith.constant 108 : index
      %539 = memref.load %arg2[%c108] : memref<256xf32, #tpu.memory_space<smem>>
      %540 = vector.broadcast %539 : f32 to vector<2x240xf32>
      %541 = arith.mulf %48, %540 : vector<2x240xf32>
      %542 = arith.addf %538, %541 : vector<2x240xf32>
      %c109 = arith.constant 109 : index
      %543 = memref.load %arg2[%c109] : memref<256xf32, #tpu.memory_space<smem>>
      %544 = vector.broadcast %543 : f32 to vector<2x240xf32>
      %545 = arith.mulf %50, %544 : vector<2x240xf32>
      %546 = arith.addf %542, %545 : vector<2x240xf32>
      %c110 = arith.constant 110 : index
      %547 = memref.load %arg2[%c110] : memref<256xf32, #tpu.memory_space<smem>>
      %548 = vector.broadcast %547 : f32 to vector<2x240xf32>
      %549 = arith.mulf %52, %548 : vector<2x240xf32>
      %550 = arith.addf %546, %549 : vector<2x240xf32>
      %c111 = arith.constant 111 : index
      %551 = memref.load %arg2[%c111] : memref<256xf32, #tpu.memory_space<smem>>
      %552 = vector.broadcast %551 : f32 to vector<2x240xf32>
      %553 = arith.mulf %54, %552 : vector<2x240xf32>
      %554 = arith.addf %550, %553 : vector<2x240xf32>
      %c6_51 = arith.constant 6 : index
      %555 = memref.load %arg3[%c6_51] : memref<16xf32, #tpu.memory_space<smem>>
      %556 = vector.broadcast %555 : f32 to vector<2x240xf32>
      %557 = arith.addf %554, %556 : vector<2x240xf32>
      %cst_52 = arith.constant 0.000000e+00 : f32
      %558 = vector.broadcast %cst_52 : f32 to vector<2x240xf32>
      %559 = arith.maximumf %557, %558 : vector<2x240xf32>
      %560 = arith.truncf %559 : vector<2x240xf32> to vector<2x240xbf16>
      %561 = vector.extract_strided_slice %560 {offsets = [0, 0], sizes = [2, 96], strides = [1, 1]} : vector<2x240xbf16> to vector<2x96xbf16>
      %c1_53 = arith.constant 1 : index
      %c0_54 = arith.constant 0 : index
      %c672 = arith.constant 672 : index
      %562 = vector.load %arg11[%c1_53, %c0_54, %c672] : memref<5x2x768xbf16, #tpu.memory_space<vmem>>, vector<1x2x96xbf16>
      %563 = vector.shape_cast %562 : vector<1x2x96xbf16> to vector<2x96xbf16>
      %564 = vector.shape_cast %561 : vector<2x96xbf16> to vector<1x2x96xbf16>
      tpu.vector_store %arg11[%c1_53, %c0_54, %c672], %564 {strides = array<i32>} : memref<5x2x768xbf16, #tpu.memory_space<vmem>>, vector<1x2x96xbf16>,
      %565 = vector.extract_strided_slice %560 {offsets = [0, 96], sizes = [2, 144], strides = [1, 1]} : vector<2x240xbf16> to vector<2x144xbf16>
      %c2_55 = arith.constant 2 : index
      %c0_56 = arith.constant 0 : index
      %c0_57 = arith.constant 0 : index
      %566 = vector.load %arg11[%c2_55, %c0_56, %c0_57] : memref<5x2x768xbf16, #tpu.memory_space<vmem>>, vector<1x2x144xbf16>
      %567 = vector.shape_cast %566 : vector<1x2x144xbf16> to vector<2x144xbf16>
      %568 = vector.shape_cast %565 : vector<2x144xbf16> to vector<1x2x144xbf16>
      tpu.vector_store %arg11[%c2_55, %c0_56, %c0_57], %568 {strides = array<i32>} : memref<5x2x768xbf16, #tpu.memory_space<vmem>>, vector<1x2x144xbf16>,
      %c112 = arith.constant 112 : index
      %569 = memref.load %arg2[%c112] : memref<256xf32, #tpu.memory_space<smem>>
      %570 = vector.broadcast %569 : f32 to vector<2x240xf32>
      %571 = arith.mulf %24, %570 : vector<2x240xf32>
      %c113 = arith.constant 113 : index
      %572 = memref.load %arg2[%c113] : memref<256xf32, #tpu.memory_space<smem>>
      %573 = vector.broadcast %572 : f32 to vector<2x240xf32>
      %574 = arith.mulf %26, %573 : vector<2x240xf32>
      %575 = arith.addf %571, %574 : vector<2x240xf32>
      %c114 = arith.constant 114 : index
      %576 = memref.load %arg2[%c114] : memref<256xf32, #tpu.memory_space<smem>>
      %577 = vector.broadcast %576 : f32 to vector<2x240xf32>
      %578 = arith.mulf %28, %577 : vector<2x240xf32>
      %579 = arith.addf %575, %578 : vector<2x240xf32>
      %c115 = arith.constant 115 : index
      %580 = memref.load %arg2[%c115] : memref<256xf32, #tpu.memory_space<smem>>
      %581 = vector.broadcast %580 : f32 to vector<2x240xf32>
      %582 = arith.mulf %30, %581 : vector<2x240xf32>
      %583 = arith.addf %579, %582 : vector<2x240xf32>
      %c116 = arith.constant 116 : index
      %584 = memref.load %arg2[%c116] : memref<256xf32, #tpu.memory_space<smem>>
      %585 = vector.broadcast %584 : f32 to vector<2x240xf32>
      %586 = arith.mulf %32, %585 : vector<2x240xf32>
      %587 = arith.addf %583, %586 : vector<2x240xf32>
      %c117 = arith.constant 117 : index
      %588 = memref.load %arg2[%c117] : memref<256xf32, #tpu.memory_space<smem>>
      %589 = vector.broadcast %588 : f32 to vector<2x240xf32>
      %590 = arith.mulf %34, %589 : vector<2x240xf32>
      %591 = arith.addf %587, %590 : vector<2x240xf32>
      %c118 = arith.constant 118 : index
      %592 = memref.load %arg2[%c118] : memref<256xf32, #tpu.memory_space<smem>>
      %593 = vector.broadcast %592 : f32 to vector<2x240xf32>
      %594 = arith.mulf %36, %593 : vector<2x240xf32>
      %595 = arith.addf %591, %594 : vector<2x240xf32>
      %c119 = arith.constant 119 : index
      %596 = memref.load %arg2[%c119] : memref<256xf32, #tpu.memory_space<smem>>
      %597 = vector.broadcast %596 : f32 to vector<2x240xf32>
      %598 = arith.mulf %38, %597 : vector<2x240xf32>
      %599 = arith.addf %595, %598 : vector<2x240xf32>
      %c120 = arith.constant 120 : index
      %600 = memref.load %arg2[%c120] : memref<256xf32, #tpu.memory_space<smem>>
      %601 = vector.broadcast %600 : f32 to vector<2x240xf32>
      %602 = arith.mulf %40, %601 : vector<2x240xf32>
      %603 = arith.addf %599, %602 : vector<2x240xf32>
      %c121 = arith.constant 121 : index
      %604 = memref.load %arg2[%c121] : memref<256xf32, #tpu.memory_space<smem>>
      %605 = vector.broadcast %604 : f32 to vector<2x240xf32>
      %606 = arith.mulf %42, %605 : vector<2x240xf32>
      %607 = arith.addf %603, %606 : vector<2x240xf32>
      %c122 = arith.constant 122 : index
      %608 = memref.load %arg2[%c122] : memref<256xf32, #tpu.memory_space<smem>>
      %609 = vector.broadcast %608 : f32 to vector<2x240xf32>
      %610 = arith.mulf %44, %609 : vector<2x240xf32>
      %611 = arith.addf %607, %610 : vector<2x240xf32>
      %c123 = arith.constant 123 : index
      %612 = memref.load %arg2[%c123] : memref<256xf32, #tpu.memory_space<smem>>
      %613 = vector.broadcast %612 : f32 to vector<2x240xf32>
      %614 = arith.mulf %46, %613 : vector<2x240xf32>
      %615 = arith.addf %611, %614 : vector<2x240xf32>
      %c124 = arith.constant 124 : index
      %616 = memref.load %arg2[%c124] : memref<256xf32, #tpu.memory_space<smem>>
      %617 = vector.broadcast %616 : f32 to vector<2x240xf32>
      %618 = arith.mulf %48, %617 : vector<2x240xf32>
      %619 = arith.addf %615, %618 : vector<2x240xf32>
      %c125 = arith.constant 125 : index
      %620 = memref.load %arg2[%c125] : memref<256xf32, #tpu.memory_space<smem>>
      %621 = vector.broadcast %620 : f32 to vector<2x240xf32>
      %622 = arith.mulf %50, %621 : vector<2x240xf32>
      %623 = arith.addf %619, %622 : vector<2x240xf32>
      %c126 = arith.constant 126 : index
      %624 = memref.load %arg2[%c126] : memref<256xf32, #tpu.memory_space<smem>>
      %625 = vector.broadcast %624 : f32 to vector<2x240xf32>
      %626 = arith.mulf %52, %625 : vector<2x240xf32>
      %627 = arith.addf %623, %626 : vector<2x240xf32>
      %c127 = arith.constant 127 : index
      %628 = memref.load %arg2[%c127] : memref<256xf32, #tpu.memory_space<smem>>
      %629 = vector.broadcast %628 : f32 to vector<2x240xf32>
      %630 = arith.mulf %54, %629 : vector<2x240xf32>
      %631 = arith.addf %627, %630 : vector<2x240xf32>
      %c7_58 = arith.constant 7 : index
      %632 = memref.load %arg3[%c7_58] : memref<16xf32, #tpu.memory_space<smem>>
      %633 = vector.broadcast %632 : f32 to vector<2x240xf32>
      %634 = arith.addf %631, %633 : vector<2x240xf32>
      %cst_59 = arith.constant 0.000000e+00 : f32
      %635 = vector.broadcast %cst_59 : f32 to vector<2x240xf32>
      %636 = arith.maximumf %634, %635 : vector<2x240xf32>
      %637 = arith.truncf %636 : vector<2x240xf32> to vector<2x240xbf16>
      %c2_60 = arith.constant 2 : index
      %c0_61 = arith.constant 0 : index
      %c144 = arith.constant 144 : index
      %638 = vector.load %arg11[%c2_60, %c0_61, %c144] : memref<5x2x768xbf16, #tpu.memory_space<vmem>>, vector<1x2x240xbf16>
      %639 = vector.shape_cast %638 : vector<1x2x240xbf16> to vector<2x240xbf16>
      %640 = vector.shape_cast %637 : vector<2x240xbf16> to vector<1x2x240xbf16>
      tpu.vector_store %arg11[%c2_60, %c0_61, %c144], %640 {strides = array<i32>} : memref<5x2x768xbf16, #tpu.memory_space<vmem>>, vector<1x2x240xbf16>,
      %c128 = arith.constant 128 : index
      %641 = memref.load %arg2[%c128] : memref<256xf32, #tpu.memory_space<smem>>
      %642 = vector.broadcast %641 : f32 to vector<2x240xf32>
      %643 = arith.mulf %24, %642 : vector<2x240xf32>
      %c129 = arith.constant 129 : index
      %644 = memref.load %arg2[%c129] : memref<256xf32, #tpu.memory_space<smem>>
      %645 = vector.broadcast %644 : f32 to vector<2x240xf32>
      %646 = arith.mulf %26, %645 : vector<2x240xf32>
      %647 = arith.addf %643, %646 : vector<2x240xf32>
      %c130 = arith.constant 130 : index
      %648 = memref.load %arg2[%c130] : memref<256xf32, #tpu.memory_space<smem>>
      %649 = vector.broadcast %648 : f32 to vector<2x240xf32>
      %650 = arith.mulf %28, %649 : vector<2x240xf32>
      %651 = arith.addf %647, %650 : vector<2x240xf32>
      %c131 = arith.constant 131 : index
      %652 = memref.load %arg2[%c131] : memref<256xf32, #tpu.memory_space<smem>>
      %653 = vector.broadcast %652 : f32 to vector<2x240xf32>
      %654 = arith.mulf %30, %653 : vector<2x240xf32>
      %655 = arith.addf %651, %654 : vector<2x240xf32>
      %c132 = arith.constant 132 : index
      %656 = memref.load %arg2[%c132] : memref<256xf32, #tpu.memory_space<smem>>
      %657 = vector.broadcast %656 : f32 to vector<2x240xf32>
      %658 = arith.mulf %32, %657 : vector<2x240xf32>
      %659 = arith.addf %655, %658 : vector<2x240xf32>
      %c133 = arith.constant 133 : index
      %660 = memref.load %arg2[%c133] : memref<256xf32, #tpu.memory_space<smem>>
      %661 = vector.broadcast %660 : f32 to vector<2x240xf32>
      %662 = arith.mulf %34, %661 : vector<2x240xf32>
      %663 = arith.addf %659, %662 : vector<2x240xf32>
      %c134 = arith.constant 134 : index
      %664 = memref.load %arg2[%c134] : memref<256xf32, #tpu.memory_space<smem>>
      %665 = vector.broadcast %664 : f32 to vector<2x240xf32>
      %666 = arith.mulf %36, %665 : vector<2x240xf32>
      %667 = arith.addf %663, %666 : vector<2x240xf32>
      %c135 = arith.constant 135 : index
      %668 = memref.load %arg2[%c135] : memref<256xf32, #tpu.memory_space<smem>>
      %669 = vector.broadcast %668 : f32 to vector<2x240xf32>
      %670 = arith.mulf %38, %669 : vector<2x240xf32>
      %671 = arith.addf %667, %670 : vector<2x240xf32>
      %c136 = arith.constant 136 : index
      %672 = memref.load %arg2[%c136] : memref<256xf32, #tpu.memory_space<smem>>
      %673 = vector.broadcast %672 : f32 to vector<2x240xf32>
      %674 = arith.mulf %40, %673 : vector<2x240xf32>
      %675 = arith.addf %671, %674 : vector<2x240xf32>
      %c137 = arith.constant 137 : index
      %676 = memref.load %arg2[%c137] : memref<256xf32, #tpu.memory_space<smem>>
      %677 = vector.broadcast %676 : f32 to vector<2x240xf32>
      %678 = arith.mulf %42, %677 : vector<2x240xf32>
      %679 = arith.addf %675, %678 : vector<2x240xf32>
      %c138 = arith.constant 138 : index
      %680 = memref.load %arg2[%c138] : memref<256xf32, #tpu.memory_space<smem>>
      %681 = vector.broadcast %680 : f32 to vector<2x240xf32>
      %682 = arith.mulf %44, %681 : vector<2x240xf32>
      %683 = arith.addf %679, %682 : vector<2x240xf32>
      %c139 = arith.constant 139 : index
      %684 = memref.load %arg2[%c139] : memref<256xf32, #tpu.memory_space<smem>>
      %685 = vector.broadcast %684 : f32 to vector<2x240xf32>
      %686 = arith.mulf %46, %685 : vector<2x240xf32>
      %687 = arith.addf %683, %686 : vector<2x240xf32>
      %c140 = arith.constant 140 : index
      %688 = memref.load %arg2[%c140] : memref<256xf32, #tpu.memory_space<smem>>
      %689 = vector.broadcast %688 : f32 to vector<2x240xf32>
      %690 = arith.mulf %48, %689 : vector<2x240xf32>
      %691 = arith.addf %687, %690 : vector<2x240xf32>
      %c141 = arith.constant 141 : index
      %692 = memref.load %arg2[%c141] : memref<256xf32, #tpu.memory_space<smem>>
      %693 = vector.broadcast %692 : f32 to vector<2x240xf32>
      %694 = arith.mulf %50, %693 : vector<2x240xf32>
      %695 = arith.addf %691, %694 : vector<2x240xf32>
      %c142 = arith.constant 142 : index
      %696 = memref.load %arg2[%c142] : memref<256xf32, #tpu.memory_space<smem>>
      %697 = vector.broadcast %696 : f32 to vector<2x240xf32>
      %698 = arith.mulf %52, %697 : vector<2x240xf32>
      %699 = arith.addf %695, %698 : vector<2x240xf32>
      %c143 = arith.constant 143 : index
      %700 = memref.load %arg2[%c143] : memref<256xf32, #tpu.memory_space<smem>>
      %701 = vector.broadcast %700 : f32 to vector<2x240xf32>
      %702 = arith.mulf %54, %701 : vector<2x240xf32>
      %703 = arith.addf %699, %702 : vector<2x240xf32>
      %c8_62 = arith.constant 8 : index
      %704 = memref.load %arg3[%c8_62] : memref<16xf32, #tpu.memory_space<smem>>
      %705 = vector.broadcast %704 : f32 to vector<2x240xf32>
      %706 = arith.addf %703, %705 : vector<2x240xf32>
      %cst_63 = arith.constant 0.000000e+00 : f32
      %707 = vector.broadcast %cst_63 : f32 to vector<2x240xf32>
      %708 = arith.maximumf %706, %707 : vector<2x240xf32>
      %709 = arith.truncf %708 : vector<2x240xf32> to vector<2x240xbf16>
      %c2_64 = arith.constant 2 : index
      %c0_65 = arith.constant 0 : index
      %c384 = arith.constant 384 : index
      %710 = vector.load %arg11[%c2_64, %c0_65, %c384] : memref<5x2x768xbf16, #tpu.memory_space<vmem>>, vector<1x2x240xbf16>
      %711 = vector.shape_cast %710 : vector<1x2x240xbf16> to vector<2x240xbf16>
      %712 = vector.shape_cast %709 : vector<2x240xbf16> to vector<1x2x240xbf16>
      tpu.vector_store %arg11[%c2_64, %c0_65, %c384], %712 {strides = array<i32>} : memref<5x2x768xbf16, #tpu.memory_space<vmem>>, vector<1x2x240xbf16>,
      %c144_66 = arith.constant 144 : index
      %713 = memref.load %arg2[%c144_66] : memref<256xf32, #tpu.memory_space<smem>>
      %714 = vector.broadcast %713 : f32 to vector<2x240xf32>
      %715 = arith.mulf %24, %714 : vector<2x240xf32>
      %c145 = arith.constant 145 : index
      %716 = memref.load %arg2[%c145] : memref<256xf32, #tpu.memory_space<smem>>
      %717 = vector.broadcast %716 : f32 to vector<2x240xf32>
      %718 = arith.mulf %26, %717 : vector<2x240xf32>
      %719 = arith.addf %715, %718 : vector<2x240xf32>
      %c146 = arith.constant 146 : index
      %720 = memref.load %arg2[%c146] : memref<256xf32, #tpu.memory_space<smem>>
      %721 = vector.broadcast %720 : f32 to vector<2x240xf32>
      %722 = arith.mulf %28, %721 : vector<2x240xf32>
      %723 = arith.addf %719, %722 : vector<2x240xf32>
      %c147 = arith.constant 147 : index
      %724 = memref.load %arg2[%c147] : memref<256xf32, #tpu.memory_space<smem>>
      %725 = vector.broadcast %724 : f32 to vector<2x240xf32>
      %726 = arith.mulf %30, %725 : vector<2x240xf32>
      %727 = arith.addf %723, %726 : vector<2x240xf32>
      %c148 = arith.constant 148 : index
      %728 = memref.load %arg2[%c148] : memref<256xf32, #tpu.memory_space<smem>>
      %729 = vector.broadcast %728 : f32 to vector<2x240xf32>
      %730 = arith.mulf %32, %729 : vector<2x240xf32>
      %731 = arith.addf %727, %730 : vector<2x240xf32>
      %c149 = arith.constant 149 : index
      %732 = memref.load %arg2[%c149] : memref<256xf32, #tpu.memory_space<smem>>
      %733 = vector.broadcast %732 : f32 to vector<2x240xf32>
      %734 = arith.mulf %34, %733 : vector<2x240xf32>
      %735 = arith.addf %731, %734 : vector<2x240xf32>
      %c150 = arith.constant 150 : index
      %736 = memref.load %arg2[%c150] : memref<256xf32, #tpu.memory_space<smem>>
      %737 = vector.broadcast %736 : f32 to vector<2x240xf32>
      %738 = arith.mulf %36, %737 : vector<2x240xf32>
      %739 = arith.addf %735, %738 : vector<2x240xf32>
      %c151 = arith.constant 151 : index
      %740 = memref.load %arg2[%c151] : memref<256xf32, #tpu.memory_space<smem>>
      %741 = vector.broadcast %740 : f32 to vector<2x240xf32>
      %742 = arith.mulf %38, %741 : vector<2x240xf32>
      %743 = arith.addf %739, %742 : vector<2x240xf32>
      %c152 = arith.constant 152 : index
      %744 = memref.load %arg2[%c152] : memref<256xf32, #tpu.memory_space<smem>>
      %745 = vector.broadcast %744 : f32 to vector<2x240xf32>
      %746 = arith.mulf %40, %745 : vector<2x240xf32>
      %747 = arith.addf %743, %746 : vector<2x240xf32>
      %c153 = arith.constant 153 : index
      %748 = memref.load %arg2[%c153] : memref<256xf32, #tpu.memory_space<smem>>
      %749 = vector.broadcast %748 : f32 to vector<2x240xf32>
      %750 = arith.mulf %42, %749 : vector<2x240xf32>
      %751 = arith.addf %747, %750 : vector<2x240xf32>
      %c154 = arith.constant 154 : index
      %752 = memref.load %arg2[%c154] : memref<256xf32, #tpu.memory_space<smem>>
      %753 = vector.broadcast %752 : f32 to vector<2x240xf32>
      %754 = arith.mulf %44, %753 : vector<2x240xf32>
      %755 = arith.addf %751, %754 : vector<2x240xf32>
      %c155 = arith.constant 155 : index
      %756 = memref.load %arg2[%c155] : memref<256xf32, #tpu.memory_space<smem>>
      %757 = vector.broadcast %756 : f32 to vector<2x240xf32>
      %758 = arith.mulf %46, %757 : vector<2x240xf32>
      %759 = arith.addf %755, %758 : vector<2x240xf32>
      %c156 = arith.constant 156 : index
      %760 = memref.load %arg2[%c156] : memref<256xf32, #tpu.memory_space<smem>>
      %761 = vector.broadcast %760 : f32 to vector<2x240xf32>
      %762 = arith.mulf %48, %761 : vector<2x240xf32>
      %763 = arith.addf %759, %762 : vector<2x240xf32>
      %c157 = arith.constant 157 : index
      %764 = memref.load %arg2[%c157] : memref<256xf32, #tpu.memory_space<smem>>
      %765 = vector.broadcast %764 : f32 to vector<2x240xf32>
      %766 = arith.mulf %50, %765 : vector<2x240xf32>
      %767 = arith.addf %763, %766 : vector<2x240xf32>
      %c158 = arith.constant 158 : index
      %768 = memref.load %arg2[%c158] : memref<256xf32, #tpu.memory_space<smem>>
      %769 = vector.broadcast %768 : f32 to vector<2x240xf32>
      %770 = arith.mulf %52, %769 : vector<2x240xf32>
      %771 = arith.addf %767, %770 : vector<2x240xf32>
      %c159 = arith.constant 159 : index
      %772 = memref.load %arg2[%c159] : memref<256xf32, #tpu.memory_space<smem>>
      %773 = vector.broadcast %772 : f32 to vector<2x240xf32>
      %774 = arith.mulf %54, %773 : vector<2x240xf32>
      %775 = arith.addf %771, %774 : vector<2x240xf32>
      %c9_67 = arith.constant 9 : index
      %776 = memref.load %arg3[%c9_67] : memref<16xf32, #tpu.memory_space<smem>>
      %777 = vector.broadcast %776 : f32 to vector<2x240xf32>
      %778 = arith.addf %775, %777 : vector<2x240xf32>
      %cst_68 = arith.constant 0.000000e+00 : f32
      %779 = vector.broadcast %cst_68 : f32 to vector<2x240xf32>
      %780 = arith.maximumf %778, %779 : vector<2x240xf32>
      %781 = arith.truncf %780 : vector<2x240xf32> to vector<2x240xbf16>
      %782 = vector.extract_strided_slice %781 {offsets = [0, 0], sizes = [2, 144], strides = [1, 1]} : vector<2x240xbf16> to vector<2x144xbf16>
      %c2_69 = arith.constant 2 : index
      %c0_70 = arith.constant 0 : index
      %c624 = arith.constant 624 : index
      %783 = vector.load %arg11[%c2_69, %c0_70, %c624] : memref<5x2x768xbf16, #tpu.memory_space<vmem>>, vector<1x2x144xbf16>
      %784 = vector.shape_cast %783 : vector<1x2x144xbf16> to vector<2x144xbf16>
      %785 = vector.shape_cast %782 : vector<2x144xbf16> to vector<1x2x144xbf16>
      tpu.vector_store %arg11[%c2_69, %c0_70, %c624], %785 {strides = array<i32>} : memref<5x2x768xbf16, #tpu.memory_space<vmem>>, vector<1x2x144xbf16>,
      %786 = vector.extract_strided_slice %781 {offsets = [0, 144], sizes = [2, 96], strides = [1, 1]} : vector<2x240xbf16> to vector<2x96xbf16>
      %c3_71 = arith.constant 3 : index
      %c0_72 = arith.constant 0 : index
      %c0_73 = arith.constant 0 : index
      %787 = vector.load %arg11[%c3_71, %c0_72, %c0_73] : memref<5x2x768xbf16, #tpu.memory_space<vmem>>, vector<1x2x96xbf16>
      %788 = vector.shape_cast %787 : vector<1x2x96xbf16> to vector<2x96xbf16>
      %789 = vector.shape_cast %786 : vector<2x96xbf16> to vector<1x2x96xbf16>
      tpu.vector_store %arg11[%c3_71, %c0_72, %c0_73], %789 {strides = array<i32>} : memref<5x2x768xbf16, #tpu.memory_space<vmem>>, vector<1x2x96xbf16>,
      %c160 = arith.constant 160 : index
      %790 = memref.load %arg2[%c160] : memref<256xf32, #tpu.memory_space<smem>>
      %791 = vector.broadcast %790 : f32 to vector<2x240xf32>
      %792 = arith.mulf %24, %791 : vector<2x240xf32>
      %c161 = arith.constant 161 : index
      %793 = memref.load %arg2[%c161] : memref<256xf32, #tpu.memory_space<smem>>
      %794 = vector.broadcast %793 : f32 to vector<2x240xf32>
      %795 = arith.mulf %26, %794 : vector<2x240xf32>
      %796 = arith.addf %792, %795 : vector<2x240xf32>
      %c162 = arith.constant 162 : index
      %797 = memref.load %arg2[%c162] : memref<256xf32, #tpu.memory_space<smem>>
      %798 = vector.broadcast %797 : f32 to vector<2x240xf32>
      %799 = arith.mulf %28, %798 : vector<2x240xf32>
      %800 = arith.addf %796, %799 : vector<2x240xf32>
      %c163 = arith.constant 163 : index
      %801 = memref.load %arg2[%c163] : memref<256xf32, #tpu.memory_space<smem>>
      %802 = vector.broadcast %801 : f32 to vector<2x240xf32>
      %803 = arith.mulf %30, %802 : vector<2x240xf32>
      %804 = arith.addf %800, %803 : vector<2x240xf32>
      %c164 = arith.constant 164 : index
      %805 = memref.load %arg2[%c164] : memref<256xf32, #tpu.memory_space<smem>>
      %806 = vector.broadcast %805 : f32 to vector<2x240xf32>
      %807 = arith.mulf %32, %806 : vector<2x240xf32>
      %808 = arith.addf %804, %807 : vector<2x240xf32>
      %c165 = arith.constant 165 : index
      %809 = memref.load %arg2[%c165] : memref<256xf32, #tpu.memory_space<smem>>
      %810 = vector.broadcast %809 : f32 to vector<2x240xf32>
      %811 = arith.mulf %34, %810 : vector<2x240xf32>
      %812 = arith.addf %808, %811 : vector<2x240xf32>
      %c166 = arith.constant 166 : index
      %813 = memref.load %arg2[%c166] : memref<256xf32, #tpu.memory_space<smem>>
      %814 = vector.broadcast %813 : f32 to vector<2x240xf32>
      %815 = arith.mulf %36, %814 : vector<2x240xf32>
      %816 = arith.addf %812, %815 : vector<2x240xf32>
      %c167 = arith.constant 167 : index
      %817 = memref.load %arg2[%c167] : memref<256xf32, #tpu.memory_space<smem>>
      %818 = vector.broadcast %817 : f32 to vector<2x240xf32>
      %819 = arith.mulf %38, %818 : vector<2x240xf32>
      %820 = arith.addf %816, %819 : vector<2x240xf32>
      %c168 = arith.constant 168 : index
      %821 = memref.load %arg2[%c168] : memref<256xf32, #tpu.memory_space<smem>>
      %822 = vector.broadcast %821 : f32 to vector<2x240xf32>
      %823 = arith.mulf %40, %822 : vector<2x240xf32>
      %824 = arith.addf %820, %823 : vector<2x240xf32>
      %c169 = arith.constant 169 : index
      %825 = memref.load %arg2[%c169] : memref<256xf32, #tpu.memory_space<smem>>
      %826 = vector.broadcast %825 : f32 to vector<2x240xf32>
      %827 = arith.mulf %42, %826 : vector<2x240xf32>
      %828 = arith.addf %824, %827 : vector<2x240xf32>
      %c170 = arith.constant 170 : index
      %829 = memref.load %arg2[%c170] : memref<256xf32, #tpu.memory_space<smem>>
      %830 = vector.broadcast %829 : f32 to vector<2x240xf32>
      %831 = arith.mulf %44, %830 : vector<2x240xf32>
      %832 = arith.addf %828, %831 : vector<2x240xf32>
      %c171 = arith.constant 171 : index
      %833 = memref.load %arg2[%c171] : memref<256xf32, #tpu.memory_space<smem>>
      %834 = vector.broadcast %833 : f32 to vector<2x240xf32>
      %835 = arith.mulf %46, %834 : vector<2x240xf32>
      %836 = arith.addf %832, %835 : vector<2x240xf32>
      %c172 = arith.constant 172 : index
      %837 = memref.load %arg2[%c172] : memref<256xf32, #tpu.memory_space<smem>>
      %838 = vector.broadcast %837 : f32 to vector<2x240xf32>
      %839 = arith.mulf %48, %838 : vector<2x240xf32>
      %840 = arith.addf %836, %839 : vector<2x240xf32>
      %c173 = arith.constant 173 : index
      %841 = memref.load %arg2[%c173] : memref<256xf32, #tpu.memory_space<smem>>
      %842 = vector.broadcast %841 : f32 to vector<2x240xf32>
      %843 = arith.mulf %50, %842 : vector<2x240xf32>
      %844 = arith.addf %840, %843 : vector<2x240xf32>
      %c174 = arith.constant 174 : index
      %845 = memref.load %arg2[%c174] : memref<256xf32, #tpu.memory_space<smem>>
      %846 = vector.broadcast %845 : f32 to vector<2x240xf32>
      %847 = arith.mulf %52, %846 : vector<2x240xf32>
      %848 = arith.addf %844, %847 : vector<2x240xf32>
      %c175 = arith.constant 175 : index
      %849 = memref.load %arg2[%c175] : memref<256xf32, #tpu.memory_space<smem>>
      %850 = vector.broadcast %849 : f32 to vector<2x240xf32>
      %851 = arith.mulf %54, %850 : vector<2x240xf32>
      %852 = arith.addf %848, %851 : vector<2x240xf32>
      %c10_74 = arith.constant 10 : index
      %853 = memref.load %arg3[%c10_74] : memref<16xf32, #tpu.memory_space<smem>>
      %854 = vector.broadcast %853 : f32 to vector<2x240xf32>
      %855 = arith.addf %852, %854 : vector<2x240xf32>
      %cst_75 = arith.constant 0.000000e+00 : f32
      %856 = vector.broadcast %cst_75 : f32 to vector<2x240xf32>
      %857 = arith.maximumf %855, %856 : vector<2x240xf32>
      %858 = arith.truncf %857 : vector<2x240xf32> to vector<2x240xbf16>
      %c3_76 = arith.constant 3 : index
      %c0_77 = arith.constant 0 : index
      %c96_78 = arith.constant 96 : index
      %859 = vector.load %arg11[%c3_76, %c0_77, %c96_78] : memref<5x2x768xbf16, #tpu.memory_space<vmem>>, vector<1x2x240xbf16>
      %860 = vector.shape_cast %859 : vector<1x2x240xbf16> to vector<2x240xbf16>
      %861 = vector.shape_cast %858 : vector<2x240xbf16> to vector<1x2x240xbf16>
      tpu.vector_store %arg11[%c3_76, %c0_77, %c96_78], %861 {strides = array<i32>} : memref<5x2x768xbf16, #tpu.memory_space<vmem>>, vector<1x2x240xbf16>,
      %c176 = arith.constant 176 : index
      %862 = memref.load %arg2[%c176] : memref<256xf32, #tpu.memory_space<smem>>
      %863 = vector.broadcast %862 : f32 to vector<2x240xf32>
      %864 = arith.mulf %24, %863 : vector<2x240xf32>
      %c177 = arith.constant 177 : index
      %865 = memref.load %arg2[%c177] : memref<256xf32, #tpu.memory_space<smem>>
      %866 = vector.broadcast %865 : f32 to vector<2x240xf32>
      %867 = arith.mulf %26, %866 : vector<2x240xf32>
      %868 = arith.addf %864, %867 : vector<2x240xf32>
      %c178 = arith.constant 178 : index
      %869 = memref.load %arg2[%c178] : memref<256xf32, #tpu.memory_space<smem>>
      %870 = vector.broadcast %869 : f32 to vector<2x240xf32>
      %871 = arith.mulf %28, %870 : vector<2x240xf32>
      %872 = arith.addf %868, %871 : vector<2x240xf32>
      %c179 = arith.constant 179 : index
      %873 = memref.load %arg2[%c179] : memref<256xf32, #tpu.memory_space<smem>>
      %874 = vector.broadcast %873 : f32 to vector<2x240xf32>
      %875 = arith.mulf %30, %874 : vector<2x240xf32>
      %876 = arith.addf %872, %875 : vector<2x240xf32>
      %c180 = arith.constant 180 : index
      %877 = memref.load %arg2[%c180] : memref<256xf32, #tpu.memory_space<smem>>
      %878 = vector.broadcast %877 : f32 to vector<2x240xf32>
      %879 = arith.mulf %32, %878 : vector<2x240xf32>
      %880 = arith.addf %876, %879 : vector<2x240xf32>
      %c181 = arith.constant 181 : index
      %881 = memref.load %arg2[%c181] : memref<256xf32, #tpu.memory_space<smem>>
      %882 = vector.broadcast %881 : f32 to vector<2x240xf32>
      %883 = arith.mulf %34, %882 : vector<2x240xf32>
      %884 = arith.addf %880, %883 : vector<2x240xf32>
      %c182 = arith.constant 182 : index
      %885 = memref.load %arg2[%c182] : memref<256xf32, #tpu.memory_space<smem>>
      %886 = vector.broadcast %885 : f32 to vector<2x240xf32>
      %887 = arith.mulf %36, %886 : vector<2x240xf32>
      %888 = arith.addf %884, %887 : vector<2x240xf32>
      %c183 = arith.constant 183 : index
      %889 = memref.load %arg2[%c183] : memref<256xf32, #tpu.memory_space<smem>>
      %890 = vector.broadcast %889 : f32 to vector<2x240xf32>
      %891 = arith.mulf %38, %890 : vector<2x240xf32>
      %892 = arith.addf %888, %891 : vector<2x240xf32>
      %c184 = arith.constant 184 : index
      %893 = memref.load %arg2[%c184] : memref<256xf32, #tpu.memory_space<smem>>
      %894 = vector.broadcast %893 : f32 to vector<2x240xf32>
      %895 = arith.mulf %40, %894 : vector<2x240xf32>
      %896 = arith.addf %892, %895 : vector<2x240xf32>
      %c185 = arith.constant 185 : index
      %897 = memref.load %arg2[%c185] : memref<256xf32, #tpu.memory_space<smem>>
      %898 = vector.broadcast %897 : f32 to vector<2x240xf32>
      %899 = arith.mulf %42, %898 : vector<2x240xf32>
      %900 = arith.addf %896, %899 : vector<2x240xf32>
      %c186 = arith.constant 186 : index
      %901 = memref.load %arg2[%c186] : memref<256xf32, #tpu.memory_space<smem>>
      %902 = vector.broadcast %901 : f32 to vector<2x240xf32>
      %903 = arith.mulf %44, %902 : vector<2x240xf32>
      %904 = arith.addf %900, %903 : vector<2x240xf32>
      %c187 = arith.constant 187 : index
      %905 = memref.load %arg2[%c187] : memref<256xf32, #tpu.memory_space<smem>>
      %906 = vector.broadcast %905 : f32 to vector<2x240xf32>
      %907 = arith.mulf %46, %906 : vector<2x240xf32>
      %908 = arith.addf %904, %907 : vector<2x240xf32>
      %c188 = arith.constant 188 : index
      %909 = memref.load %arg2[%c188] : memref<256xf32, #tpu.memory_space<smem>>
      %910 = vector.broadcast %909 : f32 to vector<2x240xf32>
      %911 = arith.mulf %48, %910 : vector<2x240xf32>
      %912 = arith.addf %908, %911 : vector<2x240xf32>
      %c189 = arith.constant 189 : index
      %913 = memref.load %arg2[%c189] : memref<256xf32, #tpu.memory_space<smem>>
      %914 = vector.broadcast %913 : f32 to vector<2x240xf32>
      %915 = arith.mulf %50, %914 : vector<2x240xf32>
      %916 = arith.addf %912, %915 : vector<2x240xf32>
      %c190 = arith.constant 190 : index
      %917 = memref.load %arg2[%c190] : memref<256xf32, #tpu.memory_space<smem>>
      %918 = vector.broadcast %917 : f32 to vector<2x240xf32>
      %919 = arith.mulf %52, %918 : vector<2x240xf32>
      %920 = arith.addf %916, %919 : vector<2x240xf32>
      %c191 = arith.constant 191 : index
      %921 = memref.load %arg2[%c191] : memref<256xf32, #tpu.memory_space<smem>>
      %922 = vector.broadcast %921 : f32 to vector<2x240xf32>
      %923 = arith.mulf %54, %922 : vector<2x240xf32>
      %924 = arith.addf %920, %923 : vector<2x240xf32>
      %c11_79 = arith.constant 11 : index
      %925 = memref.load %arg3[%c11_79] : memref<16xf32, #tpu.memory_space<smem>>
      %926 = vector.broadcast %925 : f32 to vector<2x240xf32>
      %927 = arith.addf %924, %926 : vector<2x240xf32>
      %cst_80 = arith.constant 0.000000e+00 : f32
      %928 = vector.broadcast %cst_80 : f32 to vector<2x240xf32>
      %929 = arith.maximumf %927, %928 : vector<2x240xf32>
      %930 = arith.truncf %929 : vector<2x240xf32> to vector<2x240xbf16>
      %c3_81 = arith.constant 3 : index
      %c0_82 = arith.constant 0 : index
      %c336 = arith.constant 336 : index
      %931 = vector.load %arg11[%c3_81, %c0_82, %c336] : memref<5x2x768xbf16, #tpu.memory_space<vmem>>, vector<1x2x240xbf16>
      %932 = vector.shape_cast %931 : vector<1x2x240xbf16> to vector<2x240xbf16>
      %933 = vector.shape_cast %930 : vector<2x240xbf16> to vector<1x2x240xbf16>
      tpu.vector_store %arg11[%c3_81, %c0_82, %c336], %933 {strides = array<i32>} : memref<5x2x768xbf16, #tpu.memory_space<vmem>>, vector<1x2x240xbf16>,
      %c192_83 = arith.constant 192 : index
      %934 = memref.load %arg2[%c192_83] : memref<256xf32, #tpu.memory_space<smem>>
      %935 = vector.broadcast %934 : f32 to vector<2x240xf32>
      %936 = arith.mulf %24, %935 : vector<2x240xf32>
      %c193 = arith.constant 193 : index
      %937 = memref.load %arg2[%c193] : memref<256xf32, #tpu.memory_space<smem>>
      %938 = vector.broadcast %937 : f32 to vector<2x240xf32>
      %939 = arith.mulf %26, %938 : vector<2x240xf32>
      %940 = arith.addf %936, %939 : vector<2x240xf32>
      %c194 = arith.constant 194 : index
      %941 = memref.load %arg2[%c194] : memref<256xf32, #tpu.memory_space<smem>>
      %942 = vector.broadcast %941 : f32 to vector<2x240xf32>
      %943 = arith.mulf %28, %942 : vector<2x240xf32>
      %944 = arith.addf %940, %943 : vector<2x240xf32>
      %c195 = arith.constant 195 : index
      %945 = memref.load %arg2[%c195] : memref<256xf32, #tpu.memory_space<smem>>
      %946 = vector.broadcast %945 : f32 to vector<2x240xf32>
      %947 = arith.mulf %30, %946 : vector<2x240xf32>
      %948 = arith.addf %944, %947 : vector<2x240xf32>
      %c196 = arith.constant 196 : index
      %949 = memref.load %arg2[%c196] : memref<256xf32, #tpu.memory_space<smem>>
      %950 = vector.broadcast %949 : f32 to vector<2x240xf32>
      %951 = arith.mulf %32, %950 : vector<2x240xf32>
      %952 = arith.addf %948, %951 : vector<2x240xf32>
      %c197 = arith.constant 197 : index
      %953 = memref.load %arg2[%c197] : memref<256xf32, #tpu.memory_space<smem>>
      %954 = vector.broadcast %953 : f32 to vector<2x240xf32>
      %955 = arith.mulf %34, %954 : vector<2x240xf32>
      %956 = arith.addf %952, %955 : vector<2x240xf32>
      %c198 = arith.constant 198 : index
      %957 = memref.load %arg2[%c198] : memref<256xf32, #tpu.memory_space<smem>>
      %958 = vector.broadcast %957 : f32 to vector<2x240xf32>
      %959 = arith.mulf %36, %958 : vector<2x240xf32>
      %960 = arith.addf %956, %959 : vector<2x240xf32>
      %c199 = arith.constant 199 : index
      %961 = memref.load %arg2[%c199] : memref<256xf32, #tpu.memory_space<smem>>
      %962 = vector.broadcast %961 : f32 to vector<2x240xf32>
      %963 = arith.mulf %38, %962 : vector<2x240xf32>
      %964 = arith.addf %960, %963 : vector<2x240xf32>
      %c200 = arith.constant 200 : index
      %965 = memref.load %arg2[%c200] : memref<256xf32, #tpu.memory_space<smem>>
      %966 = vector.broadcast %965 : f32 to vector<2x240xf32>
      %967 = arith.mulf %40, %966 : vector<2x240xf32>
      %968 = arith.addf %964, %967 : vector<2x240xf32>
      %c201 = arith.constant 201 : index
      %969 = memref.load %arg2[%c201] : memref<256xf32, #tpu.memory_space<smem>>
      %970 = vector.broadcast %969 : f32 to vector<2x240xf32>
      %971 = arith.mulf %42, %970 : vector<2x240xf32>
      %972 = arith.addf %968, %971 : vector<2x240xf32>
      %c202 = arith.constant 202 : index
      %973 = memref.load %arg2[%c202] : memref<256xf32, #tpu.memory_space<smem>>
      %974 = vector.broadcast %973 : f32 to vector<2x240xf32>
      %975 = arith.mulf %44, %974 : vector<2x240xf32>
      %976 = arith.addf %972, %975 : vector<2x240xf32>
      %c203 = arith.constant 203 : index
      %977 = memref.load %arg2[%c203] : memref<256xf32, #tpu.memory_space<smem>>
      %978 = vector.broadcast %977 : f32 to vector<2x240xf32>
      %979 = arith.mulf %46, %978 : vector<2x240xf32>
      %980 = arith.addf %976, %979 : vector<2x240xf32>
      %c204 = arith.constant 204 : index
      %981 = memref.load %arg2[%c204] : memref<256xf32, #tpu.memory_space<smem>>
      %982 = vector.broadcast %981 : f32 to vector<2x240xf32>
      %983 = arith.mulf %48, %982 : vector<2x240xf32>
      %984 = arith.addf %980, %983 : vector<2x240xf32>
      %c205 = arith.constant 205 : index
      %985 = memref.load %arg2[%c205] : memref<256xf32, #tpu.memory_space<smem>>
      %986 = vector.broadcast %985 : f32 to vector<2x240xf32>
      %987 = arith.mulf %50, %986 : vector<2x240xf32>
      %988 = arith.addf %984, %987 : vector<2x240xf32>
      %c206 = arith.constant 206 : index
      %989 = memref.load %arg2[%c206] : memref<256xf32, #tpu.memory_space<smem>>
      %990 = vector.broadcast %989 : f32 to vector<2x240xf32>
      %991 = arith.mulf %52, %990 : vector<2x240xf32>
      %992 = arith.addf %988, %991 : vector<2x240xf32>
      %c207 = arith.constant 207 : index
      %993 = memref.load %arg2[%c207] : memref<256xf32, #tpu.memory_space<smem>>
      %994 = vector.broadcast %993 : f32 to vector<2x240xf32>
      %995 = arith.mulf %54, %994 : vector<2x240xf32>
      %996 = arith.addf %992, %995 : vector<2x240xf32>
      %c12_84 = arith.constant 12 : index
      %997 = memref.load %arg3[%c12_84] : memref<16xf32, #tpu.memory_space<smem>>
      %998 = vector.broadcast %997 : f32 to vector<2x240xf32>
      %999 = arith.addf %996, %998 : vector<2x240xf32>
      %cst_85 = arith.constant 0.000000e+00 : f32
      %1000 = vector.broadcast %cst_85 : f32 to vector<2x240xf32>
      %1001 = arith.maximumf %999, %1000 : vector<2x240xf32>
      %1002 = arith.truncf %1001 : vector<2x240xf32> to vector<2x240xbf16>
      %1003 = vector.extract_strided_slice %1002 {offsets = [0, 0], sizes = [2, 192], strides = [1, 1]} : vector<2x240xbf16> to vector<2x192xbf16>
      %c3_86 = arith.constant 3 : index
      %c0_87 = arith.constant 0 : index
      %c576 = arith.constant 576 : index
      %1004 = vector.load %arg11[%c3_86, %c0_87, %c576] : memref<5x2x768xbf16, #tpu.memory_space<vmem>>, vector<1x2x192xbf16>
      %1005 = vector.shape_cast %1004 : vector<1x2x192xbf16> to vector<2x192xbf16>
      %1006 = vector.shape_cast %1003 : vector<2x192xbf16> to vector<1x2x192xbf16>
      tpu.vector_store %arg11[%c3_86, %c0_87, %c576], %1006 {strides = array<i32>} : memref<5x2x768xbf16, #tpu.memory_space<vmem>>, vector<1x2x192xbf16>,
      %1007 = vector.extract_strided_slice %1002 {offsets = [0, 192], sizes = [2, 48], strides = [1, 1]} : vector<2x240xbf16> to vector<2x48xbf16>
      %c4_88 = arith.constant 4 : index
      %c0_89 = arith.constant 0 : index
      %c0_90 = arith.constant 0 : index
      %1008 = vector.load %arg11[%c4_88, %c0_89, %c0_90] : memref<5x2x768xbf16, #tpu.memory_space<vmem>>, vector<1x2x48xbf16>
      %1009 = vector.shape_cast %1008 : vector<1x2x48xbf16> to vector<2x48xbf16>
      %1010 = vector.shape_cast %1007 : vector<2x48xbf16> to vector<1x2x48xbf16>
      tpu.vector_store %arg11[%c4_88, %c0_89, %c0_90], %1010 {strides = array<i32>} : memref<5x2x768xbf16, #tpu.memory_space<vmem>>, vector<1x2x48xbf16>,
      %c208 = arith.constant 208 : index
      %1011 = memref.load %arg2[%c208] : memref<256xf32, #tpu.memory_space<smem>>
      %1012 = vector.broadcast %1011 : f32 to vector<2x240xf32>
      %1013 = arith.mulf %24, %1012 : vector<2x240xf32>
      %c209 = arith.constant 209 : index
      %1014 = memref.load %arg2[%c209] : memref<256xf32, #tpu.memory_space<smem>>
      %1015 = vector.broadcast %1014 : f32 to vector<2x240xf32>
      %1016 = arith.mulf %26, %1015 : vector<2x240xf32>
      %1017 = arith.addf %1013, %1016 : vector<2x240xf32>
      %c210 = arith.constant 210 : index
      %1018 = memref.load %arg2[%c210] : memref<256xf32, #tpu.memory_space<smem>>
      %1019 = vector.broadcast %1018 : f32 to vector<2x240xf32>
      %1020 = arith.mulf %28, %1019 : vector<2x240xf32>
      %1021 = arith.addf %1017, %1020 : vector<2x240xf32>
      %c211 = arith.constant 211 : index
      %1022 = memref.load %arg2[%c211] : memref<256xf32, #tpu.memory_space<smem>>
      %1023 = vector.broadcast %1022 : f32 to vector<2x240xf32>
      %1024 = arith.mulf %30, %1023 : vector<2x240xf32>
      %1025 = arith.addf %1021, %1024 : vector<2x240xf32>
      %c212 = arith.constant 212 : index
      %1026 = memref.load %arg2[%c212] : memref<256xf32, #tpu.memory_space<smem>>
      %1027 = vector.broadcast %1026 : f32 to vector<2x240xf32>
      %1028 = arith.mulf %32, %1027 : vector<2x240xf32>
      %1029 = arith.addf %1025, %1028 : vector<2x240xf32>
      %c213 = arith.constant 213 : index
      %1030 = memref.load %arg2[%c213] : memref<256xf32, #tpu.memory_space<smem>>
      %1031 = vector.broadcast %1030 : f32 to vector<2x240xf32>
      %1032 = arith.mulf %34, %1031 : vector<2x240xf32>
      %1033 = arith.addf %1029, %1032 : vector<2x240xf32>
      %c214 = arith.constant 214 : index
      %1034 = memref.load %arg2[%c214] : memref<256xf32, #tpu.memory_space<smem>>
      %1035 = vector.broadcast %1034 : f32 to vector<2x240xf32>
      %1036 = arith.mulf %36, %1035 : vector<2x240xf32>
      %1037 = arith.addf %1033, %1036 : vector<2x240xf32>
      %c215 = arith.constant 215 : index
      %1038 = memref.load %arg2[%c215] : memref<256xf32, #tpu.memory_space<smem>>
      %1039 = vector.broadcast %1038 : f32 to vector<2x240xf32>
      %1040 = arith.mulf %38, %1039 : vector<2x240xf32>
      %1041 = arith.addf %1037, %1040 : vector<2x240xf32>
      %c216 = arith.constant 216 : index
      %1042 = memref.load %arg2[%c216] : memref<256xf32, #tpu.memory_space<smem>>
      %1043 = vector.broadcast %1042 : f32 to vector<2x240xf32>
      %1044 = arith.mulf %40, %1043 : vector<2x240xf32>
      %1045 = arith.addf %1041, %1044 : vector<2x240xf32>
      %c217 = arith.constant 217 : index
      %1046 = memref.load %arg2[%c217] : memref<256xf32, #tpu.memory_space<smem>>
      %1047 = vector.broadcast %1046 : f32 to vector<2x240xf32>
      %1048 = arith.mulf %42, %1047 : vector<2x240xf32>
      %1049 = arith.addf %1045, %1048 : vector<2x240xf32>
      %c218 = arith.constant 218 : index
      %1050 = memref.load %arg2[%c218] : memref<256xf32, #tpu.memory_space<smem>>
      %1051 = vector.broadcast %1050 : f32 to vector<2x240xf32>
      %1052 = arith.mulf %44, %1051 : vector<2x240xf32>
      %1053 = arith.addf %1049, %1052 : vector<2x240xf32>
      %c219 = arith.constant 219 : index
      %1054 = memref.load %arg2[%c219] : memref<256xf32, #tpu.memory_space<smem>>
      %1055 = vector.broadcast %1054 : f32 to vector<2x240xf32>
      %1056 = arith.mulf %46, %1055 : vector<2x240xf32>
      %1057 = arith.addf %1053, %1056 : vector<2x240xf32>
      %c220 = arith.constant 220 : index
      %1058 = memref.load %arg2[%c220] : memref<256xf32, #tpu.memory_space<smem>>
      %1059 = vector.broadcast %1058 : f32 to vector<2x240xf32>
      %1060 = arith.mulf %48, %1059 : vector<2x240xf32>
      %1061 = arith.addf %1057, %1060 : vector<2x240xf32>
      %c221 = arith.constant 221 : index
      %1062 = memref.load %arg2[%c221] : memref<256xf32, #tpu.memory_space<smem>>
      %1063 = vector.broadcast %1062 : f32 to vector<2x240xf32>
      %1064 = arith.mulf %50, %1063 : vector<2x240xf32>
      %1065 = arith.addf %1061, %1064 : vector<2x240xf32>
      %c222 = arith.constant 222 : index
      %1066 = memref.load %arg2[%c222] : memref<256xf32, #tpu.memory_space<smem>>
      %1067 = vector.broadcast %1066 : f32 to vector<2x240xf32>
      %1068 = arith.mulf %52, %1067 : vector<2x240xf32>
      %1069 = arith.addf %1065, %1068 : vector<2x240xf32>
      %c223 = arith.constant 223 : index
      %1070 = memref.load %arg2[%c223] : memref<256xf32, #tpu.memory_space<smem>>
      %1071 = vector.broadcast %1070 : f32 to vector<2x240xf32>
      %1072 = arith.mulf %54, %1071 : vector<2x240xf32>
      %1073 = arith.addf %1069, %1072 : vector<2x240xf32>
      %c13_91 = arith.constant 13 : index
      %1074 = memref.load %arg3[%c13_91] : memref<16xf32, #tpu.memory_space<smem>>
      %1075 = vector.broadcast %1074 : f32 to vector<2x240xf32>
      %1076 = arith.addf %1073, %1075 : vector<2x240xf32>
      %cst_92 = arith.constant 0.000000e+00 : f32
      %1077 = vector.broadcast %cst_92 : f32 to vector<2x240xf32>
      %1078 = arith.maximumf %1076, %1077 : vector<2x240xf32>
      %1079 = arith.truncf %1078 : vector<2x240xf32> to vector<2x240xbf16>
      %c4_93 = arith.constant 4 : index
      %c0_94 = arith.constant 0 : index
      %c48_95 = arith.constant 48 : index
      %1080 = vector.load %arg11[%c4_93, %c0_94, %c48_95] : memref<5x2x768xbf16, #tpu.memory_space<vmem>>, vector<1x2x240xbf16>
      %1081 = vector.shape_cast %1080 : vector<1x2x240xbf16> to vector<2x240xbf16>
      %1082 = vector.shape_cast %1079 : vector<2x240xbf16> to vector<1x2x240xbf16>
      tpu.vector_store %arg11[%c4_93, %c0_94, %c48_95], %1082 {strides = array<i32>} : memref<5x2x768xbf16, #tpu.memory_space<vmem>>, vector<1x2x240xbf16>,
      %c224 = arith.constant 224 : index
      %1083 = memref.load %arg2[%c224] : memref<256xf32, #tpu.memory_space<smem>>
      %1084 = vector.broadcast %1083 : f32 to vector<2x240xf32>
      %1085 = arith.mulf %24, %1084 : vector<2x240xf32>
      %c225 = arith.constant 225 : index
      %1086 = memref.load %arg2[%c225] : memref<256xf32, #tpu.memory_space<smem>>
      %1087 = vector.broadcast %1086 : f32 to vector<2x240xf32>
      %1088 = arith.mulf %26, %1087 : vector<2x240xf32>
      %1089 = arith.addf %1085, %1088 : vector<2x240xf32>
      %c226 = arith.constant 226 : index
      %1090 = memref.load %arg2[%c226] : memref<256xf32, #tpu.memory_space<smem>>
      %1091 = vector.broadcast %1090 : f32 to vector<2x240xf32>
      %1092 = arith.mulf %28, %1091 : vector<2x240xf32>
      %1093 = arith.addf %1089, %1092 : vector<2x240xf32>
      %c227 = arith.constant 227 : index
      %1094 = memref.load %arg2[%c227] : memref<256xf32, #tpu.memory_space<smem>>
      %1095 = vector.broadcast %1094 : f32 to vector<2x240xf32>
      %1096 = arith.mulf %30, %1095 : vector<2x240xf32>
      %1097 = arith.addf %1093, %1096 : vector<2x240xf32>
      %c228 = arith.constant 228 : index
      %1098 = memref.load %arg2[%c228] : memref<256xf32, #tpu.memory_space<smem>>
      %1099 = vector.broadcast %1098 : f32 to vector<2x240xf32>
      %1100 = arith.mulf %32, %1099 : vector<2x240xf32>
      %1101 = arith.addf %1097, %1100 : vector<2x240xf32>
      %c229 = arith.constant 229 : index
      %1102 = memref.load %arg2[%c229] : memref<256xf32, #tpu.memory_space<smem>>
      %1103 = vector.broadcast %1102 : f32 to vector<2x240xf32>
      %1104 = arith.mulf %34, %1103 : vector<2x240xf32>
      %1105 = arith.addf %1101, %1104 : vector<2x240xf32>
      %c230 = arith.constant 230 : index
      %1106 = memref.load %arg2[%c230] : memref<256xf32, #tpu.memory_space<smem>>
      %1107 = vector.broadcast %1106 : f32 to vector<2x240xf32>
      %1108 = arith.mulf %36, %1107 : vector<2x240xf32>
      %1109 = arith.addf %1105, %1108 : vector<2x240xf32>
      %c231 = arith.constant 231 : index
      %1110 = memref.load %arg2[%c231] : memref<256xf32, #tpu.memory_space<smem>>
      %1111 = vector.broadcast %1110 : f32 to vector<2x240xf32>
      %1112 = arith.mulf %38, %1111 : vector<2x240xf32>
      %1113 = arith.addf %1109, %1112 : vector<2x240xf32>
      %c232 = arith.constant 232 : index
      %1114 = memref.load %arg2[%c232] : memref<256xf32, #tpu.memory_space<smem>>
      %1115 = vector.broadcast %1114 : f32 to vector<2x240xf32>
      %1116 = arith.mulf %40, %1115 : vector<2x240xf32>
      %1117 = arith.addf %1113, %1116 : vector<2x240xf32>
      %c233 = arith.constant 233 : index
      %1118 = memref.load %arg2[%c233] : memref<256xf32, #tpu.memory_space<smem>>
      %1119 = vector.broadcast %1118 : f32 to vector<2x240xf32>
      %1120 = arith.mulf %42, %1119 : vector<2x240xf32>
      %1121 = arith.addf %1117, %1120 : vector<2x240xf32>
      %c234 = arith.constant 234 : index
      %1122 = memref.load %arg2[%c234] : memref<256xf32, #tpu.memory_space<smem>>
      %1123 = vector.broadcast %1122 : f32 to vector<2x240xf32>
      %1124 = arith.mulf %44, %1123 : vector<2x240xf32>
      %1125 = arith.addf %1121, %1124 : vector<2x240xf32>
      %c235 = arith.constant 235 : index
      %1126 = memref.load %arg2[%c235] : memref<256xf32, #tpu.memory_space<smem>>
      %1127 = vector.broadcast %1126 : f32 to vector<2x240xf32>
      %1128 = arith.mulf %46, %1127 : vector<2x240xf32>
      %1129 = arith.addf %1125, %1128 : vector<2x240xf32>
      %c236 = arith.constant 236 : index
      %1130 = memref.load %arg2[%c236] : memref<256xf32, #tpu.memory_space<smem>>
      %1131 = vector.broadcast %1130 : f32 to vector<2x240xf32>
      %1132 = arith.mulf %48, %1131 : vector<2x240xf32>
      %1133 = arith.addf %1129, %1132 : vector<2x240xf32>
      %c237 = arith.constant 237 : index
      %1134 = memref.load %arg2[%c237] : memref<256xf32, #tpu.memory_space<smem>>
      %1135 = vector.broadcast %1134 : f32 to vector<2x240xf32>
      %1136 = arith.mulf %50, %1135 : vector<2x240xf32>
      %1137 = arith.addf %1133, %1136 : vector<2x240xf32>
      %c238 = arith.constant 238 : index
      %1138 = memref.load %arg2[%c238] : memref<256xf32, #tpu.memory_space<smem>>
      %1139 = vector.broadcast %1138 : f32 to vector<2x240xf32>
      %1140 = arith.mulf %52, %1139 : vector<2x240xf32>
      %1141 = arith.addf %1137, %1140 : vector<2x240xf32>
      %c239 = arith.constant 239 : index
      %1142 = memref.load %arg2[%c239] : memref<256xf32, #tpu.memory_space<smem>>
      %1143 = vector.broadcast %1142 : f32 to vector<2x240xf32>
      %1144 = arith.mulf %54, %1143 : vector<2x240xf32>
      %1145 = arith.addf %1141, %1144 : vector<2x240xf32>
      %c14_96 = arith.constant 14 : index
      %1146 = memref.load %arg3[%c14_96] : memref<16xf32, #tpu.memory_space<smem>>
      %1147 = vector.broadcast %1146 : f32 to vector<2x240xf32>
      %1148 = arith.addf %1145, %1147 : vector<2x240xf32>
      %cst_97 = arith.constant 0.000000e+00 : f32
      %1149 = vector.broadcast %cst_97 : f32 to vector<2x240xf32>
      %1150 = arith.maximumf %1148, %1149 : vector<2x240xf32>
      %1151 = arith.truncf %1150 : vector<2x240xf32> to vector<2x240xbf16>
      %c4_98 = arith.constant 4 : index
      %c0_99 = arith.constant 0 : index
      %c288 = arith.constant 288 : index
      %1152 = vector.load %arg11[%c4_98, %c0_99, %c288] : memref<5x2x768xbf16, #tpu.memory_space<vmem>>, vector<1x2x240xbf16>
      %1153 = vector.shape_cast %1152 : vector<1x2x240xbf16> to vector<2x240xbf16>
      %1154 = vector.shape_cast %1151 : vector<2x240xbf16> to vector<1x2x240xbf16>
      tpu.vector_store %arg11[%c4_98, %c0_99, %c288], %1154 {strides = array<i32>} : memref<5x2x768xbf16, #tpu.memory_space<vmem>>, vector<1x2x240xbf16>,
      %c240_100 = arith.constant 240 : index
      %1155 = memref.load %arg2[%c240_100] : memref<256xf32, #tpu.memory_space<smem>>
      %1156 = vector.broadcast %1155 : f32 to vector<2x240xf32>
      %1157 = arith.mulf %24, %1156 : vector<2x240xf32>
      %c241 = arith.constant 241 : index
      %1158 = memref.load %arg2[%c241] : memref<256xf32, #tpu.memory_space<smem>>
      %1159 = vector.broadcast %1158 : f32 to vector<2x240xf32>
      %1160 = arith.mulf %26, %1159 : vector<2x240xf32>
      %1161 = arith.addf %1157, %1160 : vector<2x240xf32>
      %c242 = arith.constant 242 : index
      %1162 = memref.load %arg2[%c242] : memref<256xf32, #tpu.memory_space<smem>>
      %1163 = vector.broadcast %1162 : f32 to vector<2x240xf32>
      %1164 = arith.mulf %28, %1163 : vector<2x240xf32>
      %1165 = arith.addf %1161, %1164 : vector<2x240xf32>
      %c243 = arith.constant 243 : index
      %1166 = memref.load %arg2[%c243] : memref<256xf32, #tpu.memory_space<smem>>
      %1167 = vector.broadcast %1166 : f32 to vector<2x240xf32>
      %1168 = arith.mulf %30, %1167 : vector<2x240xf32>
      %1169 = arith.addf %1165, %1168 : vector<2x240xf32>
      %c244 = arith.constant 244 : index
      %1170 = memref.load %arg2[%c244] : memref<256xf32, #tpu.memory_space<smem>>
      %1171 = vector.broadcast %1170 : f32 to vector<2x240xf32>
      %1172 = arith.mulf %32, %1171 : vector<2x240xf32>
      %1173 = arith.addf %1169, %1172 : vector<2x240xf32>
      %c245 = arith.constant 245 : index
      %1174 = memref.load %arg2[%c245] : memref<256xf32, #tpu.memory_space<smem>>
      %1175 = vector.broadcast %1174 : f32 to vector<2x240xf32>
      %1176 = arith.mulf %34, %1175 : vector<2x240xf32>
      %1177 = arith.addf %1173, %1176 : vector<2x240xf32>
      %c246 = arith.constant 246 : index
      %1178 = memref.load %arg2[%c246] : memref<256xf32, #tpu.memory_space<smem>>
      %1179 = vector.broadcast %1178 : f32 to vector<2x240xf32>
      %1180 = arith.mulf %36, %1179 : vector<2x240xf32>
      %1181 = arith.addf %1177, %1180 : vector<2x240xf32>
      %c247 = arith.constant 247 : index
      %1182 = memref.load %arg2[%c247] : memref<256xf32, #tpu.memory_space<smem>>
      %1183 = vector.broadcast %1182 : f32 to vector<2x240xf32>
      %1184 = arith.mulf %38, %1183 : vector<2x240xf32>
      %1185 = arith.addf %1181, %1184 : vector<2x240xf32>
      %c248 = arith.constant 248 : index
      %1186 = memref.load %arg2[%c248] : memref<256xf32, #tpu.memory_space<smem>>
      %1187 = vector.broadcast %1186 : f32 to vector<2x240xf32>
      %1188 = arith.mulf %40, %1187 : vector<2x240xf32>
      %1189 = arith.addf %1185, %1188 : vector<2x240xf32>
      %c249 = arith.constant 249 : index
      %1190 = memref.load %arg2[%c249] : memref<256xf32, #tpu.memory_space<smem>>
      %1191 = vector.broadcast %1190 : f32 to vector<2x240xf32>
      %1192 = arith.mulf %42, %1191 : vector<2x240xf32>
      %1193 = arith.addf %1189, %1192 : vector<2x240xf32>
      %c250 = arith.constant 250 : index
      %1194 = memref.load %arg2[%c250] : memref<256xf32, #tpu.memory_space<smem>>
      %1195 = vector.broadcast %1194 : f32 to vector<2x240xf32>
      %1196 = arith.mulf %44, %1195 : vector<2x240xf32>
      %1197 = arith.addf %1193, %1196 : vector<2x240xf32>
      %c251 = arith.constant 251 : index
      %1198 = memref.load %arg2[%c251] : memref<256xf32, #tpu.memory_space<smem>>
      %1199 = vector.broadcast %1198 : f32 to vector<2x240xf32>
      %1200 = arith.mulf %46, %1199 : vector<2x240xf32>
      %1201 = arith.addf %1197, %1200 : vector<2x240xf32>
      %c252 = arith.constant 252 : index
      %1202 = memref.load %arg2[%c252] : memref<256xf32, #tpu.memory_space<smem>>
      %1203 = vector.broadcast %1202 : f32 to vector<2x240xf32>
      %1204 = arith.mulf %48, %1203 : vector<2x240xf32>
      %1205 = arith.addf %1201, %1204 : vector<2x240xf32>
      %c253 = arith.constant 253 : index
      %1206 = memref.load %arg2[%c253] : memref<256xf32, #tpu.memory_space<smem>>
      %1207 = vector.broadcast %1206 : f32 to vector<2x240xf32>
      %1208 = arith.mulf %50, %1207 : vector<2x240xf32>
      %1209 = arith.addf %1205, %1208 : vector<2x240xf32>
      %c254 = arith.constant 254 : index
      %1210 = memref.load %arg2[%c254] : memref<256xf32, #tpu.memory_space<smem>>
      %1211 = vector.broadcast %1210 : f32 to vector<2x240xf32>
      %1212 = arith.mulf %52, %1211 : vector<2x240xf32>
      %1213 = arith.addf %1209, %1212 : vector<2x240xf32>
      %c255 = arith.constant 255 : index
      %1214 = memref.load %arg2[%c255] : memref<256xf32, #tpu.memory_space<smem>>
      %1215 = vector.broadcast %1214 : f32 to vector<2x240xf32>
      %1216 = arith.mulf %54, %1215 : vector<2x240xf32>
      %1217 = arith.addf %1213, %1216 : vector<2x240xf32>
      %c15_101 = arith.constant 15 : index
      %1218 = memref.load %arg3[%c15_101] : memref<16xf32, #tpu.memory_space<smem>>
      %1219 = vector.broadcast %1218 : f32 to vector<2x240xf32>
      %1220 = arith.addf %1217, %1219 : vector<2x240xf32>
      %cst_102 = arith.constant 0.000000e+00 : f32
      %1221 = vector.broadcast %cst_102 : f32 to vector<2x240xf32>
      %1222 = arith.maximumf %1220, %1221 : vector<2x240xf32>
      %1223 = arith.truncf %1222 : vector<2x240xf32> to vector<2x240xbf16>
      %c4_103 = arith.constant 4 : index
      %c0_104 = arith.constant 0 : index
      %c528 = arith.constant 528 : index
      %1224 = vector.load %arg11[%c4_103, %c0_104, %c528] : memref<5x2x768xbf16, #tpu.memory_space<vmem>>, vector<1x2x240xbf16>
      %1225 = vector.shape_cast %1224 : vector<1x2x240xbf16> to vector<2x240xbf16>
      %1226 = vector.shape_cast %1223 : vector<2x240xbf16> to vector<1x2x240xbf16>
      tpu.vector_store %arg11[%c4_103, %c0_104, %c528], %1226 {strides = array<i32>} : memref<5x2x768xbf16, #tpu.memory_space<vmem>>, vector<1x2x240xbf16>,
      %cst_105 = arith.constant 0.000000e+00 : f32
      %1227 = vector.broadcast %cst_105 : f32 to vector<2x512xf32>
      %c0_106 = arith.constant 0 : index
      %c0_107 = arith.constant 0 : index
      %1228 = vector.load %arg12[%c0_106, %c0_107] : memref<2x512xf32, #tpu.memory_space<vmem>>, vector<2x512xf32>
      tpu.vector_store %arg12[%c0_106, %c0_107], %1227 {strides = array<i32>} : memref<2x512xf32, #tpu.memory_space<vmem>>, vector<2x512xf32>,
    } else {
    }
    %c0 = arith.constant 0 : index
    %c0_1 = arith.constant 0 : index
    %3 = vector.load %arg4[%c0, %c0_1] : memref<768x512xi8, #tpu.memory_space<vmem>>, vector<768x512xi8>
    %4 = arith.sitofp %3 : vector<768x512xi8> to vector<768x512xf32>
    %5 = arith.truncf %4 : vector<768x512xf32> to vector<768x512xbf16>
    %c0_2 = arith.constant 0 : index
    %c0_3 = arith.constant 0 : index
    %6 = vector.load %arg12[%c0_2, %c0_3] : memref<2x512xf32, #tpu.memory_space<vmem>>, vector<2x512xf32>
    %7 = arith.index_cast %arg0 : i32 to index
    %c0_4 = arith.constant 0 : index
    %c0_5 = arith.constant 0 : index
    %8 = vector.load %arg11[%7, %c0_4, %c0_5] : memref<5x2x768xbf16, #tpu.memory_space<vmem>>, vector<1x2x768xbf16>
    %9 = vector.shape_cast %8 : vector<1x2x768xbf16> to vector<2x768xbf16>
    %cst = arith.constant dense<0.000000e+00> : vector<2x512xf32>
    %10 = tpu.matmul %9, %5, %cst {dimension_numbers = #tpu.dot_dimension_numbers<[1], [0], [0], [1], [0, 0, 1, 1], [], []>} : vector<2x768xbf16>, vector<768x512xbf16>, vector<2x512xf32> -> vector<2x512xf32>
    %11 = arith.addf %6, %10 : vector<2x512xf32>
    %c0_6 = arith.constant 0 : index
    %c0_7 = arith.constant 0 : index
    %12 = vector.load %arg12[%c0_6, %c0_7] : memref<2x512xf32, #tpu.memory_space<vmem>>, vector<2x512xf32>
    tpu.vector_store %arg12[%c0_6, %c0_7], %11 {strides = array<i32>} : memref<2x512xf32, #tpu.memory_space<vmem>>, vector<2x512xf32>,
    %c4_i32 = arith.constant 4 : i32
    %13 = arith.cmpi eq, %arg0, %c4_i32 : i32
    %14 = arith.extui %13 : i1 to i32
    %c0_i32_8 = arith.constant 0 : i32
    %15 = arith.cmpi ne, %14, %c0_i32_8 : i32
    scf.if %15 {
      %c0_9 = arith.constant 0 : index
      %c0_10 = arith.constant 0 : index
      %16 = vector.load %arg12[%c0_9, %c0_10] : memref<2x512xf32, #tpu.memory_space<vmem>>, vector<2x512xf32>
      %c0_11 = arith.constant 0 : index
      %c0_12 = arith.constant 0 : index
      %17 = vector.load %arg5[%c0_11, %c0_12] : memref<1x512xf32, #tpu.memory_space<vmem>>, vector<1x512xf32>
      %18 = vector.broadcast %17 : vector<1x512xf32> to vector<2x512xf32>
      %19 = arith.mulf %16, %18 : vector<2x512xf32>
      %c0_13 = arith.constant 0 : index
      %c0_14 = arith.constant 0 : index
      %20 = vector.load %arg6[%c0_13, %c0_14] : memref<1x512xf32, #tpu.memory_space<vmem>>, vector<1x512xf32>
      %21 = vector.broadcast %20 : vector<1x512xf32> to vector<2x512xf32>
      %22 = arith.addf %19, %21 : vector<2x512xf32>
      %cst_15 = arith.constant 0.000000e+00 : f32
      %23 = vector.broadcast %cst_15 : f32 to vector<2x512xf32>
      %24 = arith.maximumf %22, %23 : vector<2x512xf32>
      %25 = arith.truncf %24 : vector<2x512xf32> to vector<2x512xbf16>
      %c0_16 = arith.constant 0 : index
      %c0_17 = arith.constant 0 : index
      %26 = vector.load %arg7[%c0_16, %c0_17] : memref<512x7xbf16, #tpu.memory_space<vmem>>, vector<512x7xbf16>
      %cst_18 = arith.constant dense<0.000000e+00> : vector<2x7xf32>
      %27 = tpu.matmul %25, %26, %cst_18 {dimension_numbers = #tpu.dot_dimension_numbers<[1], [0], [0], [1], [0, 0, 1, 1], [], []>} : vector<2x512xbf16>, vector<512x7xbf16>, vector<2x7xf32> -> vector<2x7xf32>
      %c0_19 = arith.constant 0 : index
      %c0_20 = arith.constant 0 : index
      %28 = vector.load %arg8[%c0_19, %c0_20] : memref<1x7xf32, #tpu.memory_space<vmem>>, vector<1x7xf32>
      %29 = vector.broadcast %28 : vector<1x7xf32> to vector<2x7xf32>
      %30 = arith.addf %27, %29 : vector<2x7xf32>
      %31 = vector.extract_strided_slice %30 {offsets = [0, 0], sizes = [2, 6], strides = [1, 1]} : vector<2x7xf32> to vector<2x6xf32>
      %cst_21 = arith.constant dense<0xFF800000> : vector<2xf32>
      %32 = vector.multi_reduction <maximumf>, %31, %cst_21 [1] : vector<2x6xf32> to vector<2xf32>
      %33 = vector.shape_cast %32 : vector<2xf32> to vector<2x1xf32>
      %34 = vector.broadcast %33 : vector<2x1xf32> to vector<2x6xf32>
      %35 = arith.subf %31, %34 : vector<2x6xf32>
      %36 = math.exp %35 : vector<2x6xf32>
      %cst_22 = arith.constant dense<0.000000e+00> : vector<2xf32>
      %37 = vector.multi_reduction <add>, %36, %cst_22 [1] : vector<2x6xf32> to vector<2xf32>
      %38 = vector.shape_cast %37 : vector<2xf32> to vector<2x1xf32>
      %39 = vector.broadcast %38 : vector<2x1xf32> to vector<2x6xf32>
      %40 = arith.divf %36, %39 : vector<2x6xf32>
      %c0_23 = arith.constant 0 : index
      %c0_24 = arith.constant 0 : index
      %41 = vector.load %arg9[%c0_23, %c0_24] : memref<2x7xf32, #tpu.memory_space<vmem>>, vector<2x6xf32>
      tpu.vector_store %arg9[%c0_23, %c0_24], %40 {strides = array<i32>} : memref<2x7xf32, #tpu.memory_space<vmem>>, vector<2x6xf32>,
      %42 = vector.extract_strided_slice %30 {offsets = [0, 6], sizes = [2, 1], strides = [1, 1]} : vector<2x7xf32> to vector<2x1xf32>
      %c0_25 = arith.constant 0 : index
      %c6 = arith.constant 6 : index
      %43 = vector.load %arg9[%c0_25, %c6] : memref<2x7xf32, #tpu.memory_space<vmem>>, vector<2x1xf32>
      tpu.vector_store %arg9[%c0_25, %c6], %42 {strides = array<i32>} : memref<2x7xf32, #tpu.memory_space<vmem>>, vector<2x1xf32>,
    } else {
    }
    return
  }
  func.func @transform_0(%arg0: i32) -> (i32, i32, i32) {
    %c0_i32 = arith.constant 0 : i32
    %c0_i32_0 = arith.constant 0 : i32
    %c0_i32_1 = arith.constant 0 : i32
    %c0_i32_2 = arith.constant 0 : i32
    return %c0_i32, %c0_i32_0, %c0_i32_1 : i32, i32, i32
  }
  func.func @transform_1(%arg0: i32) -> i32 {
    %c0_i32 = arith.constant 0 : i32
    %c0_i32_0 = arith.constant 0 : i32
    return %c0_i32 : i32
  }
  func.func @transform_2(%arg0: i32) -> i32 {
    %c0_i32 = arith.constant 0 : i32
    %c0_i32_0 = arith.constant 0 : i32
    return %c0_i32 : i32
  }
  func.func @transform_3(%arg0: i32) -> (i32, i32) {
    %c0_i32 = arith.constant 0 : i32
    %c0_i32_0 = arith.constant 0 : i32
    return %arg0, %c0_i32 : i32, i32
  }
  func.func @transform_4(%arg0: i32) -> (i32, i32) {
    %c0_i32 = arith.constant 0 : i32
    %c0_i32_0 = arith.constant 0 : i32
    %c0_i32_1 = arith.constant 0 : i32
    return %c0_i32, %c0_i32_0 : i32, i32
  }
  func.func @transform_5(%arg0: i32) -> (i32, i32) {
    %c0_i32 = arith.constant 0 : i32
    %c0_i32_0 = arith.constant 0 : i32
    %c0_i32_1 = arith.constant 0 : i32
    return %c0_i32, %c0_i32_0 : i32, i32
  }
  func.func @transform_6(%arg0: i32) -> (i32, i32) {
    %c0_i32 = arith.constant 0 : i32
    %c0_i32_0 = arith.constant 0 : i32
    %c0_i32_1 = arith.constant 0 : i32
    return %c0_i32, %c0_i32_0 : i32, i32
  }
  func.func @transform_7(%arg0: i32) -> (i32, i32) {
    %c0_i32 = arith.constant 0 : i32
    %c0_i32_0 = arith.constant 0 : i32
    %c0_i32_1 = arith.constant 0 : i32
    return %c0_i32, %c0_i32_0 : i32, i32
  }
  func.func @transform_8(%arg0: i32) -> (i32, i32) {
    %c0_i32 = arith.constant 0 : i32
    %c0_i32_0 = arith.constant 0 : i32
    %c0_i32_1 = arith.constant 0 : i32
    return %c0_i32, %c0_i32_0 : i32, i32
  }
}

</mosaic_0001>

<bundles_post_ra>
// kernel: forward.1
= control target key start
LH: loop header
LB: loop body
LE: loop exit
PB: predicated region body
PF: predicated region fallthrough
CT: control target
= control target key end

     0   :  { %s14792_s0 = inlined_call_operand.vmem [shape: u8[2,4,256], index: 0, kind: input, shape index: {}]   ;;  %s14793_s1 = inlined_call_operand.hbm [shape: f32[256], index: 1, kind: input, shape index: {}]   ;;  %s14794_s2 = inlined_call_operand.hbm [shape: f32[16], index: 2, kind: input, shape index: {}]   ;;  %s14795_s3 = inlined_call_operand.hbm [shape: s8[3840,512], index: 3, kind: input, shape index: {}]   ;;  %s14796_s4 = inlined_call_operand.hbm [shape: f32[1,512], index: 4, kind: input, shape index: {}]   ;;  %s14797_s5 = inlined_call_operand.hbm [shape: f32[1,512], index: 5, kind: input, shape index: {}]   ;;  %s14798_s6 = inlined_call_operand.vmem [shape: bf16[512,7], index: 6, kind: input, shape index: {}]   ;;  %s14799_s7 = inlined_call_operand.hbm [shape: f32[1,7], index: 7, kind: input, shape index: {}]   ;;  %s14800_s8 = inlined_call_operand.vmem [shape: f32[2,7], index: 8, kind: output, shape index: {}]  }
   0x1   :  { %14820 = sst [smem:[#allocation21_spill]] %s14792_s0 }
   0x2   :  { %14821 = sst [smem:[#allocation22_spill]] %s14793_s1 }
   0x3   :  { %14822 = sst [smem:[#allocation23_spill]] %s14794_s2 }
   0x4   :  { %14823 = sst [smem:[#allocation24_spill]] %s14795_s3 }
   0x5   :  { %14824 = sst [smem:[#allocation25_spill]] %s14796_s4 }
   0x6   :  { %13 = vsyncpa [#allocation7], 0 }
   0x7   :  { %14 = vsyncpa [#allocation9], 0 }
   0x8   :  { %15 = vsyncpa [#allocation6], 0 }
   0x9   :  { %17 = vsyncpa [#allocation6 + $0x1], 0 }
   0xa   :  { %18 = vsyncpa [#allocation12], 0 }
   0xb   :  { %19 = vsyncpa [#allocation15], 0  ;;  %s10931_s27 = smov 0   ;;  %s10933_s28 = smov 0  }
   0xc   :  { %s10935_s29 = smov 0   ;;  %s10937_s30 = smov 0  }
   0xd LB: > { %s10864_s9 = smov [#allocation11]   ;;  %s10952_s11 = sadd.s32 4294967295, %s10862_s30   ;;  %s10862_s30 = sphi %s10937_s30, %s14872_s30   ;;  %s10858_s29 = sphi %s10935_s29, %s14871_s29   ;;  %s10854_s28 = sphi %s10933_s28, %s14870_s28   ;;  %s10850_s27 = sphi %s10931_s27, %s14869_s27  }
   0xe   : > { %s258_s10 = sshll.u32 %s10864_s9, 4  ;;  %p9626_p0 = scmp.ge.s32.totalorder %s10862_s30, 1  ;;  %s259_s10 = int_to_ptr.vmem [resolvable:$true] %s258_s10 }
   0xf   : > { %p14801_p1 = scmp.eq.s32.totalorder %s10952_s11, 0  ;;  %p224_p2 = scmp.lt.s32.totalorder %s10862_s30, 6 }
  0x10   : > { %s10865_s13 = smov [#allocation13]   ;;  %s10866_s16 = smov [#allocation14]  }
  0x11   : > { %p10958_p4 = pnand %p9626_p0, %p224_p2  ;;  %s269_s14 = sshll.u32 %s10865_s13, 4  ;;  %s270_s14 = int_to_ptr.vmem [resolvable:$true] %s269_s14 }
  0x12   : > { %s283_s17 = sshll.u32 %s10866_s16, 4  ;;  %s10695_s18 = scalar_lea.vmem %s259_s10, 64  ;;  %s10970_s17 = int_to_ptr.vmem [resolvable:$true] %s283_s17 }
  0x13   : > { %s14825_s12 = scalar_select %p10958_p4, 1, 0 }
  0x14   : > { %p10535_p5 = pneg %p10958_p4  ;;  %p10696_p8 = scmp.ne.s32.totalorder %s259_s10, %s10695_s18 }
  0x15   : > { %p10703_p11 = scmp.lt.s32.totalorder %s259_s10, %s259_s10  ;;  %p10704_p12 = scmp.lt.s32.totalorder %s10695_s18, %s10695_s18 }
  0x16   : > { %p10966_p6 = pnand %p10535_p5, %p14801_p1 }
  0x17   : > { %p10705_p13 = por %p10704_p12, %p10703_p11 }
  0x18   : > { %p10686_p7 = pneg %p10966_p6 }
  0x1a   : > { %p10698_p9 = pnand %p10696_p8, %p10686_p7 }
  0x1c   : > { %p10699_p10 = pneg %p10698_p9 }
  0x1e   : > { %p10706_p0 = pnand %p10705_p13, %p10699_p10 }
  0x20   : > { %10709 = shalt.err (!%p10706_p0)
}
  0x21   : > { %s14827_s4 = sld [smem:[#allocation25_spill]]  ;;  %s10867_s21 = smov [#allocation5]  }
  0x22   : > { %s14828_s1 = sld [smem:[#allocation22_spill]]  ;;  %s10868_s24 = smov [#allocation8]  }
  0x23   : > { %s14829_s2 = sld [smem:[#allocation23_spill]]  ;;  %s10743_s9 = scalar_lea.vmem %s270_s14, 64 }
  0x24   : > { %p10744_p2 = scmp.ne.s32.totalorder %s270_s14, %s10743_s9  ;;  %p10751_p9 = scmp.lt.s32.totalorder %s270_s14, %s270_s14 }
  0x25   : > { %p10752_p10 = scmp.lt.s32.totalorder %s10743_s9, %s10743_s9 }
  0x26   : > { %p10746_p5 = pnand %p10744_p2, %p10686_p7 }
  0x27   : > { %10544 = dma.hbm_to_vmem [thread:$0]  (!%p10966_p6), %s14827_s4, 64, %s259_s10, [#allocation12]  }
  0x28   : > { %10538 = dma.hbm_to_smem (!%p10966_p6), %s14828_s1, 32, %s10867_s21, [#allocation7]  }
  0x29   : > { %10541 = dma.hbm_to_smem (!%p10966_p6), %s14829_s2, 16, %s10868_s24, [#allocation9]  }
  0x2a   : > { %p10747_p8 = pneg %p10746_p5  ;;  %p10753_p11 = por %p10752_p10, %p10751_p9 }
  0x2c   : > { %p10754_p12 = pnand %p10753_p11, %p10747_p8 }
  0x2e   : > { %10757 = shalt.err (!%p10754_p12)
}
  0x2f   : > { %10547 = dma.hbm_to_vmem [thread:$0]  (!%p10966_p6), %s14797_s5, 64, %s270_s14, [#allocation12]  }
  0x30   : > { %s10769_s16 = scalar_lea.vmem %s10970_s17, 16  ;;  %s10776_s18 = scalar_lea.vmem %s10970_s17, 32 }
  0x31   : > { %p10770_p13 = scmp.ne.s32.totalorder %s10970_s17, %s10769_s16  ;;  %p10777_p5 = scmp.lt.s32.totalorder %s10970_s17, %s10970_s17 }
  0x32   : > { %p10778_p8 = scmp.lt.s32.totalorder %s10776_s18, %s10769_s16 }
  0x33   : > { %p10772_p0 = pnand %p10770_p13, %p10686_p7 }
  0x34   : > { %p10779_p9 = por %p10778_p8, %p10777_p5 }
  0x35   : > { %p10773_p2 = pneg %p10772_p0 }
  0x37   : > { %p10780_p10 = pnand %p10779_p9, %p10773_p2 }
  0x39   : > { %10783 = shalt.err (!%p10780_p10)
}
  0x3a   : > { %10550 = dma.hbm_to_vmem [thread:$0]  (!%p10966_p6), %s14799_s7, 16, %s10970_s17, [#allocation15]  }
  0x3b   : > { %s11015_s14 = sadd.s32 1, %s10862_s30   ;;  %s95_s21 = sadd.s32 1, %s10858_s29 }
  0x3c   : > { %s92_s15 = ssub.s32 %s10862_s30, %s11015_s14  ;;  %p102_p11 = scmp.ne.s32.totalorder %s10858_s29, %s10854_s28 }
  0x3d   : > { %p93_p7 = scmp.eq.s32.totalorder %s92_s15, 0  ;;  %p103_p12 = scmp.eq.s32.totalorder %s10862_s30, 0 }
  0x3e   : > { %p108_p13 = scmp.ne.s32.totalorder %s10854_s28, %s10850_s27  ;;  %p10560_p5 = scmp.lt.s32.totalorder %s10862_s30, 5 }
  0x3f   : > { %s11026_s22 = scalar_select %p93_p7, %s10858_s29, %s95_s21  }
  0x40   : > { %p104_p0 = por %p103_p12, %p102_p11  ;;  %p11030_p2 = por %p14801_p1, %p108_p13 }
  0x41   : > { %s294_s24 = sand.u32 1, %s10858_s29   ;;  %s10462_s25 = smul.u32 12288, %s10862_s30 }
  0x42   : > { %s14830_s23 = scalar_select %p11030_p2, 1, 0 }
  0x43   : > { %s10511_s17 = smul.u32 768, %s294_s24  ;;  %p11037_p6 = pnand %p10560_p5, %p104_p0 }
  0x44   : > { %s14832_s3 = sld [smem:[#allocation24_spill]]  ;;  %s11048_s18 = scalar_lea.sflag [#allocation6], %s294_s24 }
  0x45   : > { %s298_s13 = scalar_lea.vmem [#allocation10], %s10511_s17  ;;  %p10786_p9 = pneg %p11037_p6 }
  0x46   : > { %s306_s16 = sshll.u32 %s298_s13, 4  ;;  %s11046_s16 = int_to_ptr.vmem [resolvable:$true] %s306_s16 }
  0x4a   : > { %s11044_s27 = scalar_lea.hbm %s14832_s3, %s10462_s25  ;;  %s10789_s15 = scalar_lea.hbm %s14832_s3, 61440 }
  0x4b   : > { %s10784_s30 = scalar_lea.hbm %s11044_s27, 12288  ;;  %p10790_p11 = scmp.lt.s32.totalorder %s11044_s27, %s14832_s3 }
  0x4c   : > { %p10785_p8 = scmp.ne.s32.totalorder %s11044_s27, %s10784_s30  ;;  %p10791_p12 = scmp.lt.s32.totalorder %s10789_s15, %s10784_s30 }
  0x4e   : > { %p10787_p10 = pnand %p10786_p9, %p10785_p8  ;;  %p10792_p13 = por %p10791_p12, %p10790_p11 }
  0x50   : > { %p10788_p7 = pneg %p10787_p10 }
  0x52   : > { %p10793_p0 = pnand %p10792_p13, %p10788_p7 }
  0x54   : > { %10796 = shalt.err (!%p10793_p0)
}
  0x55   : > { %s10797_s24 = scalar_lea.vmem %s11046_s16, 12288  ;;  %s10869_s17 = smov [#allocation10]  }
  0x56   : > { %p10798_p5 = scmp.ne.s32.totalorder %s11046_s16, %s10797_s24  ;;  %s10802_s9 = sshll.u32 %s10869_s17, 4  ;;  %s10803_s9 = int_to_ptr.vmem [resolvable:$false] %s10802_s9 }
  0x57   : > { %s10804_s10 = scalar_lea.vmem %s10803_s9, 24576  ;;  %p10805_p10 = scmp.lt.s32.totalorder %s11046_s16, %s10803_s9 }
  0x58   : > { %p10800_p3 = pnand %p10798_p5, %p10786_p9  ;;  %p10806_p1 = scmp.lt.s32.totalorder %s10804_s10, %s10797_s24 }
  0x5a   : > { %p10801_p8 = pneg %p10800_p3  ;;  %p10807_p2 = por %p10806_p1, %p10805_p10 }
  0x5c   : > { %p10808_p4 = pnand %p10807_p2, %p10801_p8 }
  0x5e   : > { %10811 = shalt.err (!%p10808_p4)
}
  0x5f   : > { %s10870_s13 = smov 512   ;;  %s10871_s30 = smov 32  }
  0x60   : > { %10554 = dma.hbm_to_vmem [thread:$0]  (!%p11037_p6), %s11044_s27, 12288, %s11046_s16, %s11048_s18, %s10870_s13, %s10870_s13, %s10871_s30  }
  0x61   : > { %p14833_p9 = scmp.ne.s32.totalorder %s14825_s12, 0 }
  0x62   : > { %p14834_p3 = scmp.eq.s32.totalorder (!%p14833_p9), %s10952_s11, 0 }
  0x63   : > { %318 = sbr.rel (%p14833_p9) target bundleno = 3856 (0xf10), region = 52 }
  0x68   : > { %10829 = dma.done.wait (%p14834_p3), [#allocation7], 32   ;;  %p14835_p7 = pmov %p14834_p3 }
  0x69   : > { %p14836_p1 = pmov %p14834_p3 }
  0x6a   : > { %10831 = vsyncadd (%p14835_p7), [#allocation7], 4294967264 }
  0x6b   : > { %10833 = dma.done.wait (%p14836_p1), [#allocation9], 16   ;;  %p14837_p4 = pmov %p14836_p1 }
  0x6c   : > { %s328_s19 = sand.u32 1, %s10854_s28   ;;  %p14838_p2 = scmp.ne.s32.totalorder %s14830_s23, 0 }
  0x6d   : > { %10835 = vsyncadd (%p14837_p4), [#allocation9], 4294967280  ;;  %s10512_s26 = smul.u32 768, %s328_s19  ;;  %s329_s27 = scalar_lea.sflag [#allocation6], %s328_s19 }
  0x6f   : > { %s11080_s16 = scalar_lea.vmem [#allocation10], %s10512_s26 }
  0x70   : > { %10837 = dma.done.wait (%p14838_p2), %s329_s27, 12288  }
  0x71   : > { %10839 = vsyncadd (%p14838_p2), %s329_s27, 4294955008  ;;  %p14839_p6 = pmov %p14836_p1 }
  0x72   : > { %p14840_p11 = pmov %p14836_p1 }
  0x73   : > { %10841 = dma.done.wait (%p14839_p6), [#allocation12], 128  }
  0x74   : > { %10843 = vsyncadd (%p14840_p11), [#allocation12], 4294967168  ;;  %p14841_p12 = pmov %p14836_p1 }
  0x75   : > { %p14842_p13 = pmov %p14836_p1 }
  0x76   : > { %10845 = dma.done.wait (%p14841_p12), [#allocation15], 16  }
  0x77   : > { %10847 = vsyncadd (%p14842_p13), [#allocation15], 4294967280 }
  0x78   : > { %349 = sfence }
  0x79   : > { %p14843_p0 = scmp.ne.s32.totalorder %s10952_s11, 0 }
  0x7a   : > { %s14844_s0 = sld [smem:[#allocation21_spill]] (!%p14843_p0)  ;;  %s14816_s25 = smov (!%p14843_p0), 127  }
  0x7b   : > { %378 = sbr.rel (%p14843_p0) target bundleno = 2904 (0xb58), region = 80  ;;  %s9644_s23 = sld [smem:[#allocation5 + $0x3]] (!%p14843_p0) }
  0x7c   : > { %s9642_s20 = sld [smem:[#allocation5 + $0x1]] (!%p14843_p0)  ;;  %s14818_s24 = smov (!%p14843_p0), 111  }
  0x7d   : > { %s11099_s15 = sld [smem:[#allocation5 + $0x2]] (!%p14843_p0)  ;;  %s14814_s10 = smov (!%p14843_p0), 112  }
  0x7e   : > { %s9648_s21 = sld [smem:[#allocation5 + $0x5]] (!%p14843_p0)  ;;  %s14857_s2 = smov (!%p14843_p0), 127  }
  0x7f   : > { %s9651_s17 = sld [smem:[#allocation5 + $0x6]] (!%p14843_p0)  ;;  %s10883_s4 = smov (!%p14843_p0), 16  }
  0x80   : > { %v10464_v0 = vld [vmem:[%s14844_s0] sm:$0xf]   ;;  %v10872_v1 = vmov 0.0   ;;  %s9654_s9 = sld [smem:[#allocation5 + $0x7]]  ;;  %vm413_vm0 = vcmask 1039360   ;;  %vm432_vm1 = vcmask 916480  }
  0x81   : > { %380 = vst [vmem:[#allocation2 + $0x8] sm:$0xf] %v10872_v1  ;;  %v10465_v2 = vunpack.c.0.s8 %v10464_v0  ;;  %v10466_v3 = vunpack.c.1.s8 %v10464_v0  ;;  %8452 = vst [vmem:[#allocation4] sm:$0xff] %v10872_v1  ;;  %v440_v8 = vstv %s9644_s23  ;;  %s9662_s13 = sld [smem:[#allocation5 + $0x9]]  ;;  %vm461_vm2 = vcmask 1043456  }
  0x82   : > { %382 = vst [vmem:[#allocation2 + $0x14] sm:$0xf] %v10872_v1  ;;  %v402_v9 = vstv %s9642_s20  ;;  %s9665_s30 = sld [smem:[#allocation5 + $0xa]]  ;;  %vm463_vm3 = vcmask 908288   ;;  %vm858_vm4 = vcmask 1041409   ;;  %vm878_vm5 = vcmask 1040384  }
  0x83   : > { %v387_v4 = vand.u32 255, %v10465_v2  ;;  %v388_v5 = vand.u32 255, %v10466_v3  ;;  %v421_v16 = vstv %s11099_s15  ;;  %s9668_s19 = sld [smem:[#allocation5 + $0xb]]  ;;  %vm879_vm6 = vcmask 910337  }
  0x84   : > { %v486_v19 = vstv %s9648_s21  ;;  %s9676_s26 = sld [smem:[#allocation5 + $0xd]]  ;;  %vm11457_vm7 = vmor %vm879_vm6, %vm878_vm5  ;;  %vm1363_vm8 = vcmask 1041280   ;;  %vm1365_vm10 = vcmask 780290   ;;  %vm1849_vm12 = vcmask 1041152  }
  0x85   : > { %v11101_v6 = vcvt.s32.f32 %v387_v4  ;;  %v11103_v7 = vcvt.s32.f32 %v388_v5  ;;  %v508_v24 = vstv %s9651_s17  ;;  %s9679_s27 = sld [smem:[#allocation5 + $0xe]]  ;;  %vm11739_vm9 = vmor %vm858_vm4, %vm1363_vm8  ;;  %vm1851_vm14 = vcmask 649218  }
  0x86   : > { %v530_v29 = vstv %s9654_s9  ;;  %s9682_s12 = sld [smem:[#allocation5 + $0xf]]  ;;  %vm1366_vm11 = vmor %vm1365_vm10, %vm11739_vm9  ;;  %vm1846_vm15 = vcmask 785408   ;;  %vm2416_vm8 = vcmask 517121   ;;  %vm14806_vm10 = vcmask 1041024  }
  0x87   : > { %392 = vst [vmem:[#allocation2 + $0xc] sm:$0xff] %v11103_v7  ;;  %391 = vst [vmem:[#allocation2] sm:$0xff] %v11101_v6  ;;  %v403_v12 = vmul.f32 %v402_v9, %v11101_v6  ;;  %v404_v14 = vmul.f32 %v402_v9, %v11103_v7  ;;  %v441_v17 = vmul.f32 %v440_v8, %v11101_v6  ;;  %v582_v38 = vstv %s9662_s13  ;;  %s9690_s18 = sld [smem:[#allocation5 + $0x11]] }
  0x88   : > { %v11107_v10 = vld [vmem:[#allocation2 + $0x8] sm:$0xf]  ;;  %v422_v18 = vmul.f32 %v421_v16, %v11101_v6  ;;  %v443_v20 = vmul.f32 %v440_v8, %v11103_v7  ;;  %v487_v21 = vmul.f32 %v486_v19, %v11101_v6  ;;  %v423_v22 = vmul.f32 %v421_v16, %v11103_v7  ;;  %s9691_s23 = sld [smem:[#allocation5 + $0x12]]  ;;  %vm1850_vm13 = vmor %vm858_vm4, %vm1849_vm12 }
  0x89   : > { %v11109_v11 = vld [vmem:[#allocation2 + $0x14] sm:$0xf]  ;;  %v442_v13 = vmul.f32 %v440_v8, %v11107_v10  ;;  %407 = vrot.lane.b32.xlu0 %v403_v12, %s14816_s25  ;;  %v488_v23 = vmul.f32 %v486_v19, %v11103_v7  ;;  %v509_v26 = vmul.f32 %v508_v24, %v11101_v6  ;;  %v510_v28 = vmul.f32 %v508_v24, %v11103_v7  ;;  %s9692_s20 = sld [smem:[#allocation5 + $0x13]]  ;;  %vm11758_vm6 = vmor %vm1851_vm14, %vm1850_vm13 }
  0x8a   : > { %v444_v15 = vmul.f32 %v440_v8, %v11109_v11  ;;  %v9649_v25 = vrot.slane %v487_v21, 9  ;;  %v531_v31 = vmul.f32 %v530_v29, %v11101_v6  ;;  %v532_v33 = vmul.f32 %v530_v29, %v11107_v10  ;;  %s9696_s15 = sld [smem:[#allocation5 + $0x15]]  ;;  %vm2417_vm12 = vmor %vm2416_vm8, %vm878_vm5 }
  0x8b   : > { %451 = vrot.lane.b32.xlu1 %v442_v13, %s14818_s24  ;;  %v9650_v27 = vrot.slane %v488_v23, 9  ;;  %v9652_v30 = vrot.slane %v509_v26, 9  ;;  %v9653_v32 = vrot.slane %v510_v28, 9  ;;  %v533_v35 = vmul.f32 %v530_v29, %v11103_v7  ;;  %s9699_s21 = sld [smem:[#allocation5 + $0x16]] }
  0x8c   : > { %v9655_v34 = vrot.slane %v531_v31, 9  ;;  %v9656_v36 = vrot.slane %v532_v33, 9  ;;  %v534_v37 = vmul.f32 %v530_v29, %v11109_v11  ;;  %v583_v40 = vmul.f32 %v582_v38, %v11101_v6  ;;  %s9702_s17 = sld [smem:[#allocation5 + $0x17]] }
  0x8d   : > { %409 = vrot.lane.b32.xlu0 %v404_v14, %s14816_s25  ;;  %v9657_v39 = vrot.slane %v533_v35, 9  ;;  %v584_v42 = vmul.f32 %v582_v38, %v11103_v7  ;;  %v604_v43 = vstv %s9665_s30  ;;  %v626_v48 = vstv %s9668_s19  ;;  %s9710_s9 = sld [smem:[#allocation5 + $0x19]] }
  0x8e   : > { %v9658_v41 = vrot.slane %v534_v37, 9  ;;  %v9663_v44 = vrot.slane %v583_v40, 10  ;;  %v605_v45 = vmul.f32 %v604_v43, %v11101_v6  ;;  %v606_v47 = vmul.f32 %v604_v43, %v11103_v7  ;;  %s9713_s13 = sld [smem:[#allocation5 + $0x1a]] }
  0x8f   : > { %455 = vrot.lane.b32.xlu1 %v444_v15, %s14818_s24  ;;  %v9664_v46 = vrot.slane %v584_v42, 10  ;;  %v627_v50 = vmul.f32 %v626_v48, %v11101_v6  ;;  %v628_v52 = vmul.f32 %v626_v48, %v11107_v10  ;;  %v629_v54 = vmul.f32 %v626_v48, %v11103_v7  ;;  %s9716_s30 = sld [smem:[#allocation5 + $0x1b]] }
  0x90   : > { %v9666_v49 = vrot.slane %v605_v45, 10  ;;  %v9667_v51 = vrot.slane %v606_v47, 10  ;;  %v630_v56 = vmul.f32 %v626_v48, %v11109_v11  ;;  %v678_v57 = vstv %s9676_s26  ;;  %s9724_s19 = sld [smem:[#allocation5 + $0x1d]] }
  0x91   : > { %449 = vrot.lane.b32.xlu0 %v441_v17, %s14818_s24  ;;  %v9669_v53 = vrot.slane %v627_v50, 10  ;;  %v9670_v55 = vrot.slane %v628_v52, 10  ;;  %v9671_v58 = vrot.slane %v629_v54, 10  ;;  %v679_v59 = vmul.f32 %v678_v57, %v11101_v6  ;;  %s9727_s26 = sld [smem:[#allocation5 + $0x1e]] }
  0x92   : > { %v9672_v60 = vrot.slane %v630_v56, 10  ;;  %v680_v61 = vmul.f32 %v678_v57, %v11103_v7  ;;  %v700_v62 = vstv %s9679_s27  ;;  %v722_v3 = vstv %s9682_s12  ;;  %s9730_s27 = sld [smem:[#allocation5 + $0x1f]] }
  0x93   : > { %426 = vrot.lane.b32.xlu1 %v422_v18, %s14814_s10  ;;  %v9677_v63 = vrot.slane %v679_v59, 11  ;;  %v701_v0 = vmul.f32 %v700_v62, %v11101_v6  ;;  %v702_v2 = vmul.f32 %v700_v62, %v11103_v7  ;;  %v723_v5 = vmul.f32 %v722_v3, %v11101_v6  ;;  %s9739_s12 = sld [smem:[#allocation5 + $0x21]] }
  0x94   : > { %v9678_v1 = vrot.slane %v680_v61, 11  ;;  %v724_v9 = vmul.f32 %v722_v3, %v11107_v10  ;;  %v725_v13 = vmul.f32 %v722_v3, %v11103_v7  ;;  %v726_v15 = vmul.f32 %v722_v3, %v11109_v11  ;;  %s12746_s0 = sld [smem:[#allocation5 + $0x9a]] }
  0x95   : > { %453 = vrot.lane.b32.xlu0 %v443_v20, %s14818_s24  ;;  %v9680_v4 = vrot.slane %v701_v0, 11  ;;  %v9681_v8 = vrot.slane %v702_v2, 11  ;;  %v9683_v12 = vrot.slane %v723_v5, 11  ;;  %v887_v18 = vstv %s9690_s18  ;;  %s11238_s18 = sld [smem:[#allocation5 + $0x22]] }
  0x96   : > { %v9684_v14 = vrot.slane %v724_v9, 11  ;;  %v9685_v16 = vrot.slane %v725_v13, 11  ;;  %v9686_v17 = vrot.slane %v726_v15, 11  ;;  %v888_v19 = vmul.f32 %v887_v18, %v11101_v6  ;;  %s10108_s1 = sld [smem:[#allocation5 + $0x9b]] }
  0x97   : > { %428 = vrot.lane.b32.xlu1 %v423_v22, %s14814_s10  ;;  %v889_v20 = vmul.f32 %v887_v18, %v11103_v7  ;;  %v905_v21 = vstv %s9691_s23  ;;  %v923_v24 = vstv %s9692_s20  ;;  %v1011_v37 = vstv %s9702_s17  ;;  %s11240_s23 = sld [smem:[#allocation5]] }
  0x98   : > { %v906_v22 = vmul.f32 %v905_v21, %v11101_v6  ;;  %v907_v23 = vmul.f32 %v905_v21, %v11103_v7  ;;  %v925_v26 = vmul.f32 %v923_v24, %v11107_v10  ;;  %v926_v28 = vmul.f32 %v923_v24, %v11103_v7  ;;  %s9741_s20 = sld [smem:[#allocation5 + $0x23]] }
  0x99   : > { %495 = vrot.lane.b32.xlu0 %v9649_v25, %s14816_s25  ;;  %v924_v25 = vmul.f32 %v923_v24, %v11101_v6  ;;  %v1014_v43 = vmul.f32 %v1011_v37, %v11103_v7  ;;  %v1015_v45 = vmul.f32 %v1011_v37, %v11109_v11  ;;  %v1107_v56 = vstv %s9716_s30  ;;  %s11262_s17 = sld [smem:[#allocation5 + $0x26]] }
  0x9a   : > { %v1110_v62 = vmul.f32 %v1107_v56, %v11103_v7  ;;  %v1111_v0 = vmul.f32 %v1107_v56, %v11109_v11  ;;  %v1203_v15 = vstv %s9730_s27  ;;  %s11305_s30 = sld [smem:[#allocation5 + $0x29]]  ;;  %vm2900_vm13 = vcmask 1040896  }
  0x9b   : > { %497 = vrot.lane.b32.xlu1 %v9650_v27, %s14816_s25  ;;  %v967_v27 = vstv %s9696_s15  ;;  %v9705_v47 = vrot.slane %v1014_v43, 9  ;;  %s11246_s15 = sld [smem:[#allocation5 + $0x4]]  ;;  %vm12200_vm14 = vmor %vm858_vm4, %vm2900_vm13  ;;  %vm2902_vm8 = vcmask 387074  }
  0x9c   : > { %v968_v29 = vmul.f32 %v967_v27, %v11101_v6  ;;  %v969_v31 = vmul.f32 %v967_v27, %v11103_v7  ;;  %v9719_v2 = vrot.slane %v1110_v62, 10  ;;  %s11326_s27 = sld [smem:[#allocation5 + $0x2b]] }
  0x9d   : > { %517 = vrot.lane.b32.xlu0 %v9652_v30, %s14814_s10  ;;  %v927_v30 = vmul.f32 %v923_v24, %v11109_v11  ;;  %s10122_s3 = sld [smem:[#allocation5 + $0x9f]] }
  0x9e   : > { %v9697_v33 = vrot.slane %v968_v29, 9  ;;  %v9698_v35 = vrot.slane %v969_v31, 9 }
  0x9f   : > { %519 = vrot.lane.b32.xlu1 %v9653_v32, %s14814_s10  ;;  %v989_v32 = vstv %s9699_s21  ;;  %s11253_s21 = sld [smem:[#allocation5 + $0x25]] }
  0xa1   : > { %547 = vrot.lane.b32.xlu0 %v9655_v34, %s14818_s24  ;;  %v990_v34 = vmul.f32 %v989_v32, %v11101_v6 }
  0xa3   : > { %549 = vrot.lane.b32.xlu1 %v9656_v36, %s14818_s24  ;;  %v991_v36 = vmul.f32 %v989_v32, %v11103_v7  ;;  %v9700_v38 = vrot.slane %v990_v34, 9 }
  0xa5   : > { %551 = vrot.lane.b32.xlu0 %v9657_v39, %s14818_s24  ;;  %v1012_v39 = vmul.f32 %v1011_v37, %v11101_v6  ;;  %v9701_v40 = vrot.slane %v991_v36, 9  ;;  %v1391_v36 = vstv %s11238_s18  ;;  %v1453_v62 = vstv %s11253_s21  ;;  %s11359_s18 = sld [smem:[#allocation5 + $0x2e]] }
  0xa6   : > { %v1393_v43 = vmul.f32 %v1391_v36, %v11103_v7  ;;  %s11417_s21 = sld [smem:[#allocation5 + $0x14]] }
  0xa7   : > { %553 = vrot.lane.b32.xlu1 %v9658_v41, %s14818_s24  ;;  %v1013_v41 = vmul.f32 %v1011_v37, %v11107_v10  ;;  %v9703_v42 = vrot.slane %v1012_v39, 9 }
  0xa9   : > { %591 = vrot.lane.b32.xlu0 %v9663_v44, %s14816_s25  ;;  %v9704_v44 = vrot.slane %v1013_v41, 9 }
  0xab   : > { %593 = vrot.lane.b32.xlu1 %v9664_v46, %s14816_s25  ;;  %v1063_v46 = vstv %s9710_s9  ;;  %s11280_s9 = sld [smem:[#allocation5 + $0x27]] }
  0xac   : > { %v1064_v48 = vmul.f32 %v1063_v46, %v11101_v6  ;;  %v1065_v50 = vmul.f32 %v1063_v46, %v11103_v7  ;;  %v1392_v46 = vmul.f32 %v1391_v36, %v11101_v6 }
  0xad   : > { %613 = vrot.lane.b32.xlu0 %v9666_v49, %s14814_s10  ;;  %v9706_v49 = vrot.slane %v1015_v45, 9 }
  0xae   : > { %v9711_v52 = vrot.slane %v1064_v48, 10  ;;  %v9712_v54 = vrot.slane %v1065_v50, 10 }
  0xaf   : > { %615 = vrot.lane.b32.xlu1 %v9667_v51, %s14814_s10  ;;  %v1085_v51 = vstv %s9713_s13  ;;  %s11285_s13 = sld [smem:[#allocation5 + $0x8]] }
  0xb1   : > { %643 = vrot.lane.b32.xlu0 %v9669_v53, %s14818_s24  ;;  %v1086_v53 = vmul.f32 %v1085_v51, %v11101_v6 }
  0xb3   : > { %645 = vrot.lane.b32.xlu1 %v9670_v55, %s14818_s24  ;;  %v1087_v55 = vmul.f32 %v1085_v51, %v11103_v7  ;;  %v9714_v57 = vrot.slane %v1086_v53, 10 }
  0xb5   : > { %647 = vrot.lane.b32.xlu0 %v9671_v58, %s14818_s24  ;;  %v1108_v58 = vmul.f32 %v1107_v56, %v11101_v6  ;;  %v9715_v59 = vrot.slane %v1087_v55, 10 }
  0xb7   : > { %649 = vrot.lane.b32.xlu1 %v9672_v60, %s14818_s24  ;;  %v1109_v60 = vmul.f32 %v1107_v56, %v11107_v10  ;;  %v9717_v61 = vrot.slane %v1108_v58, 10 }
  0xb9   : > { %687 = vrot.lane.b32.xlu0 %v9677_v63, %s14816_s25  ;;  %v9718_v63 = vrot.slane %v1109_v60, 10 }
  0xbb   : > { %689 = vrot.lane.b32.xlu1 %v9678_v1, %s14816_s25  ;;  %v1159_v1 = vstv %s9724_s19  ;;  %s11308_s19 = sld [smem:[#allocation5 + $0x2a]] }
  0xbc   : > { %v1160_v3 = vmul.f32 %v1159_v1, %v11101_v6  ;;  %v1161_v5 = vmul.f32 %v1159_v1, %v11103_v7 }
  0xbd   : > { %709 = vrot.lane.b32.xlu0 %v9680_v4, %s14814_s10  ;;  %v9720_v4 = vrot.slane %v1111_v0, 10 }
  0xbe   : > { %v9725_v9 = vrot.slane %v1160_v3, 11  ;;  %v9726_v13 = vrot.slane %v1161_v5, 11 }
  0xbf   : > { %711 = vrot.lane.b32.xlu1 %v9681_v8, %s14814_s10  ;;  %v1181_v8 = vstv %s9727_s26  ;;  %s11320_s26 = sld [smem:[#allocation5 + $0xc]] }
  0xc1   : > { %739 = vrot.lane.b32.xlu0 %v9683_v12, %s14818_s24  ;;  %v1182_v12 = vmul.f32 %v1181_v8, %v11101_v6 }
  0xc3   : > { %741 = vrot.lane.b32.xlu1 %v9684_v14, %s14818_s24  ;;  %v1183_v14 = vmul.f32 %v1181_v8, %v11103_v7 }
  0xc5   : > { %743 = vrot.lane.b32.xlu0 %v9685_v16, %s14818_s24  ;;  %v9728_v16 = vrot.slane %v1182_v12, 11  ;;  %v9729_v18 = vrot.slane %v1183_v14, 11 }
  0xc7   : > { %745 = vrot.lane.b32.xlu1 %v9686_v17, %s14818_s24  ;;  %v1204_v17 = vmul.f32 %v1203_v15, %v11101_v6 }
  0xc9   : > { %892 = vrot.lane.b32.xlu0 %v888_v19, %s14816_s25  ;;  %v1205_v19 = vmul.f32 %v1203_v15, %v11107_v10 }
  0xcb   : > { %894 = vrot.lane.b32.xlu1 %v889_v20, %s14816_s25  ;;  %v9732_v24 = vrot.slane %v1205_v19, 11 }
  0xcd   : > { %910 = vrot.lane.b32.xlu0 %v906_v22, %s14814_s10  ;;  %v9731_v22 = vrot.slane %v1204_v17, 11  ;;  %v1475_v17 = vstv %s11262_s17  ;;  %s11450_s17 = sld [smem:[#allocation5 + $0x18]] }
  0xcf   : > { %912 = vrot.lane.b32.xlu1 %v907_v23, %s14814_s10  ;;  %v1206_v23 = vmul.f32 %v1203_v15, %v11103_v7 }
  0xd1   : > { %932 = vrot.lane.b32.xlu0 %v924_v25, %s14818_s24  ;;  %v1207_v25 = vmul.f32 %v1203_v15, %v11109_v11 }
  0xd3   : > { %934 = vrot.lane.b32.xlu1 %v925_v26, %s14818_s24  ;;  %v9734_v29 = vrot.slane %v1207_v25, 11  ;;  %v1476_v25 = vmul.f32 %v1475_v17, %v11101_v6 }
  0xd5   : > { %936 = vrot.lane.b32.xlu0 %v926_v28, %s14818_s24  ;;  %v9733_v28 = vrot.slane %v1206_v23, 11 }
  0xd7   : > { %938 = vrot.lane.b32.xlu1 %v927_v30, %s14818_s24  ;;  %v1373_v30 = vstv %s9739_s12  ;;  %s11348_s12 = sld [smem:[#allocation5 + $0x2d]] }
  0xd9   : > { %976 = vrot.lane.b32.xlu0 %v9697_v33, %s14816_s25  ;;  %v1375_v33 = vmul.f32 %v1373_v30, %v11103_v7 }
  0xdb   : > { %978 = vrot.lane.b32.xlu1 %v9698_v35, %s14816_s25  ;;  %v1374_v35 = vmul.f32 %v1373_v30, %v11101_v6 }
  0xdd   : > { %998 = vrot.lane.b32.xlu0 %v9700_v38, %s14814_s10  ;;  %v398_v38 = vstv %s11240_s23  ;;  %s11369_s23 = sld [smem:[#allocation5 + $0x2f]] }
  0xde   : > { %v400_v41 = vmul.f32 %v398_v38, %v11103_v7  ;;  %v399_v48 = vmul.f32 %v398_v38, %v11101_v6 }
  0xdf   : > { %1000 = vrot.lane.b32.xlu1 %v9701_v40, %s14814_s10 }
  0xe1   : > { %1028 = vrot.lane.b32.xlu0 %v9703_v42, %s14818_s24 }
  0xe3   : > { %1030 = vrot.lane.b32.xlu1 %v9704_v44, %s14818_s24 }
  0xe5   : > { %1032 = vrot.lane.b32.xlu0 %v9705_v47, %s14818_s24  ;;  %v1409_v47 = vstv %s9741_s20  ;;  %s11371_s20 = sld [smem:[#allocation8]] }
  0xe6   : > { %v1411_v58 = vmul.f32 %v1409_v47, %v11107_v10  ;;  %v1413_v12 = vmul.f32 %v1409_v47, %v11109_v11  ;;  %v1412_v15 = vmul.f32 %v1409_v47, %v11103_v7 }
  0xe7   : > { %1034 = vrot.lane.b32.xlu1 %v9706_v49, %s14818_s24 }
  0xe9   : > { %1072 = vrot.lane.b32.xlu0 %v9711_v52, %s14816_s25 }
  0xeb   : > { %1074 = vrot.lane.b32.xlu1 %v9712_v54, %s14816_s25  ;;  %v472_v54 = vstv %s11246_s15  ;;  %s11410_s15 = sld [smem:[#allocation5 + $0x10]] }
  0xec   : > { %v474_v60 = vmul.f32 %v472_v54, %v11103_v7  ;;  %v473_v5 = vmul.f32 %v472_v54, %v11101_v6 }
  0xed   : > { %1094 = vrot.lane.b32.xlu0 %v9714_v57, %s14814_s10 }
  0xef   : > { %1096 = vrot.lane.b32.xlu1 %v9715_v59, %s14814_s10 }
  0xf1   : > { %1124 = vrot.lane.b32.xlu0 %v9717_v61, %s14818_s24  ;;  %v1410_v61 = vmul.f32 %v1409_v47, %v11101_v6  ;;  %v9749_v47 = vrot.slane %v1476_v25, 9 }
  0xf3   : > { %1126 = vrot.lane.b32.xlu1 %v9718_v63, %s14818_s24 }
  0xf5   : > { %1128 = vrot.lane.b32.xlu0 %v9719_v2, %s14818_s24 }
  0xf7   : > { %1130 = vrot.lane.b32.xlu1 %v9720_v4, %s14818_s24 }
  0xf9   : > { %1168 = vrot.lane.b32.xlu0 %v9725_v9, %s14816_s25 }
  0xfb   : > { %1170 = vrot.lane.b32.xlu1 %v9726_v13, %s14816_s25  ;;  %v408_v20 = vpop.permute.xlu0 %407  ;;  %v1455_v13 = vmul.f32 %v1453_v62, %v11103_v7 }
  0xfc   : > { %v411_v39 = vrot.slane %v408_v20, 4 }
  0xfd   : > { %v11232_v21 = vpop.permute.xlu1 %451  ;;  %1190 = vrot.lane.b32.xlu0 %v9728_v16, %s14814_s10  ;;  %v1454_v16 = vmul.f32 %v1453_v62, %v11101_v6 }
  0xfe   : > { %v414_v51 = vsel %vm413_vm0, %v408_v20, %v411_v39  ;;  %v458_v63 = vrot.slane %v11232_v21, 4  ;;  %v568_v39 = vstv %s11285_s13  ;;  %s11487_s13 = sld [smem:[#allocation8 + $0x1]] }
  0xff   : > { %1192 = vrot.lane.b32.xlu1 %v9729_v18, %s14814_s10  ;;  %v410_v26 = vpop.permute.xlu0 %409  ;;  %v418_v0 = vadd.f32 %v414_v51, %v399_v48  ;;  %v9647_v18 = vrot.slane %v474_v60, 9  ;;  %v9746_v30 = vrot.slane %v1454_v16, 9 }
 0x100   : > { %v412_v34 = vrot.slane %v410_v26, 4 }
 0x101   : > { %v456_v27 = vpop.permute.xlu1 %455  ;;  %1220 = vrot.lane.b32.xlu0 %v9731_v22, %s14818_s24  ;;  %v9646_v22 = vrot.slane %v473_v5, 9 }
 0x102   : > { %v415_v45 = vsel %vm413_vm0, %v410_v26, %v412_v34  ;;  %v460_v55 = vrot.slane %v456_v27, 4  ;;  %v9747_v26 = vrot.slane %v1455_v13, 9  ;;  %v1477_v27 = vmul.f32 %v1475_v17, %v11103_v7 }
 0x103   : > { %1222 = vrot.lane.b32.xlu1 %v9732_v24, %s14818_s24  ;;  %v11244_v31 = vpop.permute.xlu0 %449  ;;  %v419_v56 = vadd.f32 %v415_v45, %v400_v41 }
 0x104   : > { %v457_v57 = vrot.slane %v11244_v31, 4 }
 0x105   : > { %v427_v32 = vpop.permute.xlu1 %426  ;;  %1224 = vrot.lane.b32.xlu0 %v9733_v28, %s14818_s24 }
 0x106   : > { %v430_v44 = vrot.slane %v427_v32, 4  ;;  %v462_v9 = vsel %vm461_vm2, %v457_v57, %v458_v63  ;;  %v569_v57 = vmul.f32 %v568_v39, %v11101_v6 }
 0x107   : > { %1226 = vrot.lane.b32.xlu1 %v9734_v29, %s14818_s24  ;;  %v454_v37 = vpop.permute.xlu0 %453  ;;  %v464_v21 = vsel %vm463_vm3, %v11244_v31, %v462_v9 }
 0x108   : > { %v459_v49 = vrot.slane %v454_v37, 4  ;;  %v433_v59 = vsel %vm432_vm1, %v427_v32, %v430_v44  ;;  %v1497_v32 = vstv %s11280_s9  ;;  %v9660_v9 = vrot.slane %v569_v57, 10  ;;  %s11474_s9 = sld [smem:[#allocation5 + $0x1c]] }
 0x109   : > { %v429_v40 = vpop.permute.xlu1 %428  ;;  %1380 = vrot.lane.b32.xlu0 %v1375_v33, %s14816_s25  ;;  %v437_v8 = vadd.f32 %v433_v59, %v418_v0  ;;  %v1499_v44 = vmul.f32 %v1497_v32, %v11107_v10  ;;  %v1498_v48 = vmul.f32 %v1497_v32, %v11101_v6  ;;  %v1500_v59 = vmul.f32 %v1497_v32, %v11103_v7 }
 0x10a   : > { %v431_v42 = vrot.slane %v429_v40, 4  ;;  %v465_v2 = vsel %vm461_vm2, %v459_v49, %v460_v55 }
 0x10b   : > { %1378 = vrot.lane.b32.xlu1 %v1374_v35, %s14816_s25  ;;  %v11265_v50 = vpop.permute.xlu0 %495  ;;  %v466_v14 = vsel %vm463_vm3, %v454_v37, %v465_v2  ;;  %v469_v24 = vadd.f32 %v464_v21, %v437_v8  ;;  %v9753_v60 = vrot.slane %v1499_v44, 9  ;;  %v9752_v0 = vrot.slane %v1498_v48, 9 }
 0x10c   : > { %v434_v52 = vsel %vm432_vm1, %v429_v40, %v431_v42  ;;  %v499_v29 = vrot.slane %v11265_v50, 4 }
 0x10d   : > { %v11269_v53 = vpop.permute.xlu1 %497  ;;  %1398 = vrot.lane.b32.xlu0 %v1393_v43, %s14814_s10  ;;  %v438_v1 = vadd.f32 %v434_v52, %v419_v56  ;;  %v483_v41 = vadd.f32 %v9646_v22, %v469_v24  ;;  %v9750_v43 = vrot.slane %v1477_v27, 9  ;;  %v664_v22 = vstv %s11320_s26  ;;  %s11523_s26 = sld [smem:[#allocation5 + $0x31]] }
 0x10e   : > { %v500_v28 = vrot.slane %v11269_v53, 4  ;;  %v1593_v27 = vstv %s11326_s27  ;;  %s11529_s27 = sld [smem:[#allocation5 + $0x32]] }
 0x10f   : > { %1396 = vrot.lane.b32.xlu1 %v1392_v46, %s14814_s10  ;;  %v518_v3 = vpop.permute.xlu0 %517  ;;  %v470_v19 = vadd.f32 %v466_v14, %v438_v1  ;;  %v501_v46 = vsel %vm413_vm0, %v11265_v50, %v499_v29  ;;  %v570_v50 = vmul.f32 %v568_v39, %v11103_v7  ;;  %v1549_v1 = vstv %s11305_s30  ;;  %s11500_s30 = sld [smem:[#allocation5 + $0x20]] }
 0x110   : > { %v521_v37 = vrot.slane %v518_v3, 4  ;;  %v502_v45 = vsel %vm413_vm0, %v11269_v53, %v500_v28  ;;  %v1551_v16 = vmul.f32 %v1549_v1, %v11103_v7 }
 0x111   : > { %v520_v4 = vpop.permute.xlu1 %519  ;;  %1420 = vrot.lane.b32.xlu0 %v1411_v58, %s14818_s24  ;;  %v484_v31 = vadd.f32 %v9647_v18, %v470_v19  ;;  %v505_v58 = vadd.f32 %v501_v46, %v483_v41  ;;  %v9661_v5 = vrot.slane %v570_v50, 10  ;;  %v9754_v19 = vrot.slane %v1500_v59, 9 }
 0x112   : > { %v522_v36 = vrot.slane %v520_v4, 4  ;;  %v523_v53 = vsel %vm432_vm1, %v518_v3, %v521_v37  ;;  %v1596_v59 = vmul.f32 %v1593_v27, %v11103_v7 }
 0x113   : > { %1418 = vrot.lane.b32.xlu1 %v1410_v61, %s14818_s24  ;;  %v548_v20 = vpop.permute.xlu0 %547  ;;  %v506_v49 = vadd.f32 %v502_v45, %v484_v31  ;;  %v1501_v61 = vmul.f32 %v1497_v32, %v11109_v11  ;;  %v527_v3 = vadd.f32 %v523_v53, %v505_v58  ;;  %v9761_v31 = vrot.slane %v1551_v16, 10 }
 0x114   : > { %v555_v34 = vrot.slane %v548_v20, 4  ;;  %v524_v55 = vsel %vm432_vm1, %v520_v4, %v522_v36 }
 0x115   : > { %v550_v23 = vpop.permute.xlu1 %549  ;;  %1424 = vrot.lane.b32.xlu0 %v1413_v12, %s14818_s24  ;;  %v528_v2 = vadd.f32 %v524_v55, %v506_v49  ;;  %v1571_v12 = vstv %s11308_s19  ;;  %v666_v55 = vmul.f32 %v664_v22, %v11103_v7  ;;  %s11505_s19 = sld [smem:[#allocation5 + $0x24]] }
 0x116   : > { %v556_v33 = vrot.slane %v550_v23, 4  ;;  %v1572_v23 = vmul.f32 %v1571_v12, %v11101_v6  ;;  %v1573_v28 = vmul.f32 %v1571_v12, %v11103_v7 }
 0x117   : > { %1422 = vrot.lane.b32.xlu1 %v1412_v15, %s14818_s24  ;;  %v552_v35 = vpop.permute.xlu0 %551  ;;  %v9755_v15 = vrot.slane %v1501_v61, 9 }
 0x118   : > { %v557_v40 = vrot.slane %v552_v35, 4  ;;  %v559_v51 = vsel %vm461_vm2, %v555_v34, %v556_v33 }
 0x119   : > { %v554_v38 = vpop.permute.xlu1 %553  ;;  %1464 = vrot.lane.b32.xlu0 %v9747_v26, %s14816_s25  ;;  %v560_v62 = vsel %vm463_vm3, %v548_v20, %v559_v51  ;;  %v1550_v20 = vmul.f32 %v1549_v1, %v11101_v6  ;;  %v9763_v51 = vrot.slane %v1572_v23, 10 }
 0x11a   : > { %v558_v42 = vrot.slane %v554_v38, 4  ;;  %v565_v13 = vadd.f32 %v560_v62, %v527_v3  ;;  %v9675_v3 = vrot.slane %v666_v55, 11 }
 0x11b   : > { %1462 = vrot.lane.b32.xlu1 %v9746_v30, %s14816_s25  ;;  %v592_v54 = vpop.permute.xlu0 %591  ;;  %v9760_v36 = vrot.slane %v1550_v20, 10  ;;  %v1667_v20 = vstv %s11359_s18  ;;  %s11542_s18 = sld [smem:[#allocation5 + $0x33]] }
 0x11c   : > { %v561_v52 = vsel %vm461_vm2, %v557_v40, %v558_v42  ;;  %v595_v18 = vrot.slane %v592_v54, 4  ;;  %v579_v30 = vadd.f32 %v9660_v9, %v565_v13  ;;  %v665_v42 = vmul.f32 %v664_v22, %v11101_v6 }
 0x11d   : > { %v594_v56 = vpop.permute.xlu1 %593  ;;  %1486 = vrot.lane.b32.xlu0 %v9750_v43, %s14814_s10  ;;  %v562_v63 = vsel %vm463_vm3, %v552_v35, %v561_v52  ;;  %v1595_v43 = vmul.f32 %v1593_v27, %v11107_v10  ;;  %v1594_v52 = vmul.f32 %v1593_v27, %v11101_v6  ;;  %v10876_v22 = vmov 1966171168  }
 0x11e   : > { %v566_v14 = vadd.f32 %v562_v63, %v528_v2  ;;  %v596_v17 = vrot.slane %v594_v56, 4  ;;  %v597_v35 = vsel %vm413_vm0, %v592_v54, %v595_v18  ;;  %v9674_v58 = vrot.slane %v665_v42, 11 }
 0x11f   : > { %1484 = vrot.lane.b32.xlu1 %v9749_v47, %s14814_s10  ;;  %v614_v4 = vpop.permute.xlu0 %613  ;;  %v601_v45 = vadd.f32 %v597_v35, %v579_v30  ;;  %v9764_v47 = vrot.slane %v1573_v28, 10  ;;  %v9767_v62 = vrot.slane %v1595_v43, 10  ;;  %v1597_v63 = vmul.f32 %v1593_v27, %v11109_v11 }
 0x120   : > { %v617_v25 = vrot.slane %v614_v4, 4  ;;  %v580_v29 = vadd.f32 %v9661_v5, %v566_v14  ;;  %v598_v33 = vsel %vm413_vm0, %v594_v56, %v596_v17  ;;  %v9766_v1 = vrot.slane %v1594_v52, 10 }
 0x121   : > { %v616_v8 = vpop.permute.xlu1 %615  ;;  %1516 = vrot.lane.b32.xlu0 %v9753_v60, %s14818_s24  ;;  %v1645_v2 = vstv %s11348_s12  ;;  %v9768_v14 = vrot.slane %v1596_v59, 10  ;;  %v767_v18 = vlaneseq  ;;  %v797_v23 = vunpack.c.l.s4 %v10876_v22  ;;  %s11535_s12 = sld [smem:[#allocation5 + $0x28]] }
 0x122   : > { %v618_v34 = vrot.slane %v616_v8, 4  ;;  %v619_v39 = vsel %vm432_vm1, %v614_v4, %v617_v25  ;;  %v602_v44 = vadd.f32 %v598_v33, %v580_v29  ;;  %v1647_v16 = vmul.f32 %v1645_v2, %v11103_v7 }
 0x123   : > { %1514 = vrot.lane.b32.xlu1 %v9752_v0, %s14818_s24  ;;  %v644_v21 = vpop.permute.xlu0 %643  ;;  %v623_v54 = vadd.f32 %v619_v39, %v601_v45  ;;  %v1669_v33 = vmul.f32 %v1667_v20, %v11103_v7 }
 0x124   : > { %v651_v26 = vrot.slane %v644_v21, 4  ;;  %v620_v48 = vsel %vm432_vm1, %v616_v8, %v618_v34  ;;  %v768_v34 = vshrl.u32 %v767_v18, 7 }
 0x125   : > { %v646_v24 = vpop.permute.xlu1 %645  ;;  %1520 = vrot.lane.b32.xlu0 %v9755_v15, %s14818_s24  ;;  %v624_v60 = vadd.f32 %v620_v48, %v602_v44  ;;  %v9769_v15 = vrot.slane %v1597_v63, 10  ;;  %v760_v44 = vstv %s11371_s20  ;;  %s11558_s20 = sld [smem:[#allocation5 + $0x2c]] }
 0x126   : > { %v652_v32 = vrot.slane %v646_v24, 4  ;;  %v11392_v52 = vsub.s32 0, %v768_v34 }
 0x127   : > { %1518 = vrot.lane.b32.xlu1 %v9754_v19, %s14818_s24  ;;  %v648_v38 = vpop.permute.xlu0 %647  ;;  %v1646_v19 = vmul.f32 %v1645_v2, %v11101_v6 }
 0x128   : > { %v655_v37 = vsel %vm461_vm2, %v651_v26, %v652_v32  ;;  %v653_v41 = vrot.slane %v648_v38, 4 }
 0x129   : > { %v650_v40 = vpop.permute.xlu1 %649  ;;  %1560 = vrot.lane.b32.xlu0 %v9761_v31, %s14816_s25  ;;  %v656_v49 = vsel %vm463_vm3, %v644_v21, %v655_v37  ;;  %v9775_v31 = vrot.slane %v1647_v16, 11  ;;  %v9774_v35 = vrot.slane %v1646_v19, 11  ;;  %v1689_v37 = vstv %s11369_s23  ;;  %s11553_s23 = sld [smem:[#allocation5 + $0x35]] }
 0x12a   : > { %v654_v46 = vrot.slane %v650_v40, 4  ;;  %v661_v61 = vadd.f32 %v656_v49, %v623_v54  ;;  %v9778_v49 = vrot.slane %v1669_v33, 11  ;;  %v798_v54 = vunpack.c.0.s8 %v797_v23 }
 0x12b   : > { %1558 = vrot.lane.b32.xlu1 %v9760_v36, %s14816_s25  ;;  %v688_v56 = vpop.permute.xlu0 %687  ;;  %v1668_v36 = vmul.f32 %v1667_v20, %v11101_v6 }
 0x12c   : > { %v657_v53 = vsel %vm461_vm2, %v653_v41, %v654_v46  ;;  %v691_v0 = vrot.slane %v688_v56, 4  ;;  %v675_v13 = vadd.f32 %v9674_v58, %v661_v61 }
 0x12d   : > { %v690_v50 = vpop.permute.xlu1 %689  ;;  %v658_v57 = vsel %vm463_vm3, %v648_v38, %v657_v53  ;;  %1582 = vrot.lane.b32.xlu0 %v9764_v47, %s14814_s10  ;;  %v9777_v55 = vrot.slane %v1668_v36, 11  ;;  %v1690_v53 = vmul.f32 %v1689_v37, %v11101_v6  ;;  %v1693_v6 = vmul.f32 %v1689_v37, %v11109_v11 }
 0x12e   : > { %v662_v4 = vadd.f32 %v658_v57, %v624_v60  ;;  %v692_v8 = vrot.slane %v690_v50, 4  ;;  %v693_v17 = vsel %vm413_vm0, %v688_v56, %v691_v0  ;;  %v10877_v60 = vmov 1935823168  }
 0x12f   : > { %1580 = vrot.lane.b32.xlu1 %v9763_v51, %s14814_s10  ;;  %v710_v5 = vpop.permute.xlu0 %709  ;;  %v697_v30 = vadd.f32 %v693_v17, %v675_v13  ;;  %v1691_v51 = vmul.f32 %v1689_v37, %v11107_v10  ;;  %v826_v61 = vunpack.c.l.s4 %v10877_v60  ;;  %v9780_v2 = vrot.slane %v1690_v53, 11 }
 0x130   : > { %v713_v12 = vrot.slane %v710_v5, 4  ;;  %v676_v21 = vadd.f32 %v9675_v3, %v662_v4  ;;  %v694_v25 = vsel %vm413_vm0, %v690_v50, %v692_v8  ;;  %v11396_v50 = vsub.s32 4, %v768_v34 }
 0x131   : > { %v712_v9 = vpop.permute.xlu1 %711  ;;  %1612 = vrot.lane.b32.xlu0 %v9767_v62, %s14818_s24  ;;  %v1692_v3 = vmul.f32 %v1689_v37, %v11103_v7  ;;  %v11406_v4 = vsub.s32 %v798_v54, %v768_v34  ;;  %v9783_v11 = vrot.slane %v1693_v6, 11 }
 0x132   : > { %v714_v26 = vrot.slane %v712_v9, 4  ;;  %v715_v28 = vsel %vm432_vm1, %v710_v5, %v713_v12  ;;  %v698_v38 = vadd.f32 %v694_v25, %v676_v21 }
 0x133   : > { %1610 = vrot.lane.b32.xlu1 %v9766_v1, %s14818_s24  ;;  %v740_v24 = vpop.permute.xlu0 %739  ;;  %v719_v39 = vadd.f32 %v715_v28, %v697_v30  ;;  %v9781_v1 = vrot.slane %v1691_v51, 11  ;;  %v9782_v7 = vrot.slane %v1692_v3, 11 }
 0x134   : > { %v747_v29 = vrot.slane %v740_v24, 4  ;;  %v716_v42 = vsel %vm432_vm1, %v712_v9, %v714_v26 }
 0x135   : > { %v742_v27 = vpop.permute.xlu1 %741  ;;  %1616 = vrot.lane.b32.xlu0 %v9769_v15, %s14818_s24  ;;  %v720_v56 = vadd.f32 %v716_v42, %v698_v38 }
 0x136   : > { %v748_v32 = vrot.slane %v742_v27, 4  ;;  %v883_v27 = vstv %s11410_s15  ;;  %s11572_s15 = sld [smem:[#allocation5 + $0x36]] }
 0x137   : > { %1614 = vrot.lane.b32.xlu1 %v9768_v14, %s14818_s24  ;;  %v744_v41 = vpop.permute.xlu0 %743  ;;  %v827_v14 = vunpack.c.0.s8 %v826_v61 }
 0x138   : > { %v751_v40 = vsel %vm461_vm2, %v747_v29, %v748_v32  ;;  %v749_v46 = vrot.slane %v744_v41, 4 }
 0x139   : > { %v746_v43 = vpop.permute.xlu1 %745  ;;  %v752_v45 = vsel %vm463_vm3, %v740_v24, %v751_v40  ;;  %1656 = vrot.lane.b32.xlu0 %v9775_v31, %s14816_s25  ;;  %v11419_v22 = vsub.s32 %v827_v14, %v768_v34  ;;  %v11428_v34 = vld [vmem:[#allocation2 + $0xc] sm:$0xff] }
 0x13a   : > { %v750_v47 = vrot.slane %v746_v43, 4  ;;  %v757_v48 = vadd.f32 %v752_v45, %v719_v39 }
 0x13b   : > { %1654 = vrot.lane.b32.xlu1 %v9774_v35, %s14816_s25  ;;  %v11399_v59 = vpop.permute.xlu0 %892  ;;  %v885_v35 = vmul.f32 %v11428_v34, %v883_v27 }
 0x13c   : > { %v761_v57 = vadd.f32 %v760_v44, %v757_v48  ;;  %v753_v58 = vsel %vm461_vm2, %v749_v46, %v750_v47  ;;  %v896_v37 = vrot.slane %v11399_v59, 4  ;;  %v11437_v48 = vld [vmem:[#allocation2] sm:$0xff] }
 0x13d   : > { %v895_v62 = vpop.permute.xlu1 %894  ;;  %v754_v10 = vsel %vm463_vm3, %v744_v41, %v753_v58  ;;  %1678 = vrot.lane.b32.xlu0 %v9778_v49, %s14814_s10  ;;  %v953_v41 = vstv %s11417_s21  ;;  %v884_v49 = vmul.f32 %v11437_v48, %v883_v27  ;;  %s11582_s21 = sld [smem:[#allocation5 + $0x37]] }
 0x13e   : > { %v763_v63 = vmax.f32 %v761_v57, 0.0  ;;  %v758_v0 = vadd.f32 %v754_v10, %v720_v56  ;;  %v897_v28 = vrot.slane %v895_v62, 4  ;;  %v954_v53 = vmul.f32 %v11437_v48, %v953_v41 }
 0x13f   : > { %1676 = vrot.lane.b32.xlu1 %v9777_v55, %s14814_s10  ;;  %v911_v12 = vpop.permute.xlu0 %910  ;;  %v898_v55 = vsel %vm413_vm0, %v11399_v59, %v896_v37  ;;  %v955_v58 = vmul.f32 %v11428_v34, %v953_v41 }
 0x140   : > { %v770_v5 = vrot.slane %v763_v63, %v11392_v52  ;;  %v774_v8 = vrot.slane %v763_v63, %v11396_v50  ;;  %v762_v9 = vadd.f32 %v760_v44, %v758_v0  ;;  %v899_v43 = vsel %vm413_vm0, %v895_v62, %v897_v28 }
 0x141   : > { %v913_v13 = vpop.permute.xlu1 %912  ;;  %1708 = vrot.lane.b32.xlu0 %v9781_v1, %s14818_s24  ;;  %v914_v44 = vrot.slane %v911_v12, 4  ;;  %v903_v56 = vadd.f32 %v899_v43, %v885_v35  ;;  %v902_v6 = vadd.f32 %v898_v55, %v884_v49 }
 0x142   : > { %v9687_v15 = vpack.c.bf16 %v774_v8, %v770_v5  ;;  %v764_v16 = vmax.f32 %v762_v9, 0.0  ;;  %v915_v36 = vrot.slane %v913_v13, 4 }
 0x143   : > { %1706 = vrot.lane.b32.xlu1 %v9780_v2, %s14818_s24  ;;  %v933_v20 = vpop.permute.xlu0 %932  ;;  %v916_v62 = vsel %vm432_vm1, %v911_v12, %v914_v44 }
 0x144   : > { %v802_v17 = vrot.slane %v9687_v15, %v11406_v4  ;;  %v778_v18 = vrot.slane %v764_v16, %v11392_v52  ;;  %v782_v19 = vrot.slane %v764_v16, %v11396_v50  ;;  %v940_v40 = vrot.slane %v933_v20, 4 }
 0x145   : > { %v935_v21 = vpop.permute.xlu1 %934  ;;  %1712 = vrot.lane.b32.xlu0 %v9783_v11, %s14818_s24  ;;  %v917_v54 = vsel %vm432_vm1, %v913_v13, %v915_v36  ;;  %v920_v9 = vadd.f32 %v916_v62, %v902_v6  ;;  %v9695_v13 = vrot.slane %v955_v58, 9  ;;  %v9694_v11 = vrot.slane %v954_v53, 9 }
 0x146   : > { %v809_v23 = vrot.slane %v802_v17, %v11406_v4  ;;  %v9688_v24 = vpack.c.bf16 %v782_v19, %v778_v18  ;;  %v941_v39 = vrot.slane %v935_v21, 4  ;;  %v921_v1 = vadd.f32 %v917_v54, %v903_v56 }
 0x147   : > { %1710 = vrot.lane.b32.xlu1 %v9782_v7, %s14818_s24  ;;  %v937_v26 = vpop.permute.xlu0 %936 }
 0x148   : > { %v817_v25 = vrot.slane %v9688_v24, %v11406_v4  ;;  %v831_v30 = vrot.slane %v809_v23, %v11419_v22  ;;  %v942_v33 = vrot.slane %v937_v26, 4  ;;  %v944_v57 = vsel %vm461_vm2, %v940_v40, %v941_v39 }
 0x149   : > { %v939_v29 = vpop.permute.xlu1 %938  ;;  %v945_v3 = vsel %vm463_vm3, %v933_v20, %v944_v57 }
 0x14a   : > { %v824_v32 = vrot.slane %v817_v25, %v11406_v4  ;;  %v943_v31 = vrot.slane %v939_v29, 4  ;;  %v838_v46 = vrot.slane %v831_v30, %v11419_v22  ;;  %v950_v18 = vadd.f32 %v945_v3, %v920_v9 }
 0x14b   : > { %v977_v42 = vpop.permute.xlu0 %976 }
 0x14c   : > { %v845_v38 = vrot.slane %v824_v32, %v11419_v22  ;;  %v946_v51 = vsel %vm461_vm2, %v942_v33, %v943_v31  ;;  %v853_v59 = vunpack.c.l.b16 %v838_v46  ;;  %v854_v8 = vunpack.c.h.b16 %v838_v46 }
 0x14d   : > { %v979_v45 = vpop.permute.xlu1 %978  ;;  %v947_v10 = vsel %vm463_vm3, %v937_v26, %v946_v51  ;;  %v980_v20 = vrot.slane %v977_v42, 4  ;;  %v964_v33 = vadd.f32 %v9694_v11, %v950_v18 }
 0x14e   : > { %v852_v47 = vrot.slane %v845_v38, %v11419_v22  ;;  %v951_v14 = vadd.f32 %v947_v10, %v921_v1  ;;  %v981_v16 = vrot.slane %v979_v45, 4  ;;  %v1049_v38 = vstv %s11450_s17  ;;  %s11607_s17 = sld [smem:[#allocation5 + $0x39]] }
 0x14f   : > { %v999_v60 = vpop.permute.xlu0 %998  ;;  %v982_v37 = vsel %vm413_vm0, %v977_v42, %v980_v20  ;;  %v1051_v49 = vmul.f32 %v11428_v34, %v1049_v38  ;;  %v1050_v42 = vmul.f32 %v11437_v48, %v1049_v38 }
 0x150   : > { %v855_v61 = vunpack.c.l.b16 %v852_v47  ;;  %v856_v0 = vunpack.c.h.b16 %v852_v47  ;;  %v965_v21 = vadd.f32 %v9695_v13, %v951_v14  ;;  %v983_v27 = vsel %vm413_vm0, %v979_v45, %v981_v16 }
 0x151   : > { %v1001_v63 = vpop.permute.xlu1 %1000  ;;  %v1002_v29 = vrot.slane %v999_v60, 4  ;;  %v986_v47 = vadd.f32 %v982_v37, %v964_v33  ;;  %v9708_v62 = vrot.slane %v1050_v42, 10  ;;  %v1145_v14 = vstv %s11474_s9  ;;  %s11614_s9 = sld [smem:[#allocation5 + $0x3a]] }
 0x152   : > { %v857_v2 = vrot.slane %v855_v61, 7  ;;  %v860_v5 = vrot.slane %v856_v0, 7  ;;  %v1003_v28 = vrot.slane %v1001_v63, 4  ;;  %v987_v39 = vadd.f32 %v983_v27, %v965_v21 }
 0x153   : > { %v1029_v15 = vpop.permute.xlu0 %1028  ;;  %v1004_v45 = vsel %vm432_vm1, %v999_v60, %v1002_v29  ;;  %v9709_v61 = vrot.slane %v1051_v49, 10  ;;  %v1146_v20 = vmul.f32 %v11437_v48, %v1145_v14 }
 0x154   : > { %v859_v12 = vsel %vm858_vm4, %v857_v2, %v853_v59  ;;  %v861_v17 = vsel %vm858_vm4, %v860_v5, %v854_v8  ;;  %v1036_v24 = vrot.slane %v1029_v15, 4  ;;  %v1005_v44 = vsel %vm432_vm1, %v1001_v63, %v1003_v28 }
 0x155   : > { %v1031_v7 = vpop.permute.xlu1 %1030  ;;  %v862_v19 = vpack.c.b16 %v861_v17, %v859_v12  ;;  %v1009_v55 = vadd.f32 %v1005_v44, %v987_v39  ;;  %v1008_v53 = vadd.f32 %v1004_v45, %v986_v47  ;;  %v9722_v33 = vrot.slane %v1146_v20, 11 }
 0x156   : > { %v1037_v23 = vrot.slane %v1031_v7, 4 }
 0x157   : > { %v1033_v25 = vpop.permute.xlu0 %1032  ;;  %v869_v26 = vrot.slane %v862_v19, %v11406_v4 }
 0x158   : > { %v1038_v32 = vrot.slane %v1033_v25, 4  ;;  %v1040_v40 = vsel %vm461_vm2, %v1036_v24, %v1037_v23 }
 0x159   : > { %v1035_v30 = vpop.permute.xlu1 %1034  ;;  %v876_v36 = vrot.slane %v869_v26, %v11406_v4  ;;  %v1041_v51 = vsel %vm463_vm3, %v1029_v15, %v1040_v40 }
 0x15a   : > { %v1039_v35 = vrot.slane %v1035_v30, 4  ;;  %v1046_v58 = vadd.f32 %v1041_v51, %v1008_v53 }
 0x15b   : > { %v1073_v43 = vpop.permute.xlu0 %1072  ;;  %881 = vst.msk [vmem:[#allocation3] sm:$0x3] %vm11457_vm7, %v876_v36 }
 0x15c   : > { %v1042_v41 = vsel %vm461_vm2, %v1038_v32, %v1039_v35  ;;  %v1076_v63 = vrot.slane %v1073_v43, 4  ;;  %v1060_v3 = vadd.f32 %v9708_v62, %v1046_v58 }
 0x15d   : > { %v1075_v46 = vpop.permute.xlu1 %1074  ;;  %v1043_v54 = vsel %vm463_vm3, %v1033_v25, %v1042_v41  ;;  %v1147_v25 = vmul.f32 %v11428_v34, %v1145_v14 }
 0x15e   : > { %v1047_v60 = vadd.f32 %v1043_v54, %v1009_v55  ;;  %v1077_v10 = vrot.slane %v1075_v46, 4  ;;  %v1078_v13 = vsel %vm413_vm0, %v1073_v43, %v1076_v63 }
 0x15f   : > { %v1095_v56 = vpop.permute.xlu0 %1094  ;;  %v1082_v18 = vadd.f32 %v1078_v13, %v1060_v3  ;;  %v9723_v36 = vrot.slane %v1147_v25, 11 }
 0x160   : > { %v1098_v6 = vrot.slane %v1095_v56, 4  ;;  %v1061_v59 = vadd.f32 %v9709_v61, %v1047_v60  ;;  %v1079_v8 = vsel %vm413_vm0, %v1075_v46, %v1077_v10  ;;  %v1241_v10 = vstv %s11487_s13  ;;  %s11616_s13 = sld [smem:[#allocation8 + $0x2]] }
 0x161   : > { %v1097_v57 = vpop.permute.xlu1 %1096 }
 0x162   : > { %v1099_v9 = vrot.slane %v1097_v57, 4  ;;  %v1100_v16 = vsel %vm432_vm1, %v1095_v56, %v1098_v6  ;;  %v1083_v17 = vadd.f32 %v1079_v8, %v1061_v59 }
 0x163   : > { %v1125_v0 = vpop.permute.xlu0 %1124  ;;  %v1104_v24 = vadd.f32 %v1100_v16, %v1082_v18 }
 0x164   : > { %v1132_v2 = vrot.slane %v1125_v0, 4  ;;  %v1101_v21 = vsel %vm432_vm1, %v1097_v57, %v1099_v9 }
 0x165   : > { %v1127_v1 = vpop.permute.xlu1 %1126  ;;  %v1105_v30 = vadd.f32 %v1101_v21, %v1083_v17 }
 0x166   : > { %v1133_v5 = vrot.slane %v1127_v1, 4 }
 0x167   : > { %v1129_v12 = vpop.permute.xlu0 %1128 }
 0x168   : > { %v1136_v15 = vsel %vm461_vm2, %v1132_v2, %v1133_v5  ;;  %v1134_v7 = vrot.slane %v1129_v12, 4 }
 0x169   : > { %v1131_v11 = vpop.permute.xlu1 %1130  ;;  %v1137_v23 = vsel %vm463_vm3, %v1125_v0, %v1136_v15 }
 0x16a   : > { %v1135_v19 = vrot.slane %v1131_v11, 4  ;;  %v1142_v32 = vadd.f32 %v1137_v23, %v1104_v24 }
 0x16b   : > { %v1169_v27 = vpop.permute.xlu0 %1168 }
 0x16c   : > { %v1138_v26 = vsel %vm461_vm2, %v1134_v7, %v1135_v19  ;;  %v1172_v35 = vrot.slane %v1169_v27, 4  ;;  %v1156_v43 = vadd.f32 %v9722_v33, %v1142_v32 }
 0x16d   : > { %v1171_v28 = vpop.permute.xlu1 %1170  ;;  %v1139_v29 = vsel %vm463_vm3, %v1129_v12, %v1138_v26 }
 0x16e   : > { %v1143_v37 = vadd.f32 %v1139_v29, %v1105_v30  ;;  %v1173_v39 = vrot.slane %v1171_v28, 4  ;;  %v1174_v44 = vsel %vm413_vm0, %v1169_v27, %v1172_v35  ;;  %v1369_v27 = vstv %s11500_s30  ;;  %s9814_s30 = sld [smem:[#allocation5 + $0x3b]] }
 0x16f   : > { %v1191_v38 = vpop.permute.xlu0 %1190  ;;  %v1178_v55 = vadd.f32 %v1174_v44, %v1156_v43  ;;  %v1439_v44 = vstv %s11505_s19  ;;  %s11641_s19 = sld [smem:[#allocation5 + $0x3d]] }
 0x170   : > { %v1194_v41 = vrot.slane %v1191_v38, 4  ;;  %v1157_v45 = vadd.f32 %v9723_v36, %v1143_v37  ;;  %v1175_v47 = vsel %vm413_vm0, %v1171_v28, %v1173_v39  ;;  %v1371_v39 = vmul.f32 %v11428_v34, %v1369_v27 }
 0x171   : > { %v1193_v40 = vpop.permute.xlu1 %1192 }
 0x172   : > { %v1195_v49 = vrot.slane %v1193_v40, 4  ;;  %v1196_v51 = vsel %vm432_vm1, %v1191_v38, %v1194_v41  ;;  %v1179_v56 = vadd.f32 %v1175_v47, %v1157_v45 }
 0x173   : > { %v1221_v46 = vpop.permute.xlu0 %1220  ;;  %v1200_v57 = vadd.f32 %v1196_v51, %v1178_v55 }
 0x174   : > { %v1228_v54 = vrot.slane %v1221_v46, 4  ;;  %v1197_v60 = vsel %vm432_vm1, %v1193_v40, %v1195_v49 }
 0x175   : > { %v1223_v42 = vpop.permute.xlu1 %1222  ;;  %v1201_v2 = vadd.f32 %v1197_v60, %v1179_v56 }
 0x176   : > { %v1229_v53 = vrot.slane %v1223_v42, 4 }
 0x177   : > { %v1225_v61 = vpop.permute.xlu0 %1224 }
 0x178   : > { %v1232_v58 = vsel %vm461_vm2, %v1228_v54, %v1229_v53  ;;  %v1230_v0 = vrot.slane %v1225_v61, 4  ;;  %v1441_v54 = vmul.f32 %v11428_v34, %v1439_v44 }
 0x179   : > { %v1227_v62 = vpop.permute.xlu1 %1226  ;;  %v1233_v63 = vsel %vm463_vm3, %v1221_v46, %v1232_v58 }
 0x17a   : > { %v1231_v1 = vrot.slane %v1227_v62, 4  ;;  %v1238_v6 = vadd.f32 %v1233_v63, %v1200_v57 }
 0x17b   : > { %v1381_v5 = vpop.permute.xlu0 %1380 }
 0x17c   : > { %v1242_v59 = vadd.f32 %v1241_v10, %v1238_v6  ;;  %v1234_v3 = vsel %vm461_vm2, %v1230_v0, %v1231_v1  ;;  %v1383_v29 = vrot.slane %v1381_v5, 4 }
 0x17d   : > { %v1379_v8 = vpop.permute.xlu1 %1378  ;;  %v1235_v9 = vsel %vm463_vm3, %v1225_v61, %v1234_v3  ;;  %v9744_v3 = vrot.slane %v1441_v54, 9 }
 0x17e   : > { %v1244_v13 = vmax.f32 %v1242_v59, 0.0  ;;  %v1239_v14 = vadd.f32 %v1235_v9, %v1201_v2  ;;  %v1385_v41 = vsel %vm413_vm0, %v1381_v5, %v1383_v29  ;;  %v1382_v55 = vrot.slane %v1379_v8, 4 }
 0x17f   : > { %v1399_v11 = vpop.permute.xlu0 %1398  ;;  %v1389_v51 = vadd.f32 %v1385_v41, %v1371_v39  ;;  %v1370_v59 = vmul.f32 %v11437_v48, %v1369_v27 }
 0x180   : > { %v1251_v15 = vrot.slane %v1244_v13, %v11392_v52  ;;  %v1255_v12 = vrot.slane %v1244_v13, %v11396_v50  ;;  %v1243_v16 = vadd.f32 %v1241_v10, %v1239_v14  ;;  %v1401_v32 = vrot.slane %v1399_v11, 4 }
 0x181   : > { %v1397_v7 = vpop.permute.xlu1 %1396  ;;  %v1384_v5 = vsel %vm413_vm0, %v1379_v8, %v1382_v55 }
 0x182   : > { %v9736_v17 = vpack.c.bf16 %v1255_v12, %v1251_v15  ;;  %v1245_v18 = vmax.f32 %v1243_v16, 0.0  ;;  %v1403_v46 = vsel %vm432_vm1, %v1399_v11, %v1401_v32  ;;  %v1400_v53 = vrot.slane %v1397_v7, 4 }
 0x183   : > { %v1421_v23 = vpop.permute.xlu0 %1420  ;;  %v1407_v60 = vadd.f32 %v1403_v46, %v1389_v51 }
 0x184   : > { %v1283_v19 = vrot.slane %v9736_v17, %v11406_v4  ;;  %v1259_v20 = vrot.slane %v1245_v18, %v11392_v52  ;;  %v1263_v21 = vrot.slane %v1245_v18, %v11396_v50  ;;  %v1427_v62 = vrot.slane %v1421_v23, 4 }
 0x185   : > { %v1419_v24 = vpop.permute.xlu1 %1418  ;;  %v1402_v17 = vsel %vm432_vm1, %v1397_v7, %v1400_v53  ;;  %v1440_v18 = vmul.f32 %v11437_v48, %v1439_v44 }
 0x186   : > { %v1290_v25 = vrot.slane %v1283_v19, %v11406_v4  ;;  %v9737_v26 = vpack.c.bf16 %v1263_v21, %v1259_v20  ;;  %v1426_v61 = vrot.slane %v1419_v24, 4  ;;  %v1388_v19 = vadd.f32 %v1384_v5, %v1370_v59 }
 0x187   : > { %v1425_v30 = vpop.permute.xlu0 %1424  ;;  %v1859_v21 = vstv %s11523_s26  ;;  %v9743_v32 = vrot.slane %v1440_v18, 9  ;;  %s9787_s26 = sld [smem:[#allocation5 + $0x30]] }
 0x188   : > { %v1298_v28 = vrot.slane %v9737_v26, %v11406_v4  ;;  %v1312_v35 = vrot.slane %v1290_v25, %v11419_v22  ;;  %v1429_v38 = vrot.slane %v1425_v30, 4  ;;  %v1430_v12 = vsel %vm461_vm2, %v1426_v61, %v1427_v62 }
 0x189   : > { %v1423_v33 = vpop.permute.xlu1 %1422  ;;  %v1431_v23 = vsel %vm463_vm3, %v1419_v24, %v1430_v12  ;;  %v1406_v27 = vadd.f32 %v1402_v17, %v1388_v19  ;;  %v1631_v12 = vstv %s11558_s20  ;;  %s14813_s20 = smov 96  }
 0x18a   : > { %v1305_v36 = vrot.slane %v1298_v28, %v11406_v4  ;;  %v1428_v37 = vrot.slane %v1423_v33, 4  ;;  %v1319_v49 = vrot.slane %v1312_v35, %v11419_v22  ;;  %v1860_v35 = vmul.f32 %v11437_v48, %v1859_v21 }
 0x18b   : > { %v1465_v43 = vpop.permute.xlu0 %1464 }
 0x18c   : > { %v1326_v40 = vrot.slane %v1305_v36, %v11419_v22  ;;  %v1432_v47 = vsel %vm461_vm2, %v1428_v37, %v1429_v38  ;;  %v1334_v0 = vunpack.c.l.b16 %v1319_v49  ;;  %v1335_v1 = vunpack.c.h.b16 %v1319_v49 }
 0x18d   : > { %v11516_v45 = vpop.permute.xlu1 %1462  ;;  %v1433_v10 = vsel %vm463_vm3, %v1423_v33, %v1432_v47  ;;  %v1467_v20 = vrot.slane %v1465_v43, 4  ;;  %v1436_v36 = vadd.f32 %v1431_v23, %v1406_v27  ;;  %v1877_v38 = vstv %s11529_s27  ;;  %s11765_s27 = sld [smem:[#allocation5 + $0x34]] }
 0x18e   : > { %v1333_v42 = vrot.slane %v1326_v40, %v11419_v22  ;;  %v1437_v9 = vadd.f32 %v1433_v10, %v1407_v60  ;;  %v1466_v24 = vrot.slane %v11516_v45, 4  ;;  %v1878_v53 = vmul.f32 %v11437_v48, %v1877_v38 }
 0x18f   : > { %v1487_v56 = vpop.permute.xlu0 %1486  ;;  %v1469_v37 = vsel %vm413_vm0, %v1465_v43, %v1467_v20  ;;  %v11570_v60 = vstv %s11542_s18  ;;  %s9828_s18 = sld [smem:[#allocation5 + $0x3f]] }
 0x190   : > { %v1336_v57 = vunpack.c.l.b16 %v1333_v42  ;;  %v1337_v58 = vunpack.c.h.b16 %v1333_v42  ;;  %v1451_v25 = vadd.f32 %v9744_v3, %v1437_v9  ;;  %v1489_v28 = vrot.slane %v1487_v56, 4 }
 0x191   : > { %v11526_v63 = vpop.permute.xlu1 %1484  ;;  %v1535_v42 = vstv %s11535_s12  ;;  %v1468_v54 = vsel %vm413_vm0, %v11516_v45, %v1466_v24  ;;  %v1896_v59 = vmul.f32 %v11437_v48, %v11570_v60  ;;  %v1939_v9 = vstv %s11553_s23  ;;  %s11649_s12 = sld [smem:[#allocation5 + $0x3e]] }
 0x192   : > { %v1338_v6 = vrot.slane %v1336_v57, 7  ;;  %v1340_v2 = vrot.slane %v1337_v58, 7  ;;  %v1473_v39 = vadd.f32 %v1469_v37, %v1451_v25  ;;  %v1488_v47 = vrot.slane %v11526_v63, 4  ;;  %s11784_s23 = sld [smem:[#allocation5 + $0x38]] }
 0x193   : > { %v1517_v13 = vpop.permute.xlu0 %1516  ;;  %v1491_v49 = vsel %vm432_vm1, %v1487_v56, %v1489_v28  ;;  %v1537_v43 = vmul.f32 %v11428_v34, %v1535_v42  ;;  %v1450_v57 = vadd.f32 %v9743_v32, %v1436_v36  ;;  %v1536_v62 = vmul.f32 %v11437_v48, %v1535_v42 }
 0x194   : > { %v1339_v14 = vsel %vm858_vm4, %v1338_v6, %v1334_v0  ;;  %v1341_v15 = vsel %vm858_vm4, %v1340_v2, %v1335_v1  ;;  %v1523_v41 = vrot.slane %v1517_v13, 4  ;;  %v1495_v58 = vadd.f32 %v1491_v49, %v1473_v39 }
 0x195   : > { %v1515_v16 = vpop.permute.xlu1 %1514  ;;  %v1342_v11 = vpack.c.b16 %v1341_v15, %v1339_v14  ;;  %v1490_v45 = vsel %vm432_vm1, %v11526_v63, %v1488_v47  ;;  %v1472_v0 = vadd.f32 %v1468_v54, %v1450_v57  ;;  %v9758_v6 = vrot.slane %v1537_v43, 10 }
 0x196   : > { %v1522_v40 = vrot.slane %v1515_v16, 4  ;;  %v9757_v63 = vrot.slane %v1536_v62, 10  ;;  %v1940_v23 = vmul.f32 %v11437_v48, %v1939_v9  ;;  %v11605_v49 = vstv %s11582_s21  ;;  %s9833_s21 = sld [smem:[#allocation8 + $0x3]] }
 0x197   : > { %v1349_v8 = vrot.slane %v1342_v11, %v11406_v4  ;;  %v1521_v26 = vpop.permute.xlu0 %1520  ;;  %v1494_v3 = vadd.f32 %v1490_v45, %v1472_v0 }
 0x198   : > { %v1525_v30 = vrot.slane %v1521_v26, 4  ;;  %v1526_v56 = vsel %vm461_vm2, %v1522_v40, %v1523_v41  ;;  %v1961_v26 = vstv %s11572_s15  ;;  %v9795_v39 = vrot.slane %v1940_v23, 9  ;;  %s11798_s15 = sld [smem:[#allocation5 + $0x3c]] }
 0x199   : > { %v1519_v29 = vpop.permute.xlu1 %1518  ;;  %v1356_v7 = vrot.slane %v1349_v8, %v11406_v4  ;;  %v1527_v2 = vsel %vm463_vm3, %v1515_v16, %v1526_v56  ;;  %v1898_v8 = vmul.f32 %v11428_v34, %v11570_v60  ;;  %v1962_v40 = vmul.f32 %v11437_v48, %v1961_v26 }
 0x19a   : > { %v1524_v33 = vrot.slane %v1519_v29, 4  ;;  %v1532_v11 = vadd.f32 %v1527_v2, %v1494_v3  ;;  %v1986_v3 = vmul.f32 %v11428_v34, %v11605_v49 }
 0x19b   : > { %1357 = vrot.lane.b32.xlu0 %v1356_v7, %s14814_s10  ;;  %v1561_v46 = vpop.permute.xlu0 %1560  ;;  %v9798_v57 = vrot.slane %v1962_v40, 9 }
 0x19c   : > { %v1528_v44 = vsel %vm461_vm2, %v1524_v33, %v1525_v30  ;;  %v1563_v14 = vrot.slane %v1561_v46, 4  ;;  %v1632_v30 = vmul.f32 %v11437_v48, %v1631_v12  ;;  %v1546_v32 = vadd.f32 %v9757_v63, %v1532_v11 }
 0x19d   : > { %v1559_v51 = vpop.permute.xlu1 %1558  ;;  %v1529_v55 = vsel %vm463_vm3, %v1519_v29, %v1528_v44 }
 0x19e   : > { %v1533_v1 = vadd.f32 %v1529_v55, %v1495_v58  ;;  %v1562_v13 = vrot.slane %v1559_v51, 4  ;;  %v1565_v28 = vsel %vm413_vm0, %v1561_v46, %v1563_v14  ;;  %v1633_v46 = vmul.f32 %v11428_v34, %v1631_v12 }
 0x19f   : > { %1864 = vrot.lane.b32.xlu0 %v1860_v35, %s14816_s25  ;;  %v1583_v61 = vpop.permute.xlu0 %1582  ;;  %v1984_v58 = vmul.f32 %v11437_v48, %v11605_v49  ;;  %v9771_v56 = vrot.slane %v1632_v30, 11  ;;  %v2035_v14 = vstv %s11607_s17  ;;  %s9837_s17 = sld [smem:[#allocation5 + $0x41]] }
 0x1a0   : > { %v1547_v17 = vadd.f32 %v9758_v6, %v1533_v1  ;;  %v1585_v20 = vrot.slane %v1583_v61, 4  ;;  %v1564_v27 = vsel %vm413_vm0, %v1559_v51, %v1562_v13  ;;  %v9772_v62 = vrot.slane %v1633_v46, 11 }
 0x1a1   : > { %v1581_v10 = vpop.permute.xlu1 %1580  ;;  %v1568_v41 = vadd.f32 %v1564_v27, %v1546_v32  ;;  %v11639_v46 = vstv %s9814_s30  ;;  %s14812_s30 = smov 80  }
 0x1a2   : > { %v1584_v19 = vrot.slane %v1581_v10, 4  ;;  %v1569_v33 = vadd.f32 %v1565_v28, %v1547_v17  ;;  %v1587_v37 = vsel %vm432_vm1, %v1583_v61, %v1585_v20  ;;  %v9803_v20 = vrot.slane %v1986_v3, 9 }
 0x1a3   : > { %1882 = vrot.lane.b32.xlu0 %v1878_v53, %s14814_s10  ;;  %v1613_v5 = vpop.permute.xlu0 %1612 }
 0x1a4   : > { %v1619_v18 = vrot.slane %v1613_v5, 4  ;;  %v1586_v24 = vsel %vm432_vm1, %v1581_v10, %v1584_v19  ;;  %v1591_v55 = vadd.f32 %v1587_v37, %v1569_v33 }
 0x1a5   : > { %v1611_v15 = vpop.permute.xlu1 %1610  ;;  %v1590_v54 = vadd.f32 %v1586_v24, %v1568_v41 }
 0x1a6   : > { %v1618_v16 = vrot.slane %v1611_v15, 4 }
 0x1a7   : > { %1904 = vrot.lane.b32.xlu0 %v1896_v59, %s14818_s24  ;;  %v1617_v25 = vpop.permute.xlu0 %1616  ;;  %v9801_v59 = vrot.slane %v1984_v58, 9 }
 0x1a8   : > { %v1621_v7 = vrot.slane %v1617_v25, 4  ;;  %v1622_v36 = vsel %vm461_vm2, %v1618_v16, %v1619_v18 }
 0x1a9   : > { %v1615_v29 = vpop.permute.xlu1 %1614  ;;  %v1623_v42 = vsel %vm463_vm3, %v1611_v15, %v1622_v36 }
 0x1aa   : > { %v1620_v35 = vrot.slane %v1615_v29, 4  ;;  %v1628_v61 = vadd.f32 %v1623_v42, %v1590_v54  ;;  %v2080_v54 = vmul.f32 %v11437_v48, %v11639_v46 }
 0x1ab   : > { %1908 = vrot.lane.b32.xlu0 %v1898_v8, %s14818_s24  ;;  %v1657_v47 = vpop.permute.xlu0 %1656  ;;  %v2036_v8 = vmul.f32 %v11437_v48, %v2035_v14 }
 0x1ac   : > { %v1624_v44 = vsel %vm461_vm2, %v1620_v35, %v1621_v7  ;;  %v1659_v2 = vrot.slane %v1657_v47, 4  ;;  %v1642_v5 = vadd.f32 %v9771_v56, %v1628_v61  ;;  %v1727_v7 = vstv %s11616_s13  ;;  %s9839_s13 = sld [smem:[#allocation5 + $0x43]] }
 0x1ad   : > { %v1655_v51 = vpop.permute.xlu1 %1654  ;;  %v1625_v43 = vsel %vm463_vm3, %v1615_v29, %v1624_v44  ;;  %v2057_v29 = vstv %s11614_s9  ;;  %v9809_v37 = vrot.slane %v2036_v8, 10  ;;  %v9815_v61 = vrot.slane %v2080_v54, 10  ;;  %s9838_s9 = sld [smem:[#allocation5 + $0x42]] }
 0x1ae   : > { %v1658_v53 = vrot.slane %v1655_v51, 4  ;;  %v1629_v45 = vadd.f32 %v1625_v43, %v1591_v55  ;;  %v1661_v19 = vsel %vm413_vm0, %v1657_v47, %v1659_v2  ;;  %v1963_v54 = vmul.f32 %v11428_v34, %v1961_v26 }
 0x1af   : > { %1948 = vrot.lane.b32.xlu0 %v9795_v39, %s14816_s25  ;;  %v1679_v10 = vpop.permute.xlu0 %1678  ;;  %v2058_v39 = vmul.f32 %v11437_v48, %v2057_v29 }
 0x1b0   : > { %v1660_v6 = vsel %vm413_vm0, %v1655_v51, %v1658_v53  ;;  %v1643_v63 = vadd.f32 %v9772_v62, %v1629_v45  ;;  %v1681_v12 = vrot.slane %v1679_v10, 4  ;;  %v2082_v45 = vmul.f32 %v11428_v34, %v11639_v46 }
 0x1b1   : > { %v1677_v0 = vpop.permute.xlu1 %1676  ;;  %v1664_v16 = vadd.f32 %v1660_v6, %v1642_v5  ;;  %v9812_v43 = vrot.slane %v2058_v39, 10 }
 0x1b2   : > { %v1680_v1 = vrot.slane %v1677_v0, 4  ;;  %v1665_v25 = vadd.f32 %v1661_v19, %v1643_v63  ;;  %v1683_v30 = vsel %vm432_vm1, %v1679_v10, %v1681_v12  ;;  %v2153_v63 = vstv %s11649_s12  ;;  %s9846_s12 = sld [smem:[#allocation5 + $0x46]] }
 0x1b3   : > { %1970 = vrot.lane.b32.xlu0 %v9798_v57, %s14814_s10  ;;  %v1709_v13 = vpop.permute.xlu0 %1708 }
 0x1b4   : > { %v1682_v15 = vsel %vm432_vm1, %v1677_v0, %v1680_v1  ;;  %v1715_v17 = vrot.slane %v1709_v13, 4  ;;  %v1687_v40 = vadd.f32 %v1683_v30, %v1665_v25  ;;  %v2131_v1 = vstv %s11641_s19  ;;  %s9843_s19 = sld [smem:[#allocation5 + $0x45]] }
 0x1b5   : > { %v1707_v11 = vpop.permute.xlu1 %1706  ;;  %v1686_v23 = vadd.f32 %v1682_v15, %v1664_v16  ;;  %v2132_v3 = vmul.f32 %v11437_v48, %v2131_v1  ;;  %v11672_v16 = vstv %s9828_s18  ;;  %s9849_s18 = sld [smem:[#allocation5 + $0x47]] }
 0x1b6   : > { %v1714_v18 = vrot.slane %v1707_v11, 4  ;;  %v2176_v8 = vmul.f32 %v11437_v48, %v11672_v16 }
 0x1b7   : > { %2000 = vrot.lane.b32.xlu0 %v9801_v59, %s14818_s24  ;;  %v1713_v28 = vpop.permute.xlu0 %1712  ;;  %v9817_v59 = vrot.slane %v2082_v45, 10  ;;  %v9823_v12 = vrot.slane %v2132_v3, 11 }
 0x1b8   : > { %v1718_v27 = vsel %vm461_vm2, %v1714_v18, %v1715_v17  ;;  %v1717_v35 = vrot.slane %v1713_v28, 4 }
 0x1b9   : > { %v1719_v32 = vsel %vm463_vm3, %v1707_v11, %v1718_v27  ;;  %v1711_v33 = vpop.permute.xlu1 %1710  ;;  %v2154_v11 = vmul.f32 %v11437_v48, %v2153_v63 }
 0x1ba   : > { %v1724_v36 = vadd.f32 %v1719_v32, %v1686_v23  ;;  %v1716_v24 = vrot.slane %v1711_v33, 4  ;;  %v9829_v32 = vrot.slane %v2176_v8, 11 }
 0x1bb   : > { %2004 = vrot.lane.b32.xlu0 %v9803_v20, %s14818_s24  ;;  %v9826_v20 = vrot.slane %v2154_v11, 11 }
 0x1bc   : > { %v1728_v41 = vadd.f32 %v1727_v7, %v1724_v36  ;;  %v1720_v44 = vsel %vm461_vm2, %v1716_v24, %v1717_v35 }
 0x1bd   : > { %v1721_v47 = vsel %vm463_vm3, %v1711_v33, %v1720_v44  ;;  %v2178_v33 = vmul.f32 %v11428_v34, %v11672_v16  ;;  %v1879_v44 = vmul.f32 %v11428_v34, %v1877_v38 }
 0x1be   : > { %v1730_v42 = vmax.f32 %v1728_v41, 0.0  ;;  %v1725_v51 = vadd.f32 %v1721_v47, %v1687_v40  ;;  %v1861_v41 = vmul.f32 %v11428_v34, %v1859_v21  ;;  %v11697_v47 = vld [vmem:[#allocation2 + $0x8] sm:$0xf] }
 0x1bf   : > { %2044 = vrot.lane.b32.xlu0 %v9809_v37, %s14816_s25  ;;  %v9831_v39 = vrot.slane %v2178_v33, 11  ;;  %v2081_v45 = vmul.f32 %v11697_v47, %v11639_v46 }
 0x1c0   : > { %v1737_v55 = vrot.slane %v1730_v42, %v11392_v52  ;;  %v1741_v53 = vrot.slane %v1730_v42, %v11396_v50  ;;  %v1729_v57 = vadd.f32 %v1727_v7, %v1725_v51  ;;  %v1897_v42 = vmul.f32 %v11697_v47, %v11570_v60  ;;  %v11702_v51 = vld [vmem:[#allocation2 + $0x14] sm:$0xf] }
 0x1c1   : > { %v1899_v21 = vmul.f32 %v11702_v51, %v11570_v60  ;;  %v1987_v60 = vmul.f32 %v11702_v51, %v11605_v49 }
 0x1c2   : > { %v9785_v58 = vpack.c.bf16 %v1741_v53, %v1737_v55  ;;  %v1731_v56 = vmax.f32 %v1729_v57, 0.0  ;;  %v9799_v55 = vrot.slane %v1963_v54, 9  ;;  %v1985_v53 = vmul.f32 %v11697_v47, %v11605_v49 }
 0x1c3   : > { %2066 = vrot.lane.b32.xlu0 %v9812_v43, %s14814_s10  ;;  %v1941_v43 = vmul.f32 %v11428_v34, %v1939_v9  ;;  %v9804_v9 = vrot.slane %v1987_v60, 9  ;;  %v9816_v49 = vrot.slane %v2081_v45, 10 }
 0x1c4   : > { %v1769_v62 = vrot.slane %v9785_v58, %v11406_v4  ;;  %v1745_v10 = vrot.slane %v1731_v56, %v11392_v52  ;;  %v1749_v0 = vrot.slane %v1731_v56, %v11396_v50  ;;  %v9802_v57 = vrot.slane %v1985_v53, 9  ;;  %v11777_v53 = vld [vmem:[#allocation2] sm:$0xff] }
 0x1c5   : > { %v9796_v38 = vrot.slane %v1941_v43, 9  ;;  %v2037_v58 = vmul.f32 %v11428_v34, %v2035_v14  ;;  %v2059_v56 = vmul.f32 %v11428_v34, %v2057_v29 }
 0x1c6   : > { %v9786_v6 = vpack.c.bf16 %v1749_v0, %v1745_v10  ;;  %v1776_v2 = vrot.slane %v1769_v62, %v11406_v4  ;;  %v2083_v62 = vmul.f32 %v11702_v51, %v11639_v46  ;;  %v2133_v10 = vmul.f32 %v11428_v34, %v2131_v1 }
 0x1c7   : > { %2096 = vrot.lane.b32.xlu0 %v9815_v61, %s14818_s24  ;;  %v9810_v26 = vrot.slane %v2037_v58, 10  ;;  %v9813_v61 = vrot.slane %v2059_v56, 10 }
 0x1c8   : > { %v1784_v5 = vrot.slane %v9786_v6, %v11406_v4  ;;  %v1798_v15 = vrot.slane %v1776_v2, %v11419_v22  ;;  %v9818_v14 = vrot.slane %v2083_v62, 10  ;;  %v9824_v0 = vrot.slane %v2133_v10, 11 }
 0x1c9   : > { %v2155_v6 = vmul.f32 %v11428_v34, %v2153_v63  ;;  %v2179_v34 = vmul.f32 %v11702_v51, %v11672_v16 }
 0x1ca   : > { %v1791_v13 = vrot.slane %v1784_v5, %v11406_v4  ;;  %v1805_v18 = vrot.slane %v1798_v15, %v11419_v22 }
 0x1cb   : > { %2100 = vrot.lane.b32.xlu0 %v9817_v59, %s14818_s24  ;;  %v9827_v1 = vrot.slane %v2155_v6, 11  ;;  %v2177_v59 = vmul.f32 %v11697_v47, %v11672_v16  ;;  %v9832_v63 = vrot.slane %v2179_v34, 11 }
 0x1cc   : > { %v1812_v17 = vrot.slane %v1791_v13, %v11419_v22  ;;  %v1820_v27 = vunpack.c.l.b16 %v1805_v18  ;;  %v1821_v28 = vunpack.c.h.b16 %v1805_v18 }
 0x1cd   : > { %v9830_v5 = vrot.slane %v2177_v59, 11 }
 0x1ce   : > { %v1819_v19 = vrot.slane %v1812_v17, %v11419_v22 }
 0x1cf   : > { %2140 = vrot.lane.b32.xlu0 %v9823_v12, %s14816_s25 }
 0x1d0   : > { %v1822_v23 = vunpack.c.l.b16 %v1819_v19  ;;  %v1823_v25 = vunpack.c.h.b16 %v1819_v19 }
 0x1d2   : > { %v1824_v30 = vrot.slane %v1822_v23, 7  ;;  %v1826_v7 = vrot.slane %v1823_v25, 7 }
 0x1d3   : > { %2162 = vrot.lane.b32.xlu0 %v9826_v20, %s14814_s10 }
 0x1d4   : > { %v1825_v35 = vsel %vm858_vm4, %v1824_v30, %v1820_v27  ;;  %v1827_v36 = vsel %vm858_vm4, %v1826_v7, %v1821_v28  ;;  %v1855_v28 = vstv %s9787_s26  ;;  %s9857_s26 = sld [smem:[#allocation5 + $0x49]] }
 0x1d5   : > { %v1828_v24 = vpack.c.b16 %v1827_v36, %v1825_v35 }
 0x1d7   : > { %v1835_v37 = vrot.slane %v1828_v24, %v11406_v4  ;;  %2192 = vrot.lane.b32.xlu0 %v9829_v32, %s14818_s24  ;;  %v1856_v32 = vmul.f32 %v11437_v48, %v1855_v28 }
 0x1d9   : > { %v1842_v40 = vrot.slane %v1835_v37, %v11406_v4 }
 0x1db   : > { %1843 = vrot.lane.b32.xlu1 %v1842_v40, %s14813_s20  ;;  %2196 = vrot.lane.b32.xlu0 %v9831_v39, %s14818_s24  ;;  %v1925_v40 = vstv %s11765_s27  ;;  %s9860_s27 = sld [smem:[#allocation5 + $0x4a]] }
 0x1dc   : > { %s12700_s20 = sld [smem:[#allocation5 + $0x95]] }
 0x1df   : > { %1866 = vrot.lane.b32.xlu1 %v1861_v41, %s14816_s25 }
 0x1e3   : > { %1884 = vrot.lane.b32.xlu1 %v1879_v44, %s14814_s10 }
 0x1e7   : > { %1906 = vrot.lane.b32.xlu1 %v1897_v42, %s14818_s24 }
 0x1eb   : > { %1910 = vrot.lane.b32.xlu1 %v1899_v21, %s14818_s24 }
 0x1ef   : > { %1950 = vrot.lane.b32.xlu1 %v9796_v38, %s14816_s25 }
 0x1f3   : > { %1972 = vrot.lane.b32.xlu1 %v9799_v55, %s14814_s10  ;;  %v11774_v55 = vld [vmem:[#allocation2 + $0xc] sm:$0xff] }
 0x1f4   : > { %v1857_v48 = vmul.f32 %v11774_v55, %v1855_v28  ;;  %v1927_v10 = vmul.f32 %v11774_v55, %v1925_v40 }
 0x1f7   : > { %2002 = vrot.lane.b32.xlu1 %v9802_v57, %s14818_s24  ;;  %v1926_v57 = vmul.f32 %v11777_v53, %v1925_v40 }
 0x1fb   : > { %2006 = vrot.lane.b32.xlu1 %v9804_v9, %s14818_s24 }
 0x1ff   : > { %2046 = vrot.lane.b32.xlu1 %v9810_v26, %s14816_s25 }
 0x203   : > { %2068 = vrot.lane.b32.xlu1 %v9813_v61, %s14814_s10 }
 0x207   : > { %2098 = vrot.lane.b32.xlu1 %v9816_v49, %s14818_s24 }
 0x20b   : > { %2102 = vrot.lane.b32.xlu1 %v9818_v14, %s14818_s24  ;;  %v9792_v14 = vrot.slane %v1926_v57, 9 }
 0x20d   : > { %v1358_v46 = vpop.permute.xlu0 %1357 }
 0x20e   : > { %v1359_v2 = vrot.slane %v1358_v46, 7 }
 0x20f   : > { %2142 = vrot.lane.b32.xlu1 %v9824_v0, %s14816_s25 }
 0x210   : > { %v1361_v3 = vsel %vm432_vm1, %v1359_v2, %v1358_v46 }
 0x211   : > { %1367 = vst.msk [vmem:[#allocation3 + $0x1] sm:$0x7] %vm1366_vm11, %v1361_v3  ;;  %v1865_v13 = vpop.permute.xlu0 %1864  ;;  %v9793_v3 = vrot.slane %v1927_v10, 9  ;;  %vm14804_vm11 = vcmask 654336  }
 0x212   : > { %v1868_v30 = vrot.slane %v1865_v13, 4 }
 0x213   : > { %2164 = vrot.lane.b32.xlu1 %v9827_v1, %s14814_s10 }
 0x214   : > { %v1870_v36 = vsel %vm413_vm0, %v1865_v13, %v1868_v30 }
 0x215   : > { %v1883_v15 = vpop.permute.xlu0 %1882  ;;  %v1874_v44 = vadd.f32 %v1870_v36, %v1856_v32 }
 0x216   : > { %v1886_v24 = vrot.slane %v1883_v15, 4 }
 0x217   : > { %2194 = vrot.lane.b32.xlu1 %v9830_v5, %s14818_s24 }
 0x218   : > { %v1888_v38 = vsel %vm432_vm1, %v1883_v15, %v1886_v24 }
 0x219   : > { %v1905_v12 = vpop.permute.xlu0 %1904  ;;  %v1892_v56 = vadd.f32 %v1888_v38, %v1874_v44 }
 0x21a   : > { %v1912_v33 = vrot.slane %v1905_v12, 4 }
 0x21b   : > { %2198 = vrot.lane.b32.xlu1 %v9832_v63, %s14818_s24 }
 0x21d   : > { %v1909_v11 = vpop.permute.xlu0 %1908 }
 0x21e   : > { %v1914_v42 = vrot.slane %v1909_v11, 4 }
 0x221   : > { %v1949_v17 = vpop.permute.xlu0 %1948 }
 0x222   : > { %v1952_v0 = vrot.slane %v1949_v17, 4 }
 0x224   : > { %v1954_v63 = vsel %vm413_vm0, %v1949_v17, %v1952_v0 }
 0x225   : > { %v1971_v16 = vpop.permute.xlu0 %1970 }
 0x226   : > { %v1974_v13 = vrot.slane %v1971_v16, 4 }
 0x228   : > { %v1976_v28 = vsel %vm432_vm1, %v1971_v16, %v1974_v13 }
 0x229   : > { %v2001_v27 = vpop.permute.xlu0 %2000 }
 0x22a   : > { %v2008_v34 = vrot.slane %v2001_v27, 4 }
 0x22d   : > { %v11769_v37 = vpop.permute.xlu0 %2004 }
 0x231   : > { %v2045_v26 = vpop.permute.xlu0 %2044 }
 0x235   : > { %v2067_v1 = vpop.permute.xlu0 %2066 }
 0x24d   : > { %v1844_v18 = vpop.permute.xlu1 %1843 }
 0x24e   : > { %v1845_v19 = vrot.slane %v1844_v18, 7 }
 0x250   : > { %v1847_v8 = vsel %vm1846_vm15, %v1845_v19, %v1844_v18  ;;  %v2021_v19 = vstv %s11784_s23  ;;  %s9863_s23 = sld [smem:[#allocation5 + $0x4b]] }
 0x251   : > { %v1867_v23 = vpop.permute.xlu1 %1866  ;;  %1853 = vst.msk [vmem:[#allocation3 + $0x3] sm:$0x7] %vm11758_vm6, %v1847_v8  ;;  %v2022_v17 = vmul.f32 %v11777_v53, %v2021_v19 }
 0x252   : > { %v1869_v39 = vrot.slane %v1867_v23, 4 }
 0x254   : > { %v1871_v60 = vsel %vm413_vm0, %v1867_v23, %v1869_v39 }
 0x255   : > { %v1885_v25 = vpop.permute.xlu1 %1884  ;;  %v1875_v49 = vadd.f32 %v1871_v60, %v1857_v48 }
 0x256   : > { %v1887_v54 = vrot.slane %v1885_v25, 4 }
 0x258   : > { %v1889_v45 = vsel %vm432_vm1, %v1885_v25, %v1887_v54  ;;  %v2010_v25 = vrot.slane %v11769_v37, 4 }
 0x259   : > { %v1907_v7 = vpop.permute.xlu1 %1906  ;;  %v1893_v2 = vadd.f32 %v1889_v45, %v1875_v49 }
 0x25a   : > { %v1913_v35 = vrot.slane %v1907_v7, 4 }
 0x25c   : > { %v1916_v21 = vsel %vm461_vm2, %v1912_v33, %v1913_v35  ;;  %v2097_v33 = vpop.permute.xlu0 %2096 }
 0x25d   : > { %v1911_v41 = vpop.permute.xlu1 %1910  ;;  %v1917_v9 = vsel %vm463_vm3, %v1905_v12, %v1916_v21  ;;  %v2023_v21 = vmul.f32 %v11774_v55, %v2021_v19  ;;  %v2104_v45 = vrot.slane %v2097_v33, 4 }
 0x25e   : > { %v1915_v43 = vrot.slane %v1911_v41, 4  ;;  %v1922_v62 = vadd.f32 %v1917_v9, %v1892_v56  ;;  %v2070_v56 = vrot.slane %v2067_v1, 4 }
 0x25f   : > { %v9807_v60 = vrot.slane %v2023_v21, 10 }
 0x260   : > { %v1918_v61 = vsel %vm461_vm2, %v1914_v42, %v1915_v43  ;;  %v1936_v59 = vadd.f32 %v9792_v14, %v1922_v62  ;;  %v9806_v42 = vrot.slane %v2022_v17, 10  ;;  %v2048_v43 = vrot.slane %v2045_v26, 4  ;;  %v2101_v54 = vpop.permute.xlu0 %2100 }
 0x261   : > { %v1951_v58 = vpop.permute.xlu1 %1950  ;;  %v1919_v6 = vsel %vm463_vm3, %v1909_v11, %v1918_v61  ;;  %v2117_v62 = vstv %s11798_s15  ;;  %s9871_s15 = sld [smem:[#allocation5 + $0x4d]] }
 0x262   : > { %v1923_v5 = vadd.f32 %v1919_v6, %v1893_v2  ;;  %v1953_v15 = vrot.slane %v1951_v58, 4  ;;  %v1958_v8 = vadd.f32 %v1954_v63, %v1936_v59  ;;  %v2106_v59 = vrot.slane %v2101_v54, 4 }
 0x264   : > { %v1937_v23 = vadd.f32 %v9793_v3, %v1923_v5  ;;  %v1955_v30 = vsel %vm413_vm0, %v1951_v58, %v1953_v15  ;;  %v1980_v24 = vadd.f32 %v1976_v28, %v1958_v8  ;;  %v2050_v58 = vsel %vm413_vm0, %v2045_v26, %v2048_v43  ;;  %v2141_v14 = vpop.permute.xlu0 %2140 }
 0x265   : > { %v1973_v46 = vpop.permute.xlu1 %1972  ;;  %v2118_v5 = vmul.f32 %v11777_v53, %v2117_v62 }
 0x266   : > { %v1975_v7 = vrot.slane %v1973_v46, 4  ;;  %v1959_v39 = vadd.f32 %v1955_v30, %v1937_v23  ;;  %v2119_v23 = vmul.f32 %v11774_v55, %v2117_v62 }
 0x267   : > { %v9820_v8 = vrot.slane %v2118_v5, 11 }
 0x268   : > { %v1977_v41 = vsel %vm432_vm1, %v1973_v46, %v1975_v7  ;;  %v2072_v46 = vsel %vm432_vm1, %v2067_v1, %v2070_v56 }
 0x269   : > { %v2003_v12 = vpop.permute.xlu1 %2002 }
 0x26a   : > { %v2009_v18 = vrot.slane %v2003_v12, 4 }
 0x26c   : > { %v2012_v11 = vsel %vm461_vm2, %v2008_v34, %v2009_v18  ;;  %v2163_v18 = vpop.permute.xlu0 %2162 }
 0x26d   : > { %v2007_v32 = vpop.permute.xlu1 %2006  ;;  %v2013_v36 = vsel %vm463_vm3, %v2001_v27, %v2012_v11  ;;  %v1981_v27 = vadd.f32 %v1977_v41, %v1959_v39 }
 0x26e   : > { %v2011_v35 = vrot.slane %v2007_v32, 4  ;;  %v2018_v16 = vadd.f32 %v2013_v36, %v1980_v24  ;;  %v2166_v36 = vrot.slane %v2163_v18, 4 }
 0x270   : > { %v2014_v40 = vsel %vm461_vm2, %v2010_v25, %v2011_v35  ;;  %v2032_v57 = vadd.f32 %v9806_v42, %v2018_v16  ;;  %v2144_v25 = vrot.slane %v2141_v14, 4  ;;  %v2193_v7 = vpop.permute.xlu0 %2192  ;;  %v2168_v16 = vsel %vm432_vm1, %v2163_v18, %v2166_v36 }
 0x271   : > { %v2047_v44 = vpop.permute.xlu1 %2046  ;;  %v2015_v38 = vsel %vm463_vm3, %v11769_v37, %v2014_v40 }
 0x272   : > { %v2019_v9 = vadd.f32 %v2015_v38, %v1981_v27  ;;  %v2049_v61 = vrot.slane %v2047_v44, 4  ;;  %v2054_v10 = vadd.f32 %v2050_v58, %v2032_v57  ;;  %v2146_v35 = vsel %vm413_vm0, %v2141_v14, %v2144_v25 }
 0x273   : > { %v2213_v58 = vstv %s9833_s21  ;;  %s9874_s21 = sld [smem:[#allocation5 + $0x4e]] }
 0x274   : > { %v2033_v0 = vadd.f32 %v9807_v60, %v2019_v9  ;;  %v2051_v37 = vsel %vm413_vm0, %v2047_v44, %v2049_v61  ;;  %v2076_v63 = vadd.f32 %v2072_v46, %v2054_v10  ;;  %v2200_v44 = vrot.slane %v2193_v7, 4  ;;  %v2197_v38 = vpop.permute.xlu0 %2196 }
 0x275   : > { %v2069_v48 = vpop.permute.xlu1 %2068  ;;  %v2202_v60 = vrot.slane %v2197_v38, 4 }
 0x276   : > { %v2071_v2 = vrot.slane %v2069_v48, 4  ;;  %v2055_v13 = vadd.f32 %v2051_v37, %v2033_v0 }
 0x278   : > { %v2073_v12 = vsel %vm432_vm1, %v2069_v48, %v2071_v2 }
 0x279   : > { %v2099_v49 = vpop.permute.xlu1 %2098  ;;  %v2077_v30 = vadd.f32 %v2073_v12, %v2055_v13 }
 0x27a   : > { %v2105_v6 = vrot.slane %v2099_v49, 4 }
 0x27c   : > { %v2108_v3 = vsel %vm461_vm2, %v2104_v45, %v2105_v6 }
 0x27d   : > { %v2109_v26 = vsel %vm463_vm3, %v2097_v33, %v2108_v3  ;;  %v2103_v34 = vpop.permute.xlu1 %2102  ;;  %v9821_v33 = vrot.slane %v2119_v23, 11 }
 0x27e   : > { %v2107_v15 = vrot.slane %v2103_v34, 4  ;;  %v2114_v19 = vadd.f32 %v2109_v26, %v2076_v63 }
 0x280   : > { %v2110_v1 = vsel %vm461_vm2, %v2106_v59, %v2107_v15  ;;  %v2128_v32 = vadd.f32 %v9820_v8, %v2114_v19 }
 0x281   : > { %v2111_v11 = vsel %vm463_vm3, %v2101_v54, %v2110_v1  ;;  %v2143_v28 = vpop.permute.xlu1 %2142 }
 0x282   : > { %v2115_v17 = vadd.f32 %v2111_v11, %v2077_v30  ;;  %v2145_v24 = vrot.slane %v2143_v28, 4  ;;  %v2150_v40 = vadd.f32 %v2146_v35, %v2128_v32 }
 0x284   : > { %v2129_v41 = vadd.f32 %v9821_v33, %v2115_v17  ;;  %v2147_v42 = vsel %vm413_vm0, %v2143_v28, %v2145_v24  ;;  %v2172_v27 = vadd.f32 %v2168_v16, %v2150_v40 }
 0x285   : > { %v2165_v39 = vpop.permute.xlu1 %2164 }
 0x286   : > { %v2167_v21 = vrot.slane %v2165_v39, 4  ;;  %v2151_v48 = vadd.f32 %v2147_v42, %v2129_v41 }
 0x288   : > { %v2169_v9 = vsel %vm432_vm1, %v2165_v39, %v2167_v21 }
 0x289   : > { %v2195_v43 = vpop.permute.xlu1 %2194  ;;  %v2173_v62 = vadd.f32 %v2169_v9, %v2151_v48 }
 0x28a   : > { %v2201_v54 = vrot.slane %v2195_v43, 4 }
 0x28c   : > { %v2204_v57 = vsel %vm461_vm2, %v2200_v44, %v2201_v54 }
 0x28d   : > { %v2205_v56 = vsel %vm463_vm3, %v2193_v7, %v2204_v57  ;;  %v2199_v61 = vpop.permute.xlu1 %2198 }
 0x28e   : > { %v2210_v45 = vadd.f32 %v2205_v56, %v2172_v27  ;;  %v2203_v49 = vrot.slane %v2199_v61, 4 }
 0x290   : > { %v2214_v14 = vadd.f32 %v2213_v58, %v2210_v45  ;;  %v2206_v10 = vsel %vm461_vm2, %v2202_v60, %v2203_v49 }
 0x291   : > { %v2207_v0 = vsel %vm463_vm3, %v2197_v38, %v2206_v10 }
 0x292   : > { %v2216_v6 = vmax.f32 %v2214_v14, 0.0  ;;  %v2211_v46 = vadd.f32 %v2207_v0, %v2173_v62  ;;  %v2442_v62 = vstv %s9838_s9  ;;  %v2460_v0 = vstv %s9839_s13  ;;  %s11915_s9 = sld [smem:[#allocation5 + $0x51]] }
 0x293   : > { %v2444_v14 = vmul.f32 %v11774_v55, %v2442_v62  ;;  %v2443_v10 = vmul.f32 %v11777_v53, %v2442_v62  ;;  %s11922_s13 = sld [smem:[#allocation5 + $0x52]] }
 0x294   : > { %v2223_v37 = vrot.slane %v2216_v6, %v11392_v52  ;;  %v2227_v2 = vrot.slane %v2216_v6, %v11396_v50  ;;  %v2215_v59 = vadd.f32 %v2213_v58, %v2211_v46  ;;  %v2424_v58 = vstv %s9837_s17  ;;  %s9877_s17 = sld [smem:[#allocation5 + $0x4f]] }
 0x295   : > { %v2426_v45 = vmul.f32 %v11774_v55, %v2424_v58  ;;  %v2425_v49 = vmul.f32 %v11777_v53, %v2424_v58  ;;  %v2462_v6 = vmul.f32 %v11697_v47, %v2460_v0  ;;  %v2461_v46 = vmul.f32 %v11777_v53, %v2460_v0 }
 0x296   : > { %v2240_v3 = vpack.c.bf16 %v2223_v37, %v2223_v37  ;;  %v9834_v5 = vpack.c.bf16 %v2227_v2, %v2223_v37  ;;  %v2217_v26 = vmax.f32 %v2215_v59, 0.0  ;;  %v2504_v37 = vstv %s9843_s19  ;;  %s9888_s19 = sld [smem:[#allocation5 + $0x53]] }
 0x297   : > { %v2464_v2 = vmul.f32 %v11702_v51, %v2460_v0  ;;  %v2463_v59 = vmul.f32 %v11774_v55, %v2460_v0 }
 0x298   : > { %v2252_v34 = vrot.slane %v2240_v3, %v11406_v4  ;;  %v2335_v63 = vrot.slane %v9834_v5, %v11406_v4  ;;  %v2231_v13 = vrot.slane %v2217_v26, %v11392_v52  ;;  %v2235_v15 = vrot.slane %v2217_v26, %v11396_v50 }
 0x299   : > { %v2506_v3 = vmul.f32 %v11774_v55, %v2504_v37  ;;  %v2505_v5 = vmul.f32 %v11777_v53, %v2504_v37  ;;  %v2526_v26 = vstv %s9846_s12  ;;  %s11931_s12 = sld [smem:[#allocation5 + $0x55]] }
 0x29a   : > { %v2259_v12 = vrot.slane %v2252_v34, %v11406_v4  ;;  %v2342_v18 = vrot.slane %v2335_v63, %v11406_v4  ;;  %v2242_v19 = vpack.c.bf16 %v2231_v13, %v2231_v13  ;;  %v9835_v8 = vpack.c.bf16 %v2235_v15, %v2231_v13 }
 0x29b   : > { %v9845_v34 = vrot.slane %v2506_v3, 9  ;;  %v9844_v63 = vrot.slane %v2505_v5, 9  ;;  %v2528_v13 = vmul.f32 %v11774_v55, %v2526_v26  ;;  %v2527_v15 = vmul.f32 %v11777_v53, %v2526_v26 }
 0x29c   : > { %v2266_v1 = vrot.slane %v2242_v19, %v11406_v4  ;;  %v2350_v23 = vrot.slane %v9835_v8, %v11406_v4  ;;  %v2364_v25 = vrot.slane %v2342_v18, %v11419_v22  ;;  %v2280_v11 = vrot.slane %v2259_v12, %v11419_v22 }
 0x29d   : > { %v2548_v12 = vstv %s9849_s18  ;;  %v9848_v18 = vrot.slane %v2528_v13, 9  ;;  %v9847_v19 = vrot.slane %v2527_v15, 9  ;;  %v11929_v13 = vstv %s9888_s19  ;;  %s11938_s18 = sld [smem:[#allocation5 + $0x56]] }
 0x29e   : > { %v2273_v28 = vrot.slane %v2266_v1, %v11406_v4  ;;  %v2357_v30 = vrot.slane %v2350_v23, %v11406_v4  ;;  %v2371_v33 = vrot.slane %v2364_v25, %v11419_v22  ;;  %v2287_v35 = vrot.slane %v2280_v11, %v11419_v22  ;;  %s11987_s19 = sld [smem:[#allocation5 + $0x5e]] }
 0x29f   : > { %v2550_v8 = vmul.f32 %v11697_v47, %v2548_v12  ;;  %v2549_v1 = vmul.f32 %v11777_v53, %v2548_v12  ;;  %v2552_v11 = vmul.f32 %v11702_v51, %v2548_v12  ;;  %v2947_v15 = vmul.f32 %v11777_v53, %v11929_v13 }
 0x2a0   : > { %v2294_v7 = vrot.slane %v2273_v28, %v11419_v22  ;;  %v2378_v32 = vrot.slane %v2357_v30, %v11419_v22  ;;  %v2386_v41 = vunpack.c.l.b16 %v2371_v33  ;;  %v2387_v44 = vunpack.c.h.b16 %v2371_v33 }
 0x2a1   : > { %v2302_v21 = vunpack.c.l.b16 %v2287_v35  ;;  %v9851_v23 = vrot.slane %v2550_v8, 9  ;;  %v9850_v25 = vrot.slane %v2549_v1, 9  ;;  %v2551_v28 = vmul.f32 %v11774_v55, %v2548_v12 }
 0x2a2   : > { %v2385_v17 = vrot.slane %v2378_v32, %v11419_v22  ;;  %v2301_v36 = vrot.slane %v2294_v7, %v11419_v22  ;;  %v2600_v30 = vstv %s9857_s26  ;;  %v9853_v7 = vrot.slane %v2552_v11, 9  ;;  %s9898_s26 = sld [smem:[#allocation5 + $0x57]] }
 0x2a3   : > { %v9852_v32 = vrot.slane %v2551_v28, 9  ;;  %v2602_v33 = vmul.f32 %v11774_v55, %v2600_v30  ;;  %v2622_v35 = vstv %s9860_s27  ;;  %v2949_v12 = vmul.f32 %v11774_v55, %v11929_v13  ;;  %s11955_s27 = sld [smem:[#allocation5 + $0x59]] }
 0x2a4   : > { %v2388_v24 = vunpack.c.l.b16 %v2385_v17  ;;  %v2389_v39 = vunpack.c.h.b16 %v2385_v17  ;;  %v2303_v40 = vunpack.c.l.b16 %v2301_v36  ;;  %v2601_v17 = vmul.f32 %v11777_v53, %v2600_v30 }
 0x2a5   : > { %v9859_v36 = vrot.slane %v2602_v33, 10  ;;  %v3012_v1 = vstv %s11938_s18  ;;  %s12160_s18 = sld [smem:[#allocation5 + $0x65]] }
 0x2a6   : > { %v2390_v16 = vrot.slane %v2388_v24, 7  ;;  %v2392_v42 = vrot.slane %v2389_v39, 7  ;;  %v2304_v43 = vrot.slane %v2303_v40, 7  ;;  %v9858_v24 = vrot.slane %v2601_v17, 10 }
 0x2a7   : > { %v2624_v39 = vmul.f32 %v11774_v55, %v2622_v35  ;;  %v2623_v40 = vmul.f32 %v11777_v53, %v2622_v35 }
 0x2a8   : > { %v2391_v38 = vsel %vm858_vm4, %v2390_v16, %v2386_v41  ;;  %v2393_v54 = vsel %vm858_vm4, %v2392_v42, %v2387_v44  ;;  %v2305_v27 = vsel %vm858_vm4, %v2304_v43, %v2302_v21  ;;  %v2644_v41 = vstv %s9863_s23  ;;  %s11960_s23 = sld [smem:[#allocation5 + $0x5a]] }
 0x2a9   : > { %v2394_v48 = vpack.c.b16 %v2393_v54, %v2391_v38  ;;  %v2306_v57 = vpack.c.b16 %v2305_v27, %v2305_v27  ;;  %v9862_v44 = vrot.slane %v2624_v39, 10  ;;  %v9861_v16 = vrot.slane %v2623_v40, 10 }
 0x2aa   : > { %v2646_v42 = vmul.f32 %v11697_v47, %v2644_v41  ;;  %v2645_v21 = vmul.f32 %v11777_v53, %v2644_v41  ;;  %v2648_v54 = vmul.f32 %v11702_v51, %v2644_v41  ;;  %v2647_v27 = vmul.f32 %v11774_v55, %v2644_v41 }
 0x2ab   : > { %v2401_v60 = vrot.slane %v2394_v48, %v11406_v4  ;;  %v2313_v9 = vrot.slane %v2306_v57, %v11406_v4  ;;  %v2696_v48 = vstv %s9871_s15  ;;  %v11950_v11 = vstv %s9898_s26  ;;  %s9912_s15 = sld [smem:[#allocation5 + $0x5b]] }
 0x2ac   : > { %v9865_v43 = vrot.slane %v2646_v42, 10  ;;  %v9864_v38 = vrot.slane %v2645_v21, 10  ;;  %v9867_v57 = vrot.slane %v2648_v54, 10  ;;  %v2697_v58 = vmul.f32 %v11777_v53, %v2696_v48  ;;  %s11989_s26 = sld [smem:[#allocation5 + $0x44]] }
 0x2ad   : > { %v2408_v56 = vrot.slane %v2401_v60, %v11406_v4  ;;  %v2320_v61 = vrot.slane %v2313_v9, %v11406_v4  ;;  %v9866_v60 = vrot.slane %v2647_v27, 10  ;;  %v2698_v9 = vmul.f32 %v11774_v55, %v2696_v48 }
 0x2ae   : > { %v3035_v28 = vmul.f32 %v11777_v53, %v11950_v11  ;;  %v3086_v33 = vstv %s11955_s27  ;;  %v3108_v40 = vstv %s11960_s23  ;;  %s12169_s27 = sld [smem:[#allocation5 + $0x66]] }
 0x2af   : > { %2409 = vrot.lane.b32.xlu1 %v2408_v56, %s14812_s30  ;;  %2321 = vrot.lane.b32.xlu0 %v2320_v61, %s14812_s30  ;;  %v2718_v56 = vstv %s9874_s21  ;;  %v9873_v61 = vrot.slane %v2698_v9, 11  ;;  %v3087_v17 = vmul.f32 %v11777_v53, %v3086_v33  ;;  %s11977_s21 = sld [smem:[#allocation5 + $0x40]] }
 0x2b0   : > { %v2719_v62 = vmul.f32 %v11777_v53, %v2718_v56  ;;  %v9899_v30 = vrot.slane %v3035_v28, 9  ;;  %s9947_s23 = sld [smem:[#allocation5 + $0x67]] }
 0x2b1   : > { %v9907_v39 = vrot.slane %v3087_v17, 10  ;;  %s10084_s30 = sld [smem:[#allocation5 + $0x93]] }
 0x2b2   : > { %v9875_v0 = vrot.slane %v2719_v62, 11 }
 0x2b3   : > { %2431 = vrot.lane.b32.xlu1 %v2426_v45, %s14816_s25  ;;  %2429 = vrot.lane.b32.xlu0 %v2425_v49, %s14816_s25  ;;  %v9872_v45 = vrot.slane %v2697_v58, 11  ;;  %v2720_v49 = vmul.f32 %v11774_v55, %v2718_v56 }
 0x2b7   : > { %2449 = vrot.lane.b32.xlu1 %v2444_v14, %s14814_s10  ;;  %2447 = vrot.lane.b32.xlu0 %v2443_v10, %s14814_s10  ;;  %v2740_v14 = vstv %s9877_s17  ;;  %v9876_v10 = vrot.slane %v2720_v49, 11  ;;  %s11982_s17 = sld [smem:[#allocation5 + $0x5d]] }
 0x2b8   : > { %v2743_v3 = vmul.f32 %v11774_v55, %v2740_v14 }
 0x2ba   : > { %v9880_v26 = vrot.slane %v2743_v3, 11 }
 0x2bb   : > { %2471 = vrot.lane.b32.xlu1 %v2462_v6, %s14818_s24  ;;  %2469 = vrot.lane.b32.xlu0 %v2461_v46, %s14818_s24  ;;  %v2742_v6 = vmul.f32 %v11697_v47, %v2740_v14  ;;  %v2741_v46 = vmul.f32 %v11777_v53, %v2740_v14  ;;  %v2910_v47 = vstv %s11915_s9  ;;  %s12140_s9 = sld [smem:[#allocation5 + $0x61]] }
 0x2bd   : > { %v9879_v37 = vrot.slane %v2742_v6, 11  ;;  %v3182_v56 = vstv %s11982_s17  ;;  %s12190_s17 = sld [smem:[#allocation5 + $0x69]] }
 0x2bf   : > { %2475 = vrot.lane.b32.xlu1 %v2464_v2, %s14818_s24  ;;  %2473 = vrot.lane.b32.xlu0 %v2463_v59, %s14818_s24  ;;  %v9878_v2 = vrot.slane %v2741_v46, 11  ;;  %v2744_v59 = vmul.f32 %v11702_v51, %v2740_v14  ;;  %v2911_v51 = vmul.f32 %v11777_v53, %v2910_v47 }
 0x2c1   : > { %v9881_v5 = vrot.slane %v2744_v59, 11 }
 0x2c3   : > { %2515 = vrot.lane.b32.xlu1 %v9845_v34, %s14816_s25  ;;  %2513 = vrot.lane.b32.xlu0 %v9844_v63, %s14816_s25  ;;  %v2928_v34 = vstv %s11922_s13  ;;  %s12149_s13 = sld [smem:[#allocation5 + $0x62]] }
 0x2c4   : > { %v2929_v63 = vmul.f32 %v11777_v53, %v2928_v34 }
 0x2c7   : > { %2537 = vrot.lane.b32.xlu1 %v9848_v18, %s14814_s10  ;;  %2535 = vrot.lane.b32.xlu0 %v9847_v19, %s14814_s10  ;;  %v2990_v18 = vstv %s11931_s12  ;;  %s9937_s12 = sld [smem:[#allocation5 + $0x63]] }
 0x2c8   : > { %v2991_v19 = vmul.f32 %v11777_v53, %v2990_v18 }
 0x2ca   : > { %v9893_v8 = vrot.slane %v2991_v19, 9 }
 0x2cb   : > { %2567 = vrot.lane.b32.xlu1 %v9851_v23, %s14818_s24  ;;  %2565 = vrot.lane.b32.xlu0 %v9850_v25, %s14818_s24  ;;  %v3013_v23 = vmul.f32 %v11777_v53, %v3012_v1 }
 0x2cd   : > { %v9896_v25 = vrot.slane %v3013_v23, 9 }
 0x2cf   : > { %2571 = vrot.lane.b32.xlu1 %v9853_v7, %s14818_s24  ;;  %2569 = vrot.lane.b32.xlu0 %v9852_v32, %s14818_s24  ;;  %v3037_v7 = vmul.f32 %v11774_v55, %v11950_v11 }
 0x2d1   : > { %v9901_v32 = vrot.slane %v3037_v7, 9 }
 0x2d3   : > { %2611 = vrot.lane.b32.xlu1 %v9859_v36, %s14816_s25  ;;  %2609 = vrot.lane.b32.xlu0 %v9858_v24, %s14816_s25 }
 0x2d7   : > { %2633 = vrot.lane.b32.xlu1 %v9862_v44, %s14814_s10  ;;  %2631 = vrot.lane.b32.xlu0 %v9861_v16, %s14814_s10  ;;  %v3109_v44 = vmul.f32 %v11777_v53, %v3108_v40 }
 0x2d9   : > { %v9910_v21 = vrot.slane %v3109_v44, 10 }
 0x2db   : > { %2663 = vrot.lane.b32.xlu1 %v9865_v43, %s14818_s24  ;;  %2661 = vrot.lane.b32.xlu0 %v9864_v38, %s14818_s24  ;;  %v11975_v43 = vstv %s9912_s15  ;;  %s9926_s15 = sld [smem:[#allocation5 + $0x5f]] }
 0x2dc   : > { %v3131_v38 = vmul.f32 %v11777_v53, %v11975_v43 }
 0x2de   : > { %v9913_v48 = vrot.slane %v3131_v38, 10 }
 0x2df   : > { %2667 = vrot.lane.b32.xlu1 %v9867_v57, %s14818_s24  ;;  %2665 = vrot.lane.b32.xlu0 %v9866_v60, %s14818_s24  ;;  %v3133_v57 = vmul.f32 %v11774_v55, %v11975_v43 }
 0x2e1   : > { %v9915_v58 = vrot.slane %v3133_v57, 10  ;;  %v12012_v44 = vstv %s9926_s15  ;;  %s12050_s15 = sld [smem:[#allocation8 + $0x4]] }
 0x2e3   : > { %2707 = vrot.lane.b32.xlu1 %v9873_v61, %s14816_s25  ;;  %2705 = vrot.lane.b32.xlu0 %v9872_v45, %s14816_s25  ;;  %v3183_v61 = vmul.f32 %v11777_v53, %v3182_v56  ;;  %v2420_v45 = vstv %s11977_s21  ;;  %s12015_s21 = sld [smem:[#allocation5 + $0x48]] }
 0x2e5   : > { %v9921_v6 = vrot.slane %v3183_v61, 11  ;;  %v3229_v61 = vmul.f32 %v11774_v55, %v12012_v44 }
 0x2e7   : > { %2729 = vrot.lane.b32.xlu1 %v9876_v10, %s14814_s10  ;;  %2727 = vrot.lane.b32.xlu0 %v9875_v0, %s14814_s10 }
 0x2eb   : > { %2759 = vrot.lane.b32.xlu1 %v9879_v37, %s14818_s24  ;;  %2757 = vrot.lane.b32.xlu0 %v9878_v2, %s14818_s24  ;;  %v3204_v37 = vstv %s11987_s19  ;;  %v2422_v2 = vmul.f32 %v11774_v55, %v2420_v45  ;;  %s12197_s19 = sld [smem:[#allocation5 + $0x6a]] }
 0x2ec   : > { %v3205_v59 = vmul.f32 %v11777_v53, %v3204_v37 }
 0x2ef   : > { %2763 = vrot.lane.b32.xlu1 %v9881_v5, %s14818_s24  ;;  %2761 = vrot.lane.b32.xlu0 %v9880_v26, %s14818_s24 }
 0x2f3   : > { %2915 = vrot.lane.b32.xlu1 %v2911_v51, %s14816_s25 }
 0x2f7   : > { %2933 = vrot.lane.b32.xlu1 %v2929_v63, %s14814_s10  ;;  %v9924_v63 = vrot.slane %v3205_v59, 11 }
 0x2fb   : > { %2955 = vrot.lane.b32.xlu1 %v2947_v15, %s14818_s24 }
 0x2ff   : > { %2959 = vrot.lane.b32.xlu1 %v2949_v12, %s14818_s24  ;;  %v2490_v12 = vstv %s11989_s26  ;;  %s12036_s26 = sld [smem:[#allocation5 + $0x4c]] }
 0x300   : > { %v2492_v23 = vmul.f32 %v11774_v55, %v2490_v12 }
 0x303   : > { %2999 = vrot.lane.b32.xlu1 %v9893_v8, %s14816_s25 }
 0x307   : > { %3021 = vrot.lane.b32.xlu1 %v9896_v25, %s14814_s10 }
 0x30b   : > { %3051 = vrot.lane.b32.xlu1 %v9899_v30, %s14818_s24 }
 0x30f   : > { %3055 = vrot.lane.b32.xlu1 %v9901_v32, %s14818_s24 }
 0x313   : > { %3095 = vrot.lane.b32.xlu1 %v9907_v39, %s14816_s25 }
 0x317   : > { %3117 = vrot.lane.b32.xlu1 %v9910_v21, %s14814_s10 }
 0x31b   : > { %3147 = vrot.lane.b32.xlu1 %v9913_v48, %s14818_s24  ;;  %v3227_v48 = vmul.f32 %v11777_v53, %v12012_v44 }
 0x31f   : > { %3151 = vrot.lane.b32.xlu1 %v9915_v58, %s14818_s24  ;;  %v2491_v58 = vmul.f32 %v11777_v53, %v2490_v12 }
 0x321   : > { %v2410_v35 = vpop.permute.xlu1 %2409  ;;  %v2322_v36 = vpop.permute.xlu0 %2321 }
 0x322   : > { %v2411_v24 = vrot.slane %v2410_v35, 1  ;;  %2325 = vst.msk [vmem:[#allocation3 + $0x5] sm:$0x1] %vm14806_vm10, %v2322_v36  ;;  %v2421_v36 = vmul.f32 %v11777_v53, %v2420_v45 }
 0x323   : > { %3191 = vrot.lane.b32.xlu1 %v9921_v6, %s14816_s25 }
 0x324   : > { %v2413_v41 = vsel %vm14804_vm11, %v2410_v35, %v2411_v24  ;;  %vm2903_vm11 = vmor %vm2902_vm8, %vm12200_vm14  ;;  %vm3388_vm8 = vcmask 256002  }
 0x325   : > { %2418 = vst.msk [vmem:[#allocation3 + $0x6] sm:$0x3] %vm2417_vm12, %v2413_v41  ;;  %v2432_v16 = vpop.permute.xlu1 %2431  ;;  %v2430_v42 = vpop.permute.xlu0 %2429  ;;  %v9842_v41 = vrot.slane %v2492_v23, 9  ;;  %vm14805_vm12 = vcmask 523264  }
 0x326   : > { %v2434_v49 = vrot.slane %v2432_v16, 4  ;;  %v2433_v8 = vrot.slane %v2430_v42, 4 }
 0x327   : > { %3213 = vrot.lane.b32.xlu1 %v9924_v63, %s14814_s10 }
 0x328   : > { %v2436_v3 = vsel %vm413_vm0, %v2432_v16, %v2434_v49  ;;  %v2435_v24 = vsel %vm413_vm0, %v2430_v42, %v2433_v8  ;;  %v9927_v42 = vrot.slane %v3227_v48, 11  ;;  %v2586_v8 = vstv %s12015_s21  ;;  %s14810_s21 = smov 64  }
 0x329   : > { %v2450_v54 = vpop.permute.xlu1 %2449  ;;  %v2448_v27 = vpop.permute.xlu0 %2447  ;;  %v2440_v19 = vadd.f32 %v2436_v3, %v2422_v2 }
 0x32a   : > { %v2452_v46 = vrot.slane %v2450_v54, 4  ;;  %v2451_v35 = vrot.slane %v2448_v27, 4 }
 0x32b   : > { %3243 = vrot.lane.b32.xlu1 %v9927_v42, %s14818_s24 }
 0x32c   : > { %v2454_v15 = vsel %vm432_vm1, %v2450_v54, %v2452_v46  ;;  %v2453_v57 = vsel %vm432_vm1, %v2448_v27, %v2451_v35  ;;  %v9929_v27 = vrot.slane %v3229_v61, 11 }
 0x32d   : > { %v2472_v60 = vpop.permute.xlu1 %2471  ;;  %v2470_v9 = vpop.permute.xlu0 %2469  ;;  %v2458_v17 = vadd.f32 %v2454_v15, %v2440_v19 }
 0x32e   : > { %v2478_v25 = vrot.slane %v2472_v60, 4  ;;  %v2477_v28 = vrot.slane %v2470_v9, 4  ;;  %v2439_v60 = vadd.f32 %v2435_v24, %v2421_v36 }
 0x32f   : > { %3247 = vrot.lane.b32.xlu1 %v9929_v27, %s14818_s24 }
 0x330   : > { %v2481_v16 = vsel %vm461_vm2, %v2477_v28, %v2478_v25 }
 0x331   : > { %v2476_v62 = vpop.permute.xlu1 %2475  ;;  %v2474_v14 = vpop.permute.xlu0 %2473  ;;  %v2482_v45 = vsel %vm463_vm3, %v2470_v9, %v2481_v16 }
 0x332   : > { %v2480_v10 = vrot.slane %v2476_v62, 4  ;;  %v2479_v0 = vrot.slane %v2474_v14, 4  ;;  %v2457_v62 = vadd.f32 %v2453_v57, %v2439_v60 }
 0x334   : > { %v2483_v51 = vsel %vm461_vm2, %v2479_v0, %v2480_v10  ;;  %v2487_v3 = vadd.f32 %v2482_v45, %v2457_v62 }
 0x335   : > { %v2516_v5 = vpop.permute.xlu1 %2515  ;;  %v2514_v26 = vpop.permute.xlu0 %2513  ;;  %v2484_v30 = vsel %vm463_vm3, %v2474_v14, %v2483_v51  ;;  %v9841_v51 = vrot.slane %v2491_v58, 9 }
 0x336   : > { %v2488_v39 = vadd.f32 %v2484_v30, %v2458_v17  ;;  %v2518_v21 = vrot.slane %v2516_v5, 4  ;;  %v2517_v46 = vrot.slane %v2514_v26, 4  ;;  %v2588_v30 = vmul.f32 %v11774_v55, %v2586_v8 }
 0x337   : > { %v2501_v17 = vadd.f32 %v9841_v51, %v2487_v3 }
 0x338   : > { %v2502_v49 = vadd.f32 %v9842_v41, %v2488_v39  ;;  %v2520_v14 = vsel %vm413_vm0, %v2516_v5, %v2518_v21  ;;  %v2519_v28 = vsel %vm413_vm0, %v2514_v26, %v2517_v46  ;;  %v9856_v48 = vrot.slane %v2588_v30, 10 }
 0x339   : > { %v2538_v7 = vpop.permute.xlu1 %2537  ;;  %v2536_v32 = vpop.permute.xlu0 %2535  ;;  %v2523_v41 = vadd.f32 %v2519_v28, %v2501_v17 }
 0x33a   : > { %v2540_v10 = vrot.slane %v2538_v7, 4  ;;  %v2524_v12 = vadd.f32 %v2520_v14, %v2502_v49  ;;  %v2539_v9 = vrot.slane %v2536_v32, 4 }
 0x33c   : > { %v2542_v5 = vsel %vm432_vm1, %v2538_v7, %v2540_v10  ;;  %v2541_v39 = vsel %vm432_vm1, %v2536_v32, %v2539_v9  ;;  %v2587_v7 = vmul.f32 %v11777_v53, %v2586_v8 }
 0x33d   : > { %v2568_v38 = vpop.permute.xlu1 %2567  ;;  %v2566_v54 = vpop.permute.xlu0 %2565  ;;  %v2546_v24 = vadd.f32 %v2542_v5, %v2524_v12  ;;  %v2545_v57 = vadd.f32 %v2541_v39, %v2523_v41 }
 0x33e   : > { %v2574_v63 = vrot.slane %v2568_v38, 4  ;;  %v2573_v15 = vrot.slane %v2566_v54, 4  ;;  %v9855_v42 = vrot.slane %v2587_v7, 10 }
 0x340   : > { %v2577_v35 = vsel %vm461_vm2, %v2573_v15, %v2574_v63 }
 0x341   : > { %v2572_v0 = vpop.permute.xlu1 %2571  ;;  %v2570_v6 = vpop.permute.xlu0 %2569  ;;  %v2578_v38 = vsel %vm463_vm3, %v2566_v54, %v2577_v35 }
 0x342   : > { %v2576_v2 = vrot.slane %v2572_v0, 4  ;;  %v2575_v59 = vrot.slane %v2570_v6, 4  ;;  %v2583_v58 = vadd.f32 %v2578_v38, %v2545_v57 }
 0x344   : > { %v2579_v19 = vsel %vm461_vm2, %v2575_v59, %v2576_v2  ;;  %v2597_v27 = vadd.f32 %v9855_v42, %v2583_v58  ;;  %v2682_v59 = vstv %s12036_s26  ;;  %s9961_s26 = sld [smem:[#allocation5 + $0x6b]] }
 0x345   : > { %v2612_v23 = vpop.permute.xlu1 %2611  ;;  %v2610_v25 = vpop.permute.xlu0 %2609  ;;  %v2580_v36 = vsel %vm463_vm3, %v2570_v6, %v2579_v19  ;;  %v2684_v8 = vmul.f32 %v11774_v55, %v2682_v59 }
 0x346   : > { %v2584_v26 = vadd.f32 %v2580_v36, %v2546_v24  ;;  %v2614_v60 = vrot.slane %v2612_v23, 4  ;;  %v2613_v61 = vrot.slane %v2610_v25, 4 }
 0x347   : > { %v9870_v7 = vrot.slane %v2684_v8, 11 }
 0x348   : > { %v2598_v32 = vadd.f32 %v9856_v48, %v2584_v26  ;;  %v2616_v10 = vsel %vm413_vm0, %v2612_v23, %v2614_v60  ;;  %v2615_v54 = vsel %vm413_vm0, %v2610_v25, %v2613_v61  ;;  %v2683_v23 = vmul.f32 %v11777_v53, %v2682_v59 }
 0x349   : > { %v2634_v16 = vpop.permute.xlu1 %2633  ;;  %v2632_v21 = vpop.permute.xlu0 %2631  ;;  %v2619_v19 = vadd.f32 %v2615_v54, %v2597_v27  ;;  %v2778_v27 = vstv %s12050_s15  ;;  %s12209_s15 = sld [smem:[#allocation5 + $0x50]] }
 0x34a   : > { %v2636_v0 = vrot.slane %v2634_v16, 4  ;;  %v2635_v6 = vrot.slane %v2632_v21, 4  ;;  %v2620_v3 = vadd.f32 %v2616_v10, %v2598_v32 }
 0x34c   : > { %v2638_v12 = vsel %vm432_vm1, %v2634_v16, %v2636_v0  ;;  %v2637_v9 = vsel %vm432_vm1, %v2632_v21, %v2635_v6  ;;  %v9869_v16 = vrot.slane %v2683_v23, 11 }
 0x34d   : > { %v2664_v45 = vpop.permute.xlu1 %2663  ;;  %v2662_v49 = vpop.permute.xlu0 %2661  ;;  %v2642_v35 = vadd.f32 %v2638_v12, %v2620_v3  ;;  %v2641_v36 = vadd.f32 %v2637_v9, %v2619_v19 }
 0x34e   : > { %v2670_v62 = vrot.slane %v2664_v45, 4  ;;  %v2669_v14 = vrot.slane %v2662_v49, 4 }
 0x350   : > { %v2673_v51 = vsel %vm461_vm2, %v2669_v14, %v2670_v62 }
 0x351   : > { %v2668_v46 = vpop.permute.xlu1 %2667  ;;  %v2666_v2 = vpop.permute.xlu0 %2665  ;;  %v2674_v25 = vsel %vm463_vm3, %v2662_v49, %v2673_v51 }
 0x352   : > { %v2672_v63 = vrot.slane %v2668_v46, 4  ;;  %v2671_v15 = vrot.slane %v2666_v2, 4  ;;  %v2679_v39 = vadd.f32 %v2674_v25, %v2641_v36 }
 0x354   : > { %v2675_v5 = vsel %vm461_vm2, %v2671_v15, %v2672_v63  ;;  %v2693_v57 = vadd.f32 %v9869_v16, %v2679_v39 }
 0x355   : > { %v2676_v28 = vsel %vm463_vm3, %v2666_v2, %v2675_v5  ;;  %v2708_v30 = vpop.permute.xlu1 %2707  ;;  %v2706_v17 = vpop.permute.xlu0 %2705 }
 0x356   : > { %v2709_v24 = vrot.slane %v2706_v17, 4  ;;  %v2680_v41 = vadd.f32 %v2676_v28, %v2642_v35  ;;  %v2710_v21 = vrot.slane %v2708_v30, 4 }
 0x358   : > { %v2711_v53 = vsel %vm413_vm0, %v2706_v17, %v2709_v24  ;;  %v2694_v48 = vadd.f32 %v9870_v7, %v2680_v41  ;;  %v2712_v60 = vsel %vm413_vm0, %v2708_v30, %v2710_v21 }
 0x359   : > { %v2730_v38 = vpop.permute.xlu1 %2729  ;;  %v2728_v26 = vpop.permute.xlu0 %2727  ;;  %v2715_v49 = vadd.f32 %v2711_v53, %v2693_v57 }
 0x35a   : > { %v2731_v55 = vrot.slane %v2728_v26, 4  ;;  %v2732_v58 = vrot.slane %v2730_v38, 4  ;;  %v2716_v14 = vadd.f32 %v2712_v60, %v2694_v48 }
 0x35c   : > { %v2733_v42 = vsel %vm432_vm1, %v2728_v26, %v2731_v55  ;;  %v2734_v6 = vsel %vm432_vm1, %v2730_v38, %v2732_v58 }
 0x35d   : > { %v2760_v61 = vpop.permute.xlu1 %2759  ;;  %v2758_v45 = vpop.permute.xlu0 %2757  ;;  %v2737_v10 = vadd.f32 %v2733_v42, %v2715_v49  ;;  %v2738_v63 = vadd.f32 %v2734_v6, %v2716_v14 }
 0x35e   : > { %v2766_v32 = vrot.slane %v2760_v61, 4  ;;  %v2765_v62 = vrot.slane %v2758_v45, 4 }
 0x360   : > { %v2769_v0 = vsel %vm461_vm2, %v2765_v62, %v2766_v32  ;;  %v12078_v62 = vld [vmem:[#allocation2 + $0xc] sm:$0xff] }
 0x361   : > { %v2770_v54 = vsel %vm463_vm3, %v2758_v45, %v2769_v0  ;;  %v2764_v46 = vpop.permute.xlu1 %2763  ;;  %v2762_v2 = vpop.permute.xlu0 %2761  ;;  %v2912_v14 = vmul.f32 %v12078_v62, %v2910_v47  ;;  %v12088_v0 = vld [vmem:[#allocation2 + $0x8] sm:$0xf] }
 0x362   : > { %v2775_v59 = vadd.f32 %v2770_v54, %v2737_v10  ;;  %v2768_v3 = vrot.slane %v2764_v46, 4  ;;  %v2767_v51 = vrot.slane %v2762_v2, 4  ;;  %v2930_v10 = vmul.f32 %v12078_v62, %v2928_v34 }
 0x363   : > { %v2948_v6 = vmul.f32 %v12088_v0, %v11929_v13  ;;  %v2992_v54 = vmul.f32 %v12078_v62, %v2990_v18  ;;  %v3014_v46 = vmul.f32 %v12078_v62, %v3012_v1  ;;  %v3088_v1 = vmul.f32 %v12078_v62, %v3086_v33 }
 0x364   : > { %v2779_v15 = vadd.f32 %v2778_v27, %v2775_v59  ;;  %v2771_v12 = vsel %vm461_vm2, %v2767_v51, %v2768_v3  ;;  %v3036_v59 = vmul.f32 %v12088_v0, %v11950_v11 }
 0x365   : > { %v2772_v9 = vsel %vm463_vm3, %v2762_v2, %v2771_v12  ;;  %v9894_v34 = vrot.slane %v2992_v54, 9  ;;  %v9897_v2 = vrot.slane %v3014_v46, 9  ;;  %v9908_v51 = vrot.slane %v3088_v1, 10 }
 0x366   : > { %v2781_v19 = vmax.f32 %v2779_v15, 0.0  ;;  %v2776_v5 = vadd.f32 %v2772_v9, %v2738_v63  ;;  %v9900_v3 = vrot.slane %v3036_v59, 9  ;;  %v3110_v63 = vmul.f32 %v12078_v62, %v3108_v40 }
 0x367   : > { %v3132_v12 = vmul.f32 %v12088_v0, %v11975_v43 }
 0x368   : > { %v2788_v8 = vrot.slane %v2781_v19, %v11392_v52  ;;  %v2792_v23 = vrot.slane %v2781_v19, %v11396_v50  ;;  %v2780_v25 = vadd.f32 %v2778_v27, %v2776_v5  ;;  %v12093_v27 = vld [vmem:[#allocation2 + $0x14] sm:$0xf]  ;;  %v9911_v15 = vrot.slane %v3110_v63, 10 }
 0x369   : > { %v2950_v47 = vmul.f32 %v12093_v27, %v11929_v13  ;;  %v3038_v13 = vmul.f32 %v12093_v27, %v11950_v11  ;;  %v9914_v11 = vrot.slane %v3132_v12, 10  ;;  %v3134_v9 = vmul.f32 %v12093_v27, %v11975_v43 }
 0x36a   : > { %v9883_v28 = vpack.c.bf16 %v2792_v23, %v2788_v8  ;;  %v2782_v30 = vmax.f32 %v2780_v25, 0.0  ;;  %v3184_v19 = vmul.f32 %v12078_v62, %v3182_v56  ;;  %v3206_v5 = vmul.f32 %v12078_v62, %v3204_v37 }
 0x36b   : > { %v9902_v18 = vrot.slane %v3038_v13, 9  ;;  %v9916_v33 = vrot.slane %v3134_v9, 10  ;;  %v3228_v23 = vmul.f32 %v12088_v0, %v12012_v44  ;;  %v3230_v25 = vmul.f32 %v12093_v27, %v12012_v44  ;;  %v12151_v44 = vpop.permute.xlu1 %2915 }
 0x36c   : > { %v2820_v17 = vrot.slane %v9883_v28, %v11406_v4  ;;  %v2796_v35 = vrot.slane %v2782_v30, %v11392_v52  ;;  %v2800_v36 = vrot.slane %v2782_v30, %v11396_v50  ;;  %v9922_v40 = vrot.slane %v3184_v19, 11  ;;  %v12143_v28 = vld [vmem:[#allocation2] sm:$0xff] }
 0x36d   : > { %v9925_v8 = vrot.slane %v3206_v5, 11  ;;  %v9928_v43 = vrot.slane %v3228_v23, 11  ;;  %v9930_v56 = vrot.slane %v3230_v25, 11  ;;  %v3396_v37 = vstv %s12140_s9  ;;  %s9934_s9 = sld [smem:[#allocation5 + $0x60]] }
 0x36e   : > { %v2827_v24 = vrot.slane %v2820_v17, %v11406_v4  ;;  %v9884_v39 = vpack.c.bf16 %v2800_v36, %v2796_v35  ;;  %v3397_v30 = vmul.f32 %v12143_v28, %v3396_v37  ;;  %v3414_v17 = vstv %s12149_s13  ;;  %s12407_s13 = sld [smem:[#allocation5 + $0x64]] }
 0x36f   : > { %v3415_v35 = vmul.f32 %v12143_v28, %v3414_v17  ;;  %v12158_v36 = vstv %s9937_s12  ;;  %v12221_v13 = vstv %s9961_s26  ;;  %s12223_s12 = sld [smem:[#allocation5 + $0x54]]  ;;  %v2906_v63 = vstv %s12209_s15 }
 0x370   : > { %v2835_v41 = vrot.slane %v9884_v39, %v11406_v4  ;;  %v2849_v7 = vrot.slane %v2827_v24, %v11419_v22  ;;  %v3433_v24 = vmul.f32 %v12143_v28, %v12158_v36  ;;  %v12164_v39 = vpop.permute.xlu1 %2933  ;;  %v2907_v9 = vmul.f32 %v12143_v28, %v2906_v63  ;;  %s12238_s26 = sld [smem:[#allocation5 + $0x6e]] }
 0x371   : > { %v2937_v23 = vrot.slane %v12164_v39, 4  ;;  %s9975_s15 = sld [smem:[#allocation5 + $0x6f]] }
 0x372   : > { %v2842_v16 = vrot.slane %v2835_v41, %v11406_v4  ;;  %v2856_v26 = vrot.slane %v2849_v7, %v11419_v22  ;;  %v3435_v41 = vmul.f32 %v12078_v62, %v12158_v36  ;;  %v3476_v7 = vstv %s12160_s18  ;;  %s12420_s18 = sld [smem:[#allocation5 + $0x68]] }
 0x374   : > { %v2863_v21 = vrot.slane %v2842_v16, %v11419_v22  ;;  %v2871_v48 = vunpack.c.l.b16 %v2856_v26  ;;  %v2872_v57 = vunpack.c.h.b16 %v2856_v26  ;;  %v3477_v16 = vmul.f32 %v12143_v28, %v3476_v7 }
 0x375   : > { %v3498_v26 = vstv %s12169_s27  ;;  %s12433_s27 = sld [smem:[#allocation5 + $0x6c]] }
 0x376   : > { %v2870_v38 = vrot.slane %v2863_v21, %v11419_v22  ;;  %v12176_v21 = vpop.permute.xlu1 %2955 }
 0x377   : > { %v2963_v5 = vrot.slane %v12176_v21, 4 }
 0x378   : > { %v2873_v55 = vunpack.c.l.b16 %v2870_v38  ;;  %v2874_v53 = vunpack.c.h.b16 %v2870_v38  ;;  %v9942_v38 = vrot.slane %v3477_v16, 9 }
 0x37a   : > { %v2875_v60 = vrot.slane %v2873_v55, 7  ;;  %v2877_v58 = vrot.slane %v2874_v53, 7  ;;  %v3499_v55 = vmul.f32 %v12143_v28, %v3498_v26 }
 0x37c   : > { %v2876_v42 = vsel %vm858_vm4, %v2875_v60, %v2871_v48  ;;  %v2878_v61 = vsel %vm858_vm4, %v2877_v58, %v2872_v57  ;;  %v9945_v53 = vrot.slane %v3499_v55, 9  ;;  %v12183_v48 = vpop.permute.xlu1 %2959  ;;  %v12185_v57 = vstv %s9947_s23  ;;  %s12230_s23 = sld [smem:[#allocation5 + $0x6d]] }
 0x37d   : > { %v2879_v45 = vpack.c.b16 %v2878_v61, %v2876_v42  ;;  %v3521_v60 = vmul.f32 %v12143_v28, %v12185_v57  ;;  %v3523_v42 = vmul.f32 %v12078_v62, %v12185_v57 }
 0x37f   : > { %v2886_v49 = vrot.slane %v2879_v45, %v11406_v4  ;;  %v9948_v58 = vrot.slane %v3521_v60, 9  ;;  %v9950_v45 = vrot.slane %v3523_v42, 9  ;;  %v2908_v42 = vmul.f32 %v12078_v62, %v2906_v63 }
 0x380   : > { %v12195_v61 = vpop.permute.xlu1 %2999 }
 0x381   : > { %v2893_v32 = vrot.slane %v2886_v49, %v11406_v4 }
 0x382   : > { %v3668_v25 = vstv %s12230_s23  ;;  %s9985_s23 = sld [smem:[#allocation5 + $0x72]] }
 0x383   : > { %2894 = vrot.lane.b32.xlu0 %v2893_v32, %s14810_s21  ;;  %v3572_v32 = vstv %s12190_s17  ;;  %s9980_s17 = sld [smem:[#allocation8 + $0x6]] }
 0x384   : > { %v12213_v54 = vpop.permute.xlu1 %3021  ;;  %s10073_s21 = sld [smem:[#allocation5 + $0x8f]] }
 0x387   : > { %2917 = vrot.lane.b32.xlu0 %v2912_v14, %s14816_s25  ;;  %v3573_v14 = vmul.f32 %v12143_v28, %v3572_v32 }
 0x38b   : > { %2935 = vrot.lane.b32.xlu0 %v2930_v10, %s14814_s10 }
 0x38f   : > { %2957 = vrot.lane.b32.xlu0 %v2948_v6, %s14818_s24 }
 0x393   : > { %2961 = vrot.lane.b32.xlu0 %v2950_v47, %s14818_s24  ;;  %v9956_v47 = vrot.slane %v3573_v14, 10 }
 0x397   : > { %3001 = vrot.lane.b32.xlu0 %v9894_v34, %s14816_s25  ;;  %v3594_v34 = vstv %s12197_s19  ;;  %s9984_s19 = sld [smem:[#allocation5 + $0x71]] }
 0x39b   : > { %3023 = vrot.lane.b32.xlu0 %v9897_v2, %s14814_s10  ;;  %v3595_v2 = vmul.f32 %v12143_v28, %v3594_v34 }
 0x39f   : > { %3053 = vrot.lane.b32.xlu0 %v9900_v3, %s14818_s24  ;;  %v9959_v3 = vrot.slane %v3595_v2, 10 }
 0x3a3   : > { %3057 = vrot.lane.b32.xlu0 %v9902_v18, %s14818_s24  ;;  %v3617_v18 = vmul.f32 %v12143_v28, %v12221_v13 }
 0x3a5   : > { %v9962_v12 = vrot.slane %v3617_v18, 10 }
 0x3a7   : > { %3097 = vrot.lane.b32.xlu0 %v9908_v51, %s14816_s25  ;;  %v12228_v51 = vpop.permute.xlu1 %3051 }
 0x3ab   : > { %3119 = vrot.lane.b32.xlu0 %v9911_v15, %s14814_s10  ;;  %v2919_v15 = vrot.slane %v12151_v44, 4 }
 0x3af   : > { %3149 = vrot.lane.b32.xlu0 %v9914_v11, %s14818_s24  ;;  %v3619_v11 = vmul.f32 %v12078_v62, %v12221_v13 }
 0x3b1   : > { %v9964_v19 = vrot.slane %v3619_v11, 10 }
 0x3b3   : > { %3153 = vrot.lane.b32.xlu0 %v9916_v33, %s14818_s24 }
 0x3b7   : > { %3193 = vrot.lane.b32.xlu0 %v9922_v40, %s14816_s25  ;;  %v2921_v40 = vsel %vm413_vm0, %v12151_v44, %v2919_v15  ;;  %v2965_v44 = vrot.slane %v12183_v48, 4 }
 0x3bb   : > { %3215 = vrot.lane.b32.xlu0 %v9925_v8, %s14814_s10 }
 0x3bf   : > { %3245 = vrot.lane.b32.xlu0 %v9928_v43, %s14818_s24  ;;  %v12244_v43 = vpop.permute.xlu1 %3055 }
 0x3c3   : > { %3249 = vrot.lane.b32.xlu0 %v9930_v56, %s14818_s24  ;;  %v3669_v56 = vmul.f32 %v12143_v28, %v3668_v25 }
 0x3c5   : > { %v9970_v55 = vrot.slane %v3669_v56, 11 }
 0x3c7   : > { %3401 = vrot.lane.b32.xlu0 %v3397_v30, %s14816_s25  ;;  %v2925_v30 = vadd.f32 %v2921_v40, %v2907_v9 }
 0x3cb   : > { %3419 = vrot.lane.b32.xlu0 %v3415_v35, %s14814_s10 }
 0x3cf   : > { %3441 = vrot.lane.b32.xlu0 %v3433_v24, %s14818_s24  ;;  %v2976_v24 = vstv %s12223_s12  ;;  %s12271_s12 = sld [smem:[#allocation5 + $0x58]] }
 0x3d0   : > { %v2978_v63 = vmul.f32 %v12078_v62, %v2976_v24 }
 0x3d3   : > { %3445 = vrot.lane.b32.xlu0 %v3435_v41, %s14818_s24 }
 0x3d7   : > { %3485 = vrot.lane.b32.xlu0 %v9942_v38, %s14816_s25 }
 0x3db   : > { %3507 = vrot.lane.b32.xlu0 %v9945_v53, %s14814_s10  ;;  %v2939_v53 = vsel %vm432_vm1, %v12164_v39, %v2937_v23  ;;  %v12278_v23 = vstv %s9975_s15  ;;  %s12299_s15 = sld [smem:[#allocation5 + $0x5c]] }
 0x3dc   : > { %v2943_v39 = vadd.f32 %v2939_v53, %v2925_v30  ;;  %v3025_v30 = vrot.slane %v12213_v54, 4 }
 0x3df   : > { %3537 = vrot.lane.b32.xlu0 %v9948_v58, %s14818_s24  ;;  %v3690_v58 = vstv %s12238_s26  ;;  %s9986_s26 = sld [smem:[#allocation5 + $0x73]] }
 0x3e0   : > { %v3691_v14 = vmul.f32 %v12143_v28, %v3690_v58 }
 0x3e3   : > { %3541 = vrot.lane.b32.xlu0 %v9950_v45, %s14818_s24  ;;  %v2977_v45 = vmul.f32 %v12143_v28, %v2976_v24 }
 0x3e7   : > { %3581 = vrot.lane.b32.xlu0 %v9956_v47, %s14816_s25 }
 0x3eb   : > { %3603 = vrot.lane.b32.xlu0 %v9959_v3, %s14814_s10  ;;  %v9973_v3 = vrot.slane %v3691_v14, 11 }
 0x3ef   : > { %3633 = vrot.lane.b32.xlu0 %v9962_v12, %s14818_s24  ;;  %v9890_v12 = vrot.slane %v2977_v45, 9 }
 0x3f3   : > { %3637 = vrot.lane.b32.xlu0 %v9964_v19, %s14818_s24  ;;  %v9891_v19 = vrot.slane %v2978_v63, 9 }
 0x3f5   : > { %v2895_v10 = vpop.permute.xlu0 %2894 }
 0x3f6   : > { %v2896_v6 = vrot.slane %v2895_v10, 7 }
 0x3f7   : > { %3677 = vrot.lane.b32.xlu0 %v9970_v55, %s14816_s25 }
 0x3f8   : > { %v2898_v46 = vsel %vm14805_vm12, %v2896_v6, %v2895_v10  ;;  %vm14807_vm12 = vcmask 392192  }
 0x3f9   : > { %2904 = vst.msk [vmem:[#allocation3 + $0x7] sm:$0x7] %vm2903_vm11, %v2898_v46  ;;  %v2918_v59 = vpop.permute.xlu0 %2917  ;;  %v12266_v46 = vpop.permute.xlu1 %3095  ;;  %vm3386_vm11 = vcmask 1040768  }
 0x3fa   : > { %v2920_v35 = vrot.slane %v2918_v59, 4  ;;  %vm3387_vm13 = vmor %vm858_vm4, %vm3386_vm11  ;;  %vm3953_vm11 = vcmask 123905  }
 0x3fb   : > { %3699 = vrot.lane.b32.xlu0 %v9973_v3, %s14814_s10  ;;  %vm12400_vm10 = vmor %vm3388_vm8, %vm3387_vm13  ;;  %vm3861_vm13 = vcmask 1040640   ;;  %vm3949_vm8 = vcmask 261120  }
 0x3fc   : > { %v2922_v10 = vsel %vm413_vm0, %v2918_v59, %v2920_v35 }
 0x3fd   : > { %v2936_v1 = vpop.permute.xlu0 %2935  ;;  %v2926_v15 = vadd.f32 %v2922_v10, %v2908_v42  ;;  %v3118_v40 = vpop.permute.xlu1 %3117 }
 0x3fe   : > { %v2938_v60 = vrot.slane %v2936_v1, 4 }
 0x400   : > { %v2940_v18 = vsel %vm432_vm1, %v2936_v1, %v2938_v60  ;;  %v3061_v60 = vrot.slane %v12244_v43, 4 }
 0x401   : > { %v2958_v33 = vpop.permute.xlu0 %2957 }
 0x402   : > { %v2964_v8 = vrot.slane %v2958_v33, 4  ;;  %v2944_v33 = vadd.f32 %v2940_v18, %v2926_v15 }
 0x404   : > { %v2967_v16 = vsel %vm461_vm2, %v2963_v5, %v2964_v8  ;;  %v3059_v8 = vrot.slane %v12228_v51, 4 }
 0x405   : > { %v2962_v41 = vpop.permute.xlu0 %2961  ;;  %v2968_v6 = vsel %vm463_vm3, %v12176_v21, %v2967_v16  ;;  %v3003_v21 = vrot.slane %v12195_v61, 4 }
 0x406   : > { %v2966_v38 = vrot.slane %v2962_v41, 4  ;;  %v2973_v59 = vadd.f32 %v2968_v6, %v2943_v39  ;;  %v3148_v6 = vpop.permute.xlu1 %3147 }
 0x407   : > { %v3005_v56 = vsel %vm413_vm0, %v12195_v61, %v3003_v21  ;;  %v3027_v61 = vsel %vm432_vm1, %v12213_v54, %v3025_v30 }
 0x408   : > { %v2969_v2 = vsel %vm461_vm2, %v2965_v44, %v2966_v38  ;;  %v2987_v1 = vadd.f32 %v9890_v12, %v2973_v59  ;;  %v3072_v44 = vstv %s12271_s12  ;;  %v3715_v38 = vmul.f32 %v12078_v62, %v12278_v23  ;;  %s9931_s12 = sld [smem:[#allocation8 + $0x5]] }
 0x409   : > { %v3002_v47 = vpop.permute.xlu0 %3001  ;;  %v2970_v11 = vsel %vm463_vm3, %v12183_v48, %v2969_v2  ;;  %v3713_v48 = vmul.f32 %v12143_v28, %v12278_v23  ;;  %v3073_v2 = vmul.f32 %v12143_v28, %v3072_v44 }
 0x40a   : > { %v2974_v5 = vadd.f32 %v2970_v11, %v2944_v33  ;;  %v3004_v35 = vrot.slane %v3002_v47, 4  ;;  %v3009_v55 = vadd.f32 %v3005_v56, %v2987_v1  ;;  %v9978_v39 = vrot.slane %v3715_v38, 11 }
 0x40b   : > { %v9976_v16 = vrot.slane %v3713_v48, 11  ;;  %v3074_v11 = vmul.f32 %v12078_v62, %v3072_v44  ;;  %v3099_v33 = vrot.slane %v12266_v46, 4  ;;  %v3155_v48 = vrot.slane %v3148_v6, 4 }
 0x40c   : > { %v2988_v53 = vadd.f32 %v9891_v19, %v2974_v5  ;;  %v3006_v45 = vsel %vm413_vm0, %v3002_v47, %v3004_v35  ;;  %v3031_v63 = vadd.f32 %v3027_v61, %v3009_v55  ;;  %v9904_v47 = vrot.slane %v3073_v2, 10  ;;  %v3152_v19 = vpop.permute.xlu1 %3151 }
 0x40d   : > { %v3024_v9 = vpop.permute.xlu0 %3023  ;;  %3729 = vrot.lane.b32.xlu0 %v9976_v16, %s14818_s24  ;;  %v9905_v56 = vrot.slane %v3074_v11, 10  ;;  %v3101_v30 = vsel %vm413_vm0, %v12266_v46, %v3099_v33  ;;  %v3121_v35 = vrot.slane %v3118_v40, 4  ;;  %v3168_v16 = vstv %s12299_s15  ;;  %s14809_s15 = smov 48  }
 0x40e   : > { %v3026_v14 = vrot.slane %v3024_v9, 4  ;;  %v3010_v15 = vadd.f32 %v3006_v45, %v2988_v53  ;;  %v3157_v61 = vrot.slane %v3152_v19, 4 }
 0x410   : > { %v3028_v54 = vsel %vm432_vm1, %v3024_v9, %v3026_v14  ;;  %v3192_v44 = vpop.permute.xlu1 %3191  ;;  %v3169_v14 = vmul.f32 %v12143_v28, %v3168_v16 }
 0x411   : > { %v3054_v24 = vpop.permute.xlu0 %3053  ;;  %3733 = vrot.lane.b32.xlu0 %v9978_v39, %s14818_s24  ;;  %v3032_v1 = vadd.f32 %v3028_v54, %v3010_v15  ;;  %v3170_v54 = vmul.f32 %v12078_v62, %v3168_v16 }
 0x412   : > { %v3060_v41 = vrot.slane %v3054_v24, 4  ;;  %v9918_v15 = vrot.slane %v3169_v14, 11 }
 0x414   : > { %v3063_v42 = vsel %vm461_vm2, %v3059_v8, %v3060_v41 }
 0x415   : > { %v3058_v10 = vpop.permute.xlu0 %3057  ;;  %v3064_v18 = vsel %vm463_vm3, %v12228_v51, %v3063_v42 }
 0x416   : > { %v3062_v3 = vrot.slane %v3058_v10, 4  ;;  %v3069_v21 = vadd.f32 %v3064_v18, %v3031_v63  ;;  %v3214_v63 = vpop.permute.xlu1 %3213 }
 0x418   : > { %v3065_v12 = vsel %vm461_vm2, %v3061_v60, %v3062_v3  ;;  %v3083_v8 = vadd.f32 %v9904_v47, %v3069_v21 }
 0x419   : > { %v3098_v59 = vpop.permute.xlu0 %3097  ;;  %v3066_v51 = vsel %vm463_vm3, %v12244_v43, %v3065_v12  ;;  %v3123_v43 = vsel %vm432_vm1, %v3118_v40, %v3121_v35 }
 0x41a   : > { %v3070_v9 = vadd.f32 %v3066_v51, %v3032_v1  ;;  %v3100_v24 = vrot.slane %v3098_v59, 4  ;;  %v3105_v38 = vadd.f32 %v3101_v30, %v3083_v8  ;;  %v3244_v33 = vpop.permute.xlu1 %3243  ;;  %v9919_v1 = vrot.slane %v3170_v54, 11 }
 0x41c   : > { %v3084_v55 = vadd.f32 %v9905_v56, %v3070_v9  ;;  %v3102_v60 = vsel %vm413_vm0, %v3098_v59, %v3100_v24  ;;  %v3127_v39 = vadd.f32 %v3123_v43, %v3105_v38  ;;  %v3195_v59 = vrot.slane %v3192_v44, 4 }
 0x41d   : > { %v3120_v5 = vpop.permute.xlu0 %3119  ;;  %v3217_v9 = vrot.slane %v3214_v63, 4  ;;  %v3251_v24 = vrot.slane %v3244_v33, 4 }
 0x41e   : > { %v3122_v42 = vrot.slane %v3120_v5, 4  ;;  %v3106_v2 = vadd.f32 %v3102_v60, %v3084_v55  ;;  %v3197_v8 = vsel %vm413_vm0, %v3192_v44, %v3195_v59  ;;  %v3248_v38 = vpop.permute.xlu1 %3247 }
 0x41f   : > { %v3253_v44 = vrot.slane %v3248_v38, 4 }
 0x420   : > { %v3124_v18 = vsel %vm432_vm1, %v3120_v5, %v3122_v42 }
 0x421   : > { %v3150_v41 = vpop.permute.xlu0 %3149  ;;  %v3128_v11 = vadd.f32 %v3124_v18, %v3106_v2 }
 0x422   : > { %v3156_v53 = vrot.slane %v3150_v41, 4 }
 0x424   : > { %v3159_v45 = vsel %vm461_vm2, %v3155_v48, %v3156_v53  ;;  %v3219_v48 = vsel %vm432_vm1, %v3214_v63, %v3217_v9 }
 0x425   : > { %v3160_v46 = vsel %vm463_vm3, %v3148_v6, %v3159_v45  ;;  %v3154_v10 = vpop.permute.xlu0 %3153 }
 0x426   : > { %v3158_v3 = vrot.slane %v3154_v10, 4  ;;  %v3165_v12 = vadd.f32 %v3160_v46, %v3127_v39 }
 0x428   : > { %v3161_v40 = vsel %vm461_vm2, %v3157_v61, %v3158_v3  ;;  %v3179_v6 = vadd.f32 %v9918_v15, %v3165_v12  ;;  %v3264_v61 = vstv %s9931_s12  ;;  %s14808_s12 = smov 32  }
 0x429   : > { %v3162_v47 = vsel %vm463_vm3, %v3152_v19, %v3161_v40  ;;  %v3194_v21 = vpop.permute.xlu0 %3193 }
 0x42a   : > { %v3166_v51 = vadd.f32 %v3162_v47, %v3128_v11  ;;  %v3196_v5 = vrot.slane %v3194_v21, 4  ;;  %v3201_v30 = vadd.f32 %v3197_v8, %v3179_v6 }
 0x42c   : > { %v3180_v35 = vadd.f32 %v9919_v1, %v3166_v51  ;;  %v3198_v41 = vsel %vm413_vm0, %v3194_v21, %v3196_v5  ;;  %v3223_v53 = vadd.f32 %v3219_v48, %v3201_v30 }
 0x42d   : > { %v3216_v56 = vpop.permute.xlu0 %3215 }
 0x42e   : > { %v3218_v19 = vrot.slane %v3216_v56, 4  ;;  %v3202_v43 = vadd.f32 %v3198_v41, %v3180_v35 }
 0x430   : > { %v3220_v42 = vsel %vm432_vm1, %v3216_v56, %v3218_v19 }
 0x431   : > { %v3246_v16 = vpop.permute.xlu0 %3245  ;;  %v3224_v39 = vadd.f32 %v3220_v42, %v3202_v43  ;;  %v3416_v42 = vmul.f32 %v12078_v62, %v3414_v17  ;;  %v3500_v17 = vmul.f32 %v12078_v62, %v3498_v26  ;;  %v3574_v26 = vmul.f32 %v12078_v62, %v3572_v32 }
 0x432   : > { %v3252_v55 = vrot.slane %v3246_v16, 4 }
 0x434   : > { %v3255_v60 = vsel %vm461_vm2, %v3251_v24, %v3252_v55 }
 0x435   : > { %v3256_v45 = vsel %vm463_vm3, %v3244_v33, %v3255_v60  ;;  %v3250_v14 = vpop.permute.xlu0 %3249 }
 0x436   : > { %v3261_v46 = vadd.f32 %v3256_v45, %v3223_v53  ;;  %v3254_v10 = vrot.slane %v3250_v14, 4  ;;  %v3436_v45 = vmul.f32 %v12093_v27, %v12158_v36 }
 0x438   : > { %v3265_v2 = vadd.f32 %v3264_v61, %v3261_v46  ;;  %v3257_v3 = vsel %vm461_vm2, %v3253_v44, %v3254_v10  ;;  %v3398_v44 = vmul.f32 %v12078_v62, %v3396_v37  ;;  %v3478_v37 = vmul.f32 %v12078_v62, %v3476_v7 }
 0x439   : > { %v3258_v18 = vsel %vm463_vm3, %v3248_v38, %v3257_v3  ;;  %v9946_v46 = vrot.slane %v3500_v17, 9  ;;  %v3522_v10 = vmul.f32 %v12088_v0, %v12185_v57  ;;  %v3596_v3 = vmul.f32 %v12078_v62, %v3594_v34 }
 0x43a   : > { %v3267_v63 = vmax.f32 %v3265_v2, 0.0  ;;  %v3262_v15 = vadd.f32 %v3258_v18, %v3224_v39  ;;  %v9943_v14 = vrot.slane %v3478_v37, 9  ;;  %v9957_v2 = vrot.slane %v3574_v26, 10 }
 0x43b   : > { %v9949_v39 = vrot.slane %v3522_v10, 9  ;;  %v9960_v18 = vrot.slane %v3596_v3, 10 }
 0x43c   : > { %v3274_v12 = vrot.slane %v3267_v63, %v11392_v52  ;;  %v3278_v40 = vrot.slane %v3267_v63, %v11396_v50  ;;  %v3266_v54 = vadd.f32 %v3264_v61, %v3262_v15  ;;  %v3434_v61 = vmul.f32 %v12088_v0, %v12158_v36 }
 0x43d   : > { %v3524_v36 = vmul.f32 %v12093_v27, %v12185_v57  ;;  %v3618_v63 = vmul.f32 %v12088_v0, %v12221_v13  ;;  %v3620_v15 = vmul.f32 %v12093_v27, %v12221_v13 }
 0x43e   : > { %v9932_v59 = vpack.c.bf16 %v3278_v40, %v3274_v12  ;;  %v3268_v47 = vmax.f32 %v3266_v54, 0.0  ;;  %v3670_v12 = vmul.f32 %v12078_v62, %v3668_v25  ;;  %v3692_v40 = vmul.f32 %v12078_v62, %v3690_v58 }
 0x43f   : > { %v9951_v7 = vrot.slane %v3524_v36, 9  ;;  %v9963_v57 = vrot.slane %v3618_v63, 10  ;;  %v9965_v32 = vrot.slane %v3620_v15, 10 }
 0x440   : > { %v3306_v21 = vrot.slane %v9932_v59, %v11406_v4  ;;  %v3282_v11 = vrot.slane %v3268_v47, %v11392_v52  ;;  %v3286_v33 = vrot.slane %v3268_v47, %v11396_v50  ;;  %v9971_v34 = vrot.slane %v3670_v12, 11 }
 0x441   : > { %v9974_v54 = vrot.slane %v3692_v40, 11  ;;  %v3714_v59 = vmul.f32 %v12088_v0, %v12278_v23  ;;  %v3716_v47 = vmul.f32 %v12093_v27, %v12278_v23 }
 0x442   : > { %v3313_v6 = vrot.slane %v3306_v21, %v11406_v4  ;;  %v9933_v51 = vpack.c.bf16 %v3286_v33, %v3282_v11  ;;  %v3402_v21 = vpop.permute.xlu0 %3401 }
 0x443   : > { %v9977_v13 = vrot.slane %v3714_v59, 11  ;;  %v9979_v25 = vrot.slane %v3716_v47, 11 }
 0x444   : > { %v3321_v1 = vrot.slane %v9933_v51, %v11406_v4  ;;  %v3335_v9 = vrot.slane %v3313_v6, %v11419_v22 }
 0x446   : > { %v3328_v8 = vrot.slane %v3321_v1, %v11406_v4  ;;  %v3342_v56 = vrot.slane %v3335_v9, %v11419_v22  ;;  %v3420_v11 = vpop.permute.xlu0 %3419 }
 0x448   : > { %v3349_v5 = vrot.slane %v3328_v8, %v11419_v22  ;;  %v3357_v48 = vunpack.c.l.b16 %v3342_v56  ;;  %v3358_v41 = vunpack.c.h.b16 %v3342_v56  ;;  %v3392_v56 = vstv %s9934_s9  ;;  %s9990_s9 = sld [smem:[#allocation5 + $0x75]] }
 0x44a   : > { %v3356_v30 = vrot.slane %v3349_v5, %v11419_v22  ;;  %v3442_v58 = vpop.permute.xlu0 %3441 }
 0x44c   : > { %v3359_v35 = vunpack.c.l.b16 %v3356_v30  ;;  %v3360_v24 = vunpack.c.h.b16 %v3356_v30  ;;  %v3405_v30 = vrot.slane %v3402_v21, 4 }
 0x44e   : > { %v3361_v19 = vrot.slane %v3359_v35, 7  ;;  %v3363_v16 = vrot.slane %v3360_v24, 7  ;;  %v3446_v33 = vpop.permute.xlu0 %3445  ;;  %v3393_v24 = vmul.f32 %v12143_v28, %v3392_v56 }
 0x450   : > { %v3362_v38 = vsel %vm858_vm4, %v3361_v19, %v3357_v48  ;;  %v3364_v55 = vsel %vm858_vm4, %v3363_v16, %v3358_v41  ;;  %v3449_v48 = vrot.slane %v3442_v58, 4  ;;  %v3407_v19 = vsel %vm413_vm0, %v3402_v21, %v3405_v30 }
 0x451   : > { %v3365_v53 = vpack.c.b16 %v3364_v55, %v3362_v38  ;;  %v3423_v16 = vrot.slane %v3420_v11, 4 }
 0x452   : > { %v3486_v6 = vpop.permute.xlu0 %3485 }
 0x453   : > { %v3372_v43 = vrot.slane %v3365_v53, %v11406_v4  ;;  %v3462_v53 = vstv %s12407_s13  ;;  %v3489_v15 = vrot.slane %v3486_v6, 4  ;;  %s9993_s13 = sld [smem:[#allocation5 + $0x76]] }
 0x454   : > { %v3463_v17 = vmul.f32 %v12143_v28, %v3462_v53 }
 0x455   : > { %v3379_v60 = vrot.slane %v3372_v43, %v11406_v4 }
 0x456   : > { %v3508_v27 = vpop.permute.xlu0 %3507  ;;  %v9939_v63 = vrot.slane %v3463_v17, 9 }
 0x457   : > { %3380 = vrot.lane.b32.xlu1 %v3379_v60, %s14809_s15  ;;  %v3411_v60 = vadd.f32 %v3407_v19, %v3393_v24  ;;  %v3511_v21 = vrot.slane %v3508_v27, 4  ;;  %s12631_s15 = sld [smem:[#allocation5 + $0x74]] }
 0x45a   : > { %v3538_v5 = vpop.permute.xlu0 %3537 }
 0x45b   : > { %3403 = vrot.lane.b32.xlu1 %v3398_v44, %s14816_s25  ;;  %v3451_v44 = vrot.slane %v3446_v33, 4  ;;  %v3545_v47 = vrot.slane %v3538_v5, 4 }
 0x45e   : > { %v3542_v38 = vpop.permute.xlu0 %3541 }
 0x45f   : > { %3421 = vrot.lane.b32.xlu1 %v3416_v42, %s14814_s10 }
 0x462   : > { %v3582_v36 = vpop.permute.xlu0 %3581 }
 0x463   : > { %3443 = vrot.lane.b32.xlu1 %v3434_v61, %s14818_s24 }
 0x466   : > { %v3604_v40 = vpop.permute.xlu0 %3603 }
 0x467   : > { %3447 = vrot.lane.b32.xlu1 %v3436_v45, %s14818_s24  ;;  %v3425_v45 = vsel %vm432_vm1, %v3420_v11, %v3423_v16 }
 0x46b   : > { %3487 = vrot.lane.b32.xlu1 %v9943_v14, %s14816_s25  ;;  %v3394_v14 = vmul.f32 %v12078_v62, %v3392_v56 }
 0x46f   : > { %3509 = vrot.lane.b32.xlu1 %v9946_v46, %s14814_s10 }
 0x473   : > { %3539 = vrot.lane.b32.xlu1 %v9949_v39, %s14818_s24 }
 0x477   : > { %3543 = vrot.lane.b32.xlu1 %v9951_v7, %s14818_s24  ;;  %v3429_v7 = vadd.f32 %v3425_v45, %v3411_v60 }
 0x47b   : > { %3583 = vrot.lane.b32.xlu1 %v9957_v2, %s14816_s25 }
 0x47f   : > { %3605 = vrot.lane.b32.xlu1 %v9960_v18, %s14814_s10 }
 0x483   : > { %3635 = vrot.lane.b32.xlu1 %v9963_v57, %s14818_s24  ;;  %v3464_v57 = vmul.f32 %v12078_v62, %v3462_v53 }
 0x485   : > { %v9940_v59 = vrot.slane %v3464_v57, 9 }
 0x487   : > { %3639 = vrot.lane.b32.xlu1 %v9965_v32, %s14818_s24 }
 0x48b   : > { %3679 = vrot.lane.b32.xlu1 %v9971_v34, %s14816_s25 }
 0x48f   : > { %3701 = vrot.lane.b32.xlu1 %v9974_v54, %s14814_s10 }
 0x493   : > { %3731 = vrot.lane.b32.xlu1 %v9977_v13, %s14818_s24 }
 0x497   : > { %3735 = vrot.lane.b32.xlu1 %v9979_v25, %s14818_s24  ;;  %v3491_v25 = vsel %vm413_vm0, %v3486_v6, %v3489_v15 }
 0x4c9   : > { %v3381_v0 = vpop.permute.xlu1 %3380 }
 0x4ca   : > { %v3382_v51 = vrot.slane %v3381_v0, 7 }
 0x4cc   : > { %v3384_v23 = vsel %vm14807_vm12, %v3382_v51, %v3381_v0  ;;  %v3558_v51 = vstv %s12420_s18  ;;  %s9996_s18 = sld [smem:[#allocation5 + $0x77]]  ;;  %vm3954_vm12 = vmor %vm3953_vm11, %vm878_vm5  ;;  %vm4437_vm5 = vcmask 1040512  }
 0x4cd   : > { %v3404_v8 = vpop.permute.xlu1 %3403  ;;  %3390 = vst.msk [vmem:[#allocation3 + $0x9] sm:$0x7] %vm12400_vm10, %v3384_v23  ;;  %vm12941_vm11 = vmor %vm858_vm4, %vm4437_vm5 }
 0x4ce   : > { %v3406_v55 = vrot.slane %v3404_v8, 4 }
 0x4d0   : > { %v3408_v46 = vsel %vm413_vm0, %v3404_v8, %v3406_v55 }
 0x4d1   : > { %v3422_v9 = vpop.permute.xlu1 %3421  ;;  %v3412_v3 = vadd.f32 %v3408_v46, %v3394_v14 }
 0x4d2   : > { %v3424_v37 = vrot.slane %v3422_v9, 4 }
 0x4d4   : > { %v3426_v2 = vsel %vm432_vm1, %v3422_v9, %v3424_v37  ;;  %v3547_v9 = vrot.slane %v3542_v38, 4 }
 0x4d5   : > { %v3444_v35 = vpop.permute.xlu1 %3443  ;;  %v3430_v34 = vadd.f32 %v3426_v2, %v3412_v3 }
 0x4d6   : > { %v3450_v41 = vrot.slane %v3444_v35, 4 }
 0x4d8   : > { %v3453_v42 = vsel %vm461_vm2, %v3449_v48, %v3450_v41  ;;  %v3634_v48 = vpop.permute.xlu0 %3633  ;;  %v3559_v41 = vmul.f32 %v12143_v28, %v3558_v51 }
 0x4d9   : > { %v3448_v43 = vpop.permute.xlu1 %3447  ;;  %v3454_v10 = vsel %vm463_vm3, %v3442_v58, %v3453_v42  ;;  %v3560_v42 = vmul.f32 %v12078_v62, %v3558_v51  ;;  %v3641_v2 = vrot.slane %v3634_v48, 4 }
 0x4da   : > { %v3452_v61 = vrot.slane %v3448_v43, 4  ;;  %v3459_v18 = vadd.f32 %v3454_v10, %v3429_v7  ;;  %v3607_v7 = vrot.slane %v3604_v40, 4 }
 0x4db   : > { %v9954_v46 = vrot.slane %v3560_v42, 10 }
 0x4dc   : > { %v3455_v26 = vsel %vm461_vm2, %v3451_v44, %v3452_v61  ;;  %v3473_v54 = vadd.f32 %v9939_v63, %v3459_v18  ;;  %v9953_v44 = vrot.slane %v3559_v41, 10  ;;  %v3585_v61 = vrot.slane %v3582_v36, 4  ;;  %v3638_v37 = vpop.permute.xlu0 %3637 }
 0x4dd   : > { %v3488_v39 = vpop.permute.xlu1 %3487  ;;  %v3456_v32 = vsel %vm463_vm3, %v3446_v33, %v3455_v26  ;;  %v3513_v33 = vsel %vm432_vm1, %v3508_v27, %v3511_v21  ;;  %v3654_v18 = vstv %s12433_s27  ;;  %s10004_s27 = sld [smem:[#allocation5 + $0x79]] }
 0x4de   : > { %v3460_v13 = vadd.f32 %v3456_v32, %v3430_v34  ;;  %v3490_v11 = vrot.slane %v3488_v39, 4  ;;  %v3495_v23 = vadd.f32 %v3491_v25, %v3473_v54  ;;  %v3643_v54 = vrot.slane %v3638_v37, 4 }
 0x4e0   : > { %v3474_v8 = vadd.f32 %v9940_v59, %v3460_v13  ;;  %v3492_v30 = vsel %vm413_vm0, %v3488_v39, %v3490_v11  ;;  %v3517_v16 = vadd.f32 %v3513_v33, %v3495_v23  ;;  %v3587_v39 = vsel %vm413_vm0, %v3582_v36, %v3585_v61  ;;  %v3678_v63 = vpop.permute.xlu0 %3677 }
 0x4e1   : > { %v3510_v12 = vpop.permute.xlu1 %3509  ;;  %v3655_v13 = vmul.f32 %v12143_v28, %v3654_v18 }
 0x4e2   : > { %v3512_v35 = vrot.slane %v3510_v12, 4  ;;  %v3496_v55 = vadd.f32 %v3492_v30, %v3474_v8  ;;  %v3656_v8 = vmul.f32 %v12078_v62, %v3654_v18 }
 0x4e3   : > { %v9967_v23 = vrot.slane %v3655_v13, 11 }
 0x4e4   : > { %v3514_v43 = vsel %vm432_vm1, %v3510_v12, %v3512_v35  ;;  %v3609_v12 = vsel %vm432_vm1, %v3604_v40, %v3607_v7 }
 0x4e5   : > { %v3540_v58 = vpop.permute.xlu1 %3539  ;;  %v3518_v14 = vadd.f32 %v3514_v43, %v3496_v55 }
 0x4e6   : > { %v3546_v0 = vrot.slane %v3540_v58, 4 }
 0x4e8   : > { %v3549_v56 = vsel %vm461_vm2, %v3545_v47, %v3546_v0  ;;  %v3700_v0 = vpop.permute.xlu0 %3699 }
 0x4e9   : > { %v3544_v24 = vpop.permute.xlu1 %3543  ;;  %v3550_v19 = vsel %vm463_vm3, %v3538_v5, %v3549_v56 }
 0x4ea   : > { %v3548_v6 = vrot.slane %v3544_v24, 4  ;;  %v3555_v27 = vadd.f32 %v3550_v19, %v3517_v16  ;;  %v9968_v24 = vrot.slane %v3656_v8, 11 }
 0x4ec   : > { %v3551_v53 = vsel %vm461_vm2, %v3547_v9, %v3548_v6  ;;  %v3569_v17 = vadd.f32 %v9953_v44, %v3555_v27  ;;  %v3681_v9 = vrot.slane %v3678_v63, 4  ;;  %v3730_v30 = vpop.permute.xlu0 %3729  ;;  %v3703_v6 = vrot.slane %v3700_v0, 4 }
 0x4ed   : > { %v3584_v60 = vpop.permute.xlu1 %3583  ;;  %v3552_v45 = vsel %vm463_vm3, %v3542_v38, %v3551_v53  ;;  %v3737_v43 = vrot.slane %v3730_v30, 4 }
 0x4ee   : > { %v3556_v10 = vadd.f32 %v3552_v45, %v3518_v14  ;;  %v3586_v26 = vrot.slane %v3584_v60, 4  ;;  %v3591_v57 = vadd.f32 %v3587_v39, %v3569_v17  ;;  %v3683_v41 = vsel %vm413_vm0, %v3678_v63, %v3681_v9 }
 0x4ef   : > { %v3705_v62 = vsel %vm432_vm1, %v3700_v0, %v3703_v6 }
 0x4f0   : > { %v3570_v15 = vadd.f32 %v9954_v46, %v3556_v10  ;;  %v3588_v38 = vsel %vm413_vm0, %v3584_v60, %v3586_v26  ;;  %v3613_v25 = vadd.f32 %v3609_v12, %v3591_v57  ;;  %v3734_v42 = vpop.permute.xlu0 %3733  ;;  %v3750_v46 = vstv %s9980_s17  ;;  %s10007_s17 = sld [smem:[#allocation5 + $0x7a]] }
 0x4f1   : > { %v3606_v5 = vpop.permute.xlu1 %3605 }
 0x4f2   : > { %v3608_v34 = vrot.slane %v3606_v5, 4  ;;  %v3592_v21 = vadd.f32 %v3588_v38, %v3570_v15 }
 0x4f4   : > { %v3610_v58 = vsel %vm432_vm1, %v3606_v5, %v3608_v34  ;;  %v3739_v5 = vrot.slane %v3734_v42, 4 }
 0x4f5   : > { %v3636_v3 = vpop.permute.xlu1 %3635  ;;  %v3614_v28 = vadd.f32 %v3610_v58, %v3592_v21 }
 0x4f6   : > { %v3642_v32 = vrot.slane %v3636_v3, 4 }
 0x4f8   : > { %v3645_v59 = vsel %vm461_vm2, %v3641_v2, %v3642_v32 }
 0x4f9   : > { %v3646_v36 = vsel %vm463_vm3, %v3634_v48, %v3645_v59  ;;  %v3640_v47 = vpop.permute.xlu1 %3639 }
 0x4fa   : > { %v3644_v11 = vrot.slane %v3640_v47, 4  ;;  %v3651_v51 = vadd.f32 %v3646_v36, %v3613_v25 }
 0x4fc   : > { %v3647_v40 = vsel %vm461_vm2, %v3643_v54, %v3644_v11  ;;  %v3665_v35 = vadd.f32 %v9967_v23, %v3651_v51 }
 0x4fd   : > { %v3648_v56 = vsel %vm463_vm3, %v3638_v37, %v3647_v40  ;;  %v3680_v33 = vpop.permute.xlu1 %3679 }
 0x4fe   : > { %v3652_v48 = vadd.f32 %v3648_v56, %v3614_v28  ;;  %v3682_v19 = vrot.slane %v3680_v33, 4  ;;  %v3687_v55 = vadd.f32 %v3683_v41, %v3665_v35 }
 0x500   : > { %v3666_v53 = vadd.f32 %v9968_v24, %v3652_v48  ;;  %v3684_v60 = vsel %vm413_vm0, %v3680_v33, %v3682_v19  ;;  %v3709_v45 = vadd.f32 %v3705_v62, %v3687_v55 }
 0x501   : > { %v3702_v16 = vpop.permute.xlu1 %3701 }
 0x502   : > { %v3704_v27 = vrot.slane %v3702_v16, 4  ;;  %v3688_v37 = vadd.f32 %v3684_v60, %v3666_v53 }
 0x504   : > { %v3706_v17 = vsel %vm432_vm1, %v3702_v16, %v3704_v27 }
 0x505   : > { %v3732_v44 = vpop.permute.xlu1 %3731  ;;  %v3710_v2 = vadd.f32 %v3706_v17, %v3688_v37 }
 0x506   : > { %v3738_v61 = vrot.slane %v3732_v44, 4 }
 0x508   : > { %v3741_v14 = vsel %vm461_vm2, %v3737_v43, %v3738_v61 }
 0x509   : > { %v3742_v10 = vsel %vm463_vm3, %v3730_v30, %v3741_v14  ;;  %v3736_v39 = vpop.permute.xlu1 %3735 }
 0x50a   : > { %v3747_v7 = vadd.f32 %v3742_v10, %v3709_v45  ;;  %v3740_v26 = vrot.slane %v3736_v39, 4  ;;  %v12485_v10 = vld [vmem:[#allocation2 + $0xc] sm:$0xff] }
 0x50c   : > { %v3751_v3 = vadd.f32 %v3750_v46, %v3747_v7  ;;  %v3743_v18 = vsel %vm461_vm2, %v3739_v5, %v3740_v26  ;;  %v3961_v5 = vstv %s9984_s19  ;;  %v12488_v7 = vld [vmem:[#allocation2] sm:$0xff]  ;;  %s10010_s19 = sld [smem:[#allocation5 + $0x7b]] }
 0x50d   : > { %v3744_v63 = vsel %vm463_vm3, %v3734_v42, %v3743_v18  ;;  %v3963_v39 = vmul.f32 %v12485_v10, %v3961_v5  ;;  %v3962_v26 = vmul.f32 %v12488_v7, %v3961_v5 }
 0x50e   : > { %v3753_v57 = vmax.f32 %v3751_v3, 0.0  ;;  %v3748_v15 = vadd.f32 %v3744_v63, %v3710_v2  ;;  %v3979_v2 = vstv %s9985_s23  ;;  %v3997_v63 = vstv %s9986_s26  ;;  %s10018_s23 = sld [smem:[#allocation5 + $0x7d]] }
 0x50f   : > { %v3981_v3 = vmul.f32 %v12485_v10, %v3979_v2  ;;  %v3980_v18 = vmul.f32 %v12488_v7, %v3979_v2  ;;  %s10021_s26 = sld [smem:[#allocation5 + $0x7e]] }
 0x510   : > { %v3760_v32 = vrot.slane %v3753_v57, %v11392_v52  ;;  %v3764_v12 = vrot.slane %v3753_v57, %v11396_v50  ;;  %v3752_v38 = vadd.f32 %v3750_v46, %v3748_v15  ;;  %v12497_v57 = vld [vmem:[#allocation2 + $0x8] sm:$0xf] }
 0x511   : > { %v3999_v15 = vmul.f32 %v12497_v57, %v3997_v63 }
 0x512   : > { %v3777_v34 = vpack.c.bf16 %v3760_v32, %v3760_v32  ;;  %v9981_v54 = vpack.c.bf16 %v3764_v12, %v3760_v32  ;;  %v3754_v59 = vmax.f32 %v3752_v38, 0.0  ;;  %v3998_v32 = vmul.f32 %v12488_v7, %v3997_v63  ;;  %v12501_v38 = vld [vmem:[#allocation2 + $0x14] sm:$0xf] }
 0x513   : > { %v4041_v12 = vstv %s9990_s9  ;;  %s10024_s9 = sld [smem:[#allocation5 + $0x7f]] }
 0x514   : > { %v3789_v13 = vrot.slane %v3777_v34, %v11406_v4  ;;  %v3872_v36 = vrot.slane %v9981_v54, %v11406_v4  ;;  %v3768_v47 = vrot.slane %v3754_v59, %v11392_v52  ;;  %v3772_v25 = vrot.slane %v3754_v59, %v11396_v50 }
 0x515   : > { %v4001_v34 = vmul.f32 %v12501_v38, %v3997_v63  ;;  %v4000_v54 = vmul.f32 %v12485_v10, %v3997_v63  ;;  %v4043_v59 = vmul.f32 %v12485_v10, %v4041_v12 }
 0x516   : > { %v3796_v21 = vrot.slane %v3789_v13, %v11406_v4  ;;  %v3879_v11 = vrot.slane %v3872_v36, %v11406_v4  ;;  %v3779_v58 = vpack.c.bf16 %v3768_v47, %v3768_v47  ;;  %v9982_v0 = vpack.c.bf16 %v3772_v25, %v3768_v47 }
 0x517   : > { %v4042_v13 = vmul.f32 %v12488_v7, %v4041_v12  ;;  %v4063_v36 = vstv %s9993_s13  ;;  %v9992_v47 = vrot.slane %v4043_v59, 9  ;;  %s12557_s13 = sld [smem:[#allocation5 + $0x81]] }
 0x518   : > { %v3803_v51 = vrot.slane %v3779_v58, %v11406_v4  ;;  %v3887_v23 = vrot.slane %v9982_v0, %v11406_v4  ;;  %v3901_v40 = vrot.slane %v3879_v11, %v11419_v22  ;;  %v3817_v8 = vrot.slane %v3796_v21, %v11419_v22 }
 0x519   : > { %v9991_v25 = vrot.slane %v4042_v13, 9  ;;  %v4065_v21 = vmul.f32 %v12485_v10, %v4063_v36  ;;  %v4064_v11 = vmul.f32 %v12488_v7, %v4063_v36  ;;  %v4085_v58 = vstv %s9996_s18  ;;  %s12564_s18 = sld [smem:[#allocation5 + $0x82]] }
 0x51a   : > { %v3810_v9 = vrot.slane %v3803_v51, %v11406_v4  ;;  %v3894_v56 = vrot.slane %v3887_v23, %v11406_v4  ;;  %v3908_v30 = vrot.slane %v3901_v40, %v11419_v22  ;;  %v3824_v24 = vrot.slane %v3817_v8, %v11419_v22 }
 0x51b   : > { %v9995_v0 = vrot.slane %v4065_v21, 9  ;;  %v9994_v51 = vrot.slane %v4064_v11, 9  ;;  %v4087_v23 = vmul.f32 %v12497_v57, %v4085_v58  ;;  %v4086_v40 = vmul.f32 %v12488_v7, %v4085_v58 }
 0x51c   : > { %v3831_v33 = vrot.slane %v3810_v9, %v11419_v22  ;;  %v3915_v28 = vrot.slane %v3894_v56, %v11419_v22  ;;  %v3923_v16 = vunpack.c.l.b16 %v3908_v30  ;;  %v3924_v55 = vunpack.c.h.b16 %v3908_v30 }
 0x51d   : > { %v3839_v62 = vunpack.c.l.b16 %v3824_v24  ;;  %v9998_v8 = vrot.slane %v4087_v23, 9  ;;  %v9997_v9 = vrot.slane %v4086_v40, 9  ;;  %v4089_v56 = vmul.f32 %v12501_v38, %v4085_v58 }
 0x51e   : > { %v3922_v35 = vrot.slane %v3915_v28, %v11419_v22  ;;  %v3838_v48 = vrot.slane %v3831_v33, %v11419_v22  ;;  %v4088_v33 = vmul.f32 %v12485_v10, %v4085_v58  ;;  %v4137_v28 = vstv %s10004_s27  ;;  %s10035_s27 = sld [smem:[#allocation5 + $0x83]] }
 0x51f   : > { %v10000_v30 = vrot.slane %v4089_v56, 9  ;;  %v4139_v24 = vmul.f32 %v12485_v10, %v4137_v28  ;;  %v4277_v63 = vstv %s10024_s9  ;;  %v4445_v21 = vstv %s12557_s13  ;;  %s12602_s9 = sld [smem:[#allocation5 + $0x8a]] }
 0x520   : > { %v3925_v41 = vunpack.c.l.b16 %v3922_v35  ;;  %v3926_v6 = vunpack.c.h.b16 %v3922_v35  ;;  %v3840_v19 = vunpack.c.l.b16 %v3838_v48  ;;  %v9999_v35 = vrot.slane %v4088_v33, 9  ;;  %s13066_s13 = sld [smem:[#allocation5 + $0x90]] }
 0x521   : > { %v4138_v48 = vmul.f32 %v12488_v7, %v4137_v28  ;;  %v4279_v12 = vmul.f32 %v12497_v57, %v4277_v63  ;;  %v4281_v13 = vmul.f32 %v12501_v38, %v4277_v63  ;;  %v4280_v36 = vmul.f32 %v12485_v10, %v4277_v63 }
 0x522   : > { %v3927_v53 = vrot.slane %v3925_v41, 7  ;;  %v3929_v43 = vrot.slane %v3926_v6, 7  ;;  %v3841_v60 = vrot.slane %v3840_v19, 7  ;;  %v4159_v41 = vstv %s10007_s17  ;;  %s12573_s17 = sld [smem:[#allocation5 + $0x85]] }
 0x523   : > { %v10006_v6 = vrot.slane %v4139_v24, 10  ;;  %v10005_v19 = vrot.slane %v4138_v48, 10  ;;  %v4446_v11 = vmul.f32 %v12488_v7, %v4445_v21  ;;  %v4463_v58 = vstv %s12564_s18  ;;  %s13075_s18 = sld [smem:[#allocation5 + $0x94]] }
 0x524   : > { %v3928_v27 = vsel %vm858_vm4, %v3927_v53, %v3923_v16  ;;  %v3930_v44 = vsel %vm858_vm4, %v3929_v43, %v3924_v55  ;;  %v3842_v42 = vsel %vm858_vm4, %v3841_v60, %v3839_v62  ;;  %v4161_v16 = vmul.f32 %v12485_v10, %v4159_v41 }
 0x525   : > { %v3931_v61 = vpack.c.b16 %v3930_v44, %v3928_v27  ;;  %v3843_v45 = vpack.c.b16 %v3842_v42, %v3842_v42  ;;  %v4160_v55 = vmul.f32 %v12488_v7, %v4159_v41  ;;  %v4181_v53 = vstv %s10010_s19  ;;  %s12580_s19 = sld [smem:[#allocation5 + $0x86]] }
 0x526   : > { %v10009_v43 = vrot.slane %v4161_v16, 10  ;;  %v4183_v60 = vmul.f32 %v12497_v57, %v4181_v53  ;;  %v4182_v27 = vmul.f32 %v12488_v7, %v4181_v53 }
 0x527   : > { %v3938_v37 = vrot.slane %v3931_v61, %v11406_v4  ;;  %v3850_v14 = vrot.slane %v3843_v45, %v11406_v4  ;;  %v10008_v62 = vrot.slane %v4160_v55, 10  ;;  %v4185_v61 = vmul.f32 %v12501_v38, %v4181_v53 }
 0x528   : > { %v10012_v44 = vrot.slane %v4183_v60, 10  ;;  %v10011_v42 = vrot.slane %v4182_v27, 10  ;;  %v4184_v45 = vmul.f32 %v12485_v10, %v4181_v53  ;;  %v4643_v60 = vstv %s12602_s9  ;;  %s10131_s9 = sld [smem:[#allocation5 + $0xa1]] }
 0x529   : > { %v3945_v17 = vrot.slane %v3938_v37, %v11406_v4  ;;  %v3857_v46 = vrot.slane %v3850_v14, %v11406_v4  ;;  %v4233_v37 = vstv %s10018_s23  ;;  %v10014_v14 = vrot.slane %v4185_v61, 10  ;;  %s10045_s23 = sld [smem:[#allocation5 + $0x87]] }
 0x52a   : > { %v10013_v5 = vrot.slane %v4184_v45, 10 }
 0x52b   : > { %3946 = vrot.lane.b32.xlu1 %v3945_v17, %s14808_s12  ;;  %3858 = vrot.lane.b32.xlu0 %v3857_v46, %s14808_s12  ;;  %v4235_v17 = vmul.f32 %v12485_v10, %v4233_v37  ;;  %v4234_v46 = vmul.f32 %v12488_v7, %v4233_v37  ;;  %v4547_v33 = vstv %s12580_s19  ;;  %s12624_s12 = sld [smem:[#allocation5 + $0x8d]] }
 0x52c   : > { %v4548_v28 = vmul.f32 %v12488_v7, %v4547_v33  ;;  %s13137_s19 = sld [smem:[#allocation5 + $0x9c]] }
 0x52d   : > { %v10019_v2 = vrot.slane %v4234_v46, 11 }
 0x52f   : > { %3968 = vrot.lane.b32.xlu1 %v3963_v39, %s14816_s25  ;;  %3966 = vrot.lane.b32.xlu0 %v3962_v26, %s14816_s25  ;;  %v4255_v39 = vstv %s10021_s26  ;;  %v10020_v26 = vrot.slane %v4235_v17, 11  ;;  %s12597_s26 = sld [smem:[#allocation5 + $0x89]] }
 0x533   : > { %3986 = vrot.lane.b32.xlu1 %v3981_v3, %s14814_s10  ;;  %3984 = vrot.lane.b32.xlu0 %v3980_v18, %s14814_s10  ;;  %v4257_v3 = vmul.f32 %v12485_v10, %v4255_v39  ;;  %v4256_v18 = vmul.f32 %v12488_v7, %v4255_v39 }
 0x537   : > { %4008 = vrot.lane.b32.xlu1 %v3999_v15, %s14818_s24  ;;  %4006 = vrot.lane.b32.xlu0 %v3998_v32, %s14818_s24  ;;  %v10023_v15 = vrot.slane %v4257_v3, 11  ;;  %v10022_v32 = vrot.slane %v4256_v18, 11  ;;  %v4717_v18 = vstv %s12624_s12  ;;  %s13052_s12 = sld [smem:[#allocation8 + $0x8]] }
 0x53b   : > { %4012 = vrot.lane.b32.xlu1 %v4001_v34, %s14818_s24  ;;  %4010 = vrot.lane.b32.xlu0 %v4000_v54, %s14818_s24  ;;  %v4278_v34 = vmul.f32 %v12488_v7, %v4277_v63  ;;  %v10026_v54 = vrot.slane %v4279_v12, 11 }
 0x53d   : > { %v10025_v59 = vrot.slane %v4278_v34, 11 }
 0x53f   : > { %4052 = vrot.lane.b32.xlu1 %v9992_v47, %s14816_s25  ;;  %4050 = vrot.lane.b32.xlu0 %v9991_v25, %s14816_s25  ;;  %v10028_v47 = vrot.slane %v4281_v13, 11  ;;  %v10027_v25 = vrot.slane %v4280_v36, 11 }
 0x543   : > { %4074 = vrot.lane.b32.xlu1 %v9995_v0, %s14814_s10  ;;  %4072 = vrot.lane.b32.xlu0 %v9994_v51, %s14814_s10  ;;  %v4464_v0 = vmul.f32 %v12488_v7, %v4463_v58  ;;  %v12571_v51 = vstv %s10035_s27  ;;  %s10059_s27 = sld [smem:[#allocation5 + $0x8b]] }
 0x544   : > { %v4482_v23 = vmul.f32 %v12488_v7, %v12571_v51  ;;  %v4484_v40 = vmul.f32 %v12485_v10, %v12571_v51 }
 0x547   : > { %4104 = vrot.lane.b32.xlu1 %v9998_v8, %s14818_s24  ;;  %4102 = vrot.lane.b32.xlu0 %v9997_v9, %s14818_s24  ;;  %v4525_v8 = vstv %s12573_s17  ;;  %s13112_s17 = sld [smem:[#allocation5 + $0x98]] }
 0x548   : > { %v4526_v9 = vmul.f32 %v12488_v7, %v4525_v8 }
 0x549   : > { %v12617_v37 = vstv %s10059_s27  ;;  %s12629_s27 = sld [smem:[#allocation5 + $0x8e]] }
 0x54a   : > { %v10040_v56 = vrot.slane %v4526_v9, 9  ;;  %v4668_v39 = vmul.f32 %v12485_v10, %v12617_v37 }
 0x54b   : > { %4108 = vrot.lane.b32.xlu1 %v10000_v30, %s14818_s24  ;;  %4106 = vrot.lane.b32.xlu0 %v9999_v35, %s14818_s24  ;;  %v10043_v30 = vrot.slane %v4548_v28, 9  ;;  %v12592_v35 = vstv %s10045_s23  ;;  %s12619_s23 = sld [smem:[#allocation5 + $0x70]]  ;;  %v4027_v28 = vstv %s12631_s15 }
 0x54c   : > { %v4570_v24 = vmul.f32 %v12488_v7, %v12592_v35  ;;  %v4572_v41 = vmul.f32 %v12485_v10, %v12592_v35  ;;  %v10062_v3 = vrot.slane %v4668_v39, 10  ;;  %s12664_s15 = sld [smem:[#allocation5 + $0x78]] }
 0x54e   : > { %v10046_v48 = vrot.slane %v4570_v24, 9 }
 0x54f   : > { %4148 = vrot.lane.b32.xlu1 %v10006_v6, %s14816_s25  ;;  %4146 = vrot.lane.b32.xlu0 %v10005_v19, %s14816_s25  ;;  %v10048_v6 = vrot.slane %v4572_v41, 9  ;;  %v4621_v19 = vstv %s12597_s26  ;;  %v12652_v41 = vstv %s10073_s21  ;;  %s12661_s21 = sld [smem:[#allocation5 + $0x91]] }
 0x550   : > { %v4622_v16 = vmul.f32 %v12488_v7, %v4621_v19  ;;  %v4764_v39 = vmul.f32 %v12485_v10, %v12652_v41  ;;  %s10127_s26 = sld [smem:[#allocation8 + $0x9]] }
 0x551   : > { %v3957_v63 = vstv %s12619_s23  ;;  %s12670_s23 = sld [smem:[#allocation5 + $0x92]] }
 0x553   : > { %4170 = vrot.lane.b32.xlu1 %v10009_v43, %s14814_s10  ;;  %4168 = vrot.lane.b32.xlu0 %v10008_v62, %s14814_s10  ;;  %v10054_v62 = vrot.slane %v4622_v16, 10 }
 0x557   : > { %4200 = vrot.lane.b32.xlu1 %v10012_v44, %s14818_s24  ;;  %4198 = vrot.lane.b32.xlu0 %v10011_v42, %s14818_s24  ;;  %v4644_v44 = vmul.f32 %v12488_v7, %v4643_v60 }
 0x559   : > { %v10057_v45 = vrot.slane %v4644_v44, 10 }
 0x55b   : > { %4204 = vrot.lane.b32.xlu1 %v10014_v14, %s14818_s24  ;;  %4202 = vrot.lane.b32.xlu0 %v10013_v5, %s14818_s24  ;;  %v4666_v14 = vmul.f32 %v12488_v7, %v12617_v37 }
 0x55d   : > { %v10060_v46 = vrot.slane %v4666_v14, 10  ;;  %v3958_v14 = vmul.f32 %v12488_v7, %v3957_v63 }
 0x55f   : > { %4244 = vrot.lane.b32.xlu1 %v10020_v26, %s14816_s25  ;;  %4242 = vrot.lane.b32.xlu0 %v10019_v2, %s14816_s25 }
 0x563   : > { %4266 = vrot.lane.b32.xlu1 %v10023_v15, %s14814_s10  ;;  %4264 = vrot.lane.b32.xlu0 %v10022_v32, %s14814_s10  ;;  %v4718_v32 = vmul.f32 %v12488_v7, %v4717_v18 }
 0x565   : > { %v10068_v36 = vrot.slane %v4718_v32, 11  ;;  %v4028_v32 = vmul.f32 %v12488_v7, %v4027_v28 }
 0x567   : > { %4296 = vrot.lane.b32.xlu1 %v10026_v54, %s14818_s24  ;;  %4294 = vrot.lane.b32.xlu0 %v10025_v59, %s14818_s24 }
 0x56b   : > { %4300 = vrot.lane.b32.xlu1 %v10028_v47, %s14818_s24  ;;  %4298 = vrot.lane.b32.xlu0 %v10027_v25, %s14818_s24  ;;  %v3959_v47 = vmul.f32 %v12485_v10, %v3957_v63  ;;  %v4739_v25 = vstv %s12629_s27  ;;  %s10132_s27 = sld [smem:[#allocation5 + $0xa2]] }
 0x56f   : > { %4450 = vrot.lane.b32.xlu1 %v4446_v11, %s14816_s25 }
 0x573   : > { %4468 = vrot.lane.b32.xlu1 %v4464_v0, %s14814_s10  ;;  %v4740_v0 = vmul.f32 %v12488_v7, %v4739_v25 }
 0x577   : > { %4490 = vrot.lane.b32.xlu1 %v4482_v23, %s14818_s24 }
 0x57b   : > { %4494 = vrot.lane.b32.xlu1 %v4484_v40, %s14818_s24 }
 0x57f   : > { %4534 = vrot.lane.b32.xlu1 %v10040_v56, %s14816_s25 }
 0x583   : > { %4556 = vrot.lane.b32.xlu1 %v10043_v30, %s14814_s10  ;;  %v10071_v30 = vrot.slane %v4740_v0, 11  ;;  %v9988_v0 = vrot.slane %v4028_v32, 9 }
 0x587   : > { %4586 = vrot.lane.b32.xlu1 %v10046_v48, %s14818_s24  ;;  %v4029_v48 = vmul.f32 %v12485_v10, %v4027_v28  ;;  %v4922_v28 = vstv %s12661_s21  ;;  %s10133_s21 = sld [smem:[#allocation5 + $0xa3]] }
 0x58b   : > { %4590 = vrot.lane.b32.xlu1 %v10048_v6, %s14818_s24 }
 0x58f   : > { %4630 = vrot.lane.b32.xlu1 %v10054_v62, %s14816_s25 }
 0x593   : > { %4652 = vrot.lane.b32.xlu1 %v10057_v45, %s14814_s10 }
 0x597   : > { %4682 = vrot.lane.b32.xlu1 %v10060_v46, %s14818_s24  ;;  %v9989_v46 = vrot.slane %v4029_v48, 9  ;;  %v4923_v48 = vmul.f32 %v12488_v7, %v4922_v28 }
 0x59b   : > { %4686 = vrot.lane.b32.xlu1 %v10062_v3, %s14818_s24 }
 0x59d   : > { %v3947_v55 = vpop.permute.xlu1 %3946  ;;  %v3859_v53 = vpop.permute.xlu0 %3858 }
 0x59e   : > { %v3948_v43 = vrot.slane %v3947_v55, 1  ;;  %3862 = vst.msk [vmem:[#allocation3 + $0xb] sm:$0x1] %vm3861_vm13, %v3859_v53 }
 0x59f   : > { %4726 = vrot.lane.b32.xlu1 %v10068_v36, %s14816_s25 }
 0x5a0   : > { %v3950_v27 = vsel %vm3949_vm8, %v3947_v55, %v3948_v43  ;;  %v4762_v55 = vmul.f32 %v12488_v7, %v12652_v41 }
 0x5a1   : > { %3955 = vst.msk [vmem:[#allocation3 + $0xc] sm:$0x3] %vm3954_vm12, %v3950_v27  ;;  %v3969_v42 = vpop.permute.xlu1 %3968  ;;  %v3967_v61 = vpop.permute.xlu0 %3966  ;;  %vm4434_vm12 = vcmask 130048  }
 0x5a2   : > { %v3971_v15 = vrot.slane %v3969_v42, 4  ;;  %v3970_v6 = vrot.slane %v3967_v61, 4  ;;  %v10074_v45 = vrot.slane %v4762_v55, 11 }
 0x5a3   : > { %4748 = vrot.lane.b32.xlu1 %v10071_v30, %s14814_s10 }
 0x5a4   : > { %v3973_v11 = vsel %vm413_vm0, %v3969_v42, %v3971_v15  ;;  %v3972_v3 = vsel %vm413_vm0, %v3967_v61, %v3970_v6 }
 0x5a5   : > { %v3987_v5 = vpop.permute.xlu1 %3986  ;;  %v3985_v17 = vpop.permute.xlu0 %3984  ;;  %v3977_v24 = vadd.f32 %v3973_v11, %v3959_v47 }
 0x5a6   : > { %v3989_v54 = vrot.slane %v3987_v5, 4  ;;  %v3988_v42 = vrot.slane %v3985_v17, 4 }
 0x5a7   : > { %4778 = vrot.lane.b32.xlu1 %v10074_v45, %s14818_s24 }
 0x5a8   : > { %v3991_v56 = vsel %vm432_vm1, %v3987_v5, %v3989_v54  ;;  %v3990_v54 = vsel %vm432_vm1, %v3985_v17, %v3988_v42 }
 0x5a9   : > { %v4009_v26 = vpop.permute.xlu1 %4008  ;;  %v4007_v2 = vpop.permute.xlu0 %4006  ;;  %v3995_v53 = vadd.f32 %v3991_v56, %v3977_v24 }
 0x5aa   : > { %v4015_v43 = vrot.slane %v4009_v26, 4  ;;  %v4014_v62 = vrot.slane %v4007_v2, 4 }
 0x5ac   : > { %v4018_v26 = vsel %vm461_vm2, %v4014_v62, %v4015_v43  ;;  %v4123_v62 = vstv %s12664_s15  ;;  %s12695_s15 = sld [smem:[#allocation5 + $0x7c]] }
 0x5ad   : > { %v4013_v12 = vpop.permute.xlu1 %4012  ;;  %v4011_v34 = vpop.permute.xlu0 %4010  ;;  %v4019_v61 = vsel %vm463_vm3, %v4007_v2, %v4018_v26  ;;  %v4125_v42 = vmul.f32 %v12485_v10, %v4123_v62 }
 0x5ae   : > { %v4017_v59 = vrot.slane %v4013_v12, 4  ;;  %v4016_v13 = vrot.slane %v4011_v34, 4 }
 0x5b0   : > { %v4020_v23 = vsel %vm461_vm2, %v4016_v13, %v4017_v59  ;;  %v3976_v59 = vadd.f32 %v3972_v3, %v3958_v14 }
 0x5b1   : > { %v4053_v40 = vpop.permute.xlu1 %4052  ;;  %v12647_v9 = vpop.permute.xlu0 %4050  ;;  %v4021_v16 = vsel %vm463_vm3, %v4011_v34, %v4020_v23  ;;  %v10076_v34 = vrot.slane %v4764_v39, 11 }
 0x5b2   : > { %v4025_v5 = vadd.f32 %v4021_v16, %v3995_v53  ;;  %v4055_v15 = vrot.slane %v4053_v40, 4  ;;  %v3994_v11 = vadd.f32 %v3990_v54, %v3976_v59  ;;  %v4054_v17 = vrot.slane %v12647_v9, 4 }
 0x5b3   : > { %4782 = vrot.lane.b32.xlu1 %v10076_v34, %s14818_s24 }
 0x5b4   : > { %v4039_v13 = vadd.f32 %v9989_v46, %v4025_v5  ;;  %v4057_v36 = vsel %vm413_vm0, %v4053_v40, %v4055_v15  ;;  %v4024_v2 = vadd.f32 %v4019_v61, %v3994_v11  ;;  %v4940_v5 = vstv %s12670_s23  ;;  %s10137_s23 = sld [smem:[#allocation5 + $0xa5]] }
 0x5b5   : > { %v4075_v27 = vpop.permute.xlu1 %4074  ;;  %v4073_v44 = vpop.permute.xlu0 %4072  ;;  %v4056_v46 = vsel %vm413_vm0, %v12647_v9, %v4054_v17  ;;  %v4941_v3 = vmul.f32 %v12488_v7, %v4940_v5  ;;  %v10003_v9 = vrot.slane %v4125_v42, 10  ;;  %v12698_v61 = vstv %s10084_s30  ;;  %s12708_s30 = sld [smem:[#allocation5 + $0x96]] }
 0x5b6   : > { %v4077_v47 = vrot.slane %v4075_v27, 4  ;;  %v4061_v40 = vadd.f32 %v4057_v36, %v4039_v13  ;;  %v4076_v53 = vrot.slane %v4073_v44, 4 }
 0x5b7   : > { %4927 = vrot.lane.b32.xlu1 %v4923_v48, %s14816_s25 }
 0x5b8   : > { %v4079_v55 = vsel %vm432_vm1, %v4075_v27, %v4077_v47  ;;  %v4038_v27 = vadd.f32 %v9988_v0, %v4024_v2  ;;  %v4078_v32 = vsel %vm432_vm1, %v4073_v44, %v4076_v53  ;;  %v4959_v44 = vmul.f32 %v12488_v7, %v12698_v61 }
 0x5b9   : > { %v4105_v63 = vpop.permute.xlu1 %4104  ;;  %v4103_v12 = vpop.permute.xlu0 %4102  ;;  %v4083_v15 = vadd.f32 %v4079_v55, %v4061_v40  ;;  %v4961_v0 = vmul.f32 %v12485_v10, %v12698_v61  ;;  %v5002_v55 = vstv %s12700_s20  ;;  %v4219_v53 = vstv %s12695_s15  ;;  %s12733_s15 = sld [smem:[#allocation8 + $0x7]] }
 0x5ba   : > { %v4111_v6 = vrot.slane %v4105_v63, 4  ;;  %v4110_v16 = vrot.slane %v4103_v12, 4  ;;  %v4124_v63 = vmul.f32 %v12488_v7, %v4123_v62  ;;  %v4060_v34 = vadd.f32 %v4056_v46, %v4038_v27  ;;  %s13016_s20 = sld [smem:[#allocation5 + $0x8c]] }
 0x5bb   : > { %4945 = vrot.lane.b32.xlu1 %v4941_v3, %s14814_s10  ;;  %s10094_s10 = sld [smem:[#allocation5 + $0x97]] }
 0x5bc   : > { %v4114_v26 = vsel %vm461_vm2, %v4110_v16, %v4111_v6  ;;  %v4082_v11 = vadd.f32 %v4078_v32, %v4060_v34  ;;  %v10002_v17 = vrot.slane %v4124_v63, 10  ;;  %v4220_v34 = vmul.f32 %v12488_v7, %v4219_v53 }
 0x5bd   : > { %v4109_v23 = vpop.permute.xlu1 %4108  ;;  %v4107_v56 = vpop.permute.xlu0 %4106  ;;  %v4115_v36 = vsel %vm463_vm3, %v4103_v12, %v4114_v26 }
 0x5be   : > { %v4113_v30 = vrot.slane %v4109_v23, 4  ;;  %v4112_v24 = vrot.slane %v4107_v56, 4  ;;  %v4120_v23 = vadd.f32 %v4115_v36, %v4082_v11 }
 0x5bf   : > { %4967 = vrot.lane.b32.xlu1 %v4959_v44, %s14818_s24 }
 0x5c0   : > { %v4116_v43 = vsel %vm461_vm2, %v4112_v24, %v4113_v30  ;;  %v4134_v42 = vadd.f32 %v10002_v17, %v4120_v23  ;;  %v10016_v17 = vrot.slane %v4220_v34, 11 }
 0x5c1   : > { %v4149_v45 = vpop.permute.xlu1 %4148  ;;  %v4147_v14 = vpop.permute.xlu0 %4146  ;;  %v4117_v39 = vsel %vm463_vm3, %v4107_v56, %v4116_v43  ;;  %v5003_v43 = vmul.f32 %v12488_v7, %v5002_v55 }
 0x5c2   : > { %v4121_v54 = vadd.f32 %v4117_v39, %v4083_v15  ;;  %v4151_v47 = vrot.slane %v4149_v45, 4  ;;  %v4150_v30 = vrot.slane %v4147_v14, 4 }
 0x5c3   : > { %4971 = vrot.lane.b32.xlu1 %v4961_v0, %s14818_s24  ;;  %v10089_v26 = vrot.slane %v5003_v43, 9  ;;  %s12738_s24 = sld [smem:[#allocation5 + $0x99]] }
 0x5c4   : > { %v4135_v56 = vadd.f32 %v10003_v9, %v4121_v54  ;;  %v4153_v12 = vsel %vm413_vm0, %v4149_v45, %v4151_v47  ;;  %v4152_v46 = vsel %vm413_vm0, %v4147_v14, %v4150_v30  ;;  %v5024_v54 = vstv %s12708_s30  ;;  %s10140_s30 = sld [smem:[#allocation5 + $0xa6]] }
 0x5c5   : > { %v4171_v59 = vpop.permute.xlu1 %4170  ;;  %v4169_v13 = vpop.permute.xlu0 %4168  ;;  %v4156_v9 = vadd.f32 %v4152_v46, %v4134_v42  ;;  %v4221_v14 = vmul.f32 %v12485_v10, %v4219_v53  ;;  %v5025_v47 = vmul.f32 %v12488_v7, %v5024_v54 }
 0x5c6   : > { %v4173_v6 = vrot.slane %v4171_v59, 4  ;;  %v4172_v16 = vrot.slane %v4169_v13, 4  ;;  %v4157_v62 = vadd.f32 %v4153_v12, %v4135_v56 }
 0x5c7   : > { %5011 = vrot.lane.b32.xlu1 %v10089_v26, %s14816_s25  ;;  %v10092_v56 = vrot.slane %v5025_v47, 9  ;;  %s14855_s25 = smov 112  }
 0x5c8   : > { %v4175_v32 = vsel %vm432_vm1, %v4171_v59, %v4173_v6  ;;  %v4174_v63 = vsel %vm432_vm1, %v4169_v13, %v4172_v16 }
 0x5c9   : > { %v4201_v24 = vpop.permute.xlu1 %4200  ;;  %v4199_v48 = vpop.permute.xlu0 %4198  ;;  %v4179_v13 = vadd.f32 %v4175_v32, %v4157_v62  ;;  %v4178_v23 = vadd.f32 %v4174_v63, %v4156_v9 }
 0x5ca   : > { %v4207_v2 = vrot.slane %v4201_v24, 4  ;;  %v4206_v40 = vrot.slane %v4199_v48, 4  ;;  %v12731_v24 = vstv %s10094_s10  ;;  %s14856_s10 = smov 111  }
 0x5cb   : > { %5033 = vrot.lane.b32.xlu1 %v10092_v56, %s14855_s25  ;;  %v5049_v46 = vmul.f32 %v12485_v10, %v12731_v24 }
 0x5cc   : > { %v4210_v45 = vsel %vm461_vm2, %v4206_v40, %v4207_v2  ;;  %v10017_v40 = vrot.slane %v4221_v14, 11  ;;  %v5098_v14 = vstv %s12738_s24  ;;  %s12991_s24 = sld [smem:[#allocation5 + $0x88]] }
 0x5cd   : > { %v4205_v39 = vpop.permute.xlu1 %4204  ;;  %v4203_v3 = vpop.permute.xlu0 %4202  ;;  %v4211_v44 = vsel %vm463_vm3, %v4199_v48, %v4210_v45  ;;  %v5047_v48 = vmul.f32 %v12488_v7, %v12731_v24  ;;  %v10097_v63 = vrot.slane %v5049_v46, 9 }
 0x5ce   : > { %v4209_v27 = vrot.slane %v4205_v39, 4  ;;  %v4208_v15 = vrot.slane %v4203_v3, 4  ;;  %v4216_v12 = vadd.f32 %v4211_v44, %v4178_v23 }
 0x5cf   : > { %v10095_v62 = vrot.slane %v5047_v48, 9  ;;  %v5120_v48 = vstv %s12746_s0  ;;  %s12945_s0 = sld [smem:[#allocation5 + $0x80]] }
 0x5d0   : > { %v4212_v36 = vsel %vm461_vm2, %v4208_v15, %v4209_v27 }
 0x5d1   : > { %v4213_v11 = vsel %vm463_vm3, %v4203_v3, %v4212_v36  ;;  %v4245_v59 = vpop.permute.xlu1 %4244  ;;  %v4243_v0 = vpop.permute.xlu0 %4242  ;;  %v4230_v3 = vadd.f32 %v10016_v17, %v4216_v12  ;;  %5063 = vrot.lane.b32.xlu1 %v10095_v62, %s14856_s10 }
 0x5d2   : > { %v4246_v30 = vrot.slane %v4243_v0, 4  ;;  %v4217_v2 = vadd.f32 %v4213_v11, %v4179_v13  ;;  %v4247_v6 = vrot.slane %v4245_v59, 4  ;;  %v4315_v13 = vstv %s12733_s15  ;;  %s12771_s15 = sld [smem:[#allocation5 + $0x9d]] }
 0x5d4   : > { %v4248_v42 = vsel %vm413_vm0, %v4243_v0, %v4246_v30  ;;  %v4231_v39 = vadd.f32 %v10017_v40, %v4217_v2  ;;  %v4249_v45 = vsel %vm413_vm0, %v4245_v59, %v4247_v6  ;;  %v5099_v59 = vmul.f32 %v12488_v7, %v5098_v14 }
 0x5d5   : > { %v4267_v16 = vpop.permute.xlu1 %4266  ;;  %v4265_v53 = vpop.permute.xlu0 %4264  ;;  %v4252_v34 = vadd.f32 %v4248_v42, %v4230_v3  ;;  %5067 = vrot.lane.b32.xlu1 %v10097_v63, %s14856_s10  ;;  %v12764_v3 = vstv %s10108_s1  ;;  %s12779_s1 = sld [smem:[#allocation5 + $0x9e]] }
 0x5d6   : > { %v4268_v43 = vrot.slane %v4265_v53, 4  ;;  %v4269_v27 = vrot.slane %v4267_v16, 4  ;;  %v4253_v47 = vadd.f32 %v4249_v45, %v4231_v39  ;;  %v10103_v40 = vrot.slane %v5099_v59, 10 }
 0x5d8   : > { %v4270_v15 = vsel %vm432_vm1, %v4265_v53, %v4268_v43  ;;  %v4271_v0 = vsel %vm432_vm1, %v4267_v16, %v4269_v27  ;;  %v5121_v16 = vmul.f32 %v12488_v7, %v5120_v48 }
 0x5d9   : > { %v4297_v26 = vpop.permute.xlu1 %4296  ;;  %v4295_v32 = vpop.permute.xlu0 %4294  ;;  %v4274_v44 = vadd.f32 %v4270_v15, %v4252_v34  ;;  %v4275_v6 = vadd.f32 %v4271_v0, %v4253_v47  ;;  %5107 = vrot.lane.b32.xlu1 %v10103_v40, %s14857_s2 }
 0x5da   : > { %v4303_v9 = vrot.slane %v4297_v26, 4  ;;  %v4302_v36 = vrot.slane %v4295_v32, 4  ;;  %v10106_v39 = vrot.slane %v5121_v16, 10  ;;  %v5143_v26 = vmul.f32 %v12488_v7, %v12764_v3 }
 0x5dc   : > { %v4306_v11 = vsel %vm461_vm2, %v4302_v36, %v4303_v9  ;;  %v10109_v34 = vrot.slane %v5143_v26, 10  ;;  %v5145_v9 = vmul.f32 %v12485_v10, %v12764_v3 }
 0x5dd   : > { %v4307_v23 = vsel %vm463_vm3, %v4295_v32, %v4306_v11  ;;  %v4301_v56 = vpop.permute.xlu1 %4300  ;;  %v4299_v17 = vpop.permute.xlu0 %4298  ;;  %5129 = vrot.lane.b32.xlu1 %v10106_v39, %s14855_s25 }
 0x5de   : > { %v4312_v30 = vadd.f32 %v4307_v23, %v4274_v44  ;;  %v4305_v12 = vrot.slane %v4301_v56, 4  ;;  %v4304_v2 = vrot.slane %v4299_v17, 4  ;;  %v10111_v11 = vrot.slane %v5145_v9, 10 }
 0x5e0   : > { %v4316_v53 = vadd.f32 %v4315_v13, %v4312_v30  ;;  %v4308_v43 = vsel %vm461_vm2, %v4304_v2, %v4305_v12  ;;  %v5216_v2 = vstv %s12779_s1  ;;  %s10151_s1 = sld [smem:[#allocation5 + $0xa9]] }
 0x5e1   : > { %v4309_v62 = vsel %vm463_vm3, %v4299_v17, %v4308_v43  ;;  %5159 = vrot.lane.b32.xlu1 %v10109_v34, %s14856_s10 }
 0x5e2   : > { %v4318_v42 = vmax.f32 %v4316_v53, 0.0  ;;  %v4313_v46 = vadd.f32 %v4309_v62, %v4275_v6  ;;  %v5217_v6 = vmul.f32 %v12488_v7, %v5216_v2 }
 0x5e4   : > { %v4325_v45 = vrot.slane %v4318_v42, %v11392_v52  ;;  %v4329_v27 = vrot.slane %v4318_v42, %v11396_v50  ;;  %v4317_v15 = vadd.f32 %v4315_v13, %v4313_v46  ;;  %v5194_v13 = vstv %s12771_s15  ;;  %s10143_s15 = sld [smem:[#allocation5 + $0xa7]] }
 0x5e5   : > { %5163 = vrot.lane.b32.xlu1 %v10111_v11, %s14856_s10  ;;  %v5195_v56 = vmul.f32 %v12488_v7, %v5194_v13  ;;  %v10120_v16 = vrot.slane %v5217_v6, 11  ;;  %v4447_v11 = vmul.f32 %v12485_v10, %v4445_v21  ;;  %v4527_v21 = vmul.f32 %v12485_v10, %v4525_v8 }
 0x5e6   : > { %v10030_v32 = vpack.c.bf16 %v4329_v27, %v4325_v45  ;;  %v4319_v63 = vmax.f32 %v4317_v15, 0.0  ;;  %v4645_v6 = vmul.f32 %v12485_v10, %v4643_v60 }
 0x5e7   : > { %v10117_v12 = vrot.slane %v5195_v56, 11  ;;  %v10041_v56 = vrot.slane %v4527_v21, 9  ;;  %v5122_v21 = vmul.f32 %v12485_v10, %v5120_v48  ;;  %v12927_v48 = vld [vmem:[#allocation2 + $0xc] sm:$0xff] }
 0x5e8   : > { %v4357_v36 = vrot.slane %v10030_v32, %v11406_v4  ;;  %v4333_v47 = vrot.slane %v4319_v63, %v11392_v52  ;;  %v4337_v44 = vrot.slane %v4319_v63, %v11396_v50  ;;  %v12801_v32 = vstv %s10122_s3  ;;  %s12962_s3 = sld [smem:[#allocation5 + $0x84]] }
 0x5e9   : > { %5203 = vrot.lane.b32.xlu1 %v10117_v12, %s14857_s2  ;;  %v5239_v34 = vmul.f32 %v12488_v7, %v12801_v32  ;;  %v4465_v7 = vmul.f32 %v12485_v10, %v4463_v58  ;;  %v4549_v58 = vmul.f32 %v12485_v10, %v4547_v33  ;;  %v4623_v33 = vmul.f32 %v12485_v10, %v4621_v19 }
 0x5ea   : > { %v4364_v59 = vrot.slane %v4357_v36, %v11406_v4  ;;  %v10031_v0 = vpack.c.bf16 %v4337_v44, %v4333_v47  ;;  %v5241_v44 = vmul.f32 %v12485_v10, %v12801_v32 }
 0x5eb   : > { %v10123_v36 = vrot.slane %v5239_v34, 11 }
 0x5ec   : > { %v4372_v23 = vrot.slane %v10031_v0, %v11406_v4  ;;  %v4386_v17 = vrot.slane %v4364_v59, %v11419_v22  ;;  %v10125_v59 = vrot.slane %v5241_v44, 11  ;;  %v4483_v0 = vmul.f32 %v12497_v57, %v12571_v51 }
 0x5ed   : > { %5225 = vrot.lane.b32.xlu1 %v10120_v16, %s14855_s25  ;;  %v4669_v16 = vmul.f32 %v12501_v38, %v12617_v37 }
 0x5ee   : > { %v4379_v30 = vrot.slane %v4372_v23, %v11406_v4  ;;  %v4393_v43 = vrot.slane %v4386_v17, %v11419_v22  ;;  %v4485_v23 = vmul.f32 %v12501_v38, %v12571_v51  ;;  %v10044_v17 = vrot.slane %v4549_v58, 9 }
 0x5ef   : > { %v4573_v51 = vmul.f32 %v12501_v38, %v12592_v35  ;;  %v10063_v19 = vrot.slane %v4669_v16, 10  ;;  %v5144_v58 = vmul.f32 %v12497_v57, %v12764_v3  ;;  %v12956_v16 = vld [vmem:[#allocation2 + $0x14] sm:$0xf] }
 0x5f0   : > { %v4400_v40 = vrot.slane %v4379_v30, %v11419_v22  ;;  %v4408_v46 = vunpack.c.l.b16 %v4393_v43  ;;  %v4409_v39 = vunpack.c.h.b16 %v4393_v43  ;;  %v4571_v30 = vmul.f32 %v12497_v57, %v12592_v35 }
 0x5f1   : > { %5255 = vrot.lane.b32.xlu1 %v10123_v36, %s14856_s10  ;;  %v10049_v8 = vrot.slane %v4573_v51, 9  ;;  %v4667_v43 = vmul.f32 %v12497_v57, %v12617_v37  ;;  %v4763_v37 = vmul.f32 %v12497_v57, %v12652_v41 }
 0x5f2   : > { %v4407_v53 = vrot.slane %v4400_v40, %v11419_v22  ;;  %v10047_v12 = vrot.slane %v4571_v30, 9  ;;  %v10055_v40 = vrot.slane %v4623_v33, 10  ;;  %v5146_v30 = vmul.f32 %v12501_v38, %v12764_v3 }
 0x5f3   : > { %v10061_v35 = vrot.slane %v4667_v43, 10 }
 0x5f4   : > { %v4410_v62 = vunpack.c.l.b16 %v4407_v53  ;;  %v4411_v42 = vunpack.c.h.b16 %v4407_v53  ;;  %v10058_v53 = vrot.slane %v4645_v6, 10  ;;  %v12948_v6 = vld [vmem:[#allocation2 + $0x8] sm:$0xf] }
 0x5f5   : > { %5259 = vrot.lane.b32.xlu1 %v10125_v59, %s14856_s10  ;;  %v5050_v59 = vmul.f32 %v12501_v38, %v12731_v24 }
 0x5f6   : > { %v4412_v45 = vrot.slane %v4410_v62, 7  ;;  %v4414_v27 = vrot.slane %v4411_v42, 7  ;;  %v4719_v62 = vmul.f32 %v12485_v10, %v4717_v18  ;;  %v4741_v42 = vmul.f32 %v12485_v10, %v4739_v25 }
 0x5f7   : > { %v4765_v18 = vmul.f32 %v12501_v38, %v12652_v41  ;;  %v4960_v41 = vmul.f32 %v12497_v57, %v12698_v61 }
 0x5f8   : > { %v4413_v15 = vsel %vm858_vm4, %v4412_v45, %v4408_v46  ;;  %v4415_v26 = vsel %vm858_vm4, %v4414_v27, %v4409_v39  ;;  %v10069_v60 = vrot.slane %v4719_v62, 11  ;;  %v10072_v46 = vrot.slane %v4741_v42, 11  ;;  %v12863_v39 = vpop.permute.xlu1 %4450 }
 0x5f9   : > { %v4416_v63 = vpack.c.b16 %v4415_v26, %v4413_v15  ;;  %v10075_v45 = vrot.slane %v4763_v37, 11  ;;  %v10077_v27 = vrot.slane %v4765_v18, 11  ;;  %v4924_v15 = vmul.f32 %v12485_v10, %v4922_v28 }
 0x5fa   : > { %v5004_v28 = vmul.f32 %v12485_v10, %v5002_v55  ;;  %v4441_v42 = vstv %s12945_s0  ;;  %s10154_s0 = sld [smem:[#allocation5 + $0xaa]] }
 0x5fb   : > { %v4423_v9 = vrot.slane %v4416_v63, %v11406_v4  ;;  %v4942_v63 = vmul.f32 %v12485_v10, %v4940_v5 }
 0x5fc   : > { %v12869_v25 = vpop.permute.xlu1 %4468  ;;  %v10090_v5 = vrot.slane %v5004_v28, 9 }
 0x5fd   : > { %v4430_v47 = vrot.slane %v4423_v9, %v11406_v4  ;;  %v4962_v9 = vmul.f32 %v12501_v38, %v12698_v61 }
 0x5ff   : > { %4431 = vrot.lane.b32.xlu0 %v4430_v47, %s10883_s4  ;;  %v5026_v47 = vmul.f32 %v12485_v10, %v5024_v54  ;;  %v5100_v54 = vmul.f32 %v12485_v10, %v5098_v14  ;;  %v10110_v14 = vrot.slane %v5144_v58, 10  ;;  %v10112_v10 = vrot.slane %v5146_v30, 10 }
 0x600   : > { %v12875_v26 = vpop.permute.xlu1 %4490 }
 0x601   : > { %v10093_v44 = vrot.slane %v5026_v47, 9 }
 0x603   : > { %4452 = vrot.lane.b32.xlu0 %v4447_v11, %s14857_s2  ;;  %v5048_v11 = vmul.f32 %v12497_v57, %v12731_v24  ;;  %v10107_v24 = vrot.slane %v5122_v21, 10 }
 0x604   : > { %v12884_v34 = vpop.permute.xlu1 %4494 }
 0x605   : > { %v10096_v55 = vrot.slane %v5048_v11, 9  ;;  %v4500_v11 = vrot.slane %v12884_v34, 4 }
 0x607   : > { %4470 = vrot.lane.b32.xlu0 %v4465_v7, %s14855_s25 }
 0x608   : > { %v12892_v36 = vpop.permute.xlu1 %4534 }
 0x60b   : > { %4492 = vrot.lane.b32.xlu0 %v4483_v0, %s14856_s10  ;;  %v10098_v0 = vrot.slane %v5050_v59, 9 }
 0x60c   : > { %v12901_v61 = vpop.permute.xlu1 %4556 }
 0x60f   : > { %4496 = vrot.lane.b32.xlu0 %v4485_v23, %s14856_s10  ;;  %v10104_v23 = vrot.slane %v5100_v54, 10 }
 0x610   : > { %v12906_v7 = vpop.permute.xlu1 %4586 }
 0x613   : > { %4536 = vrot.lane.b32.xlu0 %v10041_v56, %s14857_s2 }
 0x614   : > { %v12916_v56 = vpop.permute.xlu1 %4590 }
 0x617   : > { %4558 = vrot.lane.b32.xlu0 %v10044_v17, %s14855_s25 }
 0x618   : > { %v12921_v17 = vpop.permute.xlu1 %4630 }
 0x61b   : > { %4588 = vrot.lane.b32.xlu0 %v10047_v12, %s14856_s10  ;;  %v5196_v12 = vmul.f32 %v12927_v48, %v5194_v13 }
 0x61c   : > { %v12932_v51 = vpop.permute.xlu1 %4652 }
 0x61d   : > { %v10118_v57 = vrot.slane %v5196_v12, 11 }
 0x61f   : > { %4592 = vrot.lane.b32.xlu0 %v10049_v8, %s14856_s10  ;;  %v5218_v8 = vmul.f32 %v12927_v48, %v5216_v2  ;;  %v5240_v2 = vmul.f32 %v12948_v6, %v12801_v32 }
 0x620   : > { %v12938_v38 = vpop.permute.xlu1 %4682 }
 0x621   : > { %v10121_v13 = vrot.slane %v5218_v8, 11 }
 0x623   : > { %4632 = vrot.lane.b32.xlu0 %v10055_v40, %s14857_s2 }
 0x624   : > { %v12960_v62 = vpop.permute.xlu1 %4686 }
 0x627   : > { %4654 = vrot.lane.b32.xlu0 %v10058_v53, %s14855_s25 }
 0x628   : > { %v12967_v18 = vpop.permute.xlu1 %4726 }
 0x62b   : > { %4684 = vrot.lane.b32.xlu0 %v10061_v35, %s14856_s10  ;;  %v10124_v35 = vrot.slane %v5240_v2, 11 }
 0x62f   : > { %4688 = vrot.lane.b32.xlu0 %v10063_v19, %s14856_s10  ;;  %v5242_v19 = vmul.f32 %v12956_v16, %v12801_v32  ;;  %v4498_v32 = vrot.slane %v12875_v26, 4 }
 0x631   : > { %v10126_v37 = vrot.slane %v5242_v19, 11 }
 0x633   : > { %4728 = vrot.lane.b32.xlu0 %v10069_v60, %s14857_s2 }
 0x637   : > { %4750 = vrot.lane.b32.xlu0 %v10072_v46, %s14855_s25  ;;  %v4454_v46 = vrot.slane %v12863_v39, 4 }
 0x63b   : > { %4780 = vrot.lane.b32.xlu0 %v10075_v45, %s14856_s10 }
 0x63f   : > { %4784 = vrot.lane.b32.xlu0 %v10077_v27, %s14856_s10  ;;  %v12969_v27 = vld [vmem:[#allocation2] sm:$0xff] }
 0x643   : > { %4929 = vrot.lane.b32.xlu0 %v4924_v15, %s14857_s2  ;;  %v4442_v15 = vmul.f32 %v12969_v27, %v4441_v42 }
 0x647   : > { %4947 = vrot.lane.b32.xlu0 %v4942_v63, %s14855_s25 }
 0x64b   : > { %4969 = vrot.lane.b32.xlu0 %v4960_v41, %s14856_s10  ;;  %v4456_v41 = vsel %vm413_vm0, %v12863_v39, %v4454_v46  ;;  %v4443_v39 = vmul.f32 %v12927_v48, %v4441_v42  ;;  %v4560_v46 = vrot.slane %v12901_v61, 4 }
 0x64f   : > { %4973 = vrot.lane.b32.xlu0 %v4962_v9, %s14856_s10  ;;  %v4472_v9 = vrot.slane %v12869_v25, 4 }
 0x653   : > { %5013 = vrot.lane.b32.xlu0 %v10090_v5, %s14857_s2  ;;  %v4511_v5 = vstv %s12962_s3  ;;  %s10157_s3 = sld [smem:[#allocation5 + $0xab]] }
 0x654   : > { %v4512_v21 = vmul.f32 %v12969_v27, %v4511_v5 }
 0x657   : > { %5035 = vrot.lane.b32.xlu0 %v10093_v44, %s14855_s25  ;;  %v4460_v44 = vadd.f32 %v4456_v41, %v4442_v15 }
 0x65b   : > { %5065 = vrot.lane.b32.xlu0 %v10096_v55, %s14856_s10 }
 0x65f   : > { %5069 = vrot.lane.b32.xlu0 %v10098_v0, %s14856_s10  ;;  %v4474_v0 = vsel %vm432_vm1, %v12869_v25, %v4472_v9  ;;  %v4596_v9 = vrot.slane %v12916_v56, 4 }
 0x660   : > { %v4478_v30 = vadd.f32 %v4474_v0, %v4460_v44 }
 0x663   : > { %5109 = vrot.lane.b32.xlu0 %v10104_v23, %s14857_s2  ;;  %v12982_v23 = vpop.permute.xlu1 %4748 }
 0x667   : > { %5131 = vrot.lane.b32.xlu0 %v10107_v24, %s14855_s25  ;;  %v12997_v2 = vpop.permute.xlu1 %4778 }
 0x66b   : > { %5161 = vrot.lane.b32.xlu0 %v10110_v14, %s14856_s10 }
 0x66f   : > { %5165 = vrot.lane.b32.xlu0 %v10112_v10, %s14856_s10 }
 0x671   : > { %v4432_v33 = vpop.permute.xlu0 %4431 }
 0x672   : > { %v4433_v40 = vrot.slane %v4432_v33, 7 }
 0x673   : > { %5205 = vrot.lane.b32.xlu0 %v10118_v57, %s14857_s2  ;;  %v10037_v57 = vrot.slane %v4512_v21, 9 }
 0x674   : > { %v4435_v53 = vsel %vm4434_vm12, %v4433_v40, %v4432_v33  ;;  %v4513_v33 = vmul.f32 %v12927_v48, %v4511_v5  ;;  %v4538_v40 = vrot.slane %v12892_v36, 4  ;;  %v4562_v5 = vsel %vm432_vm1, %v12901_v61, %v4560_v46 }
 0x675   : > { %4439 = vst.msk [vmem:[#allocation3 + $0xd] sm:$0x3] %vm12941_vm11, %v4435_v53  ;;  %v4453_v43 = vpop.permute.xlu0 %4452 }
 0x676   : > { %v4455_v28 = vrot.slane %v4453_v43, 4  ;;  %v10038_v19 = vrot.slane %v4513_v33, 9  ;;  %v4540_v42 = vsel %vm413_vm0, %v12892_v36, %v4538_v40 }
 0x677   : > { %5227 = vrot.lane.b32.xlu0 %v10121_v13, %s14855_s25 }
 0x678   : > { %v4457_v24 = vsel %vm413_vm0, %v4453_v43, %v4455_v28 }
 0x679   : > { %v4471_v60 = vpop.permute.xlu0 %4470  ;;  %v4461_v25 = vadd.f32 %v4457_v24, %v4443_v39 }
 0x67a   : > { %v4473_v54 = vrot.slane %v4471_v60, 4 }
 0x67b   : > { %5257 = vrot.lane.b32.xlu0 %v10124_v35, %s14856_s10 }
 0x67c   : > { %v4475_v12 = vsel %vm432_vm1, %v4471_v60, %v4473_v54  ;;  %v4594_v60 = vrot.slane %v12906_v7, 4 }
 0x67d   : > { %v4493_v45 = vpop.permute.xlu0 %4492  ;;  %v4479_v53 = vadd.f32 %v4475_v12, %v4461_v25 }
 0x67e   : > { %v4499_v63 = vrot.slane %v4493_v45, 4 }
 0x67f   : > { %5261 = vrot.lane.b32.xlu0 %v10126_v37, %s14856_s10 }
 0x680   : > { %v4502_v55 = vsel %vm461_vm2, %v4498_v32, %v4499_v63  ;;  %v4607_v32 = vstv %s12991_s24  ;;  %v13004_v63 = vpop.permute.xlu1 %4782  ;;  %s10165_s24 = sld [smem:[#allocation5 + $0xad]] }
 0x681   : > { %v4497_v47 = vpop.permute.xlu0 %4496  ;;  %v4503_v58 = vsel %vm463_vm3, %v12875_v26, %v4502_v55 }
 0x682   : > { %v4501_v59 = vrot.slane %v4497_v47, 4  ;;  %v4508_v8 = vadd.f32 %v4503_v58, %v4478_v30  ;;  %v4609_v30 = vmul.f32 %v12927_v48, %v4607_v32 }
 0x684   : > { %v4504_v10 = vsel %vm461_vm2, %v4500_v11, %v4501_v59  ;;  %v4522_v43 = vadd.f32 %v10037_v57, %v4508_v8  ;;  %v4608_v11 = vmul.f32 %v12969_v27, %v4607_v32  ;;  %v13018_v61 = vpop.permute.xlu1 %4927  ;;  %v10052_v33 = vrot.slane %v4609_v30, 10 }
 0x685   : > { %v4537_v14 = vpop.permute.xlu0 %4536  ;;  %v4505_v13 = vsel %vm463_vm3, %v12884_v34, %v4504_v10  ;;  %v4634_v10 = vrot.slane %v12921_v17, 4  ;;  %v4752_v30 = vrot.slane %v12982_v23, 4 }
 0x686   : > { %v4509_v35 = vadd.f32 %v4505_v13, %v4479_v53  ;;  %v4539_v37 = vrot.slane %v4537_v14, 4  ;;  %v4544_v34 = vadd.f32 %v4540_v42, %v4522_v43  ;;  %v10051_v58 = vrot.slane %v4608_v11, 10 }
 0x687   : > { %v4636_v40 = vsel %vm413_vm0, %v12921_v17, %v4634_v10  ;;  %v4656_v13 = vrot.slane %v12932_v51, 4  ;;  %v4690_v43 = vrot.slane %v12938_v38, 4  ;;  %v4692_v17 = vrot.slane %v12960_v62, 4 }
 0x688   : > { %v4523_v41 = vadd.f32 %v10038_v19, %v4509_v35  ;;  %v4541_v47 = vsel %vm413_vm0, %v4537_v14, %v4539_v37  ;;  %v4566_v0 = vadd.f32 %v4562_v5, %v4544_v34  ;;  %v13027_v53 = vpop.permute.xlu1 %4945  ;;  %v4703_v19 = vstv %s13016_s20  ;;  %s10168_s20 = sld [smem:[#allocation5 + $0xae]] }
 0x689   : > { %v4559_v26 = vpop.permute.xlu0 %4558  ;;  %v4658_v46 = vsel %vm432_vm1, %v12932_v51, %v4656_v13  ;;  %v4704_v32 = vmul.f32 %v12969_v27, %v4703_v19 }
 0x68a   : > { %v4561_v36 = vrot.slane %v4559_v26, 4  ;;  %v4545_v54 = vadd.f32 %v4541_v47, %v4523_v41 }
 0x68c   : > { %v4563_v21 = vsel %vm432_vm1, %v4559_v26, %v4561_v36  ;;  %v10065_v36 = vrot.slane %v4704_v32, 11 }
 0x68d   : > { %v4589_v45 = vpop.permute.xlu0 %4588  ;;  %v4567_v12 = vadd.f32 %v4563_v21, %v4545_v54 }
 0x68e   : > { %v4595_v15 = vrot.slane %v4589_v45, 4 }
 0x690   : > { %v4598_v28 = vsel %vm461_vm2, %v4594_v60, %v4595_v15 }
 0x691   : > { %v4593_v44 = vpop.permute.xlu0 %4592  ;;  %v4599_v59 = vsel %vm463_vm3, %v12906_v7, %v4598_v28 }
 0x692   : > { %v4597_v55 = vrot.slane %v4593_v44, 4  ;;  %v4604_v14 = vadd.f32 %v4599_v59, %v4566_v0  ;;  %v4730_v59 = vrot.slane %v12967_v18, 4 }
 0x694   : > { %v4600_v39 = vsel %vm461_vm2, %v4596_v9, %v4597_v55  ;;  %v4618_v57 = vadd.f32 %v10051_v58, %v4604_v14  ;;  %v13039_v9 = vpop.permute.xlu1 %4967  ;;  %v4705_v55 = vmul.f32 %v12927_v48, %v4703_v19  ;;  %v4732_v14 = vsel %vm413_vm0, %v12967_v18, %v4730_v59 }
 0x695   : > { %v4633_v24 = vpop.permute.xlu0 %4632  ;;  %v4601_v7 = vsel %vm463_vm3, %v12916_v56, %v4600_v39  ;;  %v4931_v59 = vrot.slane %v13018_v61, 4 }
 0x696   : > { %v4605_v8 = vadd.f32 %v4601_v7, %v4567_v12  ;;  %v4635_v26 = vrot.slane %v4633_v24, 4  ;;  %v4640_v60 = vadd.f32 %v4636_v40, %v4618_v57  ;;  %v10066_v58 = vrot.slane %v4705_v55, 11 }
 0x697   : > { %v4754_v57 = vsel %vm432_vm1, %v12982_v23, %v4752_v30  ;;  %v4918_v55 = vstv %s13066_s13  ;;  %v4975_v30 = vrot.slane %v13039_v9, 4  ;;  %s13258_s13 = sld [smem:[#allocation5 + $0xb1]] }
 0x698   : > { %v4619_v42 = vadd.f32 %v10052_v33, %v4605_v8  ;;  %v4637_v37 = vsel %vm413_vm0, %v4633_v24, %v4635_v26  ;;  %v4662_v28 = vadd.f32 %v4658_v46, %v4640_v60  ;;  %v13047_v39 = vpop.permute.xlu1 %4971 }
 0x699   : > { %v4655_v25 = vpop.permute.xlu0 %4654 }
 0x69a   : > { %v4657_v45 = vrot.slane %v4655_v25, 4  ;;  %v4641_v5 = vadd.f32 %v4637_v37, %v4619_v42  ;;  %v4799_v42 = vstv %s13052_s12  ;;  %s10171_s12 = sld [smem:[#allocation5 + $0xaf]] }
 0x69c   : > { %v4659_v51 = vsel %vm432_vm1, %v4655_v25, %v4657_v45  ;;  %v13058_v13 = vpop.permute.xlu1 %5011 }
 0x69d   : > { %v4685_v35 = vpop.permute.xlu0 %4684  ;;  %v4663_v54 = vadd.f32 %v4659_v51, %v4641_v5 }
 0x69e   : > { %v4691_v56 = vrot.slane %v4685_v35, 4  ;;  %v4788_v35 = vrot.slane %v13004_v63, 4 }
 0x6a0   : > { %v4694_v15 = vsel %vm461_vm2, %v4690_v43, %v4691_v56  ;;  %v13068_v45 = vpop.permute.xlu1 %5033 }
 0x6a1   : > { %v4695_v34 = vsel %vm463_vm3, %v12938_v38, %v4694_v15  ;;  %v4689_v41 = vpop.permute.xlu0 %4688 }
 0x6a2   : > { %v4693_v47 = vrot.slane %v4689_v41, 4  ;;  %v4700_v44 = vadd.f32 %v4695_v34, %v4662_v28 }
 0x6a4   : > { %v4696_v11 = vsel %vm461_vm2, %v4692_v17, %v4693_v47  ;;  %v4714_v21 = vadd.f32 %v10065_v36, %v4700_v44  ;;  %v13077_v44 = vpop.permute.xlu1 %5063 }
 0x6a5   : > { %v4697_v0 = vsel %vm463_vm3, %v12960_v62, %v4696_v11  ;;  %v4729_v38 = vpop.permute.xlu0 %4728  ;;  %v4786_v62 = vrot.slane %v12997_v2, 4 }
 0x6a6   : > { %v4701_v24 = vadd.f32 %v4697_v0, %v4663_v54  ;;  %v4731_v10 = vrot.slane %v4729_v38, 4  ;;  %v4736_v12 = vadd.f32 %v4732_v14, %v4714_v21  ;;  %v4919_v21 = vmul.f32 %v12969_v27, %v4918_v55 }
 0x6a8   : > { %v4715_v25 = vadd.f32 %v10066_v58, %v4701_v24  ;;  %v4733_v8 = vsel %vm413_vm0, %v4729_v38, %v4731_v10  ;;  %v4758_v26 = vadd.f32 %v4754_v57, %v4736_v12  ;;  %v4933_v58 = vsel %vm413_vm0, %v13018_v61, %v4931_v59 }
 0x6a9   : > { %v4751_v7 = vpop.permute.xlu0 %4750  ;;  %v4949_v12 = vrot.slane %v13027_v53, 4  ;;  %v4937_v57 = vadd.f32 %v4933_v58, %v4919_v21  ;;  %v4977_v61 = vrot.slane %v13047_v39, 4 }
 0x6aa   : > { %v4753_v33 = vrot.slane %v4751_v7, 4  ;;  %v4737_v43 = vadd.f32 %v4733_v8, %v4715_v25  ;;  %v13090_v25 = vpop.permute.xlu1 %5067 }
 0x6ac   : > { %v4755_v60 = vsel %vm432_vm1, %v4751_v7, %v4753_v33  ;;  %v4988_v33 = vstv %s13075_s18  ;;  %s13265_s18 = sld [smem:[#allocation5 + $0xb2]] }
 0x6ad   : > { %v4781_v40 = vpop.permute.xlu0 %4780  ;;  %v4759_v17 = vadd.f32 %v4755_v60, %v4737_v43 }
 0x6ae   : > { %v4787_v18 = vrot.slane %v4781_v40, 4 }
 0x6b0   : > { %v4790_v19 = vsel %vm461_vm2, %v4786_v62, %v4787_v18 }
 0x6b1   : > { %v4791_v56 = vsel %vm463_vm3, %v12997_v2, %v4790_v19  ;;  %v4785_v23 = vpop.permute.xlu0 %4784  ;;  %v4951_v19 = vsel %vm432_vm1, %v13027_v53, %v4949_v12 }
 0x6b2   : > { %v4796_v46 = vadd.f32 %v4791_v56, %v4758_v26  ;;  %v4789_v37 = vrot.slane %v4785_v23, 4  ;;  %v4920_v56 = vmul.f32 %v12927_v48, %v4918_v55  ;;  %v4989_v23 = vmul.f32 %v12969_v27, %v4988_v33 }
 0x6b4   : > { %v4800_v15 = vadd.f32 %v4799_v42, %v4796_v46  ;;  %v4792_v32 = vsel %vm461_vm2, %v4788_v35, %v4789_v37 }
 0x6b5   : > { %v4793_v34 = vsel %vm463_vm3, %v13004_v63, %v4792_v32  ;;  %v4930_v41 = vpop.permute.xlu0 %4929  ;;  %v4955_v32 = vadd.f32 %v4951_v19, %v4937_v57 }
 0x6b6   : > { %v4802_v28 = vmax.f32 %v4800_v15, 0.0  ;;  %v4797_v5 = vadd.f32 %v4793_v34, %v4759_v17  ;;  %v4932_v8 = vrot.slane %v4930_v41, 4  ;;  %v13106_v15 = vpop.permute.xlu1 %5107 }
 0x6b8   : > { %v4809_v2 = vrot.slane %v4802_v28, %v11392_v52  ;;  %v4813_v47 = vrot.slane %v4802_v28, %v11396_v50  ;;  %v4801_v51 = vadd.f32 %v4799_v42, %v4797_v5  ;;  %v4934_v46 = vsel %vm413_vm0, %v4930_v41, %v4932_v8 }
 0x6b9   : > { %v4948_v36 = vpop.permute.xlu0 %4947  ;;  %v4990_v5 = vmul.f32 %v12927_v48, %v4988_v33  ;;  %v4938_v41 = vadd.f32 %v4934_v46, %v4920_v56 }
 0x6ba   : > { %v10079_v11 = vpack.c.bf16 %v4813_v47, %v4809_v2  ;;  %v4803_v0 = vmax.f32 %v4801_v51, 0.0  ;;  %v4950_v60 = vrot.slane %v4948_v36, 4  ;;  %v10086_v47 = vrot.slane %v4989_v23, 9 }
 0x6bc   : > { %v4841_v63 = vrot.slane %v10079_v11, %v11406_v4  ;;  %v4817_v38 = vrot.slane %v4803_v0, %v11392_v52  ;;  %v4821_v54 = vrot.slane %v4803_v0, %v11396_v50  ;;  %v4952_v28 = vsel %vm432_vm1, %v4948_v36, %v4950_v60  ;;  %v5130_v36 = vpop.permute.xlu1 %5129 }
 0x6bd   : > { %v4970_v24 = vpop.permute.xlu0 %4969 }
 0x6be   : > { %v10080_v14 = vpack.c.bf16 %v4821_v54, %v4817_v38  ;;  %v4976_v10 = vrot.slane %v4970_v24, 4  ;;  %v4848_v7 = vrot.slane %v4841_v63, %v11406_v4  ;;  %v4956_v63 = vadd.f32 %v4952_v28, %v4938_v41 }
 0x6bf   : > { %v10087_v38 = vrot.slane %v4990_v5, 9 }
 0x6c0   : > { %v4856_v62 = vrot.slane %v10080_v14, %v11406_v4  ;;  %v4979_v26 = vsel %vm461_vm2, %v4975_v30, %v4976_v10  ;;  %v4870_v35 = vrot.slane %v4848_v7, %v11419_v22  ;;  %v5071_v30 = vrot.slane %v13077_v44, 4  ;;  %v5160_v56 = vpop.permute.xlu1 %5159 }
 0x6c1   : > { %v4974_v40 = vpop.permute.xlu0 %4973  ;;  %v4980_v37 = vsel %vm463_vm3, %v13039_v9, %v4979_v26  ;;  %v5015_v9 = vrot.slane %v13058_v13, 4 }
 0x6c2   : > { %v4863_v18 = vrot.slane %v4856_v62, %v11406_v4  ;;  %v4978_v43 = vrot.slane %v4974_v40, 4  ;;  %v4877_v2 = vrot.slane %v4870_v35, %v11419_v22  ;;  %v4985_v51 = vadd.f32 %v4980_v37, %v4955_v32 }
 0x6c3   : > { %v5017_v7 = vsel %vm413_vm0, %v13058_v13, %v5015_v9  ;;  %v5084_v40 = vstv %s13112_s17  ;;  %s10182_s17 = sld [smem:[#allocation5 + $0xb3]] }
 0x6c4   : > { %v4884_v42 = vrot.slane %v4863_v18, %v11419_v22  ;;  %v4981_v34 = vsel %vm461_vm2, %v4977_v61, %v4978_v43  ;;  %v4892_v54 = vunpack.c.l.b16 %v4877_v2  ;;  %v4999_v58 = vadd.f32 %v10086_v47, %v4985_v51  ;;  %v5164_v9 = vpop.permute.xlu1 %5163 }
 0x6c5   : > { %v5014_v17 = vpop.permute.xlu0 %5013  ;;  %v4982_v11 = vsel %vm463_vm3, %v13047_v39, %v4981_v34  ;;  %v4893_v10 = vunpack.c.h.b16 %v4877_v2  ;;  %v5037_v39 = vrot.slane %v13068_v45, 4  ;;  %v5073_v43 = vrot.slane %v13090_v25, 4 }
 0x6c6   : > { %v4891_v53 = vrot.slane %v4884_v42, %v11419_v22  ;;  %v4986_v14 = vadd.f32 %v4982_v11, %v4956_v63  ;;  %v5016_v12 = vrot.slane %v5014_v17, 4  ;;  %v5021_v61 = vadd.f32 %v5017_v7, %v4999_v58 }
 0x6c7   : > { %v5039_v13 = vsel %vm432_vm1, %v13068_v45, %v5037_v39  ;;  %v5085_v46 = vmul.f32 %v12969_v27, %v5084_v40  ;;  %v5086_v47 = vmul.f32 %v12927_v48, %v5084_v40  ;;  %v5180_v58 = vstv %s13137_s19  ;;  %s13274_s19 = sld [smem:[#allocation5 + $0xb5]] }
 0x6c8   : > { %v4894_v59 = vunpack.c.l.b16 %v4891_v53  ;;  %v4895_v0 = vunpack.c.h.b16 %v4891_v53  ;;  %v5000_v26 = vadd.f32 %v10087_v38, %v4986_v14  ;;  %v5018_v19 = vsel %vm413_vm0, %v5014_v17, %v5016_v12  ;;  %v5204_v14 = vpop.permute.xlu1 %5203 }
 0x6c9   : > { %v5036_v55 = vpop.permute.xlu0 %5035  ;;  %v5043_v53 = vadd.f32 %v5039_v13, %v5021_v61  ;;  %v10100_v2 = vrot.slane %v5085_v46, 10  ;;  %v10101_v63 = vrot.slane %v5086_v47, 10  ;;  %v5133_v38 = vrot.slane %v5130_v36, 4 }
 0x6ca   : > { %v4896_v21 = vrot.slane %v4894_v59, 7  ;;  %v4898_v24 = vrot.slane %v4895_v0, 7  ;;  %v5038_v60 = vrot.slane %v5036_v55, 4  ;;  %v5022_v28 = vadd.f32 %v5018_v19, %v5000_v26 }
 0x6cb   : > { %v5182_v19 = vmul.f32 %v12927_v48, %v5180_v58 }
 0x6cc   : > { %v4897_v57 = vsel %vm858_vm4, %v4896_v21, %v4892_v54  ;;  %v4899_v33 = vsel %vm858_vm4, %v4898_v24, %v4893_v10  ;;  %v5040_v45 = vsel %vm432_vm1, %v5036_v55, %v5038_v60  ;;  %v5167_v21 = vrot.slane %v5160_v56, 4 }
 0x6cd   : > { %v5066_v62 = vpop.permute.xlu0 %5065  ;;  %v4900_v18 = vpack.c.b16 %v4899_v33, %v4897_v57  ;;  %v5044_v11 = vadd.f32 %v5040_v45, %v5022_v28  ;;  %v5207_v60 = vrot.slane %v5204_v14, 4 }
 0x6ce   : > { %v5072_v8 = vrot.slane %v5066_v62, 4  ;;  %v5169_v62 = vrot.slane %v5164_v9, 4 }
 0x6cf   : > { %v4907_v23 = vrot.slane %v4900_v18, %v11406_v4 }
 0x6d0   : > { %v5075_v35 = vsel %vm461_vm2, %v5071_v30, %v5072_v8  ;;  %v5181_v8 = vmul.f32 %v12969_v27, %v5180_v58 }
 0x6d1   : > { %v5070_v42 = vpop.permute.xlu0 %5069  ;;  %v5076_v32 = vsel %vm463_vm3, %v13077_v44, %v5075_v35  ;;  %v4914_v34 = vrot.slane %v4907_v23, %v11406_v4  ;;  %v5111_v44 = vrot.slane %v13106_v15, 4 }
 0x6d2   : > { %v5074_v37 = vrot.slane %v5070_v42, 4  ;;  %v5081_v41 = vadd.f32 %v5076_v32, %v5043_v53  ;;  %v10114_v35 = vrot.slane %v5181_v8, 11  ;;  %v5209_v53 = vsel %vm413_vm0, %v5204_v14, %v5207_v60 }
 0x6d3   : > { %4916 = vst.msk [vmem:[#allocation3 + $0xf] sm:$0x3] %vm11457_vm7, %v4914_v34  ;;  %v5113_v31 = vsel %vm413_vm0, %v13106_v15, %v5111_v44  ;;  %v10115_v34 = vrot.slane %v5182_v19, 11  ;;  %vm5477_vm7 = vcmask 778240  }
 0x6d4   : > { %v5077_v5 = vsel %vm461_vm2, %v5073_v43, %v5074_v37  ;;  %v5095_v55 = vadd.f32 %v10100_v2, %v5081_v41  ;;  %v5226_v43 = vpop.permute.xlu1 %5225 }
 0x6d5   : > { %v5110_v17 = vpop.permute.xlu0 %5109  ;;  %v5078_v51 = vsel %vm463_vm3, %v13090_v25, %v5077_v5  ;;  %v5135_v25 = vsel %vm432_vm1, %v5130_v36, %v5133_v38  ;;  %v5229_v28 = vrot.slane %v5226_v43, 4 }
 0x6d6   : > { %v5082_v0 = vadd.f32 %v5078_v51, %v5044_v11  ;;  %v5112_v54 = vrot.slane %v5110_v17, 4  ;;  %v5117_v30 = vadd.f32 %v5113_v31, %v5095_v55 }
 0x6d7   : > { %v5231_v47 = vsel %vm432_vm1, %v5226_v43, %v5229_v28 }
 0x6d8   : > { %v5096_v10 = vadd.f32 %v10101_v63, %v5082_v0  ;;  %v5114_v39 = vsel %vm413_vm0, %v5110_v17, %v5112_v54  ;;  %v5139_v40 = vadd.f32 %v5135_v25, %v5117_v30  ;;  %v5256_v37 = vpop.permute.xlu1 %5255  ;;  %v5276_v54 = vstv %s10127_s26  ;;  %s13283_s26 = sld [smem:[#allocation5 + $0xb6]] }
 0x6d9   : > { %v5132_v59 = vpop.permute.xlu0 %5131  ;;  %v5263_v41 = vrot.slane %v5256_v37, 4 }
 0x6da   : > { %v5134_v12 = vrot.slane %v5132_v59, 4  ;;  %v5118_v18 = vadd.f32 %v5114_v39, %v5096_v10 }
 0x6dc   : > { %v5136_v26 = vsel %vm432_vm1, %v5132_v59, %v5134_v12  ;;  %v5260_v11 = vpop.permute.xlu1 %5259 }
 0x6dd   : > { %v5162_v24 = vpop.permute.xlu0 %5161  ;;  %v5140_v46 = vadd.f32 %v5136_v26, %v5118_v18  ;;  %v5265_v31 = vrot.slane %v5260_v11, 4 }
 0x6de   : > { %v5168_v7 = vrot.slane %v5162_v24, 4 }
 0x6e0   : > { %v5171_v57 = vsel %vm461_vm2, %v5167_v21, %v5168_v7 }
 0x6e1   : > { %v5172_v15 = vsel %vm463_vm3, %v5160_v56, %v5171_v57  ;;  %v5166_v33 = vpop.permute.xlu0 %5165 }
 0x6e2   : > { %v5170_v61 = vrot.slane %v5166_v33, 4  ;;  %v5177_v13 = vadd.f32 %v5172_v15, %v5139_v40 }
 0x6e4   : > { %v5173_v36 = vsel %vm461_vm2, %v5169_v62, %v5170_v61  ;;  %v5191_v56 = vadd.f32 %v10114_v35, %v5177_v13 }
 0x6e5   : > { %v5174_v42 = vsel %vm463_vm3, %v5164_v9, %v5173_v36  ;;  %v5206_v23 = vpop.permute.xlu0 %5205 }
 0x6e6   : > { %v5178_v32 = vadd.f32 %v5174_v42, %v5140_v46  ;;  %v5208_v5 = vrot.slane %v5206_v23, 4  ;;  %v5213_v17 = vadd.f32 %v5209_v53, %v5191_v56 }
 0x6e8   : > { %v5192_v2 = vadd.f32 %v10115_v34, %v5178_v32  ;;  %v5210_v44 = vsel %vm413_vm0, %v5206_v23, %v5208_v5  ;;  %v5235_v55 = vadd.f32 %v5231_v47, %v5213_v17 }
 0x6e9   : > { %v5228_v45 = vpop.permute.xlu0 %5227 }
 0x6ea   : > { %v5230_v51 = vrot.slane %v5228_v45, 4  ;;  %v5214_v0 = vadd.f32 %v5210_v44, %v5192_v2 }
 0x6ec   : > { %v5232_v38 = vsel %vm432_vm1, %v5228_v45, %v5230_v51 }
 0x6ed   : > { %v5258_v9 = vpop.permute.xlu0 %5257  ;;  %v5236_v30 = vadd.f32 %v5232_v38, %v5214_v0 }
 0x6ee   : > { %v5264_v59 = vrot.slane %v5258_v9, 4 }
 0x6f0   : > { %v5267_v63 = vsel %vm461_vm2, %v5263_v41, %v5264_v59 }
 0x6f1   : > { %v5268_v21 = vsel %vm463_vm3, %v5256_v37, %v5267_v63  ;;  %v5262_v24 = vpop.permute.xlu0 %5261 }
 0x6f2   : > { %v5273_v58 = vadd.f32 %v5268_v21, %v5235_v55  ;;  %v5266_v14 = vrot.slane %v5262_v24, 4  ;;  %v5484_v24 = vstv %s10131_s9  ;;  %s10192_s9 = sld [smem:[#allocation5 + $0xb7]] }
 0x6f4   : > { %v5277_v10 = vadd.f32 %v5276_v54, %v5273_v58  ;;  %v5269_v7 = vsel %vm461_vm2, %v5265_v31, %v5266_v14 }
 0x6f5   : > { %v5270_v25 = vsel %vm463_vm3, %v5260_v11, %v5269_v7  ;;  %v5502_v7 = vstv %s10132_s27  ;;  %s13300_s27 = sld [smem:[#allocation5 + $0xb9]] }
 0x6f6   : > { %v5279_v39 = vmax.f32 %v5277_v10, 0.0  ;;  %v5274_v12 = vadd.f32 %v5270_v25, %v5236_v30  ;;  %v5486_v30 = vmul.f32 %v12927_v48, %v5484_v24  ;;  %v5485_v10 = vmul.f32 %v12969_v27, %v5484_v24 }
 0x6f7   : > { %v5504_v25 = vmul.f32 %v12927_v48, %v5502_v7 }
 0x6f8   : > { %v5286_v62 = vrot.slane %v5279_v39, %v11392_v52  ;;  %v5290_v57 = vrot.slane %v5279_v39, %v11396_v50  ;;  %v5278_v8 = vadd.f32 %v5276_v54, %v5274_v12  ;;  %v5503_v39 = vmul.f32 %v12969_v27, %v5502_v7 }
 0x6f9   : > { %v5520_v12 = vstv %s10133_s21  ;;  %s13305_s21 = sld [smem:[#allocation5 + $0xba]] }
 0x6fa   : > { %v5304_v15 = vpack.c.bf16 %v5290_v57, %v5290_v57  ;;  %v10128_v33 = vpack.c.bf16 %v5290_v57, %v5286_v62  ;;  %v5280_v40 = vmax.f32 %v5278_v8, 0.0  ;;  %v5522_v62 = vmul.f32 %v12948_v6, %v5520_v12 }
 0x6fb   : > { %v5521_v57 = vmul.f32 %v12969_v27, %v5520_v12  ;;  %v5564_v8 = vstv %s10137_s23  ;;  %s10206_s23 = sld [smem:[#allocation5 + $0xbb]] }
 0x6fc   : > { %v5318_v18 = vrot.slane %v10128_v33, %v11406_v4  ;;  %v5404_v61 = vrot.slane %v5304_v15, %v11406_v4  ;;  %v5294_v26 = vrot.slane %v5280_v40, %v11392_v52  ;;  %v5298_v43 = vrot.slane %v5280_v40, %v11396_v50 }
 0x6fd   : > { %v5524_v15 = vmul.f32 %v12956_v16, %v5520_v12  ;;  %v5523_v33 = vmul.f32 %v12927_v48, %v5520_v12  ;;  %v5566_v40 = vmul.f32 %v12927_v48, %v5564_v8  ;;  %v5800_v12 = vstv %s10171_s12  ;;  %s13397_s12 = sld [smem:[#allocation8 + $0xa]] }
 0x6fe   : > { %v5325_v35 = vrot.slane %v5318_v18, %v11406_v4  ;;  %v5411_v13 = vrot.slane %v5404_v61, %v11406_v4  ;;  %v5306_v36 = vpack.c.bf16 %v5298_v43, %v5298_v43  ;;  %v10129_v19 = vpack.c.bf16 %v5298_v43, %v5294_v26 }
 0x6ff   : > { %v5565_v18 = vmul.f32 %v12969_v27, %v5564_v8  ;;  %v5586_v61 = vstv %s10140_s30  ;;  %v10139_v26 = vrot.slane %v5566_v40, 9  ;;  %v5802_v8 = vmul.f32 %v12948_v6, %v5800_v12  ;;  %s13324_s30 = sld [smem:[#allocation5 + $0xa0]] }
 0x700   : > { %v5333_v60 = vrot.slane %v10129_v19, %v11406_v4  ;;  %v5418_v42 = vrot.slane %v5306_v36, %v11406_v4  ;;  %v5432_v23 = vrot.slane %v5411_v13, %v11419_v22  ;;  %v5347_v46 = vrot.slane %v5325_v35, %v11419_v22 }
 0x701   : > { %v10138_v43 = vrot.slane %v5565_v18, 9  ;;  %v5588_v35 = vmul.f32 %v12927_v48, %v5586_v61  ;;  %v5587_v13 = vmul.f32 %v12969_v27, %v5586_v61  ;;  %v5608_v36 = vstv %s10143_s15  ;;  %s13329_s15 = sld [smem:[#allocation5 + $0xbd]] }
 0x702   : > { %v5340_v37 = vrot.slane %v5333_v60, %v11406_v4  ;;  %v5425_v56 = vrot.slane %v5418_v42, %v11406_v4  ;;  %v5439_v53 = vrot.slane %v5432_v23, %v11419_v22  ;;  %v5354_v28 = vrot.slane %v5347_v46, %v11419_v22 }
 0x703   : > { %v10142_v19 = vrot.slane %v5588_v35, 9  ;;  %v10141_v60 = vrot.slane %v5587_v13, 9  ;;  %v5610_v42 = vmul.f32 %v12948_v6, %v5608_v36  ;;  %v5609_v23 = vmul.f32 %v12969_v27, %v5608_v36 }
 0x704   : > { %v5446_v32 = vrot.slane %v5425_v56, %v11419_v22  ;;  %v5361_v34 = vrot.slane %v5340_v37, %v11419_v22  ;;  %v5454_v47 = vunpack.c.l.b16 %v5439_v53  ;;  %v5369_v44 = vunpack.c.l.b16 %v5354_v28 }
 0x705   : > { %v5370_v9 = vunpack.c.h.b16 %v5354_v28  ;;  %v10145_v46 = vrot.slane %v5610_v42, 9  ;;  %v10144_v37 = vrot.slane %v5609_v23, 9  ;;  %v5612_v56 = vmul.f32 %v12956_v16, %v5608_v36 }
 0x706   : > { %v5453_v5 = vrot.slane %v5446_v32, %v11419_v22  ;;  %v5368_v45 = vrot.slane %v5361_v34, %v11419_v22  ;;  %v5611_v32 = vmul.f32 %v12927_v48, %v5608_v36  ;;  %v5660_v34 = vstv %s10151_s1  ;;  %s13334_s1 = sld [smem:[#allocation5 + $0xbe]] }
 0x707   : > { %v10147_v53 = vrot.slane %v5612_v56, 9  ;;  %v5804_v18 = vmul.f32 %v12956_v16, %v5800_v12  ;;  %v5803_v61 = vmul.f32 %v12927_v48, %v5800_v12  ;;  %v13272_v13 = vstv %s10182_s17  ;;  %s14860_s17 = smov 96  }
 0x708   : > { %v5455_v17 = vunpack.c.l.b16 %v5453_v5  ;;  %v5371_v2 = vunpack.c.l.b16 %v5368_v45  ;;  %v5372_v41 = vunpack.c.h.b16 %v5368_v45  ;;  %v10146_v28 = vrot.slane %v5611_v32, 9 }
 0x709   : > { %v5662_v5 = vmul.f32 %v12927_v48, %v5660_v34  ;;  %v5661_v45 = vmul.f32 %v12969_v27, %v5660_v34  ;;  %v6002_v36 = vmul.f32 %v12969_v27, %v13272_v13  ;;  %v6045_v42 = vstv %s13274_s19  ;;  %s10231_s19 = sld [smem:[#allocation5 + $0xc3]] }
 0x70a   : > { %v5456_v51 = vrot.slane %v5455_v17, 7  ;;  %v5373_v11 = vrot.slane %v5371_v2, 7  ;;  %v5375_v59 = vrot.slane %v5372_v41, 7  ;;  %v5682_v17 = vstv %s10154_s0  ;;  %s13336_s0 = sld [smem:[#allocation5 + $0xa4]] }
 0x70b   : > { %v10153_v2 = vrot.slane %v5662_v5, 10  ;;  %v10152_v41 = vrot.slane %v5661_v45, 10  ;;  %v6046_v23 = vmul.f32 %v12969_v27, %v6045_v42  ;;  %v13295_v34 = vstv %s10192_s9  ;;  %s13512_s9 = sld [smem:[#allocation5 + $0xc6]] }
 0x70c   : > { %v5457_v55 = vsel %vm858_vm4, %v5456_v51, %v5454_v47  ;;  %v5374_v0 = vsel %vm858_vm4, %v5373_v11, %v5369_v44  ;;  %v5376_v63 = vsel %vm858_vm4, %v5375_v59, %v5370_v9  ;;  %v5684_v47 = vmul.f32 %v12927_v48, %v5682_v17 }
 0x70d   : > { %v5458_v31 = vpack.c.b16 %v5457_v55, %v5457_v55  ;;  %v5377_v38 = vpack.c.b16 %v5376_v63, %v5374_v0  ;;  %v5683_v44 = vmul.f32 %v12969_v27, %v5682_v17  ;;  %v5704_v51 = vstv %s10157_s3  ;;  %s10220_s3 = sld [smem:[#allocation5 + $0xbf]] }
 0x70e   : > { %v10156_v9 = vrot.slane %v5684_v47, 10  ;;  %v5706_v59 = vmul.f32 %v12948_v6, %v5704_v51  ;;  %v5705_v55 = vmul.f32 %v12969_v27, %v5704_v51  ;;  %v5965_v6 = vstv %s13258_s13  ;;  %s13485_s13 = sld [smem:[#allocation5 + $0xc1]] }
 0x70f   : > { %v5465_v54 = vrot.slane %v5458_v31, %v11406_v4  ;;  %v5384_v21 = vrot.slane %v5377_v38, %v11406_v4  ;;  %v10155_v11 = vrot.slane %v5683_v44, 10  ;;  %v5708_v31 = vmul.f32 %v12956_v16, %v5704_v51 }
 0x710   : > { %v10159_v0 = vrot.slane %v5706_v59, 10  ;;  %v10158_v63 = vrot.slane %v5705_v55, 10  ;;  %v5707_v38 = vmul.f32 %v12927_v48, %v5704_v51  ;;  %v5966_v16 = vmul.f32 %v12969_v27, %v5965_v6 }
 0x711   : > { %v5472_v58 = vrot.slane %v5465_v54, %v11406_v4  ;;  %v5391_v14 = vrot.slane %v5384_v21, %v11406_v4  ;;  %v5756_v54 = vstv %s10165_s24  ;;  %v10161_v21 = vrot.slane %v5708_v31, 10  ;;  %s13360_s24 = sld [smem:[#allocation5 + $0xa8]] }
 0x712   : > { %v10160_v24 = vrot.slane %v5707_v38, 10  ;;  %v6141_v17 = vstv %s13300_s27  ;;  %v13322_v31 = vstv %s10206_s23  ;;  %s10241_s27 = sld [smem:[#allocation5 + $0xc7]] }
 0x713   : > { %5473 = vrot.lane.b32.xlu0 %v5472_v58, %s14855_s25  ;;  %5392 = vrot.lane.b32.xlu1 %v5391_v14, %s14855_s25  ;;  %v5758_v58 = vmul.f32 %v12927_v48, %v5756_v54  ;;  %v5757_v14 = vmul.f32 %v12969_v27, %v5756_v54  ;;  %v6142_v47 = vmul.f32 %v12969_v27, %v6141_v17  ;;  %s13540_s23 = sld [smem:[#allocation5 + $0xca]] }
 0x715   : > { %v10166_v7 = vrot.slane %v5757_v14, 11  ;;  %v10201_v51 = vrot.slane %v6142_v47, 10 }
 0x717   : > { %5491 = vrot.lane.b32.xlu0 %v5486_v30, %s14857_s2  ;;  %5489 = vrot.lane.b32.xlu1 %v5485_v10, %s14857_s2  ;;  %v5778_v30 = vstv %s10168_s20  ;;  %v10167_v10 = vrot.slane %v5758_v58, 11  ;;  %s13383_s20 = sld [smem:[#allocation5 + $0xac]] }
 0x71b   : > { %5509 = vrot.lane.b32.xlu0 %v5504_v25, %s14855_s25  ;;  %5507 = vrot.lane.b32.xlu1 %v5503_v39, %s14855_s25  ;;  %v5780_v25 = vmul.f32 %v12927_v48, %v5778_v30  ;;  %v5779_v39 = vmul.f32 %v12969_v27, %v5778_v30  ;;  %v5983_v48 = vstv %s13265_s18  ;;  %s13492_s18 = sld [smem:[#allocation5 + $0xc2]] }
 0x71c   : > { %v5984_v35 = vmul.f32 %v12969_v27, %v5983_v48 }
 0x71f   : > { %5531 = vrot.lane.b32.xlu0 %v5522_v62, %s14856_s10  ;;  %5529 = vrot.lane.b32.xlu1 %v5521_v57, %s14856_s10  ;;  %v10170_v62 = vrot.slane %v5780_v25, 11  ;;  %v10169_v57 = vrot.slane %v5779_v39, 11 }
 0x723   : > { %5535 = vrot.lane.b32.xlu0 %v5524_v15, %s14856_s10  ;;  %5533 = vrot.lane.b32.xlu1 %v5523_v33, %s14856_s10  ;;  %v5801_v15 = vmul.f32 %v12969_v27, %v5800_v12  ;;  %v10173_v33 = vrot.slane %v5802_v8, 11 }
 0x725   : > { %v10172_v40 = vrot.slane %v5801_v15, 11 }
 0x727   : > { %5575 = vrot.lane.b32.xlu0 %v10139_v26, %s14857_s2  ;;  %5573 = vrot.lane.b32.xlu1 %v10138_v43, %s14857_s2  ;;  %v10175_v26 = vrot.slane %v5804_v18, 11  ;;  %v10174_v43 = vrot.slane %v5803_v61, 11  ;;  %v6259_v18 = vstv %s13334_s1  ;;  %s13561_s1 = sld [smem:[#allocation5 + $0xb4]] }
 0x72b   : > { %5597 = vrot.lane.b32.xlu0 %v10142_v19, %s14855_s25  ;;  %5595 = vrot.lane.b32.xlu1 %v10141_v60, %s14855_s25  ;;  %v13279_v19 = vld [vmem:[#allocation2 + $0xc] sm:$0xff] }
 0x72c   : > { %v6004_v60 = vmul.f32 %v13279_v19, %v13272_v13  ;;  %v6092_v5 = vmul.f32 %v13279_v19, %v13295_v34 }
 0x72e   : > { %v10195_v45 = vrot.slane %v6092_v5, 9 }
 0x72f   : > { %5627 = vrot.lane.b32.xlu0 %v10145_v46, %s14856_s10  ;;  %5625 = vrot.lane.b32.xlu1 %v10144_v37, %s14856_s10  ;;  %v10187_v46 = vrot.slane %v6046_v23, 9  ;;  %v6067_v37 = vstv %s13283_s26  ;;  %s13503_s26 = sld [smem:[#allocation5 + $0xc5]] }
 0x730   : > { %v6068_v56 = vmul.f32 %v12969_v27, %v6067_v37 }
 0x732   : > { %v10190_v32 = vrot.slane %v6068_v56, 9 }
 0x733   : > { %5631 = vrot.lane.b32.xlu0 %v10147_v53, %s14856_s10  ;;  %5629 = vrot.lane.b32.xlu1 %v10146_v28, %s14856_s10  ;;  %v6090_v53 = vmul.f32 %v12969_v27, %v13295_v34 }
 0x735   : > { %v10193_v28 = vrot.slane %v6090_v53, 9 }
 0x737   : > { %5671 = vrot.lane.b32.xlu0 %v10153_v2, %s14857_s2  ;;  %5669 = vrot.lane.b32.xlu1 %v10152_v41, %s14857_s2 }
 0x73b   : > { %5693 = vrot.lane.b32.xlu0 %v10156_v9, %s14855_s25  ;;  %5691 = vrot.lane.b32.xlu1 %v10155_v11, %s14855_s25  ;;  %v6163_v11 = vstv %s13305_s21  ;;  %s13533_s21 = sld [smem:[#allocation5 + $0xc9]] }
 0x73f   : > { %5723 = vrot.lane.b32.xlu0 %v10159_v0, %s14856_s10  ;;  %5721 = vrot.lane.b32.xlu1 %v10158_v63, %s14856_s10  ;;  %v13317_v0 = vld [vmem:[#allocation2] sm:$0xff] }
 0x740   : > { %v6164_v63 = vmul.f32 %v13317_v0, %v6163_v11  ;;  %v6186_v29 = vmul.f32 %v13317_v0, %v13322_v31 }
 0x742   : > { %v10204_v27 = vrot.slane %v6164_v63, 10 }
 0x743   : > { %5727 = vrot.lane.b32.xlu0 %v10161_v21, %s14856_s10  ;;  %5725 = vrot.lane.b32.xlu1 %v10160_v24, %s14856_s10  ;;  %v10207_v21 = vrot.slane %v6186_v29, 10  ;;  %v6188_v24 = vmul.f32 %v13279_v19, %v13322_v31 }
 0x745   : > { %v10209_v30 = vrot.slane %v6188_v24, 10 }
 0x747   : > { %5767 = vrot.lane.b32.xlu0 %v10167_v10, %s14857_s2  ;;  %5765 = vrot.lane.b32.xlu1 %v10166_v7, %s14857_s2  ;;  %v6237_v10 = vstv %s13329_s15  ;;  %v5480_v7 = vstv %s13324_s30  ;;  %s10255_s30 = sld [smem:[#allocation5 + $0xcb]] }
 0x748   : > { %s13547_s15 = sld [smem:[#allocation5 + $0xb0]] }
 0x74b   : > { %5789 = vrot.lane.b32.xlu0 %v10170_v62, %s14855_s25  ;;  %5787 = vrot.lane.b32.xlu1 %v10169_v57, %s14855_s25  ;;  %v6238_v62 = vmul.f32 %v13317_v0, %v6237_v10 }
 0x74f   : > { %5819 = vrot.lane.b32.xlu0 %v10173_v33, %s14856_s10  ;;  %5817 = vrot.lane.b32.xlu1 %v10172_v40, %s14856_s10  ;;  %v10215_v33 = vrot.slane %v6238_v62, 11  ;;  %v5482_v40 = vmul.f32 %v13279_v19, %v5480_v7 }
 0x753   : > { %5823 = vrot.lane.b32.xlu0 %v10175_v26, %s14856_s10  ;;  %5821 = vrot.lane.b32.xlu1 %v10174_v43, %s14856_s10 }
 0x757   : > { %5970 = vrot.lane.b32.xlu0 %v5966_v16, %s14857_s2  ;;  %v6260_v16 = vmul.f32 %v13317_v0, %v6259_v18 }
 0x759   : > { %v10218_v23 = vrot.slane %v6260_v16, 11 }
 0x75b   : > { %5988 = vrot.lane.b32.xlu0 %v5984_v35, %s14855_s25 }
 0x75f   : > { %6010 = vrot.lane.b32.xlu0 %v6002_v36, %s14856_s10 }
 0x763   : > { %6014 = vrot.lane.b32.xlu0 %v6004_v60, %s14856_s10  ;;  %v5550_v60 = vstv %s13336_s0  ;;  %s13568_s0 = sld [smem:[#allocation5 + $0xcd]] }
 0x767   : > { %6054 = vrot.lane.b32.xlu0 %v10187_v46, %s14857_s2 }
 0x76b   : > { %6076 = vrot.lane.b32.xlu0 %v10190_v32, %s14855_s25  ;;  %v5552_v32 = vmul.f32 %v13279_v19, %v5550_v60 }
 0x76f   : > { %6106 = vrot.lane.b32.xlu0 %v10193_v28, %s14856_s10 }
 0x773   : > { %6110 = vrot.lane.b32.xlu0 %v10195_v45, %s14856_s10 }
 0x777   : > { %6150 = vrot.lane.b32.xlu0 %v10201_v51, %s14857_s2 }
 0x77b   : > { %6172 = vrot.lane.b32.xlu0 %v10204_v27, %s14855_s25 }
 0x77f   : > { %6202 = vrot.lane.b32.xlu0 %v10207_v21, %s14856_s10  ;;  %v13362_v21 = vstv %s10220_s3  ;;  %s13577_s3 = sld [smem:[#allocation5 + $0xce]] }
 0x783   : > { %6206 = vrot.lane.b32.xlu0 %v10209_v30, %s14856_s10 }
 0x785   : > { %v5474_v2 = vpop.permute.xlu0 %5473  ;;  %v5393_v41 = vpop.permute.xlu1 %5392 }
 0x786   : > { %5478 = vst.msk [vmem:[#allocation3 + $0x12] sm:$0x1] %vm5477_vm7, %v5474_v2  ;;  %v5394_v44 = vrot.slane %v5393_v41, 7  ;;  %vm14863_vm7 = vcmask 654336  }
 0x787   : > { %6246 = vrot.lane.b32.xlu0 %v10215_v33, %s14857_s2 }
 0x788   : > { %v5395_v9 = vsel %vm432_vm1, %v5394_v44, %v5393_v41  ;;  %v5481_v44 = vmul.f32 %v13317_v0, %v5480_v7  ;;  %v5551_v7 = vmul.f32 %v13317_v0, %v5550_v60 }
 0x789   : > { %5397 = vst.msk [vmem:[#allocation3 + $0x10] sm:$0x3] %vm11739_vm9, %v5395_v9  ;;  %v5492_v59 = vpop.permute.xlu0 %5491  ;;  %v5490_v55 = vpop.permute.xlu1 %5489  ;;  %vm14862_vm9 = vcmask 1041024  }
 0x78a   : > { %v5494_v25 = vrot.slane %v5492_v59, 4  ;;  %v5493_v56 = vrot.slane %v5490_v55, 4 }
 0x78b   : > { %6268 = vrot.lane.b32.xlu0 %v10218_v23, %s14855_s25 }
 0x78c   : > { %v5496_v61 = vsel %vm413_vm0, %v5492_v59, %v5494_v25  ;;  %v5495_v51 = vsel %vm413_vm0, %v5490_v55, %v5493_v56  ;;  %v10136_v59 = vrot.slane %v5552_v32, 9  ;;  %v6284_v55 = vmul.f32 %v13279_v19, %v13362_v21 }
 0x78d   : > { %v5510_v38 = vpop.permute.xlu0 %5509  ;;  %v5508_v54 = vpop.permute.xlu1 %5507  ;;  %v5500_v46 = vadd.f32 %v5496_v61, %v5482_v40  ;;  %v5499_v30 = vadd.f32 %v5495_v51, %v5481_v44  ;;  %v5646_v32 = vstv %s13360_s24  ;;  %s13607_s24 = sld [smem:[#allocation5 + $0xb8]] }
 0x78e   : > { %v5512_v15 = vrot.slane %v5510_v38, 4  ;;  %v5511_v47 = vrot.slane %v5508_v54, 4  ;;  %v10223_v16 = vrot.slane %v6284_v55, 11 }
 0x790   : > { %v5514_v36 = vsel %vm432_vm1, %v5510_v38, %v5512_v15  ;;  %v5513_v24 = vsel %vm432_vm1, %v5508_v54, %v5511_v47 }
 0x791   : > { %v5532_v58 = vpop.permute.xlu0 %5531  ;;  %v5530_v14 = vpop.permute.xlu1 %5529  ;;  %v5518_v41 = vadd.f32 %v5514_v36, %v5500_v46  ;;  %v5517_v62 = vadd.f32 %v5513_v24, %v5499_v30  ;;  %v10135_v36 = vrot.slane %v5551_v7, 9 }
 0x792   : > { %v5538_v53 = vrot.slane %v5532_v58, 4  ;;  %v5537_v28 = vrot.slane %v5530_v14, 4  ;;  %v6282_v58 = vmul.f32 %v13317_v0, %v13362_v21 }
 0x794   : > { %v5541_v63 = vsel %vm461_vm2, %v5537_v28, %v5538_v53 }
 0x795   : > { %v5536_v39 = vpop.permute.xlu0 %5535  ;;  %v5534_v12 = vpop.permute.xlu1 %5533  ;;  %v5542_v25 = vsel %vm463_vm3, %v5530_v14, %v5541_v63 }
 0x796   : > { %v5540_v57 = vrot.slane %v5536_v39, 4  ;;  %v5539_v8 = vrot.slane %v5534_v12, 4 }
 0x798   : > { %v5543_v35 = vsel %vm461_vm2, %v5539_v8, %v5540_v57 }
 0x799   : > { %v5576_v26 = vpop.permute.xlu0 %5575  ;;  %v5574_v43 = vpop.permute.xlu1 %5573  ;;  %v5544_v5 = vsel %vm463_vm3, %v5534_v12, %v5543_v35  ;;  %v10221_v12 = vrot.slane %v6282_v58, 11  ;;  %v5547_v35 = vadd.f32 %v5542_v25, %v5517_v62 }
 0x79a   : > { %v5548_v9 = vadd.f32 %v5544_v5, %v5518_v41  ;;  %v5578_v27 = vrot.slane %v5576_v26, 4  ;;  %v5577_v33 = vrot.slane %v5574_v43, 4  ;;  %v5648_v41 = vmul.f32 %v13279_v19, %v5646_v32 }
 0x79b   : > { %6298 = vrot.lane.b32.xlu0 %v10221_v12, %s14856_s10  ;;  %v5561_v47 = vadd.f32 %v10135_v36, %v5547_v35  ;;  %v5742_v35 = vstv %s13383_s20  ;;  %s10269_s20 = sld [smem:[#allocation5 + $0xcf]] }
 0x79c   : > { %v5562_v39 = vadd.f32 %v10136_v59, %v5548_v9  ;;  %v5580_v57 = vsel %vm413_vm0, %v5576_v26, %v5578_v27  ;;  %v5579_v5 = vsel %vm413_vm0, %v5574_v43, %v5577_v33  ;;  %v10150_v58 = vrot.slane %v5648_v41, 10 }
 0x79d   : > { %v5598_v45 = vpop.permute.xlu0 %5597  ;;  %v5596_v2 = vpop.permute.xlu1 %5595  ;;  %v5583_v63 = vadd.f32 %v5579_v5, %v5561_v47  ;;  %v5743_v5 = vmul.f32 %v13317_v0, %v5742_v35 }
 0x79e   : > { %v5600_v8 = vrot.slane %v5598_v45, 4  ;;  %v5584_v14 = vadd.f32 %v5580_v57, %v5562_v39  ;;  %v5599_v46 = vrot.slane %v5596_v2, 4 }
 0x79f   : > { %6302 = vrot.lane.b32.xlu0 %v10223_v16, %s14856_s10 }
 0x7a0   : > { %v5602_v26 = vsel %vm432_vm1, %v5598_v45, %v5600_v8  ;;  %v5601_v59 = vsel %vm432_vm1, %v5596_v2, %v5599_v46  ;;  %v5647_v45 = vmul.f32 %v13317_v0, %v5646_v32 }
 0x7a1   : > { %v5628_v38 = vpop.permute.xlu0 %5627  ;;  %v5626_v29 = vpop.permute.xlu1 %5625  ;;  %v5606_v9 = vadd.f32 %v5602_v26, %v5584_v14  ;;  %v5605_v30 = vadd.f32 %v5601_v59, %v5583_v63 }
 0x7a2   : > { %v5634_v60 = vrot.slane %v5628_v38, 4  ;;  %v5633_v23 = vrot.slane %v5626_v29, 4  ;;  %v10149_v25 = vrot.slane %v5647_v45, 10 }
 0x7a4   : > { %v5637_v44 = vsel %vm461_vm2, %v5633_v23, %v5634_v60 }
 0x7a5   : > { %v5632_v15 = vpop.permute.xlu0 %5631  ;;  %v5630_v54 = vpop.permute.xlu1 %5629  ;;  %v5638_v43 = vsel %vm463_vm3, %v5626_v29, %v5637_v44 }
 0x7a6   : > { %v5636_v40 = vrot.slane %v5632_v15, 4  ;;  %v5635_v61 = vrot.slane %v5630_v54, 4  ;;  %v5643_v55 = vadd.f32 %v5638_v43, %v5605_v30 }
 0x7a8   : > { %v5639_v56 = vsel %vm461_vm2, %v5635_v61, %v5636_v40  ;;  %v5657_v40 = vadd.f32 %v10149_v25, %v5643_v55 }
 0x7a9   : > { %v5672_v53 = vpop.permute.xlu0 %5671  ;;  %v5670_v28 = vpop.permute.xlu1 %5669  ;;  %v5640_v51 = vsel %vm463_vm3, %v5630_v54, %v5639_v56 }
 0x7aa   : > { %v5644_v24 = vadd.f32 %v5640_v51, %v5606_v9  ;;  %v5674_v7 = vrot.slane %v5672_v53, 4  ;;  %v5673_v39 = vrot.slane %v5670_v28, 4 }
 0x7ac   : > { %v5658_v2 = vadd.f32 %v10150_v58, %v5644_v24  ;;  %v5676_v15 = vsel %vm413_vm0, %v5672_v53, %v5674_v7  ;;  %v5675_v29 = vsel %vm413_vm0, %v5670_v28, %v5673_v39  ;;  %v5744_v53 = vmul.f32 %v13279_v19, %v5742_v35 }
 0x7ad   : > { %v5694_v27 = vpop.permute.xlu0 %5693  ;;  %v5692_v38 = vpop.permute.xlu1 %5691  ;;  %v5679_v26 = vadd.f32 %v5675_v29, %v5657_v40 }
 0x7ae   : > { %v5696_v54 = vrot.slane %v5694_v27, 4  ;;  %v5695_v33 = vrot.slane %v5692_v38, 4  ;;  %v5680_v36 = vadd.f32 %v5676_v15, %v5658_v2 }
 0x7b0   : > { %v5698_v46 = vsel %vm432_vm1, %v5694_v27, %v5696_v54  ;;  %v5697_v56 = vsel %vm432_vm1, %v5692_v38, %v5695_v33  ;;  %v10164_v27 = vrot.slane %v5744_v53, 11  ;;  %v10163_v38 = vrot.slane %v5743_v5, 11 }
 0x7b1   : > { %v5724_v12 = vpop.permute.xlu0 %5723  ;;  %v5722_v62 = vpop.permute.xlu1 %5721  ;;  %v5702_v51 = vadd.f32 %v5698_v46, %v5680_v36  ;;  %v5701_v9 = vadd.f32 %v5697_v56, %v5679_v26 }
 0x7b2   : > { %v5730_v57 = vrot.slane %v5724_v12, 4  ;;  %v5729_v8 = vrot.slane %v5722_v62, 4 }
 0x7b4   : > { %v5733_v60 = vsel %vm461_vm2, %v5729_v8, %v5730_v57 }
 0x7b5   : > { %v5728_v61 = vpop.permute.xlu0 %5727  ;;  %v5726_v16 = vpop.permute.xlu1 %5725  ;;  %v5734_v28 = vsel %vm463_vm3, %v5722_v62, %v5733_v60 }
 0x7b6   : > { %v5732_v23 = vrot.slane %v5728_v61, 4  ;;  %v5731_v14 = vrot.slane %v5726_v16, 4  ;;  %v5739_v63 = vadd.f32 %v5734_v28, %v5701_v9 }
 0x7b8   : > { %v5735_v32 = vsel %vm461_vm2, %v5731_v14, %v5732_v23  ;;  %v5753_v25 = vadd.f32 %v10163_v38, %v5739_v63 }
 0x7b9   : > { %v5736_v41 = vsel %vm463_vm3, %v5726_v16, %v5735_v32  ;;  %v5768_v47 = vpop.permute.xlu0 %5767  ;;  %v5766_v44 = vpop.permute.xlu1 %5765  ;;  %v5838_v16 = vstv %s13397_s12  ;;  %s13637_s12 = sld [smem:[#allocation5 + $0xbc]] }
 0x7ba   : > { %v5769_v59 = vrot.slane %v5766_v44, 4  ;;  %v5740_v45 = vadd.f32 %v5736_v41, %v5702_v51  ;;  %v5770_v43 = vrot.slane %v5768_v47, 4 }
 0x7bc   : > { %v5771_v7 = vsel %vm413_vm0, %v5766_v44, %v5769_v59  ;;  %v5754_v55 = vadd.f32 %v10164_v27, %v5740_v45  ;;  %v5772_v39 = vsel %vm413_vm0, %v5768_v47, %v5770_v43 }
 0x7bd   : > { %v5790_v24 = vpop.permute.xlu0 %5789  ;;  %v5788_v58 = vpop.permute.xlu1 %5787  ;;  %v5775_v8 = vadd.f32 %v5771_v7, %v5753_v25 }
 0x7be   : > { %v5791_v30 = vrot.slane %v5788_v58, 4  ;;  %v5792_v12 = vrot.slane %v5790_v24, 4  ;;  %v5776_v33 = vadd.f32 %v5772_v39, %v5754_v55 }
 0x7c0   : > { %v5793_v62 = vsel %vm432_vm1, %v5788_v58, %v5791_v30  ;;  %v5794_v61 = vsel %vm432_vm1, %v5790_v24, %v5792_v12 }
 0x7c1   : > { %v5820_v2 = vpop.permute.xlu0 %5819  ;;  %v5818_v57 = vpop.permute.xlu1 %5817  ;;  %v5797_v40 = vadd.f32 %v5793_v62, %v5775_v8  ;;  %v5798_v56 = vadd.f32 %v5794_v61, %v5776_v33  ;;  %v5985_v61 = vmul.f32 %v13279_v19, %v5983_v48 }
 0x7c2   : > { %v5826_v15 = vrot.slane %v5820_v2, 4  ;;  %v5825_v54 = vrot.slane %v5818_v57, 4 }
 0x7c4   : > { %v5829_v29 = vsel %vm461_vm2, %v5825_v54, %v5826_v15 }
 0x7c5   : > { %v5830_v35 = vsel %vm463_vm3, %v5818_v57, %v5829_v29  ;;  %v5824_v36 = vpop.permute.xlu0 %5823  ;;  %v5822_v60 = vpop.permute.xlu1 %5821  ;;  %v5967_v29 = vmul.f32 %v13279_v19, %v5965_v6 }
 0x7c6   : > { %v5835_v23 = vadd.f32 %v5830_v35, %v5797_v40  ;;  %v5828_v14 = vrot.slane %v5824_v36, 4  ;;  %v5827_v46 = vrot.slane %v5822_v60, 4  ;;  %v13438_v36 = vld [vmem:[#allocation2 + $0x14] sm:$0xf] }
 0x7c7   : > { %v6005_v6 = vmul.f32 %v13438_v36, %v13272_v13 }
 0x7c8   : > { %v5839_v26 = vadd.f32 %v5838_v16, %v5835_v23  ;;  %v5831_v32 = vsel %vm461_vm2, %v5827_v46, %v5828_v14  ;;  %v6069_v23 = vmul.f32 %v13279_v19, %v6067_v37  ;;  %v6143_v37 = vmul.f32 %v13279_v19, %v6141_v17 }
 0x7c9   : > { %v5832_v53 = vsel %vm463_vm3, %v5822_v60, %v5831_v32  ;;  %v6047_v60 = vmul.f32 %v13279_v19, %v6045_v42  ;;  %v6165_v32 = vmul.f32 %v13279_v19, %v6163_v11 }
 0x7ca   : > { %v5841_v5 = vmax.f32 %v5839_v26, 0.0  ;;  %v5836_v28 = vadd.f32 %v5832_v53, %v5798_v56  ;;  %v10191_v14 = vrot.slane %v6069_v23, 9  ;;  %v10202_v26 = vrot.slane %v6143_v37, 10 }
 0x7cb   : > { %v10188_v48 = vrot.slane %v6047_v60, 9  ;;  %v10205_v53 = vrot.slane %v6165_v32, 10  ;;  %v6647_v23 = vstv %s13540_s23  ;;  %s10279_s23 = sld [smem:[#allocation5 + $0xd2]] }
 0x7cc   : > { %v5848_v41 = vrot.slane %v5841_v5, %v11392_v52  ;;  %v5852_v47 = vrot.slane %v5841_v5, %v11396_v50  ;;  %v5840_v44 = vadd.f32 %v5838_v16, %v5836_v28  ;;  %v13433_v16 = vld [vmem:[#allocation2 + $0x8] sm:$0xf]  ;;  %v6189_v28 = vmul.f32 %v13438_v36, %v13322_v31 }
 0x7cd   : > { %v6003_v35 = vmul.f32 %v13433_v16, %v13272_v13  ;;  %v6091_v46 = vmul.f32 %v13433_v16, %v13295_v34  ;;  %v6093_v13 = vmul.f32 %v13438_v36, %v13295_v34  ;;  %v6187_v5 = vmul.f32 %v13433_v16, %v13322_v31 }
 0x7ce   : > { %v10177_v51 = vpack.c.bf16 %v5852_v47, %v5848_v41  ;;  %v5842_v9 = vmax.f32 %v5840_v44, 0.0  ;;  %v10210_v17 = vrot.slane %v6189_v28, 10  ;;  %v6239_v41 = vmul.f32 %v13279_v19, %v6237_v10 }
 0x7cf   : > { %v10194_v56 = vrot.slane %v6091_v46, 9  ;;  %v10196_v42 = vrot.slane %v6093_v13, 9  ;;  %v10208_v34 = vrot.slane %v6187_v5, 10  ;;  %v6261_v47 = vmul.f32 %v13279_v19, %v6259_v18 }
 0x7d0   : > { %v5880_v59 = vrot.slane %v10177_v51, %v11406_v4  ;;  %v5856_v63 = vrot.slane %v5842_v9, %v11392_v52  ;;  %v5860_v45 = vrot.slane %v5842_v9, %v11396_v50  ;;  %v10216_v11 = vrot.slane %v6239_v41, 11 }
 0x7d1   : > { %v10219_v44 = vrot.slane %v6261_v47, 11  ;;  %v6283_v51 = vmul.f32 %v13433_v16, %v13362_v21  ;;  %v6285_v9 = vmul.f32 %v13438_v36, %v13362_v21  ;;  %v6449_v18 = vstv %s13485_s13  ;;  %v13494_v21 = vpop.permute.xlu0 %5970  ;;  %s10228_s13 = sld [smem:[#allocation5 + $0xc0]] }
 0x7d2   : > { %v5887_v27 = vrot.slane %v5880_v59, %v11406_v4  ;;  %v10178_v38 = vpack.c.bf16 %v5860_v45, %v5856_v63  ;;  %v6450_v59 = vmul.f32 %v13317_v0, %v6449_v18  ;;  %v6467_v63 = vstv %s13492_s18  ;;  %s13742_s18 = sld [smem:[#allocation5 + $0xc4]] }
 0x7d3   : > { %v10222_v31 = vrot.slane %v6283_v51, 11  ;;  %v10224_v10 = vrot.slane %v6285_v9, 11  ;;  %v6468_v45 = vmul.f32 %v13317_v0, %v6467_v63  ;;  %v6648_v46 = vmul.f32 %v13317_v0, %v6647_v23 }
 0x7d4   : > { %v5895_v43 = vrot.slane %v10178_v38, %v11406_v4  ;;  %v5909_v24 = vrot.slane %v5887_v27, %v11419_v22  ;;  %v13501_v27 = vstv %s10231_s19  ;;  %v13559_v13 = vstv %s10255_s30  ;;  %s14861_s19 = smov 80   ;;  %s10280_s30 = sld [smem:[#allocation5 + $0xd3]] }
 0x7d5   : > { %v13505_v38 = vpop.permute.xlu0 %5988  ;;  %v6670_v20 = vmul.f32 %v13317_v0, %v13559_v13  ;;  %v5974_v32 = vrot.slane %v13494_v21, 4  ;;  %v6672_v5 = vmul.f32 %v13279_v19, %v13559_v13 }
 0x7d6   : > { %v5902_v58 = vrot.slane %v5895_v43, %v11406_v4  ;;  %v5916_v55 = vrot.slane %v5909_v24, %v11419_v22  ;;  %v6486_v43 = vmul.f32 %v13317_v0, %v13501_v27  ;;  %v6488_v24 = vmul.f32 %v13279_v19, %v13501_v27 }
 0x7d7   : > { %v10258_v28 = vrot.slane %v6672_v5, 10  ;;  %v5976_v47 = vsel %vm413_vm0, %v13494_v21, %v5974_v32 }
 0x7d8   : > { %v5923_v30 = vrot.slane %v5902_v58, %v11419_v22  ;;  %v5931_v12 = vunpack.c.l.b16 %v5916_v55  ;;  %v5932_v62 = vunpack.c.h.b16 %v5916_v55  ;;  %v6529_v58 = vstv %s13503_s26  ;;  %s13757_s26 = sld [smem:[#allocation5 + $0xc8]] }
 0x7da   : > { %v5930_v7 = vrot.slane %v5923_v30, %v11419_v22  ;;  %v13515_v30 = vpop.permute.xlu0 %6010 }
 0x7db   : > { %v6018_v41 = vrot.slane %v13515_v30, 4 }
 0x7dc   : > { %v5933_v25 = vunpack.c.l.b16 %v5930_v7  ;;  %v5934_v39 = vunpack.c.h.b16 %v5930_v7  ;;  %v6530_v7 = vmul.f32 %v13317_v0, %v6529_v58 }
 0x7de   : > { %v5935_v2 = vrot.slane %v5933_v25, 7  ;;  %v5937_v57 = vrot.slane %v5934_v39, 7  ;;  %v10236_v55 = vrot.slane %v6530_v7, 9  ;;  %v6551_v25 = vstv %s13512_s9  ;;  %s13770_s9 = sld [smem:[#allocation5 + $0xcc]] }
 0x7df   : > { %v6552_v39 = vmul.f32 %v13317_v0, %v6551_v25 }
 0x7e0   : > { %v5936_v8 = vsel %vm858_vm4, %v5935_v2, %v5931_v12  ;;  %v5938_v15 = vsel %vm858_vm4, %v5937_v57, %v5932_v62  ;;  %v13526_v12 = vpop.permute.xlu0 %6014  ;;  %v13528_v2 = vstv %s10241_s27  ;;  %s10274_s27 = sld [smem:[#allocation8 + $0xc]] }
 0x7e1   : > { %v5939_v54 = vpack.c.b16 %v5938_v15, %v5936_v8  ;;  %v10239_v62 = vrot.slane %v6552_v39, 9  ;;  %v6574_v57 = vmul.f32 %v13317_v0, %v13528_v2  ;;  %v6576_v15 = vmul.f32 %v13279_v19, %v13528_v2 }
 0x7e3   : > { %v5946_v33 = vrot.slane %v5939_v54, %v11406_v4  ;;  %v10242_v8 = vrot.slane %v6574_v57, 9 }
 0x7e4   : > { %v13537_v54 = vpop.permute.xlu0 %6054 }
 0x7e5   : > { %v5953_v40 = vrot.slane %v5946_v33, %v11406_v4  ;;  %v10244_v33 = vrot.slane %v6576_v15, 9  ;;  %v6743_v15 = vstv %s13577_s3  ;;  %v6058_v32 = vrot.slane %v13537_v54, 4  ;;  %s10376_s3 = sld [smem:[#allocation5 + $0xf1]] }
 0x7e7   : > { %5954 = vrot.lane.b32.xlu1 %v5953_v40, %s14860_s17  ;;  %v6625_v40 = vstv %s13533_s21  ;;  %s10225_s17 = sld [smem:[#allocation8 + $0xb]] }
 0x7e8   : > { %s10278_s21 = sld [smem:[#allocation5 + $0xd1]] }
 0x7eb   : > { %5972 = vrot.lane.b32.xlu1 %v5967_v29, %s14857_s2 }
 0x7ef   : > { %5990 = vrot.lane.b32.xlu1 %v5985_v61, %s14855_s25  ;;  %v6626_v61 = vmul.f32 %v13317_v0, %v6625_v40 }
 0x7f1   : > { %v10250_v60 = vrot.slane %v6626_v61, 10 }
 0x7f3   : > { %6012 = vrot.lane.b32.xlu1 %v6003_v35, %s14856_s10 }
 0x7f7   : > { %6016 = vrot.lane.b32.xlu1 %v6005_v6, %s14856_s10  ;;  %v13549_v6 = vpop.permute.xlu0 %6076 }
 0x7fb   : > { %6056 = vrot.lane.b32.xlu1 %v10188_v48, %s14857_s2  ;;  %v13563_v37 = vpop.permute.xlu0 %6106 }
 0x7ff   : > { %6078 = vrot.lane.b32.xlu1 %v10191_v14, %s14855_s25  ;;  %v13582_v51 = vpop.permute.xlu0 %6110 }
 0x803   : > { %6108 = vrot.lane.b32.xlu1 %v10194_v56, %s14856_s10  ;;  %v10253_v56 = vrot.slane %v6648_v46, 10 }
 0x807   : > { %6112 = vrot.lane.b32.xlu1 %v10196_v42, %s14856_s10 }
 0x80b   : > { %6152 = vrot.lane.b32.xlu1 %v10202_v26, %s14857_s2  ;;  %v5961_v26 = vstv %s13547_s15  ;;  %s14864_s15 = smov 64  }
 0x80c   : > { %v5963_v57 = vmul.f32 %v13279_v19, %v5961_v26 }
 0x80f   : > { %6174 = vrot.lane.b32.xlu1 %v10205_v53, %s14855_s25  ;;  %v10256_v53 = vrot.slane %v6670_v20, 10 }
 0x813   : > { %6204 = vrot.lane.b32.xlu1 %v10208_v34, %s14856_s10 }
 0x817   : > { %6208 = vrot.lane.b32.xlu1 %v10210_v17, %s14856_s10  ;;  %v5962_v17 = vmul.f32 %v13317_v0, %v5961_v26 }
 0x81b   : > { %6248 = vrot.lane.b32.xlu1 %v10216_v11, %s14857_s2 }
 0x81f   : > { %6270 = vrot.lane.b32.xlu1 %v10219_v44, %s14855_s25  ;;  %v5992_v44 = vrot.slane %v13505_v38, 4 }
 0x823   : > { %6300 = vrot.lane.b32.xlu1 %v10222_v31, %s14856_s10  ;;  %v6721_v31 = vstv %s13568_s0  ;;  %s10327_s0 = sld [smem:[#allocation5 + $0xe1]] }
 0x827   : > { %6304 = vrot.lane.b32.xlu1 %v10224_v10, %s14856_s10  ;;  %v6031_v10 = vstv %s13561_s1  ;;  %s13824_s1 = sld [smem:[#allocation5 + $0xd5]] }
 0x828   : > { %v6033_v26 = vmul.f32 %v13279_v19, %v6031_v10 }
 0x82b   : > { %6454 = vrot.lane.b32.xlu1 %v6450_v59, %s14857_s2 }
 0x82f   : > { %6472 = vrot.lane.b32.xlu1 %v6468_v45, %s14855_s25  ;;  %v6722_v45 = vmul.f32 %v13317_v0, %v6721_v31 }
 0x833   : > { %6494 = vrot.lane.b32.xlu1 %v6486_v43, %s14856_s10  ;;  %v5980_v43 = vadd.f32 %v5976_v47, %v5962_v17  ;;  %v6060_v47 = vsel %vm413_vm0, %v13537_v54, %v6058_v32 }
 0x837   : > { %6498 = vrot.lane.b32.xlu1 %v6488_v24, %s14856_s10  ;;  %v6020_v24 = vrot.slane %v13526_v12, 4 }
 0x83b   : > { %6538 = vrot.lane.b32.xlu1 %v10236_v55, %s14857_s2  ;;  %v5994_v55 = vsel %vm432_vm1, %v13505_v38, %v5992_v44  ;;  %v6744_v38 = vmul.f32 %v13317_v0, %v6743_v15  ;;  %v6080_v44 = vrot.slane %v13549_v6, 4 }
 0x83f   : > { %6560 = vrot.lane.b32.xlu1 %v10239_v62, %s14855_s25  ;;  %v10264_v62 = vrot.slane %v6722_v45, 11 }
 0x843   : > { %6590 = vrot.lane.b32.xlu1 %v10242_v8, %s14856_s10  ;;  %v6032_v8 = vmul.f32 %v13317_v0, %v6031_v10 }
 0x845   : > { %v10184_v20 = vrot.slane %v6032_v8, 9 }
 0x847   : > { %6594 = vrot.lane.b32.xlu1 %v10244_v33, %s14856_s10 }
 0x84b   : > { %6634 = vrot.lane.b32.xlu1 %v10250_v60, %s14857_s2  ;;  %v5998_v60 = vadd.f32 %v5994_v55, %v5980_v43  ;;  %v6116_v43 = vrot.slane %v13582_v51, 4 }
 0x84f   : > { %6656 = vrot.lane.b32.xlu1 %v10253_v56, %s14855_s25  ;;  %v10267_v56 = vrot.slane %v6744_v38, 11 }
 0x853   : > { %6686 = vrot.lane.b32.xlu1 %v10256_v53, %s14856_s10 }
 0x857   : > { %6690 = vrot.lane.b32.xlu1 %v10258_v28, %s14856_s10 }
 0x859   : > { %v5955_v29 = vpop.permute.xlu1 %5954 }
 0x85a   : > { %v5956_v35 = vrot.slane %v5955_v29, 7 }
 0x85b   : > { %6730 = vrot.lane.b32.xlu1 %v10264_v62, %s14857_s2  ;;  %v6082_v62 = vsel %vm432_vm1, %v13549_v6, %v6080_v44 }
 0x85c   : > { %v5957_v48 = vsel %vm1846_vm15, %v5956_v35, %v5955_v29  ;;  %v13600_v35 = vpop.permute.xlu0 %6150  ;;  %vm6440_vm15 = vmor %vm858_vm4, %vm14862_vm9  ;;  %vm7004_vm9 = vcmask 385024  }
 0x85d   : > { %5959 = vst.msk [vmem:[#allocation3 + $0x12] sm:$0x7] %vm11758_vm6, %v5957_v48  ;;  %v5973_v14 = vpop.permute.xlu1 %5972  ;;  %vm6441_vm6 = vcmask 518146  }
 0x85e   : > { %v5975_v9 = vrot.slane %v5973_v14, 4  ;;  %vm6442_vm5 = vmor %vm6441_vm6, %vm6440_vm15  ;;  %vm14865_vm15 = vcmask 523264  }
 0x85f   : > { %6752 = vrot.lane.b32.xlu1 %v10267_v56, %s14855_s25 }
 0x860   : > { %v5977_v33 = vsel %vm413_vm0, %v5973_v14, %v5975_v9  ;;  %v6173_v28 = vpop.permute.xlu0 %6172 }
 0x861   : > { %v5991_v42 = vpop.permute.xlu1 %5990  ;;  %v5981_v14 = vadd.f32 %v5977_v33, %v5963_v57  ;;  %v6176_v44 = vrot.slane %v6173_v28, 4 }
 0x862   : > { %v5993_v39 = vrot.slane %v5991_v42, 4 }
 0x864   : > { %v5995_v46 = vsel %vm432_vm1, %v5991_v42, %v5993_v39 }
 0x865   : > { %v6013_v34 = vpop.permute.xlu1 %6012 }
 0x866   : > { %v6019_v11 = vrot.slane %v6013_v34, 4  ;;  %v5999_v34 = vadd.f32 %v5995_v46, %v5981_v14 }
 0x868   : > { %v6022_v21 = vsel %vm461_vm2, %v6018_v41, %v6019_v11  ;;  %v10185_v41 = vrot.slane %v6033_v26, 9  ;;  %v6114_v11 = vrot.slane %v13563_v37, 4 }
 0x869   : > { %v6017_v59 = vpop.permute.xlu1 %6016  ;;  %v6023_v29 = vsel %vm463_vm3, %v13515_v30, %v6022_v21 }
 0x86a   : > { %v6021_v7 = vrot.slane %v6017_v59, 4  ;;  %v6028_v30 = vadd.f32 %v6023_v29, %v5998_v60  ;;  %v13619_v59 = vstv %s10269_s20  ;;  %v6203_v29 = vpop.permute.xlu0 %6202  ;;  %s10328_s20 = sld [smem:[#allocation5 + $0xe2]] }
 0x86b   : > { %v6766_v45 = vmul.f32 %v13317_v0, %v13619_v59  ;;  %v6768_v21 = vmul.f32 %v13279_v19, %v13619_v59 }
 0x86c   : > { %v6024_v48 = vsel %vm461_vm2, %v6020_v24, %v6021_v7  ;;  %v6042_v17 = vadd.f32 %v10184_v20, %v6028_v30  ;;  %v6127_v24 = vstv %s13607_s24  ;;  %s10329_s24 = sld [smem:[#allocation5 + $0xe3]] }
 0x86d   : > { %v6057_v61 = vpop.permute.xlu1 %6056  ;;  %v6025_v53 = vsel %vm463_vm3, %v13526_v12, %v6024_v48  ;;  %v10270_v39 = vrot.slane %v6766_v45, 11  ;;  %v6128_v38 = vmul.f32 %v13317_v0, %v6127_v24  ;;  %v10272_v48 = vrot.slane %v6768_v21, 11 }
 0x86e   : > { %v6029_v42 = vadd.f32 %v6025_v53, %v5999_v34  ;;  %v6059_v9 = vrot.slane %v6057_v61, 4  ;;  %v6064_v7 = vadd.f32 %v6060_v47, %v6042_v17  ;;  %v6129_v32 = vmul.f32 %v13279_v19, %v6127_v24  ;;  %v6207_v34 = vpop.permute.xlu0 %6206 }
 0x86f   : > { %6782 = vrot.lane.b32.xlu1 %v10270_v39, %s14856_s10  ;;  %v6154_v53 = vrot.slane %v13600_v35, 4  ;;  %v6223_v45 = vstv %s13637_s12  ;;  %v6212_v39 = vrot.slane %v6207_v34, 4  ;;  %s13851_s12 = sld [smem:[#allocation5 + $0xf2]] }
 0x870   : > { %v6043_v55 = vadd.f32 %v10185_v41, %v6029_v42  ;;  %v6061_v57 = vsel %vm413_vm0, %v6057_v61, %v6059_v9  ;;  %v6086_v56 = vadd.f32 %v6082_v62, %v6064_v7  ;;  %v10198_v61 = vrot.slane %v6128_v38, 10 }
 0x871   : > { %v6079_v5 = vpop.permute.xlu1 %6078  ;;  %v6156_v47 = vsel %vm413_vm0, %v13600_v35, %v6154_v53 }
 0x872   : > { %v6081_v8 = vrot.slane %v6079_v5, 4  ;;  %v6065_v14 = vadd.f32 %v6061_v57, %v6043_v55  ;;  %v6224_v57 = vmul.f32 %v13317_v0, %v6223_v45 }
 0x873   : > { %6786 = vrot.lane.b32.xlu1 %v10272_v48, %s14856_s10 }
 0x874   : > { %v6083_v6 = vsel %vm432_vm1, %v6079_v5, %v6081_v8 }
 0x875   : > { %v6109_v10 = vpop.permute.xlu1 %6108  ;;  %v6087_v17 = vadd.f32 %v6083_v6, %v6065_v14 }
 0x876   : > { %v6115_v12 = vrot.slane %v6109_v10, 4  ;;  %v6210_v10 = vrot.slane %v6203_v29, 4 }
 0x878   : > { %v6118_v54 = vsel %vm461_vm2, %v6114_v11, %v6115_v12  ;;  %v10199_v11 = vrot.slane %v6129_v32, 10 }
 0x879   : > { %v6113_v33 = vpop.permute.xlu1 %6112  ;;  %v6119_v46 = vsel %vm463_vm3, %v13563_v37, %v6118_v54 }
 0x87a   : > { %v6117_v60 = vrot.slane %v6113_v33, 4  ;;  %v6124_v26 = vadd.f32 %v6119_v46, %v6086_v56  ;;  %v10212_v56 = vrot.slane %v6224_v57, 11 }
 0x87c   : > { %v6120_v20 = vsel %vm461_vm2, %v6116_v43, %v6117_v60  ;;  %v6138_v41 = vadd.f32 %v10198_v61, %v6124_v26  ;;  %v6247_v43 = vpop.permute.xlu0 %6246 }
 0x87d   : > { %v6153_v30 = vpop.permute.xlu1 %6152  ;;  %v6121_v37 = vsel %vm463_vm3, %v13582_v51, %v6120_v20  ;;  %v6178_v51 = vsel %vm432_vm1, %v6173_v28, %v6176_v44  ;;  %v6225_v20 = vmul.f32 %v13279_v19, %v6223_v45  ;;  %v6250_v6 = vrot.slane %v6247_v43, 4 }
 0x87e   : > { %v6125_v5 = vadd.f32 %v6121_v37, %v6087_v17  ;;  %v6155_v9 = vrot.slane %v6153_v30, 4  ;;  %v6160_v24 = vadd.f32 %v6156_v47, %v6138_v41 }
 0x87f   : > { %v10213_v53 = vrot.slane %v6225_v20, 11  ;;  %v6252_v37 = vsel %vm413_vm0, %v6247_v43, %v6250_v6 }
 0x880   : > { %v6139_v21 = vadd.f32 %v10199_v11, %v6125_v5  ;;  %v6157_v55 = vsel %vm413_vm0, %v6153_v30, %v6155_v9  ;;  %v6182_v33 = vadd.f32 %v6178_v51, %v6160_v24  ;;  %v6269_v46 = vpop.permute.xlu0 %6268  ;;  %v6319_v51 = vstv %s10225_s17  ;;  %s10378_s17 = sld [smem:[#allocation5 + $0xf3]] }
 0x881   : > { %v6175_v42 = vpop.permute.xlu1 %6174  ;;  %v6272_v17 = vrot.slane %v6269_v46, 4 }
 0x882   : > { %v6177_v54 = vrot.slane %v6175_v42, 4  ;;  %v6161_v38 = vadd.f32 %v6157_v55, %v6139_v21 }
 0x883   : > { %v6274_v19 = vsel %vm432_vm1, %v6269_v46, %v6272_v17 }
 0x884   : > { %v6179_v48 = vsel %vm432_vm1, %v6175_v42, %v6177_v54  ;;  %v6299_v26 = vpop.permute.xlu0 %6298 }
 0x885   : > { %v6205_v12 = vpop.permute.xlu1 %6204  ;;  %v6183_v0 = vadd.f32 %v6179_v48, %v6161_v38  ;;  %v6306_v47 = vrot.slane %v6299_v26, 4 }
 0x886   : > { %v6211_v7 = vrot.slane %v6205_v12, 4 }
 0x888   : > { %v6214_v62 = vsel %vm461_vm2, %v6210_v10, %v6211_v7  ;;  %v6303_v10 = vpop.permute.xlu0 %6302 }
 0x889   : > { %v6215_v35 = vsel %vm463_vm3, %v6203_v29, %v6214_v62  ;;  %v6209_v8 = vpop.permute.xlu1 %6208  ;;  %v6308_v43 = vrot.slane %v6303_v10, 4 }
 0x88a   : > { %v6213_v60 = vrot.slane %v6209_v8, 4  ;;  %v6220_v14 = vadd.f32 %v6215_v35, %v6182_v33 }
 0x88c   : > { %v6216_v28 = vsel %vm461_vm2, %v6212_v39, %v6213_v60  ;;  %v6234_v29 = vadd.f32 %v10212_v56, %v6220_v14 }
 0x88d   : > { %v6217_v30 = vsel %vm463_vm3, %v6207_v34, %v6216_v28  ;;  %v6249_v61 = vpop.permute.xlu1 %6248 }
 0x88e   : > { %v6221_v32 = vadd.f32 %v6217_v30, %v6183_v0  ;;  %v6251_v42 = vrot.slane %v6249_v61, 4  ;;  %v6256_v5 = vadd.f32 %v6252_v37, %v6234_v29 }
 0x890   : > { %v6235_v11 = vadd.f32 %v10213_v53, %v6221_v32  ;;  %v6253_v44 = vsel %vm413_vm0, %v6249_v61, %v6251_v42  ;;  %v6278_v45 = vadd.f32 %v6274_v19, %v6256_v5 }
 0x891   : > { %v6271_v41 = vpop.permute.xlu1 %6270 }
 0x892   : > { %v6273_v34 = vrot.slane %v6271_v41, 4  ;;  %v6257_v24 = vadd.f32 %v6253_v44, %v6235_v11 }
 0x894   : > { %v6275_v7 = vsel %vm432_vm1, %v6271_v41, %v6273_v34 }
 0x895   : > { %v6301_v9 = vpop.permute.xlu1 %6300  ;;  %v6279_v57 = vadd.f32 %v6275_v7, %v6257_v24  ;;  %v6489_v7 = vmul.f32 %v13438_v36, %v13501_v27 }
 0x896   : > { %v6307_v12 = vrot.slane %v6301_v9, 4 }
 0x898   : > { %v6310_v21 = vsel %vm461_vm2, %v6306_v47, %v6307_v12 }
 0x899   : > { %v6311_v55 = vsel %vm463_vm3, %v6299_v26, %v6310_v21  ;;  %v6305_v54 = vpop.permute.xlu1 %6304 }
 0x89a   : > { %v6316_v39 = vadd.f32 %v6311_v55, %v6278_v45  ;;  %v6309_v62 = vrot.slane %v6305_v54, 4  ;;  %v13681_v45 = vld [vmem:[#allocation2 + $0xc] sm:$0xff]  ;;  %v6575_v54 = vmul.f32 %v13433_v16, %v13528_v2 }
 0x89b   : > { %v6451_v24 = vmul.f32 %v13681_v45, %v6449_v18  ;;  %v6469_v21 = vmul.f32 %v13681_v45, %v6467_v63  ;;  %v6531_v18 = vmul.f32 %v13681_v45, %v6529_v58  ;;  %v6553_v63 = vmul.f32 %v13681_v45, %v6551_v25 }
 0x89c   : > { %v6320_v35 = vadd.f32 %v6319_v51, %v6316_v39  ;;  %v6312_v8 = vsel %vm461_vm2, %v6308_v43, %v6309_v62  ;;  %v6487_v43 = vmul.f32 %v13433_v16, %v13501_v27  ;;  %v10243_v39 = vrot.slane %v6575_v54, 9 }
 0x89d   : > { %v6313_v33 = vsel %vm463_vm3, %v6303_v10, %v6312_v8  ;;  %v10240_v55 = vrot.slane %v6553_v63, 9  ;;  %v6577_v27 = vmul.f32 %v13438_v36, %v13528_v2  ;;  %v6627_v25 = vmul.f32 %v13681_v45, %v6625_v40 }
 0x89e   : > { %v6322_v38 = vmax.f32 %v6320_v35, 0.0  ;;  %v6317_v60 = vadd.f32 %v6313_v33, %v6279_v57  ;;  %v6649_v57 = vmul.f32 %v13681_v45, %v6647_v23  ;;  %v6671_v8 = vmul.f32 %v13433_v16, %v13559_v13 }
 0x89f   : > { %v10245_v58 = vrot.slane %v6577_v27, 9  ;;  %v10251_v62 = vrot.slane %v6627_v25, 10  ;;  %v6673_v33 = vmul.f32 %v13438_v36, %v13559_v13 }
 0x8a0   : > { %v6329_v48 = vrot.slane %v6322_v38, %v11392_v52  ;;  %v6333_v46 = vrot.slane %v6322_v38, %v11396_v50  ;;  %v6321_v56 = vadd.f32 %v6319_v51, %v6317_v60  ;;  %v10237_v51 = vrot.slane %v6531_v18, 9 }
 0x8a1   : > { %v10254_v35 = vrot.slane %v6649_v57, 10  ;;  %v10257_v2 = vrot.slane %v6671_v8, 10  ;;  %v10259_v40 = vrot.slane %v6673_v33, 10  ;;  %v6723_v38 = vmul.f32 %v13681_v45, %v6721_v31 }
 0x8a2   : > { %v10226_v14 = vpack.c.bf16 %v6333_v46, %v6329_v48  ;;  %v6323_v28 = vmax.f32 %v6321_v56, 0.0  ;;  %v6745_v60 = vmul.f32 %v13681_v45, %v6743_v15  ;;  %v6767_v46 = vmul.f32 %v13433_v16, %v13619_v59 }
 0x8a3   : > { %v10265_v23 = vrot.slane %v6723_v38, 11  ;;  %v6769_v56 = vmul.f32 %v13438_v36, %v13619_v59 }
 0x8a4   : > { %v6361_v20 = vrot.slane %v10226_v14, %v11406_v4  ;;  %v6337_v6 = vrot.slane %v6323_v28, %v11392_v52  ;;  %v6341_v30 = vrot.slane %v6323_v28, %v11396_v50  ;;  %v10268_v48 = vrot.slane %v6745_v60, 11  ;;  %v6455_v14 = vpop.permute.xlu1 %6454 }
 0x8a5   : > { %v10271_v13 = vrot.slane %v6767_v46, 11  ;;  %v10273_v31 = vrot.slane %v6769_v56, 11 }
 0x8a6   : > { %v6368_v61 = vrot.slane %v6361_v20, %v11406_v4  ;;  %v10227_v0 = vpack.c.bf16 %v6341_v30, %v6337_v6 }
 0x8a8   : > { %v6376_v26 = vrot.slane %v10227_v0, %v11406_v4  ;;  %v6390_v32 = vrot.slane %v6368_v61, %v11419_v22  ;;  %v6473_v28 = vpop.permute.xlu1 %6472 }
 0x8aa   : > { %v6383_v29 = vrot.slane %v6376_v26, %v11406_v4  ;;  %v6397_v37 = vrot.slane %v6390_v32, %v11419_v22  ;;  %v6458_v32 = vrot.slane %v6455_v14, 4 }
 0x8ac   : > { %v6404_v53 = vrot.slane %v6383_v29, %v11419_v22  ;;  %v6412_v5 = vunpack.c.l.b16 %v6397_v37  ;;  %v6413_v11 = vunpack.c.h.b16 %v6397_v37  ;;  %v6495_v15 = vpop.permute.xlu1 %6494  ;;  %v6445_v29 = vstv %s10228_s13  ;;  %v13744_v37 = vld [vmem:[#allocation2] sm:$0xff]  ;;  %s13872_s13 = sld [smem:[#allocation5 + $0xe5]] }
 0x8ae   : > { %v6411_v17 = vrot.slane %v6404_v53, %v11419_v22 }
 0x8b0   : > { %v6414_v42 = vunpack.c.l.b16 %v6411_v17  ;;  %v6415_v41 = vunpack.c.h.b16 %v6411_v17  ;;  %v6499_v20 = vpop.permute.xlu1 %6498  ;;  %v6446_v17 = vmul.f32 %v13744_v37, %v6445_v29 }
 0x8b2   : > { %v6416_v47 = vrot.slane %v6414_v42, 7  ;;  %v6418_v19 = vrot.slane %v6415_v41, 7  ;;  %v6502_v42 = vrot.slane %v6495_v15, 4 }
 0x8b4   : > { %v6417_v44 = vsel %vm858_vm4, %v6416_v47, %v6412_v5  ;;  %v6419_v34 = vsel %vm858_vm4, %v6418_v19, %v6413_v11  ;;  %v6539_v6 = vpop.permute.xlu1 %6538  ;;  %v6460_v5 = vsel %vm413_vm0, %v6455_v14, %v6458_v32  ;;  %v6476_v11 = vrot.slane %v6473_v28, 4 }
 0x8b5   : > { %v6420_v9 = vpack.c.b16 %v6419_v34, %v6417_v44  ;;  %v6515_v44 = vstv %s13742_s18  ;;  %v6542_v8 = vrot.slane %v6539_v6, 4  ;;  %s10290_s18 = sld [smem:[#allocation5 + $0xd7]] }
 0x8b6   : > { %v6516_v18 = vmul.f32 %v13744_v37, %v6515_v44 }
 0x8b7   : > { %v6427_v10 = vrot.slane %v6420_v9, %v11406_v4  ;;  %v6464_v9 = vadd.f32 %v6460_v5, %v6446_v17 }
 0x8b8   : > { %v6561_v61 = vpop.permute.xlu1 %6560  ;;  %v10233_v57 = vrot.slane %v6516_v18, 9 }
 0x8b9   : > { %v6434_v12 = vrot.slane %v6427_v10, %v11406_v4  ;;  %v6504_v10 = vrot.slane %v6499_v20, 4  ;;  %v6564_v56 = vrot.slane %v6561_v61, 4 }
 0x8bb   : > { %6435 = vrot.lane.b32.xlu0 %v6434_v12, %s14861_s19  ;;  %s13870_s19 = sld [smem:[#allocation5 + $0xd6]] }
 0x8bc   : > { %v6591_v26 = vpop.permute.xlu1 %6590 }
 0x8bd   : > { %v6598_v46 = vrot.slane %v6591_v26, 4 }
 0x8bf   : > { %6456 = vrot.lane.b32.xlu0 %v6451_v24, %s14857_s2 }
 0x8c0   : > { %v6595_v47 = vpop.permute.xlu1 %6594 }
 0x8c3   : > { %6474 = vrot.lane.b32.xlu0 %v6469_v21, %s14855_s25  ;;  %v6478_v21 = vsel %vm432_vm1, %v6473_v28, %v6476_v11 }
 0x8c4   : > { %v6635_v54 = vpop.permute.xlu1 %6634 }
 0x8c7   : > { %6496 = vrot.lane.b32.xlu0 %v6487_v43, %s14856_s10 }
 0x8c8   : > { %v6657_v38 = vpop.permute.xlu1 %6656 }
 0x8cb   : > { %6500 = vrot.lane.b32.xlu0 %v6489_v7, %s14856_s10  ;;  %v6447_v7 = vmul.f32 %v13681_v45, %v6445_v29 }
 0x8cf   : > { %6540 = vrot.lane.b32.xlu0 %v10237_v51, %s14857_s2 }
 0x8d3   : > { %6562 = vrot.lane.b32.xlu0 %v10240_v55, %s14855_s25 }
 0x8d7   : > { %6592 = vrot.lane.b32.xlu0 %v10243_v39, %s14856_s10  ;;  %v6482_v39 = vadd.f32 %v6478_v21, %v6464_v9 }
 0x8db   : > { %6596 = vrot.lane.b32.xlu0 %v10245_v58, %s14856_s10 }
 0x8df   : > { %6636 = vrot.lane.b32.xlu0 %v10251_v62, %s14857_s2 }
 0x8e3   : > { %6658 = vrot.lane.b32.xlu0 %v10254_v35, %s14855_s25  ;;  %v6517_v35 = vmul.f32 %v13681_v45, %v6515_v44 }
 0x8e5   : > { %v10234_v60 = vrot.slane %v6517_v35, 9 }
 0x8e7   : > { %6688 = vrot.lane.b32.xlu0 %v10257_v2, %s14856_s10 }
 0x8eb   : > { %6692 = vrot.lane.b32.xlu0 %v10259_v40, %s14856_s10 }
 0x8ef   : > { %6732 = vrot.lane.b32.xlu0 %v10265_v23, %s14857_s2 }
 0x8f3   : > { %6754 = vrot.lane.b32.xlu0 %v10268_v48, %s14855_s25 }
 0x8f7   : > { %6784 = vrot.lane.b32.xlu0 %v10271_v13, %s14856_s10  ;;  %v6544_v13 = vsel %vm413_vm0, %v6539_v6, %v6542_v8 }
 0x8fb   : > { %6788 = vrot.lane.b32.xlu0 %v10273_v31, %s14856_s10 }
 0x92d   : > { %v6436_v16 = vpop.permute.xlu0 %6435 }
 0x92e   : > { %v6437_v30 = vrot.slane %v6436_v16, 7 }
 0x930   : > { %v6438_v36 = vsel %vm14863_vm7, %v6437_v30, %v6436_v16 }
 0x931   : > { %6443 = vst.msk [vmem:[#allocation3 + $0x14] sm:$0x7] %vm6442_vm5, %v6438_v36  ;;  %v6457_v59 = vpop.permute.xlu0 %6456  ;;  %v6600_v36 = vrot.slane %v6595_v47, 4 }
 0x932   : > { %v6459_v19 = vrot.slane %v6457_v59, 4 }
 0x934   : > { %v6461_v51 = vsel %vm413_vm0, %v6457_v59, %v6459_v19 }
 0x935   : > { %v6475_v0 = vpop.permute.xlu0 %6474  ;;  %v6465_v25 = vadd.f32 %v6461_v51, %v6447_v7 }
 0x936   : > { %v6477_v43 = vrot.slane %v6475_v0, 4 }
 0x938   : > { %v6479_v58 = vsel %vm432_vm1, %v6475_v0, %v6477_v43 }
 0x939   : > { %v6497_v53 = vpop.permute.xlu0 %6496  ;;  %v6483_v40 = vadd.f32 %v6479_v58, %v6465_v25  ;;  %v6707_v58 = vstv %s13770_s9  ;;  %s13893_s9 = sld [smem:[#allocation5 + $0xe6]] }
 0x93a   : > { %v6503_v41 = vrot.slane %v6497_v53, 4  ;;  %v6687_v53 = vpop.permute.xlu1 %6686 }
 0x93c   : > { %v6506_v12 = vsel %vm461_vm2, %v6502_v42, %v6503_v41 }
 0x93d   : > { %v6501_v34 = vpop.permute.xlu0 %6500  ;;  %v6507_v63 = vsel %vm463_vm3, %v6495_v15, %v6506_v12  ;;  %v6611_v15 = vstv %s13757_s26  ;;  %s13878_s26 = sld [smem:[#allocation5 + $0xf5]] }
 0x93e   : > { %v6505_v24 = vrot.slane %v6501_v34, 4  ;;  %v6512_v62 = vadd.f32 %v6507_v63, %v6482_v39  ;;  %v6612_v17 = vmul.f32 %v13744_v37, %v6611_v15  ;;  %v6613_v9 = vmul.f32 %v13681_v45, %v6611_v15 }
 0x93f   : > { %v6660_v63 = vrot.slane %v6657_v38, 4  ;;  %v6694_v39 = vrot.slane %v6687_v53, 4  ;;  %v6709_v15 = vmul.f32 %v13681_v45, %v6707_v58 }
 0x940   : > { %v6508_v27 = vsel %vm461_vm2, %v6504_v10, %v6505_v24  ;;  %v6526_v23 = vadd.f32 %v10233_v57, %v6512_v62  ;;  %v10247_v34 = vrot.slane %v6612_v17, 10  ;;  %v6638_v10 = vrot.slane %v6635_v54, 4  ;;  %v6691_v24 = vpop.permute.xlu1 %6690 }
 0x941   : > { %v6541_v55 = vpop.permute.xlu0 %6540  ;;  %v6509_v2 = vsel %vm463_vm3, %v6499_v20, %v6508_v27  ;;  %v6566_v20 = vsel %vm432_vm1, %v6561_v61, %v6564_v56  ;;  %v10248_v7 = vrot.slane %v6613_v9, 10  ;;  %v6662_v8 = vsel %vm432_vm1, %v6657_v38, %v6660_v63 }
 0x942   : > { %v6513_v48 = vadd.f32 %v6509_v2, %v6483_v40  ;;  %v6543_v31 = vrot.slane %v6541_v55, 4  ;;  %v6548_v16 = vadd.f32 %v6544_v13, %v6526_v23  ;;  %v6640_v51 = vsel %vm413_vm0, %v6635_v54, %v6638_v10 }
 0x943   : > { %v6708_v23 = vmul.f32 %v13744_v37, %v6707_v58 }
 0x944   : > { %v6527_v30 = vadd.f32 %v10234_v60, %v6513_v48  ;;  %v6545_v0 = vsel %vm413_vm0, %v6541_v55, %v6543_v31  ;;  %v6570_v41 = vadd.f32 %v6566_v20, %v6548_v16  ;;  %v6731_v25 = vpop.permute.xlu1 %6730 }
 0x945   : > { %v6563_v33 = vpop.permute.xlu0 %6562  ;;  %v6734_v16 = vrot.slane %v6731_v25, 4 }
 0x946   : > { %v6565_v29 = vrot.slane %v6563_v33, 4  ;;  %v6549_v5 = vadd.f32 %v6545_v0, %v6527_v30 }
 0x948   : > { %v6567_v19 = vsel %vm432_vm1, %v6563_v33, %v6565_v29  ;;  %v6696_v33 = vrot.slane %v6691_v24, 4  ;;  %v6753_v31 = vpop.permute.xlu1 %6752  ;;  %v10262_v29 = vrot.slane %v6709_v15, 11 }
 0x949   : > { %v6593_v14 = vpop.permute.xlu0 %6592  ;;  %v6571_v21 = vadd.f32 %v6567_v19, %v6549_v5  ;;  %v6756_v17 = vrot.slane %v6753_v31, 4 }
 0x94a   : > { %v6599_v28 = vrot.slane %v6593_v14, 4 }
 0x94b   : > { %v6758_v19 = vsel %vm432_vm1, %v6753_v31, %v6756_v17 }
 0x94c   : > { %v6602_v59 = vsel %vm461_vm2, %v6598_v46, %v6599_v28  ;;  %v10261_v28 = vrot.slane %v6708_v23, 11  ;;  %v6783_v20 = vpop.permute.xlu1 %6782 }
 0x94d   : > { %v6597_v32 = vpop.permute.xlu0 %6596  ;;  %v6603_v42 = vsel %vm463_vm3, %v6591_v26, %v6602_v59 }
 0x94e   : > { %v6601_v6 = vrot.slane %v6597_v32, 4  ;;  %v6608_v61 = vadd.f32 %v6603_v42, %v6570_v41 }
 0x950   : > { %v6604_v11 = vsel %vm461_vm2, %v6600_v36, %v6601_v6  ;;  %v6622_v43 = vadd.f32 %v10247_v34, %v6608_v61  ;;  %v6787_v9 = vpop.permute.xlu1 %6786 }
 0x951   : > { %v6637_v44 = vpop.permute.xlu0 %6636  ;;  %v6605_v12 = vsel %vm463_vm3, %v6595_v47, %v6604_v11  ;;  %v6790_v11 = vrot.slane %v6783_v20, 4 }
 0x952   : > { %v6609_v18 = vadd.f32 %v6605_v12, %v6571_v21  ;;  %v6639_v55 = vrot.slane %v6637_v44, 4  ;;  %v6644_v62 = vadd.f32 %v6640_v51, %v6622_v43 }
 0x954   : > { %v6623_v57 = vadd.f32 %v10248_v7, %v6609_v18  ;;  %v6641_v47 = vsel %vm413_vm0, %v6637_v44, %v6639_v55  ;;  %v6666_v48 = vadd.f32 %v6662_v8, %v6644_v62  ;;  %v6803_v7 = vstv %s10274_s27  ;;  %s10339_s27 = sld [smem:[#allocation5 + $0xe7]] }
 0x955   : > { %v6659_v26 = vpop.permute.xlu0 %6658 }
 0x956   : > { %v6661_v2 = vrot.slane %v6659_v26, 4  ;;  %v6645_v46 = vadd.f32 %v6641_v47, %v6623_v57 }
 0x958   : > { %v6663_v56 = vsel %vm432_vm1, %v6659_v26, %v6661_v2  ;;  %v6792_v26 = vrot.slane %v6787_v9, 4 }
 0x959   : > { %v6689_v27 = vpop.permute.xlu0 %6688  ;;  %v6667_v59 = vadd.f32 %v6663_v56, %v6645_v46 }
 0x95a   : > { %v6695_v35 = vrot.slane %v6689_v27, 4 }
 0x95c   : > { %v6698_v40 = vsel %vm461_vm2, %v6694_v39, %v6695_v35 }
 0x95d   : > { %v6699_v54 = vsel %vm463_vm3, %v6687_v53, %v6698_v40  ;;  %v6693_v60 = vpop.permute.xlu0 %6692  ;;  %v6736_v53 = vsel %vm413_vm0, %v6731_v25, %v6734_v16 }
 0x95e   : > { %v6697_v13 = vrot.slane %v6693_v60, 4  ;;  %v6704_v14 = vadd.f32 %v6699_v54, %v6666_v48 }
 0x960   : > { %v6700_v38 = vsel %vm461_vm2, %v6696_v33, %v6697_v13  ;;  %v6718_v0 = vadd.f32 %v10261_v28, %v6704_v14 }
 0x961   : > { %v6701_v30 = vsel %vm463_vm3, %v6691_v24, %v6700_v38  ;;  %v6733_v36 = vpop.permute.xlu0 %6732 }
 0x962   : > { %v6705_v32 = vadd.f32 %v6701_v30, %v6667_v59  ;;  %v6735_v6 = vrot.slane %v6733_v36, 4  ;;  %v6740_v41 = vadd.f32 %v6736_v53, %v6718_v0 }
 0x964   : > { %v6719_v5 = vadd.f32 %v10262_v29, %v6705_v32  ;;  %v6737_v44 = vsel %vm413_vm0, %v6733_v36, %v6735_v6  ;;  %v6762_v12 = vadd.f32 %v6758_v19, %v6740_v41 }
 0x965   : > { %v6755_v42 = vpop.permute.xlu0 %6754 }
 0x966   : > { %v6757_v61 = vrot.slane %v6755_v42, 4  ;;  %v6741_v24 = vadd.f32 %v6737_v44, %v6719_v5 }
 0x968   : > { %v6759_v43 = vsel %vm432_vm1, %v6755_v42, %v6757_v61 }
 0x969   : > { %v6785_v34 = vpop.permute.xlu0 %6784  ;;  %v6763_v39 = vadd.f32 %v6759_v43, %v6741_v24 }
 0x96a   : > { %v6791_v10 = vrot.slane %v6785_v34, 4 }
 0x96c   : > { %v6794_v21 = vsel %vm461_vm2, %v6790_v11, %v6791_v10 }
 0x96d   : > { %v6795_v18 = vsel %vm463_vm3, %v6783_v20, %v6794_v21  ;;  %v6789_v51 = vpop.permute.xlu0 %6788 }
 0x96e   : > { %v6800_v63 = vadd.f32 %v6795_v18, %v6762_v12  ;;  %v6793_v55 = vrot.slane %v6789_v51, 4 }
 0x970   : > { %v6804_v27 = vadd.f32 %v6803_v7, %v6800_v63  ;;  %v6796_v58 = vsel %vm461_vm2, %v6792_v26, %v6793_v55  ;;  %v7011_v26 = vstv %s10278_s21  ;;  %v7029_v63 = vstv %s10279_s23  ;;  %s13904_s21 = sld [smem:[#allocation5 + $0xf6]] }
 0x971   : > { %v6797_v25 = vsel %vm463_vm3, %v6787_v9, %v6796_v58  ;;  %v7013_v18 = vmul.f32 %v13681_v45, %v7011_v26  ;;  %v7012_v51 = vmul.f32 %v13744_v37, %v7011_v26  ;;  %v7031_v55 = vmul.f32 %v13681_v45, %v7029_v63  ;;  %v13832_v58 = vld [vmem:[#allocation2 + $0x8] sm:$0xf]  ;;  %s10388_s23 = sld [smem:[#allocation5 + $0xf7]] }
 0x972   : > { %v6806_v62 = vmax.f32 %v6804_v27, 0.0  ;;  %v6801_v57 = vadd.f32 %v6797_v25, %v6763_v39  ;;  %v7030_v39 = vmul.f32 %v13744_v37, %v7029_v63  ;;  %v7047_v27 = vstv %s10280_s30  ;;  %s13931_s30 = sld [smem:[#allocation5 + $0xe9]] }
 0x973   : > { %v7049_v25 = vmul.f32 %v13832_v58, %v7047_v27 }
 0x974   : > { %v6813_v35 = vrot.slane %v6806_v62, %v11392_v52  ;;  %v6817_v8 = vrot.slane %v6806_v62, %v11396_v50  ;;  %v6805_v47 = vadd.f32 %v6803_v7, %v6801_v57  ;;  %v7048_v62 = vmul.f32 %v13744_v37, %v7047_v27 }
 0x975   : > { %v7091_v57 = vstv %s13824_s1  ;;  %s13937_s1 = sld [smem:[#allocation5 + $0xda]] }
 0x976   : > { %v6831_v2 = vpack.c.bf16 %v6817_v8, %v6817_v8  ;;  %v10275_v33 = vpack.c.bf16 %v6817_v8, %v6813_v35  ;;  %v6807_v40 = vmax.f32 %v6805_v47, 0.0  ;;  %v13839_v35 = vld [vmem:[#allocation2 + $0x14] sm:$0xf]  ;;  %v7050_v47 = vmul.f32 %v13681_v45, %v7047_v27 }
 0x977   : > { %v7051_v8 = vmul.f32 %v13839_v35, %v7047_v27 }
 0x978   : > { %v6845_v23 = vrot.slane %v10275_v33, %v11406_v4  ;;  %v6931_v54 = vrot.slane %v6831_v2, %v11406_v4  ;;  %v6821_v60 = vrot.slane %v6807_v40, %v11392_v52  ;;  %v6825_v48 = vrot.slane %v6807_v40, %v11396_v50 }
 0x979   : > { %v7092_v2 = vmul.f32 %v13744_v37, %v7091_v57  ;;  %v7492_v33 = vstv %s10327_s0  ;;  %s10304_s0 = sld [smem:[#allocation5 + $0xdb]] }
 0x97a   : > { %v6852_v46 = vrot.slane %v6845_v23, %v11406_v4  ;;  %v6938_v13 = vrot.slane %v6931_v54, %v11406_v4  ;;  %v6833_v56 = vpack.c.bf16 %v6825_v48, %v6825_v48  ;;  %v10276_v31 = vpack.c.bf16 %v6825_v48, %v6821_v60 }
 0x97b   : > { %v7494_v40 = vmul.f32 %v13681_v45, %v7492_v33  ;;  %v10285_v23 = vrot.slane %v7092_v2, 9  ;;  %v7976_v54 = vstv %s10376_s3  ;;  %v7493_v60 = vmul.f32 %v13744_v37, %v7492_v33  ;;  %s13944_s3 = sld [smem:[#allocation5 + $0xf9]] }
 0x97c   : > { %v6860_v14 = vrot.slane %v10276_v31, %v11406_v4  ;;  %v6945_v28 = vrot.slane %v6833_v56, %v11406_v4  ;;  %v6874_v38 = vrot.slane %v6852_v46, %v11419_v22  ;;  %v6959_v15 = vrot.slane %v6938_v13, %v11419_v22 }
 0x97d   : > { %v7978_v48 = vmul.f32 %v13681_v45, %v7976_v54  ;;  %v7528_v46 = vstv %s10329_s24  ;;  %v7510_v13 = vstv %s10328_s20  ;;  %s13956_s24 = sld [smem:[#allocation5 + $0xea]] }
 0x97e   : > { %v6867_v16 = vrot.slane %v6860_v14, %v11406_v4  ;;  %v6952_v30 = vrot.slane %v6945_v28, %v11406_v4  ;;  %v6966_v20 = vrot.slane %v6959_v15, %v11419_v22  ;;  %v6881_v0 = vrot.slane %v6874_v38, %v11419_v22  ;;  %s10353_s20 = sld [smem:[#allocation5 + $0xeb]] }
 0x97f   : > { %v7531_v56 = vmul.f32 %v13681_v45, %v7528_v46  ;;  %v7512_v31 = vmul.f32 %v13681_v45, %v7510_v13  ;;  %v7977_v14 = vmul.f32 %v13744_v37, %v7976_v54  ;;  %v7532_v28 = vmul.f32 %v13839_v35, %v7528_v46 }
 0x980   : > { %v6888_v36 = vrot.slane %v6867_v16, %v11419_v22  ;;  %v6973_v59 = vrot.slane %v6952_v30, %v11419_v22  ;;  %v6981_v42 = vunpack.c.l.b16 %v6966_v20  ;;  %v6896_v41 = vunpack.c.l.b16 %v6881_v0 }
 0x981   : > { %v6897_v11 = vunpack.c.h.b16 %v6881_v0  ;;  %v7994_v38 = vstv %s13851_s12  ;;  %v7511_v15 = vmul.f32 %v13744_v37, %v7510_v13  ;;  %v8012_v30 = vstv %s10378_s17  ;;  %s13967_s12 = sld [smem:[#allocation5 + $0xfa]] }
 0x982   : > { %v6895_v29 = vrot.slane %v6888_v36, %v11419_v22  ;;  %v6980_v32 = vrot.slane %v6973_v59, %v11419_v22  ;;  %v7996_v16 = vmul.f32 %v13681_v45, %v7994_v38  ;;  %v8016_v36 = vmul.f32 %v13839_v35, %v8012_v30  ;;  %s13973_s17 = sld [smem:[#allocation5 + $0xd0]] }
 0x983   : > { %v8015_v59 = vmul.f32 %v13681_v45, %v8012_v30  ;;  %v7530_v20 = vmul.f32 %v13832_v58, %v7528_v46  ;;  %v7529_v0 = vmul.f32 %v13744_v37, %v7528_v46 }
 0x984   : > { %v6982_v53 = vunpack.c.l.b16 %v6980_v32  ;;  %v6898_v17 = vunpack.c.l.b16 %v6895_v29  ;;  %v6899_v6 = vunpack.c.h.b16 %v6895_v29  ;;  %v8013_v29 = vmul.f32 %v13744_v37, %v8012_v30 }
 0x985   : > { %v7995_v32 = vmul.f32 %v13744_v37, %v7994_v38 }
 0x986   : > { %v6983_v5 = vrot.slane %v6982_v53, 7  ;;  %v6900_v19 = vrot.slane %v6898_v17, 7  ;;  %v6902_v44 = vrot.slane %v6899_v6, 7  ;;  %v7093_v53 = vmul.f32 %v13681_v45, %v7091_v57 }
 0x987   : > { %v7113_v17 = vstv %s13870_s19  ;;  %v7572_v6 = vstv %s13872_s13  ;;  %v8078_v57 = vstv %s13904_s21  ;;  %s10402_s19 = sld [smem:[#allocation5 + $0xfb]] }
 0x988   : > { %v6984_v61 = vsel %vm858_vm4, %v6983_v5, %v6981_v42  ;;  %v6901_v34 = vsel %vm858_vm4, %v6900_v19, %v6896_v41  ;;  %v6903_v9 = vsel %vm858_vm4, %v6902_v44, %v6897_v11  ;;  %v10286_v42 = vrot.slane %v7093_v53, 9  ;;  %s13991_s13 = sld [smem:[#allocation5 + $0xd4]] }
 0x989   : > { %v6985_v10 = vpack.c.b16 %v6984_v61, %v6984_v61  ;;  %v6904_v12 = vpack.c.b16 %v6903_v9, %v6901_v34  ;;  %v8014_v41 = vmul.f32 %v13832_v58, %v8012_v30  ;;  %v7115_v5 = vmul.f32 %v13681_v45, %v7113_v17  ;;  %s14042_s21 = sld [smem:[#allocation5 + $0xf0]] }
 0x98a   : > { %v7574_v11 = vmul.f32 %v13681_v45, %v7572_v6  ;;  %v7135_v19 = vstv %s10290_s18  ;;  %v8056_v44 = vstv %s13878_s26  ;;  %v8080_v2 = vmul.f32 %v13681_v45, %v8078_v57  ;;  %s14014_s18 = sld [smem:[#allocation5 + $0xe0]] }
 0x98b   : > { %v6992_v24 = vrot.slane %v6985_v10, %v11406_v4  ;;  %v6911_v21 = vrot.slane %v6904_v12, %v11406_v4  ;;  %v10289_v61 = vrot.slane %v7115_v5, 9  ;;  %v7138_v9 = vmul.f32 %v13681_v45, %v7135_v19  ;;  %s14025_s26 = sld [smem:[#allocation5 + $0xed]] }
 0x98c   : > { %v10335_v34 = vrot.slane %v7574_v11, 9  ;;  %v8058_v10 = vmul.f32 %v13681_v45, %v8056_v44  ;;  %v7139_v26 = vmul.f32 %v13839_v35, %v7135_v19  ;;  %v8057_v33 = vmul.f32 %v13744_v37, %v8056_v44 }
 0x98d   : > { %v6999_v43 = vrot.slane %v6992_v24, %v11406_v4  ;;  %v6918_v7 = vrot.slane %v6911_v21, %v11406_v4  ;;  %v10293_v12 = vrot.slane %v7138_v9, 9  ;;  %v7573_v21 = vmul.f32 %v13744_v37, %v7572_v6 }
 0x98e   : > { %v10384_v24 = vrot.slane %v8058_v10, 9  ;;  %v7137_v54 = vmul.f32 %v13832_v58, %v7135_v19  ;;  %v7668_v53 = vstv %s13931_s30  ;;  %v7209_v11 = vstv %s13937_s1  ;;  %s14056_s30 = sld [smem:[#allocation5 + $0xfd]] }
 0x98f   : > { %7000 = vrot.lane.b32.xlu0 %v6999_v43, %s14864_s15  ;;  %6919 = vrot.lane.b32.xlu1 %v6918_v7, %s14864_s15  ;;  %v7594_v43 = vstv %s13893_s9  ;;  %v10334_v7 = vrot.slane %v7573_v21, 9  ;;  %s10298_s15 = sld [smem:[#allocation5 + $0xd9]]  ;;  %v7231_v9 = vstv %s10304_s0 }
 0x990   : > { %v7596_v63 = vmul.f32 %v13681_v45, %v7594_v43  ;;  %v10292_v46 = vrot.slane %v7137_v54, 9  ;;  %v8152_v10 = vstv %s13944_s3  ;;  %v7234_v21 = vmul.f32 %v13681_v45, %v7231_v9  ;;  %s14028_s9 = sld [smem:[#allocation5 + $0xdd]] }
 0x991   : > { %s14097_s1 = sld [smem:[#allocation5 + $0xef]] }
 0x992   : > { %v10338_v27 = vrot.slane %v7596_v63, 9  ;;  %v7690_v63 = vstv %s13956_s24  ;;  %s14103_s0 = sld [smem:[#allocation5 + $0xe4]] }
 0x993   : > { %7018 = vrot.lane.b32.xlu0 %v7013_v18, %s14857_s2  ;;  %7016 = vrot.lane.b32.xlu1 %v7012_v51, %s14857_s2  ;;  %v10294_v18 = vrot.slane %v7139_v26, 9  ;;  %v7114_v51 = vmul.f32 %v13744_v37, %v7113_v17  ;;  %v8154_v26 = vmul.f32 %v13681_v45, %v8152_v10  ;;  %s14115_s3 = sld [smem:[#allocation5 + $0xfe]] }
 0x994   : > { %s14117_s24 = sld [smem:[#allocation5 + $0xf4]] }
 0x995   : > { %v7187_v17 = vstv %s10298_s15  ;;  %s14080_s15 = sld [smem:[#allocation5 + $0xee]] }
 0x996   : > { %v7189_v5 = vmul.f32 %v13681_v45, %v7187_v17 }
 0x997   : > { %7036 = vrot.lane.b32.xlu0 %v7031_v55, %s14855_s25  ;;  %7034 = vrot.lane.b32.xlu1 %v7030_v39, %s14855_s25  ;;  %v7616_v55 = vstv %s10339_s27  ;;  %v10288_v39 = vrot.slane %v7114_v51, 9  ;;  %v7235_v51 = vmul.f32 %v13839_v35, %v7231_v9  ;;  %s14039_s27 = sld [smem:[#allocation5 + $0xde]] }
 0x998   : > { %v7617_v38 = vmul.f32 %v13744_v37, %v7616_v55  ;;  %v10300_v44 = vrot.slane %v7189_v5, 10 }
 0x99b   : > { %7058 = vrot.lane.b32.xlu0 %v7049_v25, %s14856_s10  ;;  %7056 = vrot.lane.b32.xlu1 %v7048_v62, %s14856_s10  ;;  %v7620_v25 = vmul.f32 %v13839_v35, %v7616_v55  ;;  %v7619_v62 = vmul.f32 %v13681_v45, %v7616_v55 }
 0x99f   : > { %7062 = vrot.lane.b32.xlu0 %v7051_v8, %s14856_s10  ;;  %7060 = vrot.lane.b32.xlu1 %v7050_v47, %s14856_s10  ;;  %v10343_v8 = vrot.slane %v7620_v25, 9  ;;  %v10342_v47 = vrot.slane %v7619_v62, 9  ;;  %v7692_v25 = vmul.f32 %v13681_v45, %v7690_v63  ;;  %v13975_v62 = vstv %s10353_s20  ;;  %s14152_s20 = sld [smem:[#allocation5 + $0xff]] }
 0x9a3   : > { %7499 = vrot.lane.b32.xlu0 %v7494_v40, %s14857_s2  ;;  %7100 = vrot.lane.b32.xlu1 %v10285_v23, %s14857_s2  ;;  %v10387_v40 = vrot.slane %v8080_v2, 9  ;;  %v10383_v23 = vrot.slane %v8057_v33, 9  ;;  %v7715_v2 = vmul.f32 %v13681_v45, %v13975_v62  ;;  %v8174_v33 = vstv %s13967_s12  ;;  %s14298_s12 = sld [smem:[#allocation5 + $0xdc]] }
 0x9a7   : > { %7497 = vrot.lane.b32.xlu0 %v7493_v60, %s14857_s2  ;;  %7983 = vrot.lane.b32.xlu1 %v7978_v48, %s14857_s2  ;;  %v7136_v60 = vmul.f32 %v13744_v37, %v7135_v19  ;;  %v8100_v48 = vstv %s10388_s23  ;;  %s10318_s23 = sld [smem:[#allocation5 + $0xdf]] }
 0x9a9   : > { %v10291_v13 = vrot.slane %v7136_v60, 9 }
 0x9ab   : > { %7541 = vrot.lane.b32.xlu0 %v7531_v56, %s14856_s10  ;;  %7517 = vrot.lane.b32.xlu1 %v7512_v31, %s14855_s25  ;;  %v8103_v56 = vmul.f32 %v13681_v45, %v8100_v48  ;;  %v7595_v31 = vmul.f32 %v13744_v37, %v7594_v43  ;;  %v7669_v43 = vmul.f32 %v13744_v37, %v7668_v53 }
 0x9af   : > { %7981 = vrot.lane.b32.xlu0 %v7977_v14, %s14857_s2  ;;  %7543 = vrot.lane.b32.xlu1 %v7532_v28, %s14856_s10  ;;  %v10391_v14 = vrot.slane %v8103_v56, 9  ;;  %v10337_v28 = vrot.slane %v7595_v31, 9  ;;  %v8153_v56 = vmul.f32 %v13744_v37, %v8152_v10 }
 0x9b3   : > { %7515 = vrot.lane.b32.xlu0 %v7511_v15, %s14855_s25  ;;  %8001 = vrot.lane.b32.xlu1 %v7996_v16, %s14855_s25  ;;  %v8104_v15 = vmul.f32 %v13839_v35, %v8100_v48  ;;  %v10340_v16 = vrot.slane %v7617_v38, 9  ;;  %v7233_v38 = vmul.f32 %v13832_v58, %v7231_v9 }
 0x9b5   : > { %v10392_v30 = vrot.slane %v8104_v15, 9 }
 0x9b7   : > { %8027 = vrot.lane.b32.xlu0 %v8016_v36, %s14856_s10  ;;  %8025 = vrot.lane.b32.xlu1 %v8015_v59, %s14856_s10  ;;  %v8079_v36 = vmul.f32 %v13744_v37, %v8078_v57  ;;  %v7618_v59 = vmul.f32 %v13832_v58, %v7616_v55  ;;  %v10348_v55 = vrot.slane %v7669_v43, 10  ;;  %v7716_v57 = vmul.f32 %v13839_v35, %v13975_v62 }
 0x9b9   : > { %v10357_v60 = vrot.slane %v7716_v57, 10 }
 0x9bb   : > { %7539 = vrot.lane.b32.xlu0 %v7530_v20, %s14856_s10  ;;  %7537 = vrot.lane.b32.xlu1 %v7529_v0, %s14856_s10  ;;  %v10386_v20 = vrot.slane %v8079_v36, 9  ;;  %v10341_v0 = vrot.slane %v7618_v59, 9 }
 0x9bf   : > { %8021 = vrot.lane.b32.xlu0 %v8013_v29, %s14856_s10  ;;  %7999 = vrot.lane.b32.xlu1 %v7995_v32, %s14855_s25  ;;  %v8102_v29 = vmul.f32 %v13832_v58, %v8100_v48  ;;  %v8101_v32 = vmul.f32 %v13744_v37, %v8100_v48  ;;  %v7007_v48 = vstv %s13973_s17  ;;  %s14304_s17 = sld [smem:[#allocation5 + $0xec]] }
 0x9c0   : > { %v7009_v15 = vmul.f32 %v13681_v45, %v7007_v48 }
 0x9c1   : > { %v10390_v6 = vrot.slane %v8102_v29, 9  ;;  %v7008_v29 = vmul.f32 %v13744_v37, %v7007_v48 }
 0x9c3   : > { %7102 = vrot.lane.b32.xlu0 %v10286_v42, %s14857_s2  ;;  %8023 = vrot.lane.b32.xlu1 %v8014_v41, %s14856_s10  ;;  %v10389_v42 = vrot.slane %v8101_v32, 9  ;;  %v7670_v41 = vmul.f32 %v13681_v45, %v7668_v53 }
 0x9c5   : > { %v10349_v19 = vrot.slane %v7670_v41, 10 }
 0x9c7   : > { %7124 = vrot.lane.b32.xlu0 %v10289_v61, %s14855_s25  ;;  %7583 = vrot.lane.b32.xlu1 %v10335_v34, %s14857_s2  ;;  %v7211_v61 = vmul.f32 %v13681_v45, %v7209_v11  ;;  %v7188_v34 = vmul.f32 %v13744_v37, %v7187_v17  ;;  %v10306_v17 = vrot.slane %v7233_v38, 10 }
 0x9cb   : > { %7156 = vrot.lane.b32.xlu0 %v10293_v12, %s14856_s10  ;;  %8067 = vrot.lane.b32.xlu1 %v10384_v24, %s14857_s2  ;;  %v10303_v12 = vrot.slane %v7211_v61, 10  ;;  %v10299_v24 = vrot.slane %v7188_v34, 10  ;;  %v7077_v61 = vstv %s13991_s13  ;;  %s14330_s13 = sld [smem:[#allocation8 + $0xd]] }
 0x9cc   : > { %v7078_v43 = vmul.f32 %v13744_v37, %v7077_v61 }
 0x9cf   : > { %7581 = vrot.lane.b32.xlu0 %v10334_v7, %s14857_s2  ;;  %7158 = vrot.lane.b32.xlu1 %v10294_v18, %s14856_s10  ;;  %v10307_v7 = vrot.slane %v7234_v21, 10  ;;  %v10398_v18 = vrot.slane %v8154_v26, 10 }
 0x9d3   : > { %7122 = vrot.lane.b32.xlu0 %v10288_v39, %s14855_s25  ;;  %7605 = vrot.lane.b32.xlu1 %v10338_v27, %s14855_s25  ;;  %v10308_v39 = vrot.slane %v7235_v51, 10  ;;  %v7210_v27 = vmul.f32 %v13744_v37, %v7209_v11  ;;  %v7713_v51 = vmul.f32 %v13744_v37, %v13975_v62 }
 0x9d7   : > { %7639 = vrot.lane.b32.xlu0 %v10343_v8, %s14856_s10  ;;  %7637 = vrot.lane.b32.xlu1 %v10342_v47, %s14856_s10  ;;  %v10302_v8 = vrot.slane %v7210_v27, 10  ;;  %v10352_v47 = vrot.slane %v7692_v25, 10 }
 0x9db   : > { %8089 = vrot.lane.b32.xlu0 %v10387_v40, %s14855_s25  ;;  %8065 = vrot.lane.b32.xlu1 %v10383_v23, %s14857_s2 }
 0x9df   : > { %7154 = vrot.lane.b32.xlu0 %v10292_v46, %s14856_s10  ;;  %7152 = vrot.lane.b32.xlu1 %v10291_v13, %s14856_s10  ;;  %v10356_v46 = vrot.slane %v7715_v2, 10  ;;  %v8176_v13 = vmul.f32 %v13681_v45, %v8174_v33 }
 0x9e1   : > { %v10401_v59 = vrot.slane %v8176_v13, 10 }
 0x9e3   : > { %8121 = vrot.lane.b32.xlu0 %v10391_v14, %s14856_s10  ;;  %7603 = vrot.lane.b32.xlu1 %v10337_v28, %s14855_s25 }
 0x9e7   : > { %7633 = vrot.lane.b32.xlu0 %v10340_v16, %s14856_s10  ;;  %8123 = vrot.lane.b32.xlu1 %v10392_v30, %s14856_s10  ;;  %v7232_v30 = vmul.f32 %v13744_v37, %v7231_v9 }
 0x9e9   : > { %v10305_v41 = vrot.slane %v7232_v30, 10  ;;  %v7764_v30 = vstv %s14025_s26  ;;  %s14417_s26 = sld [smem:[#allocation8 + $0xf]] }
 0x9eb   : > { %8087 = vrot.lane.b32.xlu0 %v10386_v20, %s14855_s25  ;;  %7635 = vrot.lane.b32.xlu1 %v10341_v0, %s14856_s10  ;;  %v10397_v20 = vrot.slane %v8153_v56, 10  ;;  %v14001_v0 = vstv %s10402_s19  ;;  %s14309_s19 = sld [smem:[#allocation5 + $0xfc]] }
 0x9ec   : > { %v8199_v5 = vmul.f32 %v13681_v45, %v14001_v0 }
 0x9ef   : > { %8119 = vrot.lane.b32.xlu0 %v10390_v6, %s14856_s10  ;;  %8117 = vrot.lane.b32.xlu1 %v10389_v42, %s14856_s10 }
 0x9f3   : > { %7679 = vrot.lane.b32.xlu0 %v10349_v19, %s14857_s2  ;;  %7198 = vrot.lane.b32.xlu1 %v10300_v44, %s14857_s2  ;;  %v7691_v44 = vmul.f32 %v13744_v37, %v7690_v63  ;;  %v8200_v63 = vmul.f32 %v13839_v35, %v14001_v0 }
 0x9f5   : > { %v10406_v48 = vrot.slane %v8200_v63, 10  ;;  %v8248_v63 = vstv %s14056_s30 }
 0x9f7   : > { %7220 = vrot.lane.b32.xlu0 %v10303_v12, %s14855_s25  ;;  %7196 = vrot.lane.b32.xlu1 %v10299_v24, %s14857_s2 }
 0x9fb   : > { %7252 = vrot.lane.b32.xlu0 %v10307_v7, %s14856_s10  ;;  %8163 = vrot.lane.b32.xlu1 %v10398_v18, %s14857_s2  ;;  %v10405_v7 = vrot.slane %v8199_v5, 10  ;;  %v10351_v18 = vrot.slane %v7691_v44, 10 }
 0x9ff   : > { %7677 = vrot.lane.b32.xlu0 %v10348_v55, %s14857_s2  ;;  %7254 = vrot.lane.b32.xlu1 %v10308_v39, %s14856_s10 }
 0xa01   : > { %v7001_v40 = vpop.permute.xlu0 %7000  ;;  %v6920_v23 = vpop.permute.xlu1 %6919 }
 0xa02   : > { %7005 = vst.msk [vmem:[#allocation3 + $0x18] sm:$0x1] %vm7004_vm9, %v7001_v40  ;;  %v6921_v54 = vrot.slane %v6920_v23, 7 }
 0xa03   : > { %7218 = vrot.lane.b32.xlu0 %v10302_v8, %s14855_s25  ;;  %7701 = vrot.lane.b32.xlu1 %v10352_v47, %s14855_s25  ;;  %v8175_v8 = vmul.f32 %v13744_v37, %v8174_v33 }
 0xa04   : > { %v6922_v31 = vsel %vm14865_vm15, %v6921_v54, %v6920_v23  ;;  %v7714_v23 = vmul.f32 %v13832_v58, %v13975_v62  ;;  %v10282_v54 = vrot.slane %v7078_v43, 9 }
 0xa05   : > { %6924 = vst.msk [vmem:[#allocation3 + $0x16] sm:$0x3] %vm12200_vm14, %v6922_v31  ;;  %v7019_v14 = vpop.permute.xlu0 %7018  ;;  %v7017_v28 = vpop.permute.xlu1 %7016 }
 0xa06   : > { %v7021_v16 = vrot.slane %v7019_v14, 4  ;;  %v7020_v36 = vrot.slane %v7017_v28, 4 }
 0xa07   : > { %7735 = vrot.lane.b32.xlu0 %v10357_v60, %s14856_s10  ;;  %7733 = vrot.lane.b32.xlu1 %v10356_v46, %s14856_s10  ;;  %v10354_v60 = vrot.slane %v7713_v51, 10 }
 0xa08   : > { %v7023_v49 = vsel %vm413_vm0, %v7019_v14, %v7021_v16  ;;  %v7022_v19 = vsel %vm413_vm0, %v7017_v28, %v7020_v36  ;;  %v10400_v14 = vrot.slane %v8175_v8, 10  ;;  %v10355_v28 = vrot.slane %v7714_v23, 10 }
 0xa09   : > { %v7037_v32 = vpop.permute.xlu0 %7036  ;;  %v7035_v53 = vpop.permute.xlu1 %7034  ;;  %v7027_v11 = vadd.f32 %v7023_v49, %v7009_v15  ;;  %v7026_v21 = vadd.f32 %v7022_v19, %v7008_v29  ;;  %v8198_v15 = vmul.f32 %v13832_v58, %v14001_v0  ;;  %v8197_v16 = vmul.f32 %v13744_v37, %v14001_v0 }
 0xa0a   : > { %v7039_v6 = vrot.slane %v7037_v32, 4  ;;  %v7038_v42 = vrot.slane %v7035_v53, 4  ;;  %v7488_v36 = vstv %s14014_s18  ;;  %v7283_v49 = vstv %s14028_s9  ;;  %s14340_s18 = sld [smem:[#allocation8 + $0xe]]  ;;  %s14866_s9 = smov 48  }
 0xa0b   : > { %8185 = vrot.lane.b32.xlu0 %v10401_v59, %s14855_s25  ;;  %8161 = vrot.lane.b32.xlu1 %v10397_v20, %s14857_s2  ;;  %v7305_v19 = vstv %s14039_s27  ;;  %v7284_v43 = vmul.f32 %v13744_v37, %v7283_v49  ;;  %s14867_s27 = smov 32  }
 0xa0c   : > { %v7041_v34 = vsel %vm432_vm1, %v7037_v32, %v7039_v6  ;;  %v7040_v10 = vsel %vm432_vm1, %v7035_v53, %v7038_v42  ;;  %v10404_v42 = vrot.slane %v8198_v15, 10 }
 0xa0d   : > { %v7045_v9 = vadd.f32 %v7041_v34, %v7027_v11  ;;  %v7059_v12 = vpop.permute.xlu0 %7058  ;;  %v7057_v24 = vpop.permute.xlu1 %7056  ;;  %v7044_v55 = vadd.f32 %v7040_v10, %v7026_v21  ;;  %v10313_v23 = vrot.slane %v7284_v43, 11 }
 0xa0e   : > { %v7065_v45 = vrot.slane %v7059_v12, 4  ;;  %v7064_v26 = vrot.slane %v7057_v24, 4 }
 0xa0f   : > { %7250 = vrot.lane.b32.xlu0 %v10306_v17, %s14856_s10  ;;  %7248 = vrot.lane.b32.xlu1 %v10305_v41, %s14856_s10  ;;  %v14060_v17 = vld [vmem:[#allocation2 + $0xc] sm:$0xff]  ;;  %v10403_v41 = vrot.slane %v8197_v16, 10 }
 0xa10   : > { %v7068_v39 = vsel %vm461_vm2, %v7064_v26, %v7065_v45  ;;  %v7766_v6 = vmul.f32 %v14060_v17, %v7764_v30  ;;  %v7490_v0 = vmul.f32 %v14060_v17, %v7488_v36  ;;  %v7285_v5 = vmul.f32 %v14060_v17, %v7283_v49 }
 0xa11   : > { %v7069_v27 = vsel %vm463_vm3, %v7057_v24, %v7068_v39  ;;  %v7063_v25 = vpop.permute.xlu0 %7062  ;;  %v7061_v57 = vpop.permute.xlu1 %7060  ;;  %v14070_v24 = vstv %s10318_s23  ;;  %v7307_v26 = vmul.f32 %v14060_v17, %v7305_v19 }
 0xa12   : > { %v7074_v47 = vadd.f32 %v7069_v27, %v7044_v55  ;;  %v7067_v2 = vrot.slane %v7063_v25, 4  ;;  %v7066_v40 = vrot.slane %v7061_v57, 4  ;;  %v10363_v12 = vrot.slane %v7766_v6, 11 }
 0xa13   : > { %8217 = vrot.lane.b32.xlu0 %v10405_v7, %s14856_s10  ;;  %7699 = vrot.lane.b32.xlu1 %v10351_v18, %s14855_s25  ;;  %v10314_v45 = vrot.slane %v7285_v5, 11  ;;  %v7330_v25 = vmul.f32 %v14060_v17, %v14070_v24 }
 0xa14   : > { %v7070_v46 = vsel %vm461_vm2, %v7066_v40, %v7067_v2  ;;  %v7088_v38 = vadd.f32 %v10282_v54, %v7074_v47  ;;  %v10317_v40 = vrot.slane %v7307_v26, 11  ;;  %v8250_v54 = vmul.f32 %v14060_v17, %v8248_v63 }
 0xa15   : > { %v7071_v33 = vsel %vm463_vm3, %v7061_v57, %v7070_v46  ;;  %v7500_v13 = vpop.permute.xlu0 %7499  ;;  %v7101_v56 = vpop.permute.xlu1 %7100  ;;  %v14086_v57 = vld [vmem:[#allocation2] sm:$0xff] }
 0xa16   : > { %v14044_v62 = vadd.f32 %v7071_v33, %v7045_v9  ;;  %v7104_v31 = vrot.slane %v7101_v56, 4  ;;  %v7502_v59 = vrot.slane %v7500_v13, 4  ;;  %v7972_v9 = vstv %s14042_s21 }
 0xa17   : > { %7729 = vrot.lane.b32.xlu0 %v10354_v60, %s14856_s10  ;;  %8219 = vrot.lane.b32.xlu1 %v10406_v48, %s14856_s10  ;;  %v7489_v8 = vmul.f32 %v14086_v57, %v7488_v36  ;;  %v7974_v2 = vmul.f32 %v14060_v17, %v7972_v9 }
 0xa18   : > { %v7106_v20 = vsel %vm413_vm0, %v7101_v56, %v7104_v31  ;;  %v7504_v11 = vsel %vm413_vm0, %v7500_v13, %v7502_v59  ;;  %v10321_v31 = vrot.slane %v7330_v25, 11  ;;  %v10412_v59 = vrot.slane %v8250_v54, 11 }
 0xa19   : > { %v14058_v29 = vadd.f32 %v7106_v20, %v7088_v38  ;;  %v7498_v32 = vpop.permute.xlu0 %7497  ;;  %v7984_v53 = vpop.permute.xlu1 %7983  ;;  %v7508_v21 = vadd.f32 %v7504_v11, %v7490_v0  ;;  %v7765_v38 = vmul.f32 %v14086_v57, %v7764_v30  ;;  %v7331_v20 = vmul.f32 %v13839_v35, %v14070_v24 }
 0xa1a   : > { %v7501_v7 = vrot.slane %v7498_v32, 4  ;;  %v7986_v18 = vrot.slane %v7984_v53, 4  ;;  %v7786_v30 = vstv %s14080_s15 }
 0xa1b   : > { %8183 = vrot.lane.b32.xlu0 %v10400_v14, %s14855_s25  ;;  %7731 = vrot.lane.b32.xlu1 %v10355_v28, %s14856_s10  ;;  %v10362_v11 = vrot.slane %v7765_v38, 11  ;;  %v8249_v38 = vmul.f32 %v14086_v57, %v8248_v63 }
 0xa1c   : > { %v7503_v60 = vsel %vm413_vm0, %v7498_v32, %v7501_v7  ;;  %v7988_v48 = vsel %vm413_vm0, %v7984_v53, %v7986_v18  ;;  %v7079_v18 = vmul.f32 %v14060_v17, %v7077_v61 }
 0xa1d   : > { %v7542_v44 = vpop.permute.xlu0 %7541  ;;  %v7518_v34 = vpop.permute.xlu1 %7517  ;;  %v7507_v16 = vadd.f32 %v7503_v60, %v7489_v8  ;;  %v7992_v36 = vadd.f32 %v7988_v48, %v7974_v2  ;;  %v7973_v8 = vmul.f32 %v14086_v57, %v7972_v9 }
 0xa1e   : > { %v7520_v10 = vrot.slane %v7518_v34, 4  ;;  %v7547_v37 = vrot.slane %v7542_v44, 4  ;;  %v10283_v48 = vrot.slane %v7079_v18, 9 }
 0xa1f   : > { %8215 = vrot.lane.b32.xlu0 %v10404_v42, %s14856_s10  ;;  %8213 = vrot.lane.b32.xlu1 %v10403_v41, %s14856_s10 }
 0xa20   : > { %v7522_v51 = vsel %vm432_vm1, %v7518_v34, %v7520_v10  ;;  %v7306_v34 = vmul.f32 %v14086_v57, %v7305_v19  ;;  %v7788_v10 = vmul.f32 %v14060_v17, %v7786_v30 }
 0xa21   : > { %v7526_v55 = vadd.f32 %v7522_v51, %v7508_v21  ;;  %v14082_v39 = vpop.permute.xlu0 %7981  ;;  %v7544_v27 = vpop.permute.xlu1 %7543  ;;  %v7558_v51 = vstv %s14103_s0 }
 0xa22   : > { %v7548_v47 = vrot.slane %v7544_v27, 4  ;;  %v7985_v21 = vrot.slane %v14082_v39, 4 }
 0xa23   : > { %7775 = vrot.lane.b32.xlu0 %v10363_v12, %s14857_s2  ;;  %7294 = vrot.lane.b32.xlu1 %v10314_v45, %s14857_s2  ;;  %v14128_v12 = vstv %s14097_s1 }
 0xa24   : > { %v7551_v46 = vsel %vm461_vm2, %v7547_v37, %v7548_v47  ;;  %v7812_v25 = vmul.f32 %v13839_v35, %v14128_v12  ;;  %v10316_v37 = vrot.slane %v7306_v34, 11  ;;  %v10366_v47 = vrot.slane %v7788_v10, 11 }
 0xa25   : > { %v7552_v33 = vsel %vm463_vm3, %v7542_v44, %v7551_v46  ;;  %v7516_v13 = vpop.permute.xlu0 %7515  ;;  %v8002_v56 = vpop.permute.xlu1 %8001  ;;  %v10322_v44 = vrot.slane %v7331_v20, 11  ;;  %v7811_v61 = vmul.f32 %v14060_v17, %v14128_v12  ;;  %v7987_v2 = vsel %vm413_vm0, %v14082_v39, %v7985_v21 }
 0xa26   : > { %v7519_v14 = vrot.slane %v7516_v13, 4  ;;  %v8004_v28 = vrot.slane %v8002_v56, 4  ;;  %v14106_v15 = vadd.f32 %v7552_v33, %v7526_v55  ;;  %v7560_v46 = vmul.f32 %v14060_v17, %v7558_v51 }
 0xa27   : > { %7316 = vrot.lane.b32.xlu0 %v10317_v40, %s14855_s25  ;;  %7292 = vrot.lane.b32.xlu1 %v10313_v23, %s14857_s2  ;;  %v8270_v23 = vstv %s14115_s3  ;;  %v8042_v39 = vstv %s14117_s24 }
 0xa28   : > { %v7521_v49 = vsel %vm432_vm1, %v7516_v13, %v7519_v14  ;;  %v8006_v32 = vsel %vm432_vm1, %v8002_v56, %v8004_v28  ;;  %v10371_v56 = vrot.slane %v7812_v25, 11  ;;  %v10370_v14 = vrot.slane %v7811_v61, 11 }
 0xa29   : > { %v7525_v53 = vadd.f32 %v7521_v49, %v7507_v16  ;;  %v8010_v6 = vadd.f32 %v8006_v32, %v7992_v36  ;;  %v8028_v0 = vpop.permute.xlu0 %8027  ;;  %v8026_v42 = vpop.permute.xlu1 %8025  ;;  %v8272_v28 = vmul.f32 %v14060_v17, %v8270_v23  ;;  %v10332_v49 = vrot.slane %v7560_v46, 9 }
 0xa2a   : > { %v8032_v41 = vrot.slane %v8028_v0, 4  ;;  %v8031_v5 = vrot.slane %v8026_v42, 4  ;;  %v8044_v32 = vmul.f32 %v14060_v17, %v8042_v39  ;;  %v8292_v10 = vstv %s14152_s20 }
 0xa2b   : > { %7348 = vrot.lane.b32.xlu0 %v10321_v31, %s14856_s10  ;;  %8259 = vrot.lane.b32.xlu1 %v10412_v59, %s14857_s2  ;;  %v7991_v31 = vadd.f32 %v7987_v2, %v7973_v8  ;;  %v10415_v63 = vrot.slane %v8272_v28, 11 }
 0xa2c   : > { %v8035_v45 = vsel %vm461_vm2, %v8031_v5, %v8032_v41  ;;  %v7089_v41 = vadd.f32 %v10283_v48, %v14044_v62  ;;  %v10411_v5 = vrot.slane %v8249_v38, 11  ;;  %v7809_v48 = vmul.f32 %v14086_v57, %v14128_v12 }
 0xa2d   : > { %v8036_v26 = vsel %vm463_vm3, %v8026_v42, %v8035_v45  ;;  %v7540_v43 = vpop.permute.xlu0 %7539  ;;  %v7538_v7 = vpop.permute.xlu1 %7537  ;;  %v7329_v42 = vmul.f32 %v13832_v58, %v14070_v24 }
 0xa2e   : > { %v14137_v55 = vadd.f32 %v8036_v26, %v8010_v6  ;;  %v7546_v19 = vrot.slane %v7540_v43, 4  ;;  %v7545_v27 = vrot.slane %v7538_v7, 4  ;;  %v10381_v43 = vrot.slane %v8044_v32, 9 }
 0xa2f   : > { %7773 = vrot.lane.b32.xlu0 %v10362_v11, %s14857_s2  ;;  %7350 = vrot.lane.b32.xlu1 %v10322_v44, %s14856_s10  ;;  %v7328_v11 = vmul.f32 %v14086_v57, %v14070_v24  ;;  %v7570_v24 = vadd.f32 %v10332_v49, %v14106_v15  ;;  %v7810_v32 = vmul.f32 %v13832_v58, %v14128_v12 }
 0xa30   : > { %v7549_v40 = vsel %vm461_vm2, %v7545_v27, %v7546_v19  ;;  %v10320_v27 = vrot.slane %v7329_v42, 11  ;;  %v8054_v46 = vadd.f32 %v10381_v43, %v14137_v55 }
 0xa31   : > { %v7550_v9 = vsel %vm463_vm3, %v7538_v7, %v7549_v40  ;;  %v8022_v54 = vpop.permute.xlu0 %8021  ;;  %v8000_v60 = vpop.permute.xlu1 %7999  ;;  %v7559_v7 = vmul.f32 %v14086_v57, %v7558_v51  ;;  %v10319_v8 = vrot.slane %v7328_v11, 11  ;;  %v8043_v11 = vmul.f32 %v14086_v57, %v8042_v39 }
 0xa32   : > { %v14156_v33 = vadd.f32 %v7550_v9, %v7525_v53  ;;  %v8003_v13 = vrot.slane %v8000_v60, 4  ;;  %v8029_v53 = vrot.slane %v8022_v54, 4 }
 0xa33   : > { %7314 = vrot.lane.b32.xlu0 %v10316_v37, %s14855_s25  ;;  %7797 = vrot.lane.b32.xlu1 %v10366_v47, %s14855_s25  ;;  %v8295_v37 = vmul.f32 %v14060_v17, %v8292_v10  ;;  %v7787_v47 = vmul.f32 %v14086_v57, %v7786_v30  ;;  %v10331_v15 = vrot.slane %v7559_v7, 9 }
 0xa34   : > { %v8005_v16 = vsel %vm432_vm1, %v8000_v60, %v8003_v13 }
 0xa35   : > { %v8009_v36 = vadd.f32 %v8005_v16, %v7991_v31  ;;  %v7103_v59 = vpop.permute.xlu0 %7102  ;;  %v8024_v20 = vpop.permute.xlu1 %8023  ;;  %v10419_v30 = vrot.slane %v8295_v37, 11  ;;  %v10365_v13 = vrot.slane %v7787_v47, 11  ;;  %v7569_v55 = vadd.f32 %v10331_v15, %v14156_v33 }
 0xa36   : > { %v7105_v6 = vrot.slane %v7103_v59, 4  ;;  %v8030_v0 = vrot.slane %v8024_v20, 4  ;;  %v10368_v20 = vrot.slane %v7809_v48, 11 }
 0xa37   : > { %7831 = vrot.lane.b32.xlu0 %v10371_v56, %s14856_s10  ;;  %7829 = vrot.lane.b32.xlu1 %v10370_v14, %s14856_s10  ;;  %v8296_v56 = vmul.f32 %v13839_v35, %v8292_v10  ;;  %v8271_v35 = vmul.f32 %v14086_v57, %v8270_v23  ;;  %v10369_v23 = vrot.slane %v7810_v32, 11 }
 0xa38   : > { %v7107_v44 = vsel %vm413_vm0, %v7103_v59, %v7105_v6  ;;  %v8033_v34 = vsel %vm461_vm2, %v8029_v53, %v8030_v0 }
 0xa39   : > { %v7111_v21 = vadd.f32 %v7107_v44, %v7089_v41  ;;  %v8034_v45 = vsel %vm463_vm3, %v8022_v54, %v8033_v34  ;;  %v7125_v26 = vpop.permute.xlu0 %7124  ;;  %v7584_v62 = vpop.permute.xlu1 %7583  ;;  %v10420_v49 = vrot.slane %v8296_v56, 11  ;;  %v10414_v12 = vrot.slane %v8271_v35, 11 }
 0xa3a   : > { %v7127_v18 = vrot.slane %v7125_v26, 4  ;;  %v7586_v19 = vrot.slane %v7584_v62, 4  ;;  %v14183_v25 = vadd.f32 %v8034_v45, %v8009_v36  ;;  %v8294_v34 = vmul.f32 %v13832_v58, %v8292_v10 }
 0xa3b   : > { %8281 = vrot.lane.b32.xlu0 %v10415_v63, %s14855_s25  ;;  %8257 = vrot.lane.b32.xlu1 %v10411_v5, %s14857_s2  ;;  %s14233_s2 = sld [smem:[#allocation5 + $0xd8]] }
 0xa3c   : > { %v7129_v61 = vsel %vm432_vm1, %v7125_v26, %v7127_v18  ;;  %v7588_v51 = vsel %vm413_vm0, %v7584_v62, %v7586_v19 }
 0xa3d   : > { %v7133_v2 = vadd.f32 %v7129_v61, %v7111_v21  ;;  %v7592_v40 = vadd.f32 %v7588_v51, %v7570_v24  ;;  %v7157_v9 = vpop.permute.xlu0 %7156  ;;  %v8068_v54 = vpop.permute.xlu1 %8067  ;;  %v8293_v21 = vmul.f32 %v14086_v57, %v8292_v10  ;;  %v10418_v24 = vrot.slane %v8294_v34, 11 }
 0xa3e   : > { %v8070_v60 = vrot.slane %v8068_v54, 4  ;;  %v7162_v16 = vrot.slane %v7157_v9, 4 }
 0xa3f   : > { %7346 = vrot.lane.b32.xlu0 %v10320_v27, %s14856_s10  ;;  %7344 = vrot.lane.b32.xlu1 %v10319_v8, %s14856_s10  ;;  %v10380_v27 = vrot.slane %v8043_v11, 9  ;;  %v10417_v58 = vrot.slane %v8293_v21, 11 }
 0xa40   : > { %v8072_v31 = vsel %vm413_vm0, %v8068_v54, %v8070_v60 }
 0xa41   : > { %v8076_v14 = vadd.f32 %v8072_v31, %v8054_v46  ;;  %v7582_v28 = vpop.permute.xlu0 %7581  ;;  %v7159_v38 = vpop.permute.xlu1 %7158  ;;  %v7173_v32 = vstv %s14233_s2 }
 0xa42   : > { %v7585_v36 = vrot.slane %v7582_v28, 4  ;;  %v7163_v59 = vrot.slane %v7159_v38, 4  ;;  %v7175_v11 = vmul.f32 %v14060_v17, %v7173_v32 }
 0xa43   : > { %8313 = vrot.lane.b32.xlu0 %v10419_v30, %s14856_s10  ;;  %7795 = vrot.lane.b32.xlu1 %v10365_v13, %s14855_s25 }
 0xa44   : > { %v7587_v53 = vsel %vm413_vm0, %v7582_v28, %v7585_v36  ;;  %v7166_v6 = vsel %vm461_vm2, %v7162_v16, %v7163_v59 }
 0xa45   : > { %v7591_v0 = vadd.f32 %v7587_v53, %v7569_v55  ;;  %v7167_v42 = vsel %vm463_vm3, %v7157_v9, %v7166_v6  ;;  %v7123_v41 = vpop.permute.xlu0 %7122  ;;  %v7606_v33 = vpop.permute.xlu1 %7605 }
 0xa46   : > { %v7126_v63 = vrot.slane %v7123_v41, 4  ;;  %v7608_v5 = vrot.slane %v7606_v33, 4  ;;  %v14215_v44 = vadd.f32 %v7167_v42, %v7133_v2  ;;  %v8053_v2 = vadd.f32 %v10380_v27, %v14183_v25 }
 0xa47   : > { %7825 = vrot.lane.b32.xlu0 %v10368_v20, %s14856_s10  ;;  %8315 = vrot.lane.b32.xlu1 %v10420_v49, %s14856_s10 }
 0xa48   : > { %v7128_v45 = vsel %vm432_vm1, %v7123_v41, %v7126_v63  ;;  %v7610_v26 = vsel %vm432_vm1, %v7606_v33, %v7608_v5 }
 0xa49   : > { %v7132_v62 = vadd.f32 %v7128_v45, %v14058_v29  ;;  %v7614_v43 = vadd.f32 %v7610_v26, %v7592_v40  ;;  %v7640_v39 = vpop.permute.xlu0 %7639  ;;  %v7638_v7 = vpop.permute.xlu1 %7637 }
 0xa4a   : > { %v7644_v18 = vrot.slane %v7640_v39, 4  ;;  %v7643_v19 = vrot.slane %v7638_v7, 4 }
 0xa4b   : > { %8279 = vrot.lane.b32.xlu0 %v10414_v12, %s14855_s25  ;;  %7827 = vrot.lane.b32.xlu1 %v10369_v23, %s14856_s10  ;;  %s14236_s25 = sld [smem:[#allocation5 + $0xe8]] }
 0xa4c   : > { %v7647_v10 = vsel %vm461_vm2, %v7643_v19, %v7644_v18  ;;  %v10297_v18 = vrot.slane %v7175_v11, 10 }
 0xa4d   : > { %v7648_v8 = vsel %vm463_vm3, %v7638_v7, %v7647_v10  ;;  %v8090_v37 = vpop.permute.xlu0 %8089  ;;  %v8066_v47 = vpop.permute.xlu1 %8065 }
 0xa4e   : > { %v7652_v61 = vadd.f32 %v7648_v8, %v7614_v43  ;;  %v8092_v29 = vrot.slane %v8090_v37, 4  ;;  %v8069_v51 = vrot.slane %v8066_v47, 4 }
 0xa4f   : > { %8311 = vrot.lane.b32.xlu0 %v10418_v24, %s14856_s10  ;;  %8309 = vrot.lane.b32.xlu1 %v10417_v58, %s14856_s10  ;;  %s14245_s10 = sld [smem:[#allocation5 + $0xf8]] }
 0xa50   : > { %v8094_v40 = vsel %vm432_vm1, %v8090_v37, %v8092_v29  ;;  %v8071_v9 = vsel %vm413_vm0, %v8066_v47, %v8069_v51  ;;  %v7185_v51 = vadd.f32 %v10297_v18, %v14215_v44 }
 0xa51   : > { %v8098_v54 = vadd.f32 %v8094_v40, %v8076_v14  ;;  %v8075_v60 = vadd.f32 %v8071_v9, %v8053_v2  ;;  %v7155_v15 = vpop.permute.xlu0 %7154  ;;  %v7153_v48 = vpop.permute.xlu1 %7152  ;;  %v7654_v35 = vstv %s14236_s25 }
 0xa52   : > { %v7161_v46 = vrot.slane %v7155_v15, 4  ;;  %v7160_v30 = vrot.slane %v7153_v48, 4  ;;  %v7656_v5 = vmul.f32 %v14060_v17, %v7654_v35 }
 0xa54   : > { %v7164_v13 = vsel %vm461_vm2, %v7160_v30, %v7161_v46  ;;  %v10346_v7 = vrot.slane %v7656_v5, 10  ;;  %v7655_v30 = vmul.f32 %v14086_v57, %v7654_v35 }
 0xa55   : > { %v7165_v25 = vsel %vm463_vm3, %v7153_v48, %v7164_v13  ;;  %v8122_v56 = vpop.permute.xlu0 %8121  ;;  %v7604_v31 = vpop.permute.xlu1 %7603  ;;  %v8138_v27 = vstv %s14245_s10 }
 0xa56   : > { %v14239_v28 = vadd.f32 %v7165_v25, %v7132_v62  ;;  %v7607_v14 = vrot.slane %v7604_v31, 4  ;;  %v8127_v20 = vrot.slane %v8122_v56, 4  ;;  %v7666_v29 = vadd.f32 %v10346_v7, %v7652_v61 }
 0xa57   : > { %v8140_v2 = vmul.f32 %v14060_v17, %v8138_v27  ;;  %v10345_v44 = vrot.slane %v7655_v30, 10 }
 0xa58   : > { %v7609_v38 = vsel %vm432_vm1, %v7604_v31, %v7607_v14 }
 0xa59   : > { %v7613_v16 = vadd.f32 %v7609_v38, %v7591_v0  ;;  %v7634_v36 = vpop.permute.xlu0 %7633  ;;  %v8124_v59 = vpop.permute.xlu1 %8123  ;;  %v10395_v46 = vrot.slane %v8140_v2, 10 }
 0xa5a   : > { %v8128_v55 = vrot.slane %v8124_v59, 4  ;;  %v7641_v41 = vrot.slane %v7634_v36, 4 }
 0xa5c   : > { %v8131_v49 = vsel %vm461_vm2, %v8127_v20, %v8128_v55 }
 0xa5d   : > { %v8132_v53 = vsel %vm463_vm3, %v8122_v56, %v8131_v49  ;;  %v8088_v6 = vpop.permute.xlu0 %8087  ;;  %v7636_v42 = vpop.permute.xlu1 %7635 }
 0xa5e   : > { %v8091_v33 = vrot.slane %v8088_v6, 4  ;;  %v7642_v63 = vrot.slane %v7636_v42, 4  ;;  %v8136_v0 = vadd.f32 %v8132_v53, %v8098_v54 }
 0xa60   : > { %v8093_v12 = vsel %vm432_vm1, %v8088_v6, %v8091_v33  ;;  %v7645_v23 = vsel %vm461_vm2, %v7641_v41, %v7642_v63  ;;  %v8150_v56 = vadd.f32 %v10395_v46, %v8136_v0 }
 0xa61   : > { %v8097_v34 = vadd.f32 %v8093_v12, %v8075_v60  ;;  %v7646_v21 = vsel %vm463_vm3, %v7634_v36, %v7645_v23  ;;  %v8120_v45 = vpop.permute.xlu0 %8119  ;;  %v8118_v26 = vpop.permute.xlu1 %8117 }
 0xa62   : > { %v8126_v62 = vrot.slane %v8120_v45, 4  ;;  %v8125_v43 = vrot.slane %v8118_v26, 4  ;;  %v7651_v39 = vadd.f32 %v7646_v21, %v7613_v16 }
 0xa64   : > { %v8129_v19 = vsel %vm461_vm2, %v8125_v43, %v8126_v62  ;;  %v7665_v59 = vadd.f32 %v10345_v44, %v7651_v39 }
 0xa65   : > { %v8130_v24 = vsel %vm463_vm3, %v8118_v26, %v8129_v19  ;;  %v7680_v58 = vpop.permute.xlu0 %7679  ;;  %v7199_v10 = vpop.permute.xlu1 %7198 }
 0xa66   : > { %v14258_v8 = vadd.f32 %v8130_v24, %v8097_v34  ;;  %v7682_v37 = vrot.slane %v7680_v58, 4  ;;  %v7201_v47 = vrot.slane %v7199_v10, 4  ;;  %v7269_v24 = vstv %s14298_s12 }
 0xa68   : > { %v7684_v40 = vsel %vm413_vm0, %v7680_v58, %v7682_v37  ;;  %v7203_v9 = vsel %vm413_vm0, %v7199_v10, %v7201_v47  ;;  %v7271_v47 = vmul.f32 %v14060_v17, %v7269_v24 }
 0xa69   : > { %v7688_v54 = vadd.f32 %v7684_v40, %v7666_v29  ;;  %v7207_v60 = vadd.f32 %v7203_v9, %v7185_v51  ;;  %v7221_v15 = vpop.permute.xlu0 %7220  ;;  %v14266_v48 = vpop.permute.xlu1 %7196  ;;  %v7174_v29 = vmul.f32 %v14086_v57, %v7173_v32 }
 0xa6a   : > { %v7223_v7 = vrot.slane %v7221_v15, 4  ;;  %v7200_v32 = vrot.slane %v14266_v48, 4 }
 0xa6b   : > { %v10296_v44 = vrot.slane %v7174_v29, 10 }
 0xa6c   : > { %v7225_v37 = vsel %vm432_vm1, %v7221_v15, %v7223_v7  ;;  %v7750_v15 = vstv %s14304_s17 }
 0xa6d   : > { %v7253_v13 = vpop.permute.xlu0 %7252  ;;  %v8164_v25 = vpop.permute.xlu1 %8163  ;;  %v7229_v9 = vadd.f32 %v7225_v37, %v7207_v60  ;;  %v7184_v7 = vadd.f32 %v10296_v44, %v14239_v28 }
 0xa6e   : > { %v8166_v61 = vrot.slane %v8164_v25, 4  ;;  %v7258_v18 = vrot.slane %v7253_v13, 4 }
 0xa70   : > { %v8168_v31 = vsel %vm413_vm0, %v8164_v25, %v8166_v61  ;;  %v14323_v25 = vmul.f32 %v14086_v57, %v8138_v27 }
 0xa71   : > { %v14270_v14 = vadd.f32 %v8168_v31, %v8150_v56  ;;  %v7678_v38 = vpop.permute.xlu0 %7677  ;;  %v7255_v16 = vpop.permute.xlu1 %7254  ;;  %v10311_v56 = vrot.slane %v7271_v47, 11 }
 0xa72   : > { %v7681_v36 = vrot.slane %v7678_v38, 4  ;;  %v7259_v39 = vrot.slane %v7255_v16, 4 }
 0xa74   : > { %v7683_v20 = vsel %vm413_vm0, %v7678_v38, %v7681_v36  ;;  %v7262_v10 = vsel %vm461_vm2, %v7258_v18, %v7259_v39  ;;  %v7202_v18 = vsel %vm413_vm0, %v14266_v48, %v7200_v32  ;;  %v7365_v32 = vstv %s14330_s13 }
 0xa75   : > { %v14273_v55 = vadd.f32 %v7683_v20, %v7665_v59  ;;  %v14275_v49 = vpop.permute.xlu0 %7218  ;;  %v7702_v35 = vpop.permute.xlu1 %7701  ;;  %v7263_v51 = vsel %vm463_vm3, %v7253_v13, %v7262_v10  ;;  %v8234_v13 = vstv %s14309_s19  ;;  %v7752_v20 = vmul.f32 %v14060_v17, %v7750_v15 }
 0xa76   : > { %v7704_v53 = vrot.slane %v7702_v35, 4  ;;  %v7267_v61 = vadd.f32 %v7263_v51, %v7229_v9  ;;  %v7222_v27 = vrot.slane %v14275_v49, 4  ;;  %v14344_v39 = vmul.f32 %v14060_v17, %v8234_v13 }
 0xa77   : > { %v10360_v28 = vrot.slane %v7752_v20, 11  ;;  %v7846_v20 = vstv %s14340_s18 }
 0xa78   : > { %v7706_v6 = vsel %vm432_vm1, %v7702_v35, %v7704_v53  ;;  %v14338_v53 = vmul.f32 %v14086_v57, %v7269_v24  ;;  %v7224_v9 = vsel %vm432_vm1, %v14275_v49, %v7222_v27 }
 0xa79   : > { %v14278_v42 = vadd.f32 %v7706_v6, %v7688_v54  ;;  %v7736_v41 = vpop.permute.xlu0 %7735  ;;  %v7734_v33 = vpop.permute.xlu1 %7733  ;;  %v10394_v6 = vrot.slane %v14323_v25, 10 }
 0xa7a   : > { %v7740_v54 = vrot.slane %v7736_v41, 4  ;;  %v7739_v46 = vrot.slane %v7734_v33, 4  ;;  %v7281_v41 = vadd.f32 %v10311_v56, %v7267_v61  ;;  %v10310_v48 = vrot.slane %v14338_v53, 11 }
 0xa7b   : > { %v10409_v61 = vrot.slane %v14344_v39, 11 }
 0xa7c   : > { %v7743_v60 = vsel %vm461_vm2, %v7739_v46, %v7740_v54 }
 0xa7d   : > { %v14280_v63 = vpop.permute.xlu0 %8185  ;;  %v14282_v0 = vpop.permute.xlu1 %8161 }
 0xa81   : > { %v7251_v5 = vpop.permute.xlu0 %7250  ;;  %v14284_v11 = vpop.permute.xlu1 %7248 }
 0xa82   : > { %v7257_v36 = vrot.slane %v7251_v5, 4  ;;  %v7256_v59 = vrot.slane %v14284_v11, 4  ;;  %v14347_v5 = vmul.f32 %v14086_v57, %v7750_v15 }
 0xa84   : > { %v7260_v47 = vsel %vm461_vm2, %v7256_v59, %v7257_v36 }
 0xa85   : > { %v14286_v12 = vpop.permute.xlu0 %8217  ;;  %v14288_v23 = vpop.permute.xlu1 %7699  ;;  %v7261_v15 = vsel %vm463_vm3, %v14284_v11, %v7260_v47  ;;  %v14374_v11 = vmul.f32 %v14086_v57, %v8234_v13 }
 0xa89   : > { %v14290_v34 = vpop.permute.xlu0 %7729  ;;  %v14292_v21 = vpop.permute.xlu1 %8219 }
 0xa8d   : > { %v14294_v45 = vpop.permute.xlu0 %8183  ;;  %v14296_v26 = vpop.permute.xlu1 %7731 }
 0xa91   : > { %v14300_v62 = vpop.permute.xlu0 %8215  ;;  %v14302_v43 = vpop.permute.xlu1 %8213 }
 0xa95   : > { %v14306_v19 = vpop.permute.xlu0 %7775  ;;  %v7295_v58 = vpop.permute.xlu1 %7294 }
 0xa96   : > { %v7297_v30 = vrot.slane %v7295_v58, 4  ;;  %v7778_v54 = vrot.slane %v14306_v19, 4 }
 0xa98   : > { %v7299_v35 = vsel %vm413_vm0, %v7295_v58, %v7297_v30  ;;  %v7744_v58 = vsel %vm463_vm3, %v7734_v33, %v7743_v60  ;;  %v7206_v33 = vadd.f32 %v7202_v18, %v7184_v7  ;;  %v10359_v60 = vrot.slane %v14347_v5, 11 }
 0xa99   : > { %v7317_v2 = vpop.permute.xlu0 %7316  ;;  %v14318_v40 = vpop.permute.xlu1 %7292  ;;  %v7303_v29 = vadd.f32 %v7299_v35, %v7281_v41  ;;  %v7780_v27 = vsel %vm413_vm0, %v14306_v19, %v7778_v54  ;;  %v8165_v35 = vrot.slane %v14282_v0, 4  ;;  %v8223_v7 = vrot.slane %v14286_v12, 4 }
 0xa9a   : > { %v7319_v31 = vrot.slane %v7317_v2, 4  ;;  %v7703_v18 = vrot.slane %v14288_v23, 4 }
 0xa9c   : > { %v7321_v24 = vsel %vm432_vm1, %v7317_v2, %v7319_v31  ;;  %v7748_v2 = vadd.f32 %v7744_v58, %v14278_v42  ;;  %v7228_v31 = vadd.f32 %v7224_v9, %v7206_v33  ;;  %v8188_v42 = vrot.slane %v14280_v63, 4 }
 0xa9d   : > { %v7349_v38 = vpop.permute.xlu0 %7348  ;;  %v14328_v16 = vpop.permute.xlu1 %8259  ;;  %v7325_v46 = vadd.f32 %v7321_v24, %v7303_v29  ;;  %v8224_v58 = vrot.slane %v14292_v21, 4  ;;  %v8221_v9 = vrot.slane %v14302_v43, 4 }
 0xa9e   : > { %v7354_v17 = vrot.slane %v7349_v38, 4  ;;  %v7762_v53 = vadd.f32 %v10360_v28, %v7748_v2  ;;  %v7296_v28 = vrot.slane %v14318_v40, 4 }
 0xaa0   : > { %v7784_v47 = vadd.f32 %v7780_v27, %v7762_v53  ;;  %v8167_v27 = vsel %vm413_vm0, %v14282_v0, %v8165_v35 }
 0xaa1   : > { %v14354_v10 = vpop.permute.xlu0 %7773  ;;  %v7351_v37 = vpop.permute.xlu1 %7350 }
 0xaa2   : > { %v7355_v51 = vrot.slane %v7351_v37, 4 }
 0xaa4   : > { %v7358_v30 = vsel %vm461_vm2, %v7354_v17, %v7355_v51  ;;  %v7738_v17 = vrot.slane %v14296_v26, 4  ;;  %v8222_v51 = vrot.slane %v14300_v62, 4 }
 0xaa5   : > { %v7359_v49 = vsel %vm463_vm3, %v7349_v38, %v7358_v30  ;;  %v7315_v56 = vpop.permute.xlu0 %7314  ;;  %v7798_v44 = vpop.permute.xlu1 %7797  ;;  %v7266_v38 = vadd.f32 %v7261_v15, %v7228_v31  ;;  %v8187_v30 = vrot.slane %v14294_v45, 4  ;;  %v8149_v31 = vadd.f32 %v10394_v6, %v14258_v8 }
 0xaa6   : > { %v7363_v36 = vadd.f32 %v7359_v49, %v7325_v46  ;;  %v7800_v59 = vrot.slane %v7798_v44, 4  ;;  %v7737_v46 = vrot.slane %v14290_v34, 4  ;;  %v7318_v15 = vrot.slane %v7315_v56, 4 }
 0xaa7   : > { %v8189_v0 = vsel %vm432_vm1, %v14294_v45, %v8187_v30 }
 0xaa8   : > { %v7367_v41 = vadd.f32 %v7365_v32, %v7363_v36  ;;  %v7802_v24 = vsel %vm432_vm1, %v7798_v44, %v7800_v59  ;;  %v8190_v44 = vsel %vm432_vm1, %v14280_v63, %v8188_v42  ;;  %v8227_v36 = vsel %vm461_vm2, %v8223_v7, %v8224_v58 }
 0xaa9   : > { %v7832_v37 = vpop.permute.xlu0 %7831  ;;  %v7830_v19 = vpop.permute.xlu1 %7829  ;;  %v7806_v54 = vadd.f32 %v7802_v24, %v7784_v47  ;;  %v7741_v53 = vsel %vm461_vm2, %v7737_v46, %v7738_v17  ;;  %v8225_v63 = vsel %vm461_vm2, %v8221_v9, %v8222_v51  ;;  %v7280_v42 = vadd.f32 %v10310_v48, %v7266_v38 }
 0xaaa   : > { %v7836_v29 = vrot.slane %v7832_v37, 4  ;;  %v7835_v57 = vrot.slane %v7830_v19, 4  ;;  %v7369_v13 = vmax.f32 %v7367_v41, 0.0  ;;  %v7298_v41 = vsel %vm413_vm0, %v14318_v40, %v7296_v28 }
 0xaab   : > { %v7705_v37 = vsel %vm432_vm1, %v14288_v23, %v7703_v18  ;;  %v8194_v25 = vadd.f32 %v8190_v44, %v14270_v14  ;;  %v8228_v6 = vsel %vm463_vm3, %v14286_v12, %v8227_v36  ;;  %v7320_v35 = vsel %vm432_vm1, %v7315_v56, %v7318_v15 }
 0xaac   : > { %v7839_v33 = vsel %vm461_vm2, %v7835_v57, %v7836_v29  ;;  %v7383_v21 = vrot.slane %v7369_v13, %v11392_v52  ;;  %v7387_v2 = vrot.slane %v7369_v13, %v11396_v50  ;;  %v7742_v23 = vsel %vm463_vm3, %v14290_v34, %v7741_v53 }
 0xaad   : > { %v7840_v26 = vsel %vm463_vm3, %v7830_v19, %v7839_v33  ;;  %v8282_v62 = vpop.permute.xlu0 %8281  ;;  %v14393_v49 = vpop.permute.xlu1 %8257  ;;  %v7302_v48 = vadd.f32 %v7298_v41, %v7280_v42  ;;  %v8171_v58 = vadd.f32 %v8167_v27, %v8149_v31  ;;  %v7709_v14 = vadd.f32 %v7705_v37, %v14273_v55 }
 0xaae   : > { %v7844_v59 = vadd.f32 %v7840_v26, %v7806_v54  ;;  %v10325_v24 = vpack.c.bf16 %v7387_v2, %v7383_v21  ;;  %v8226_v12 = vsel %vm463_vm3, %v14302_v43, %v8225_v63  ;;  %v8262_v56 = vrot.slane %v14328_v16, 4 }
 0xaaf   : > { %v7324_v19 = vadd.f32 %v7320_v35, %v7302_v48  ;;  %v8193_v57 = vadd.f32 %v8189_v0, %v8171_v58  ;;  %v8232_v34 = vadd.f32 %v8228_v6, %v8194_v25  ;;  %v7747_v13 = vadd.f32 %v7742_v23, %v7709_v14 }
 0xab0   : > { %v7848_v8 = vadd.f32 %v7846_v20, %v7844_v59  ;;  %v7422_v45 = vrot.slane %v10325_v24, %v11406_v4  ;;  %v7777_v55 = vrot.slane %v14354_v10, 4  ;;  %v8284_v43 = vrot.slane %v8282_v62, 4 }
 0xab1   : > { %v7347_v40 = vpop.permute.xlu0 %7346  ;;  %v7345_v7 = vpop.permute.xlu1 %7344  ;;  %v8231_v54 = vadd.f32 %v8226_v12, %v8193_v57  ;;  %v10408_v33 = vrot.slane %v14374_v11, 11  ;;  %v8264_v2 = vsel %vm413_vm0, %v14328_v16, %v8262_v56  ;;  %v8246_v26 = vadd.f32 %v10409_v61, %v8232_v34 }
 0xab2   : > { %v7353_v38 = vrot.slane %v7347_v40, 4  ;;  %v7352_v18 = vrot.slane %v7345_v7, 4  ;;  %v7850_v47 = vmax.f32 %v7848_v8, 0.0  ;;  %v7429_v21 = vrot.slane %v7422_v45, %v11406_v4 }
 0xab3   : > { %v7761_v44 = vadd.f32 %v10359_v60, %v7747_v13  ;;  %v8261_v31 = vrot.slane %v14393_v49, 4  ;;  %v8330_v59 = vstv %s14417_s26  ;;  %v7779_v16 = vsel %vm413_vm0, %v14354_v10, %v7777_v55 }
 0xab4   : > { %v7356_v29 = vsel %vm461_vm2, %v7352_v18, %v7353_v38  ;;  %v7864_v46 = vrot.slane %v7850_v47, %v11392_v52  ;;  %v7868_v30 = vrot.slane %v7850_v47, %v11396_v50  ;;  %v8286_v27 = vsel %vm432_vm1, %v8282_v62, %v8284_v43 }
 0xab5   : > { %v7357_v17 = vsel %vm463_vm3, %v7345_v7, %v7356_v29  ;;  %v8314_v51 = vpop.permute.xlu0 %8313  ;;  %v7796_v9 = vpop.permute.xlu1 %7795  ;;  %v8268_v24 = vadd.f32 %v8264_v2, %v8246_v26  ;;  %v8245_v5 = vadd.f32 %v10408_v33, %v8231_v54  ;;  %v7783_v42 = vadd.f32 %v7779_v16, %v7761_v44 }
 0xab6   : > { %v7362_v28 = vadd.f32 %v7357_v17, %v7324_v19  ;;  %v7799_v41 = vrot.slane %v7796_v9, 4  ;;  %v8319_v39 = vrot.slane %v8314_v51, 4  ;;  %v10374_v37 = vpack.c.bf16 %v7868_v30, %v7864_v46 }
 0xab7   : > { %v8290_v8 = vadd.f32 %v8286_v27, %v8268_v24  ;;  %v8263_v10 = vsel %vm413_vm0, %v14393_v49, %v8261_v31  ;;  %vm14868_vm0 = vcmask 392192  }
 0xab8   : > { %v7366_v15 = vadd.f32 %v7365_v32, %v7362_v28  ;;  %v7450_v32 = vrot.slane %v7429_v21, %v11419_v22  ;;  %v7801_v35 = vsel %vm432_vm1, %v7796_v9, %v7799_v41  ;;  %v7903_v58 = vrot.slane %v10374_v37, %v11406_v4 }
 0xab9   : > { %v7826_v11 = vpop.permute.xlu0 %7825  ;;  %v8316_v36 = vpop.permute.xlu1 %8315  ;;  %v8267_v14 = vadd.f32 %v8263_v10, %v8245_v5  ;;  %v7805_v12 = vadd.f32 %v7801_v35, %v7783_v42 }
 0xaba   : > { %v7368_v53 = vmax.f32 %v7366_v15, 0.0  ;;  %v8320_v61 = vrot.slane %v8316_v36, 4  ;;  %v7457_v23 = vrot.slane %v7450_v32, %v11419_v22  ;;  %v7833_v48 = vrot.slane %v7826_v11, 4 }
 0xabb   : > { %v7910_v28 = vrot.slane %v7903_v58, %v11406_v4 }
 0xabc   : > { %v7375_v60 = vrot.slane %v7368_v53, %v11392_v52  ;;  %v7379_v63 = vrot.slane %v7368_v53, %v11396_v50  ;;  %v8323_v62 = vsel %vm461_vm2, %v8319_v39, %v8320_v61  ;;  %v7460_v55 = vunpack.c.l.b16 %v7457_v23 }
 0xabd   : > { %v8280_v25 = vpop.permute.xlu0 %8279  ;;  %v7828_v6 = vpop.permute.xlu1 %7827  ;;  %v8324_v40 = vsel %vm463_vm3, %v8314_v51, %v8323_v62  ;;  %v7461_v43 = vunpack.c.h.b16 %v7457_v23  ;;  %v7931_v24 = vrot.slane %v7910_v28, %v11419_v22 }
 0xabe   : > { %v10324_v0 = vpack.c.bf16 %v7379_v63, %v7375_v60  ;;  %v8283_v7 = vrot.slane %v8280_v25, 4  ;;  %v8328_v38 = vadd.f32 %v8324_v40, %v8290_v8  ;;  %v7834_v18 = vrot.slane %v7828_v6, 4 }
 0xabf   : > { %v7462_v36 = vrot.slane %v7460_v55, 7  ;;  %v7464_v41 = vrot.slane %v7461_v43, 7  ;;  %v7938_v10 = vrot.slane %v7931_v24, %v11419_v22 }
 0xac0   : > { %v7407_v49 = vrot.slane %v10324_v0, %v11406_v4  ;;  %v8285_v45 = vsel %vm432_vm1, %v8280_v25, %v8283_v7  ;;  %v7837_v56 = vsel %vm461_vm2, %v7833_v48, %v7834_v18  ;;  %v8332_v47 = vadd.f32 %v8330_v59, %v8328_v38  ;;  %vm7967_vm1 = vmor %vm858_vm4, %vm3861_vm13 }
 0xac1   : > { %v8312_v19 = vpop.permute.xlu0 %8311  ;;  %v8310_v29 = vpop.permute.xlu1 %8309  ;;  %v7838_v34 = vsel %vm463_vm3, %v7826_v11, %v7837_v56  ;;  %v8289_v33 = vadd.f32 %v8285_v45, %v8267_v14  ;;  %v7942_v48 = vunpack.c.h.b16 %v7938_v10 }
 0xac2   : > { %v7414_v57 = vrot.slane %v7407_v49, %v11406_v4  ;;  %v8318_v13 = vrot.slane %v8312_v19, 4  ;;  %v8317_v17 = vrot.slane %v8310_v29, 4  ;;  %v7843_v51 = vadd.f32 %v7838_v34, %v7805_v12 }
 0xac3   : > { %v8334_v9 = vmax.f32 %v8332_v47, 0.0  ;;  %v7945_v19 = vrot.slane %v7942_v48, 7 }
 0xac4   : > { %v7436_v54 = vrot.slane %v7414_v57, %v11419_v22  ;;  %v8321_v21 = vsel %vm461_vm2, %v8317_v17, %v8318_v13  ;;  %v7847_v2 = vadd.f32 %v7846_v20, %v7843_v51  ;;  %vm7968_vm2 = vcmask 124930  }
 0xac5   : > { %v8348_v46 = vrot.slane %v8334_v9, %v11392_v52  ;;  %v8352_v30 = vrot.slane %v8334_v9, %v11396_v50  ;;  %v8322_v15 = vsel %vm463_vm3, %v8310_v29, %v8321_v21  ;;  %vm7969_vm3 = vmor %vm7968_vm2, %vm7967_vm1 }
 0xac6   : > { %v7443_v26 = vrot.slane %v7436_v54, %v11419_v22  ;;  %v8327_v44 = vadd.f32 %v8322_v15, %v8289_v33  ;;  %v7849_v31 = vmax.f32 %v7847_v2, 0.0 }
 0xac7   : > { %v10423_v11 = vpack.c.bf16 %v8352_v30, %v8348_v46 }
 0xac8   : > { %v8331_v16 = vadd.f32 %v8330_v59, %v8327_v44  ;;  %v7458_v27 = vunpack.c.l.b16 %v7443_v26  ;;  %v7459_v53 = vunpack.c.h.b16 %v7443_v26  ;;  %v7856_v20 = vrot.slane %v7849_v31, %v11392_v52 }
 0xac9   : > { %v7860_v32 = vrot.slane %v7849_v31, %v11396_v50  ;;  %v8387_v39 = vrot.slane %v10423_v11, %v11406_v4 }
 0xaca   : > { %v8333_v61 = vmax.f32 %v8331_v16, 0.0  ;;  %v7463_v37 = vsel %vm858_vm4, %v7462_v36, %v7458_v27  ;;  %v7465_v5 = vsel %vm858_vm4, %v7464_v41, %v7459_v53 }
 0xacb   : > { %v10373_v60 = vpack.c.bf16 %v7860_v32, %v7856_v20  ;;  %v8394_v63 = vrot.slane %v8387_v39, %v11406_v4  ;;  %v7466_v59 = vpack.c.b16 %v7465_v5, %v7463_v37 }
 0xacc   : > { %v8340_v42 = vrot.slane %v8333_v61, %v11392_v52  ;;  %v8344_v8 = vrot.slane %v8333_v61, %v11396_v50  ;;  %v7941_v50 = vunpack.c.l.b16 %v7938_v10 }
 0xacd   : > { %v7888_v62 = vrot.slane %v10373_v60, %v11406_v4  ;;  %v8415_v25 = vrot.slane %v8394_v63, %v11419_v22  ;;  %v7473_v6 = vrot.slane %v7466_v59, %v11406_v4 }
 0xace   : > { %v10422_v0 = vpack.c.bf16 %v8344_v8, %v8340_v42  ;;  %v7943_v56 = vrot.slane %v7941_v50, 7 }
 0xacf   : > { %v7895_v35 = vrot.slane %v7888_v62, %v11406_v4  ;;  %v8422_v40 = vrot.slane %v8415_v25, %v11419_v22  ;;  %v7480_v7 = vrot.slane %v7473_v6, %v11406_v4 }
 0xad0   : > { %v8372_v23 = vrot.slane %v10422_v0, %v11406_v4 }
 0xad1   : > { %v7917_v52 = vrot.slane %v7895_v35, %v11419_v22  ;;  %7481 = vrot.lane.b32.xlu1 %v7480_v7, %s14866_s9  ;;  %v8425_v58 = vunpack.c.l.b16 %v8422_v40  ;;  %v8426_v49 = vunpack.c.h.b16 %v8422_v40 }
 0xad2   : > { %v8379_v38 = vrot.slane %v8372_v23, %v11406_v4 }
 0xad3   : > { %v7924_v18 = vrot.slane %v7917_v52, %v11419_v22  ;;  %v8427_v34 = vrot.slane %v8425_v58, 7  ;;  %v8429_v9 = vrot.slane %v8426_v49, 7 }
 0xad4   : > { %v8401_v14 = vrot.slane %v8379_v38, %v11419_v22 }
 0xad5   : > { %v7939_v12 = vunpack.c.l.b16 %v7924_v18  ;;  %v7940_v45 = vunpack.c.h.b16 %v7924_v18 }
 0xad6   : > { %v8408_v47 = vrot.slane %v8401_v14, %v11419_v22 }
 0xad7   : > { %v7944_v29 = vsel %vm858_vm4, %v7943_v56, %v7939_v12  ;;  %v7946_v57 = vsel %vm858_vm4, %v7945_v19, %v7940_v45 }
 0xad8   : > { %v7947_v13 = vpack.c.b16 %v7946_v57, %v7944_v29  ;;  %v8423_v17 = vunpack.c.l.b16 %v8408_v47  ;;  %v8424_v51 = vunpack.c.h.b16 %v8408_v47 }
 0xada   : > { %v7954_v55 = vrot.slane %v7947_v13, %v11406_v4  ;;  %v8428_v43 = vsel %vm858_vm4, %v8427_v34, %v8423_v17  ;;  %v8430_v28 = vsel %vm858_vm4, %v8429_v9, %v8424_v51 }
 0xadb   : > { %v8431_v54 = vpack.c.b16 %v8430_v28, %v8428_v43 }
 0xadc   : > { %v7961_v33 = vrot.slane %v7954_v55, %v11406_v4 }
 0xadd   : > { %v8438_v22 = vrot.slane %v8431_v54, %v11406_v4 }
 0xade   : > { %7962 = vrot.lane.b32.xlu0 %v7961_v33, %s14867_s27 }
 0xadf   : > { %v8445_v21 = vrot.slane %v8438_v22, %v11406_v4 }
 0xae1   : > { %8446 = vrot.lane.b32.xlu1 %v8445_v21, %s10883_s4 }
 0xb43   : > { %v7482_v2 = vpop.permute.xlu1 %7481 }
 0xb44   : > { %v7483_v46 = vrot.slane %v7482_v2, 7 }
 0xb46   : > { %v7484_v30 = vsel %vm14868_vm0, %v7483_v46, %v7482_v2 }
 0xb47   : > { %7486 = vst.msk [vmem:[#allocation3 + $0x18] sm:$0x7] %vm12400_vm10, %v7484_v30 }
 0xb50   : > { %v7963_v15 = vpop.permute.xlu0 %7962 }
 0xb51   : > { %v7964_v26 = vrot.slane %v7963_v15, 7 }
 0xb53   : > { %v7965_v44 = vsel %vm3949_vm8, %v7964_v26, %v7963_v15  ;;  %v8447_v31 = vpop.permute.xlu1 %8446 }
 0xb54   : > { %7970 = vst.msk [vmem:[#allocation3 + $0x1a] sm:$0x7] %vm7969_vm3, %v7965_v44  ;;  %v8448_v4 = vrot.slane %v8447_v31, 7 }
 0xb56   : > { %v8449_v11 = vsel %vm4434_vm12, %v8448_v4, %v8447_v31 }
 0xb57   : > { %8451 = vst.msk [vmem:[#allocation3 + $0x1c] sm:$0x3] %vm12941_vm11, %v8449_v11 }
 0xb58 PF: > { %v8466_v1 = vld [vmem:[%s11080_s16 + $0x68] sm:$0xff]  ;;  %v8465_v16 = vld [vmem:[%s11080_s16 + $0x60] sm:$0xff]  ;;  %s8742_s4 = smul.u32 6, %s10952_s11  ;;  %v8750_v48 = vlaneseq  ;;  %v10884_v49 = vmov 1966171168   ;;  %p10424_p5 = scmp.ne.s32.totalorder %s10952_s11, 4 }
 0xb59   : > { %v8498_v36 = vld [vmem:[%s11080_s16 + $0x168] sm:$0xff]  ;;  %v8574_v27 = vunpack.c.l.s8.bf16 %v8466_v1  ;;  %v8578_v53 = vunpack.c.h.s8.bf16 %v8466_v1  ;;  %v8497_v20 = vld [vmem:[%s11080_s16 + $0x160] sm:$0xff]  ;;  %v8577_v32 = vunpack.c.h.s8.bf16 %v8465_v16  ;;  %v8573_v37 = vunpack.c.l.s8.bf16 %v8465_v16 }
 0xb5a   : > { %v8638_v41 = vunpack.c.l.s8.bf16 %v8498_v36  ;;  %v8642_v24 = vunpack.c.h.s8.bf16 %v8498_v36  ;;  %v8641_v3 = vunpack.c.h.s8.bf16 %v8497_v20  ;;  %v8462_v39 = vld [vmem:[%s11080_s16 + $0x48] sm:$0xff]  ;;  %v8637_v5 = vunpack.c.l.s8.bf16 %v8497_v20  ;;  %v8461_v59 = vld [vmem:[%s11080_s16 + $0x40] sm:$0xff]  ;;  %s8743_s21 = scalar_lea.vmem [#allocation3], %s8742_s4 }
 0xb5b   : > { %v8494_v61 = vld [vmem:[%s11080_s16 + $0x148] sm:$0xff]  ;;  %8799 = vmatprep.subr.bf16.mxu0 %v8578_v53  ;;  %v8570_v60 = vunpack.c.h.s8.bf16 %v8462_v39  ;;  %v8493_v42 = vld [vmem:[%s11080_s16 + $0x140] sm:$0xff]  ;;  %v8569_v8 = vunpack.c.h.s8.bf16 %v8461_v59  ;;  %v8566_v62 = vunpack.c.l.s8.bf16 %v8462_v39  ;;  %v8565_v35 = vunpack.c.l.s8.bf16 %v8461_v59 }
 0xb5c   : > { %8840 = vmatprep.subr.bf16.mxu1 %v8642_v24  ;;  %8800 = vmatpush1.bf16.msra.mxu0 %v8577_v32  ;;  %v8634_v63 = vunpack.c.h.s8.bf16 %v8494_v61  ;;  %v8633_v10 = vunpack.c.h.s8.bf16 %v8493_v42  ;;  %v8630_v25 = vunpack.c.l.s8.bf16 %v8494_v61  ;;  %v8458_v6 = vld [vmem:[%s11080_s16 + $0x28] sm:$0xff]  ;;  %v8629_v40 = vunpack.c.l.s8.bf16 %v8493_v42  ;;  %v8457_v52 = vld [vmem:[%s11080_s16 + $0x20] sm:$0xff] }
 0xb5d   : > { %8841 = vmatpush1.bf16.msra.mxu1 %v8641_v3  ;;  %8801 = vmatprep.subr.bf16.mxu0 %v8574_v27  ;;  %v8490_v0 = vld [vmem:[%s11080_s16 + $0x128] sm:$0xff]  ;;  %v8562_v7 = vunpack.c.h.s8.bf16 %v8458_v6  ;;  %v8489_v50 = vld [vmem:[%s11080_s16 + $0x120] sm:$0xff]  ;;  %v8561_v38 = vunpack.c.h.s8.bf16 %v8457_v52  ;;  %v8558_v58 = vunpack.c.l.s8.bf16 %v8458_v6  ;;  %v8748_v12 = vunpack.c.l.s4 %v10884_v49 }
 0xb5e   : > { %8842 = vmatprep.subr.bf16.mxu1 %v8638_v41  ;;  %v8626_v23 = vunpack.c.h.s8.bf16 %v8490_v0  ;;  %v8625_v18 = vunpack.c.h.s8.bf16 %v8489_v50  ;;  %v8622_v14 = vunpack.c.l.s8.bf16 %v8490_v0  ;;  %v14525_v45 = vshrl.u32 %v8750_v48, 7  ;;  %v8454_v56 = vld [vmem:[%s11080_s16 + $0x8] sm:$0xff]  ;;  %v8744_v34 = vld [vmem:[%s8743_s21] sm:$0x3f] }
 0xb5f   : > { %v8486_v19 = vld [vmem:[%s11080_s16 + $0x108] sm:$0xff]  ;;  %v8749_v47 = vunpack.c.0.s8 %v8748_v12  ;;  %v8557_v29 = vunpack.c.l.s8.bf16 %v8457_v52  ;;  %v8621_v57 = vunpack.c.l.s8.bf16 %v8489_v50  ;;  %v8554_v13 = vunpack.c.h.s8.bf16 %v8454_v56  ;;  %v8453_v51 = vld [vmem:[%s11080_s16] sm:$0xff] }
 0xb60   : > { %8802 = vmatpush1.bf16.msra.mxu0 %v8573_v37  ;;  %v8618_v17 = vunpack.c.h.s8.bf16 %v8486_v19  ;;  %v8485_v9 = vld [vmem:[%s11080_s16 + $0x100] sm:$0xff]  ;;  %v8553_v28 = vunpack.c.h.s8.bf16 %v8453_v51  ;;  %v8550_v33 = vunpack.c.l.s8.bf16 %v8454_v56  ;;  %v8614_v22 = vunpack.c.l.s8.bf16 %v8486_v19  ;;  %v8482_v2 = vld [vmem:[%s11080_s16 + $0xe8] sm:$0xff] }
 0xb61   : > { %8843 = vmatpush1.bf16.msra.mxu1 %v8637_v5  ;;  %8803 = vmatprep.subr.bf16.mxu0 %v8570_v60  ;;  %v14532_v55 = vsub.s32 %v8749_v47, %v14525_v45  ;;  %v8617_v54 = vunpack.c.h.s8.bf16 %v8485_v9  ;;  %v8514_v46 = vld [vmem:[%s11080_s16 + $0x1e8] sm:$0xff]  ;;  %v8549_v15 = vunpack.c.l.s8.bf16 %v8453_v51  ;;  %v8613_v26 = vunpack.c.l.s8.bf16 %v8485_v9  ;;  %v8481_v4 = vld [vmem:[%s11080_s16 + $0xe0] sm:$0xff]  ;;  %v8468_v51 = vld [vmem:[%s11080_s16 + $0x78] sm:$0xff] }
 0xb62   : > { %8844 = vmatprep.subr.bf16.mxu1 %v8634_v63  ;;  %v8610_v44 = vunpack.c.h.s8.bf16 %v8482_v2  ;;  %v8674_v31 = vunpack.c.h.s8.bf16 %v8514_v46  ;;  %v8513_v11 = vld [vmem:[%s11080_s16 + $0x1e0] sm:$0xff]  ;;  %v8609_v36 = vunpack.c.h.s8.bf16 %v8481_v4  ;;  %v8606_v27 = vunpack.c.l.s8.bf16 %v8482_v2  ;;  %v8478_v41 = vld [vmem:[%s11080_s16 + $0xc8] sm:$0xff]  ;;  %v8467_v2 = vld [vmem:[%s11080_s16 + $0x70] sm:$0xff] }
 0xb63   : > { %v14535_v43 = vrot.slane %v8744_v34, %v14532_v55  ;;  %v8673_v16 = vunpack.c.h.s8.bf16 %v8513_v11  ;;  %v8670_v53 = vunpack.c.l.s8.bf16 %v8514_v46  ;;  %v8510_v24 = vld [vmem:[%s11080_s16 + $0x1c8] sm:$0xff]  ;;  %v8746_v20 = vcombine.high %v8744_v34, %v8744_v34  ;;  %v8477_v37 = vld [vmem:[%s11080_s16 + $0xc0] sm:$0xff] }
 0xb64   : > { %8804 = vmatpush1.bf16.msra.mxu0 %v8569_v8  ;;  %v8605_v32 = vunpack.c.l.s8.bf16 %v8481_v4  ;;  %v8669_v3 = vunpack.c.l.s8.bf16 %v8513_v11  ;;  %v8602_v39 = vunpack.c.h.s8.bf16 %v8478_v41  ;;  %v8666_v61 = vunpack.c.h.s8.bf16 %v8510_v24  ;;  %v8509_v5 = vld [vmem:[%s11080_s16 + $0x1c0] sm:$0xff]  ;;  %v8526_v4 = vld [vmem:[%s11080_s16 + $0x248] sm:$0xff]  ;;  %v8464_v11 = vld [vmem:[%s11080_s16 + $0x58] sm:$0xff] }
 0xb65   : > { %8845 = vmatpush1.bf16.msra.mxu1 %v8633_v10  ;;  %8805 = vmatprep.subr.bf16.mxu0 %v8566_v62  ;;  %v8761_v21 = vcombine.high %v14535_v43, %v14535_v43  ;;  %v14557_v60 = vrot.slane %v8746_v20, %v14532_v55  ;;  %v8601_v59 = vunpack.c.h.s8.bf16 %v8477_v37  ;;  %v8665_v42 = vunpack.c.h.s8.bf16 %v8509_v5  ;;  %v8474_v62 = vld [vmem:[%s11080_s16 + $0xa8] sm:$0xff]  ;;  %v8469_v19 = vld [vmem:[%s11080_s16 + $0x80] sm:$0xff]  ;;  %v8463_v20 = vld [vmem:[%s11080_s16 + $0x50] sm:$0xff] }
 0xb66   : > { %8846 = vmatprep.subr.bf16.mxu1 %v8630_v25  ;;  %v8598_v8 = vunpack.c.l.s8.bf16 %v8478_v41  ;;  %v8662_v10 = vunpack.c.l.s8.bf16 %v8510_v24  ;;  %v8506_v25 = vld [vmem:[%s11080_s16 + $0x1a8] sm:$0xff]  ;;  %v8597_v6 = vunpack.c.l.s8.bf16 %v8477_v37  ;;  %v8661_v0 = vunpack.c.l.s8.bf16 %v8509_v5  ;;  %v8501_v47 = vld [vmem:[%s11080_s16 + $0x180] sm:$0xff]  ;;  %v8460_v37 = vld [vmem:[%s11080_s16 + $0x38] sm:$0xff] }
 0xb67   : > { %v14542_v30 = vrot.slane %v8761_v21, %v14532_v55  ;;  %v14561_v63 = vrot.slane %v14557_v60, %v14532_v55  ;;  %v8590_v48 = vunpack.c.l.s8.bf16 %v8474_v62  ;;  %v14575_v9 = vrot.slane %v14535_v43, %v14532_v55  ;;  %v8529_v21 = vld [vmem:[%s11080_s16 + $0x260] sm:$0xff] }
 0xb68   : > { %8806 = vmatpush1.bf16.msra.mxu0 %v8565_v35  ;;  %v8594_v35 = vunpack.c.h.s8.bf16 %v8474_v62  ;;  %v8762_v46 = vcombine.high %v14557_v60, %v14557_v60  ;;  %v8705_v43 = vunpack.c.h.s8.bf16 %v8529_v21  ;;  %v8572_v41 = vunpack.c.h.s8.bf16 %v8464_v11  ;;  %v8525_v24 = vld [vmem:[%s11080_s16 + $0x240] sm:$0xff] }
 0xb69   : > { %8847 = vmatpush1.bf16.msra.mxu1 %v8629_v40  ;;  %8807 = vmatprep.subr.bf16.mxu0 %v8562_v7  ;;  %v14548_v1 = vcombine.high %v14542_v30, %v14542_v30  ;;  %v8658_v40 = vunpack.c.h.s8.bf16 %v8506_v25  ;;  %v8473_v7 = vld [vmem:[%s11080_s16 + $0xa0] sm:$0xff]  ;;  %v8693_v5 = vunpack.c.l.s8.bf16 %v8525_v24  ;;  %v8567_v60 = vunpack.c.l.s8.bf16 %v8463_v20 }
 0xb6a   : > { %8848 = vmatprep.subr.bf16.mxu1 %v8626_v23  ;;  %8831 = vmatprep.mubr.bf16.mxu0 %v14542_v30  ;;  %v8505_v23 = vld [vmem:[%s11080_s16 + $0x1a0] sm:$0xff]  ;;  %v8593_v52 = vunpack.c.h.s8.bf16 %v8473_v7 }
 0xb6b   : > { %8872 = vmatprep.mubr.bf16.mxu1 %v14548_v1  ;;  %v8657_v50 = vunpack.c.h.s8.bf16 %v8505_v23  ;;  %v8653_v49 = vunpack.c.l.s8.bf16 %v8505_v23 }
 0xb6c   : > { %8808 = vmatpush1.bf16.msra.mxu0 %v8561_v38  ;;  %v8654_v38 = vunpack.c.l.s8.bf16 %v8506_v25 }
 0xb6d   : > { %8849 = vmatpush1.bf16.msra.mxu1 %v8625_v18  ;;  %8809 = vmatprep.subr.bf16.mxu0 %v8558_v58  ;;  %v8470_v18 = vld [vmem:[%s11080_s16 + $0x88] sm:$0xff] }
 0xb6e   : > { %8850 = vmatprep.subr.bf16.mxu1 %v8622_v14  ;;  %v8502_v58 = vld [vmem:[%s11080_s16 + $0x188] sm:$0xff]  ;;  %v8589_v14 = vunpack.c.l.s8.bf16 %v8473_v7  ;;  %v8586_v12 = vunpack.c.h.s8.bf16 %v8470_v18  ;;  %v8582_v34 = vunpack.c.l.s8.bf16 %v8470_v18 }
 0xb6f   : > { %v8650_v56 = vunpack.c.h.s8.bf16 %v8502_v58 }
 0xb70   : > { %8810 = vmatpush1.bf16.msra.mxu0 %v8557_v29  ;;  %v8585_v29 = vunpack.c.h.s8.bf16 %v8469_v19 }
 0xb71   : > { %8851 = vmatpush1.bf16.msra.mxu1 %v8621_v57  ;;  %8811 = vmatprep.subr.bf16.mxu0 %v8554_v13  ;;  %v8649_v57 = vunpack.c.h.s8.bf16 %v8501_v47  ;;  %v8646_v13 = vunpack.c.l.s8.bf16 %v8502_v58 }
 0xb72   : > { %8852 = vmatprep.subr.bf16.mxu1 %v8618_v17  ;;  %v8530_v17 = vld [vmem:[%s11080_s16 + $0x268] sm:$0xff] }
 0xb74   : > { %8812 = vmatpush1.bf16.msra.mxu0 %v8553_v28  ;;  %v8581_v28 = vunpack.c.l.s8.bf16 %v8469_v19 }
 0xb75   : > { %8853 = vmatpush1.bf16.msra.mxu1 %v8617_v54  ;;  %8813 = vmatprep.subr.bf16.mxu0 %v8550_v33  ;;  %v8645_v54 = vunpack.c.l.s8.bf16 %v8501_v47  ;;  %v8706_v33 = vunpack.c.h.s8.bf16 %v8530_v17 }
 0xb76   : > { %8854 = vmatprep.subr.bf16.mxu1 %v8614_v22  ;;  %v8580_v22 = vunpack.c.h.s8.bf16 %v8468_v51 }
 0xb78   : > { %8814 = vmatpush1.bf16.msra.mxu0 %v8549_v15  ;;  %v14583_v15 = vcombine.high %v14575_v9, %v14575_v9 }
 0xb79   : > { %8855 = vmatpush1.bf16.msra.mxu1 %v8613_v26  ;;  %8815 = vmatprep.subr.bf16.mxu0 %v8610_v44  ;;  %v8579_v26 = vunpack.c.h.s8.bf16 %v8467_v2  ;;  %v8702_v44 = vunpack.c.l.s8.bf16 %v8530_v17 }
 0xb7a   : > { %8856 = vmatprep.subr.bf16.mxu1 %v8674_v31  ;;  %v8576_v31 = vunpack.c.l.s8.bf16 %v8468_v51 }
 0xb7c   : > { %8816 = vmatpush2.bf16.msra.mxu0 %v8609_v36  ;;  %v14588_v36 = vrot.slane %v8762_v46, %v14532_v55  ;;  %v8697_v55 = vunpack.c.h.s8.bf16 %v8525_v24 }
 0xb7d   : > { %8857 = vmatpush2.bf16.msra.mxu1 %v8673_v16  ;;  %8817 = vmatprep.subr.bf16.mxu0 %v8606_v27  ;;  %v8701_v16 = vunpack.c.l.s8.bf16 %v8529_v21  ;;  %v8575_v27 = vunpack.c.l.s8.bf16 %v8467_v2 }
 0xb7e   : > { %8858 = vmatprep.subr.bf16.mxu1 %v8670_v53  ;;  %v8698_v53 = vunpack.c.h.s8.bf16 %v8526_v4 }
 0xb80   : > { %8818 = vmatpush2.bf16.msra.mxu0 %v8605_v32  ;;  %v8571_v32 = vunpack.c.h.s8.bf16 %v8463_v20 }
 0xb81   : > { %8859 = vmatpush2.bf16.msra.mxu1 %v8669_v3  ;;  %8819 = vmatprep.subr.bf16.mxu0 %v8602_v39  ;;  %v8694_v3 = vunpack.c.l.s8.bf16 %v8526_v4  ;;  %v8568_v39 = vunpack.c.l.s8.bf16 %v8464_v11 }
 0xb82   : > { %8860 = vmatprep.subr.bf16.mxu1 %v8666_v61  ;;  %v8522_v61 = vld [vmem:[%s11080_s16 + $0x228] sm:$0xff] }
 0xb83   : > { %v8686_v25 = vunpack.c.l.s8.bf16 %v8522_v61 }
 0xb84   : > { %8820 = vmatpush2.bf16.msra.mxu0 %v8601_v59  ;;  %v8564_v59 = vunpack.c.h.s8.bf16 %v8460_v37 }
 0xb85   : > { %8861 = vmatpush2.bf16.msra.mxu1 %v8665_v42  ;;  %8821 = vmatprep.subr.bf16.mxu0 %v8598_v8  ;;  %v8521_v42 = vld [vmem:[%s11080_s16 + $0x220] sm:$0xff]  ;;  %v8459_v8 = vld [vmem:[%s11080_s16 + $0x30] sm:$0xff] }
 0xb86   : > { %8862 = vmatprep.subr.bf16.mxu1 %v8662_v10  ;;  %v8689_v10 = vunpack.c.h.s8.bf16 %v8521_v42  ;;  %v8563_v62 = vunpack.c.h.s8.bf16 %v8459_v8  ;;  %v8559_v7 = vunpack.c.l.s8.bf16 %v8459_v8 }
 0xb88   : > { %8822 = vmatpush2.bf16.msra.mxu0 %v8597_v6  ;;  %v8560_v6 = vunpack.c.l.s8.bf16 %v8460_v37 }
 0xb89   : > { %8863 = vmatpush2.bf16.msra.mxu1 %v8661_v0  ;;  %8823 = vmatprep.subr.bf16.mxu0 %v8594_v35  ;;  %v8518_v0 = vld [vmem:[%s11080_s16 + $0x208] sm:$0xff]  ;;  %v8456_v35 = vld [vmem:[%s11080_s16 + $0x18] sm:$0xff] }
 0xb8a   : > { %8864 = vmatprep.subr.bf16.mxu1 %v8658_v40  ;;  %v8685_v40 = vunpack.c.l.s8.bf16 %v8521_v42  ;;  %v8682_v23 = vunpack.c.h.s8.bf16 %v8518_v0  ;;  %v8678_v58 = vunpack.c.l.s8.bf16 %v8518_v0 }
 0xb8c   : > { %8824 = vmatpush2.bf16.msra.mxu0 %v8593_v52  ;;  %v8556_v52 = vunpack.c.h.s8.bf16 %v8456_v35 }
 0xb8d   : > { %8865 = vmatpush2.bf16.msra.mxu1 %v8657_v50  ;;  %8825 = vmatprep.subr.bf16.mxu0 %v8590_v48  ;;  %v8517_v50 = vld [vmem:[%s11080_s16 + $0x200] sm:$0xff]  ;;  %v8455_v48 = vld [vmem:[%s11080_s16 + $0x10] sm:$0xff] }
 0xb8e   : > { %8866 = vmatprep.subr.bf16.mxu1 %v8654_v38  ;;  %v8681_v38 = vunpack.c.h.s8.bf16 %v8517_v50  ;;  %v8555_v18 = vunpack.c.h.s8.bf16 %v8455_v48  ;;  %v8551_v19 = vunpack.c.l.s8.bf16 %v8455_v48 }
 0xb90   : > { %8826 = vmatpush2.bf16.msra.mxu0 %v8589_v14  ;;  %v8552_v14 = vunpack.c.l.s8.bf16 %v8456_v35 }
 0xb91   : > { %8867 = vmatpush2.bf16.msra.mxu1 %v8653_v49  ;;  %8827 = vmatprep.subr.bf16.mxu0 %v8586_v12  ;;  %v8546_v49 = vld [vmem:[%s11080_s16 + $0x2e8] sm:$0xff]  ;;  %v8484_v12 = vld [vmem:[%s11080_s16 + $0xf8] sm:$0xff] }
 0xb92   : > { %8868 = vmatprep.subr.bf16.mxu1 %v8650_v56  ;;  %v8677_v56 = vunpack.c.l.s8.bf16 %v8517_v50  ;;  %v8738_v47 = vunpack.c.h.s8.bf16 %v8546_v49  ;;  %v8734_v51 = vunpack.c.l.s8.bf16 %v8546_v49 }
 0xb94   : > { %8828 = vmatpush2.bf16.msra.mxu0 %v8585_v29  ;;  %v8612_v29 = vunpack.c.h.s8.bf16 %v8484_v12 }
 0xb95   : > { %8869 = vmatpush2.bf16.msra.mxu1 %v8649_v57  ;;  %8829 = vmatprep.subr.bf16.mxu0 %v8582_v34  ;;  %v8545_v57 = vld [vmem:[%s11080_s16 + $0x2e0] sm:$0xff]  ;;  %v8483_v34 = vld [vmem:[%s11080_s16 + $0xf0] sm:$0xff] }
 0xb96   : > { %8870 = vmatprep.subr.bf16.mxu1 %v8646_v13  ;;  %v8737_v13 = vunpack.c.h.s8.bf16 %v8545_v57  ;;  %v8611_v17 = vunpack.c.h.s8.bf16 %v8483_v34  ;;  %v8607_v21 = vunpack.c.l.s8.bf16 %v8483_v34 }
 0xb98   : > { %8830 = vmatpush2.bf16.msra.mxu0 %v8581_v28  ;;  %v8608_v28 = vunpack.c.l.s8.bf16 %v8484_v12 }
 0xb99   : > { %8871 = vmatpush2.bf16.msra.mxu1 %v8645_v54  ;;  %8881 = vmatprep.subr.bf16.mxu0 %v8706_v33  ;;  %v8542_v54 = vld [vmem:[%s11080_s16 + $0x2c8] sm:$0xff]  ;;  %v8480_v33 = vld [vmem:[%s11080_s16 + $0xd8] sm:$0xff] }
 0xb9a   : > { %8922 = vmatprep.subr.bf16.mxu1 %v8580_v22  ;;  %v8733_v22 = vunpack.c.l.s8.bf16 %v8545_v57  ;;  %v8730_v2 = vunpack.c.h.s8.bf16 %v8542_v54  ;;  %v8604_v46 = vunpack.c.h.s8.bf16 %v8480_v33  ;;  %v8726_v4 = vunpack.c.l.s8.bf16 %v8542_v54 }
 0xb9b   : > { %8832 = vmatmul.mubr.bf16.vlgmr.msra.gmra.mxu0 %v14575_v9  ;;  %v8600_v11 = vunpack.c.l.s8.bf16 %v8480_v33  ;;  %v8492_v33 = vld [vmem:[%s11080_s16 + $0x138] sm:$0xff] }
 0xb9c   : > { %8873 = vmatmul.mubr.bf16.vlgmr.msra.gmra.mxu1 %v14583_v15  ;;  %8882 = vmatpush1.bf16.msra.mxu0 %v8705_v43  ;;  %v8541_v43 = vld [vmem:[%s11080_s16 + $0x2c0] sm:$0xff] }
 0xb9d   : > { %8923 = vmatpush1.bf16.msra.mxu1 %v8579_v26  ;;  %8883 = vmatprep.subr.bf16.mxu0 %v8702_v44  ;;  %v8479_v26 = vld [vmem:[%s11080_s16 + $0xd0] sm:$0xff]  ;;  %v8729_v44 = vunpack.c.h.s8.bf16 %v8541_v43 }
 0xb9e   : > { %8924 = vmatprep.subr.bf16.mxu1 %v8576_v31  ;;  %8913 = vmatprep.mubr.bf16.mxu0 %v14588_v36  ;;  %v8603_v31 = vunpack.c.h.s8.bf16 %v8479_v26 }
 0xb9f   : > { %8954 = vmatprep.mubr.bf16.mxu1 %v14542_v30  ;;  %v8690_v30 = vunpack.c.h.s8.bf16 %v8522_v61 }
 0xba0   : > { %8884 = vmatpush1.bf16.msra.mxu0 %v8701_v16  ;;  %v8538_v16 = vld [vmem:[%s11080_s16 + $0x2a8] sm:$0xff] }
 0xba1   : > { %8925 = vmatpush1.bf16.msra.mxu1 %v8575_v27  ;;  %8885 = vmatprep.subr.bf16.mxu0 %v8698_v53  ;;  %v8476_v27 = vld [vmem:[%s11080_s16 + $0xb8] sm:$0xff]  ;;  %v8725_v53 = vunpack.c.l.s8.bf16 %v8541_v43  ;;  %v8722_v24 = vunpack.c.h.s8.bf16 %v8538_v16  ;;  %v8718_v61 = vunpack.c.l.s8.bf16 %v8538_v16  ;;  %v8523_v43 = vld [vmem:[%s11080_s16 + $0x230] sm:$0xff] }
 0xba2   : > { %8926 = vmatprep.subr.bf16.mxu1 %v8572_v41  ;;  %v8599_v41 = vunpack.c.l.s8.bf16 %v8479_v26  ;;  %v8596_v20 = vunpack.c.h.s8.bf16 %v8476_v27  ;;  %v8592_v37 = vunpack.c.l.s8.bf16 %v8476_v27  ;;  %v8520_v16 = vld [vmem:[%s11080_s16 + $0x218] sm:$0xff] }
 0xba4   : > { %8886 = vmatpush1.bf16.msra.mxu0 %v8697_v55  ;;  %v8537_v55 = vld [vmem:[%s11080_s16 + $0x2a0] sm:$0xff] }
 0xba5   : > { %8927 = vmatpush1.bf16.msra.mxu1 %v8571_v32  ;;  %8887 = vmatprep.subr.bf16.mxu0 %v8694_v3  ;;  %v8475_v32 = vld [vmem:[%s11080_s16 + $0xb0] sm:$0xff]  ;;  %v8721_v3 = vunpack.c.h.s8.bf16 %v8537_v55 }
 0xba6   : > { %8928 = vmatprep.subr.bf16.mxu1 %v8568_v39  ;;  %v8595_v39 = vunpack.c.h.s8.bf16 %v8475_v32 }
 0xba8   : > { %8888 = vmatpush1.bf16.msra.mxu0 %v8693_v5  ;;  %v8534_v5 = vld [vmem:[%s11080_s16 + $0x288] sm:$0xff] }
 0xba9   : > { %8929 = vmatpush1.bf16.msra.mxu1 %v8567_v60  ;;  %8889 = vmatprep.subr.bf16.mxu0 %v8690_v30  ;;  %v8472_v60 = vld [vmem:[%s11080_s16 + $0x98] sm:$0xff]  ;;  %v8717_v30 = vunpack.c.l.s8.bf16 %v8537_v55  ;;  %v8714_v42 = vunpack.c.h.s8.bf16 %v8534_v5  ;;  %v8710_v0 = vunpack.c.l.s8.bf16 %v8534_v5  ;;  %v8519_v55 = vld [vmem:[%s11080_s16 + $0x210] sm:$0xff] }
 0xbaa   : > { %8930 = vmatprep.subr.bf16.mxu1 %v8564_v59  ;;  %v8591_v59 = vunpack.c.l.s8.bf16 %v8475_v32  ;;  %v8588_v8 = vunpack.c.h.s8.bf16 %v8472_v60  ;;  %v8584_v35 = vunpack.c.l.s8.bf16 %v8472_v60  ;;  %v8548_v5 = vld [vmem:[%s11080_s16 + $0x2f8] sm:$0xff] }
 0xbac   : > { %8890 = vmatpush1.bf16.msra.mxu0 %v8689_v10  ;;  %v8533_v10 = vld [vmem:[%s11080_s16 + $0x280] sm:$0xff] }
 0xbad   : > { %8931 = vmatpush1.bf16.msra.mxu1 %v8563_v62  ;;  %8891 = vmatprep.subr.bf16.mxu0 %v8686_v25  ;;  %v8471_v62 = vld [vmem:[%s11080_s16 + $0x90] sm:$0xff]  ;;  %v8713_v25 = vunpack.c.h.s8.bf16 %v8533_v10 }
 0xbae   : > { %8932 = vmatprep.subr.bf16.mxu1 %v8560_v6  ;;  %v8587_v6 = vunpack.c.h.s8.bf16 %v8471_v62 }
 0xbb0   : > { %8892 = vmatpush1.bf16.msra.mxu0 %v8685_v40  ;;  %v8500_v40 = vld [vmem:[%s11080_s16 + $0x178] sm:$0xff] }
 0xbb1   : > { %8933 = vmatpush1.bf16.msra.mxu1 %v8559_v7  ;;  %8893 = vmatprep.subr.bf16.mxu0 %v8682_v23  ;;  %v8532_v7 = vld [vmem:[%s11080_s16 + $0x278] sm:$0xff]  ;;  %v8709_v23 = vunpack.c.l.s8.bf16 %v8533_v10  ;;  %v8644_v50 = vunpack.c.h.s8.bf16 %v8500_v40  ;;  %v8640_v49 = vunpack.c.l.s8.bf16 %v8500_v40  ;;  %v8547_v10 = vld [vmem:[%s11080_s16 + $0x2f0] sm:$0xff] }
 0xbb2   : > { %8934 = vmatprep.subr.bf16.mxu1 %v8556_v52  ;;  %v8583_v52 = vunpack.c.l.s8.bf16 %v8471_v62  ;;  %v8708_v48 = vunpack.c.h.s8.bf16 %v8532_v7  ;;  %v8704_v12 = vunpack.c.l.s8.bf16 %v8532_v7  ;;  %v8544_v40 = vld [vmem:[%s11080_s16 + $0x2d8] sm:$0xff] }
 0xbb4   : > { %8894 = vmatpush1.bf16.msra.mxu0 %v8681_v38  ;;  %v8499_v38 = vld [vmem:[%s11080_s16 + $0x170] sm:$0xff] }
 0xbb5   : > { %8935 = vmatpush1.bf16.msra.mxu1 %v8555_v18  ;;  %8895 = vmatprep.subr.bf16.mxu0 %v8678_v58  ;;  %v8531_v18 = vld [vmem:[%s11080_s16 + $0x270] sm:$0xff]  ;;  %v8643_v58 = vunpack.c.h.s8.bf16 %v8499_v38 }
 0xbb6   : > { %8936 = vmatprep.subr.bf16.mxu1 %v8552_v14  ;;  %v8707_v14 = vunpack.c.h.s8.bf16 %v8531_v18 }
 0xbb8   : > { %8896 = vmatpush1.bf16.msra.mxu0 %v8677_v56  ;;  %v8496_v56 = vld [vmem:[%s11080_s16 + $0x158] sm:$0xff] }
 0xbb9   : > { %8937 = vmatpush1.bf16.msra.mxu1 %v8551_v19  ;;  %8897 = vmatprep.subr.bf16.mxu0 %v8738_v47  ;;  %v8528_v19 = vld [vmem:[%s11080_s16 + $0x258] sm:$0xff]  ;;  %v8639_v47 = vunpack.c.l.s8.bf16 %v8499_v38  ;;  %v8636_v57 = vunpack.c.h.s8.bf16 %v8496_v56  ;;  %v8543_v38 = vld [vmem:[%s11080_s16 + $0x2d0] sm:$0xff] }
 0xbba   : > { %8938 = vmatprep.subr.bf16.mxu1 %v8612_v29  ;;  %v8703_v29 = vunpack.c.l.s8.bf16 %v8531_v18  ;;  %v8700_v34 = vunpack.c.h.s8.bf16 %v8528_v19  ;;  %v8696_v54 = vunpack.c.l.s8.bf16 %v8528_v19 }
 0xbbc   : > { %8898 = vmatpush2.bf16.msra.mxu0 %v8737_v13  ;;  %v8495_v13 = vld [vmem:[%s11080_s16 + $0x150] sm:$0xff] }
 0xbbd   : > { %8939 = vmatpush2.bf16.msra.mxu1 %v8611_v17  ;;  %8899 = vmatprep.subr.bf16.mxu0 %v8734_v51  ;;  %v8527_v17 = vld [vmem:[%s11080_s16 + $0x250] sm:$0xff]  ;;  %v8635_v51 = vunpack.c.h.s8.bf16 %v8495_v13 }
 0xbbe   : > { %8940 = vmatprep.subr.bf16.mxu1 %v8608_v28  ;;  %v8632_v28 = vunpack.c.l.s8.bf16 %v8496_v56  ;;  %v8540_v56 = vld [vmem:[%s11080_s16 + $0x2b8] sm:$0xff] }
 0xbc0   : > { %8900 = vmatpush2.bf16.msra.mxu0 %v8733_v22  ;;  %v8524_v22 = vld [vmem:[%s11080_s16 + $0x238] sm:$0xff] }
 0xbc1   : > { %8941 = vmatpush2.bf16.msra.mxu1 %v8607_v21  ;;  %8901 = vmatprep.subr.bf16.mxu0 %v8730_v2  ;;  %v8631_v21 = vunpack.c.l.s8.bf16 %v8495_v13  ;;  %v8695_v2 = vunpack.c.l.s8.bf16 %v8527_v17  ;;  %v8539_v13 = vld [vmem:[%s11080_s16 + $0x2b0] sm:$0xff] }
 0xbc2   : > { %8942 = vmatprep.subr.bf16.mxu1 %v8604_v46  ;;  %v8491_v46 = vld [vmem:[%s11080_s16 + $0x130] sm:$0xff] }
 0xbc3   : > { %v8627_v26 = vunpack.c.h.s8.bf16 %v8491_v46  ;;  %v8623_v27 = vunpack.c.l.s8.bf16 %v8491_v46  ;;  %v8535_v46 = vld [vmem:[%s11080_s16 + $0x290] sm:$0xff] }
 0xbc4   : > { %8902 = vmatpush2.bf16.msra.mxu0 %v8729_v44  ;;  %v8691_v44 = vunpack.c.h.s8.bf16 %v8523_v43 }
 0xbc5   : > { %8943 = vmatpush2.bf16.msra.mxu1 %v8603_v31  ;;  %8903 = vmatprep.subr.bf16.mxu0 %v8726_v4  ;;  %v8624_v31 = vunpack.c.l.s8.bf16 %v8492_v33  ;;  %v8688_v4 = vunpack.c.l.s8.bf16 %v8524_v22 }
 0xbc6   : > { %8944 = vmatprep.subr.bf16.mxu1 %v8600_v11  ;;  %v8488_v11 = vld [vmem:[%s11080_s16 + $0x118] sm:$0xff] }
 0xbc8   : > { %8904 = vmatpush2.bf16.msra.mxu0 %v8725_v53  ;;  %v8687_v53 = vunpack.c.l.s8.bf16 %v8523_v43 }
 0xbc9   : > { %8945 = vmatpush2.bf16.msra.mxu1 %v8599_v41  ;;  %8905 = vmatprep.subr.bf16.mxu0 %v8722_v24  ;;  %v8620_v41 = vunpack.c.h.s8.bf16 %v8488_v11  ;;  %v8684_v24 = vunpack.c.h.s8.bf16 %v8520_v16 }
 0xbca   : > { %8946 = vmatprep.subr.bf16.mxu1 %v8596_v20  ;;  %v8487_v20 = vld [vmem:[%s11080_s16 + $0x110] sm:$0xff] }
 0xbcb   : > { %v8619_v32 = vunpack.c.h.s8.bf16 %v8487_v20  ;;  %v8615_v60 = vunpack.c.l.s8.bf16 %v8487_v20 }
 0xbcc   : > { %8906 = vmatpush2.bf16.msra.mxu0 %v8721_v3  ;;  %v8683_v3 = vunpack.c.h.s8.bf16 %v8519_v55 }
 0xbcd   : > { %8947 = vmatpush2.bf16.msra.mxu1 %v8595_v39  ;;  %8907 = vmatprep.subr.bf16.mxu0 %v8718_v61  ;;  %v8616_v39 = vunpack.c.l.s8.bf16 %v8488_v11  ;;  %v8680_v61 = vunpack.c.l.s8.bf16 %v8520_v16  ;;  %v8711_v11 = vunpack.c.l.s8.bf16 %v8535_v46 }
 0xbce   : > { %8948 = vmatprep.subr.bf16.mxu1 %v8592_v37  ;;  %v8516_v37 = vld [vmem:[%s11080_s16 + $0x1f8] sm:$0xff] }
 0xbd0   : > { %8908 = vmatpush2.bf16.msra.mxu0 %v8717_v30  ;;  %v8679_v30 = vunpack.c.l.s8.bf16 %v8519_v55 }
 0xbd1   : > { %8949 = vmatpush2.bf16.msra.mxu1 %v8591_v59  ;;  %8909 = vmatprep.subr.bf16.mxu0 %v8714_v42  ;;  %v8676_v59 = vunpack.c.h.s8.bf16 %v8516_v37  ;;  %v8740_v42 = vunpack.c.h.s8.bf16 %v8548_v5 }
 0xbd2   : > { %8950 = vmatprep.subr.bf16.mxu1 %v8588_v8  ;;  %v8515_v8 = vld [vmem:[%s11080_s16 + $0x1f0] sm:$0xff] }
 0xbd3   : > { %v8675_v62 = vunpack.c.h.s8.bf16 %v8515_v8  ;;  %v8671_v7 = vunpack.c.l.s8.bf16 %v8515_v8 }
 0xbd4   : > { %8910 = vmatpush2.bf16.msra.mxu0 %v8713_v25  ;;  %v8739_v25 = vunpack.c.h.s8.bf16 %v8547_v10 }
 0xbd5   : > { %8951 = vmatpush2.bf16.msra.mxu1 %v8587_v6  ;;  %8911 = vmatprep.subr.bf16.mxu0 %v8710_v0  ;;  %v8672_v6 = vunpack.c.l.s8.bf16 %v8516_v37  ;;  %v8736_v0 = vunpack.c.l.s8.bf16 %v8548_v5 }
 0xbd6   : > { %8952 = vmatprep.subr.bf16.mxu1 %v8584_v35  ;;  %v8512_v35 = vld [vmem:[%s11080_s16 + $0x1d8] sm:$0xff] }
 0xbd8   : > { %8912 = vmatpush2.bf16.msra.mxu0 %v8709_v23  ;;  %v8735_v23 = vunpack.c.l.s8.bf16 %v8547_v10 }
 0xbd9   : > { %8953 = vmatpush2.bf16.msra.mxu1 %v8583_v52  ;;  %8963 = vmatprep.subr.bf16.mxu0 %v8644_v50  ;;  %v8668_v52 = vunpack.c.h.s8.bf16 %v8512_v35  ;;  %v8732_v50 = vunpack.c.h.s8.bf16 %v8544_v40 }
 0xbda   : > { %9004 = vmatprep.subr.bf16.mxu1 %v8708_v48  ;;  %v8511_v48 = vld [vmem:[%s11080_s16 + $0x1d0] sm:$0xff] }
 0xbdb   : > { %8914 = vmatmul.mubr.bf16.vlgmr.msra.gmra.mxu0 %v14561_v63  ;;  %v8667_v18 = vunpack.c.h.s8.bf16 %v8511_v48  ;;  %v8663_v19 = vunpack.c.l.s8.bf16 %v8511_v48 }
 0xbdc   : > { %8955 = vmatmul.mubr.bf16.vlgmr.msra.gmra.mxu1 %v14575_v9  ;;  %8964 = vmatpush1.bf16.msra.mxu0 %v8643_v58  ;;  %v8699_v9 = vunpack.c.h.s8.bf16 %v8527_v17  ;;  %v8731_v58 = vunpack.c.h.s8.bf16 %v8543_v38 }
 0xbdd   : > { %9005 = vmatpush1.bf16.msra.mxu1 %v8707_v14  ;;  %8965 = vmatprep.subr.bf16.mxu0 %v8640_v49  ;;  %v8664_v14 = vunpack.c.l.s8.bf16 %v8512_v35  ;;  %v8728_v49 = vunpack.c.l.s8.bf16 %v8544_v40 }
 0xbde   : > { %9006 = vmatprep.subr.bf16.mxu1 %v8704_v12  ;;  %8995 = vmatprep.mubr.bf16.mxu0 %v14548_v1  ;;  %v8628_v1 = vunpack.c.h.s8.bf16 %v8492_v33  ;;  %v8508_v12 = vld [vmem:[%s11080_s16 + $0x1b8] sm:$0xff] }
 0xbdf   : > { %9036 = vmatprep.mubr.bf16.mxu1 %v14588_v36  ;;  %v8692_v36 = vunpack.c.h.s8.bf16 %v8524_v22  ;;  %v8536_v33 = vld [vmem:[%s11080_s16 + $0x298] sm:$0xff] }
 0xbe0   : > { %8966 = vmatpush1.bf16.msra.mxu0 %v8639_v47  ;;  %v8727_v47 = vunpack.c.l.s8.bf16 %v8543_v38 }
 0xbe1   : > { %9007 = vmatpush1.bf16.msra.mxu1 %v8703_v29  ;;  %8967 = vmatprep.subr.bf16.mxu0 %v8636_v57  ;;  %v8660_v29 = vunpack.c.h.s8.bf16 %v8508_v12  ;;  %v8724_v57 = vunpack.c.h.s8.bf16 %v8540_v56 }
 0xbe2   : > { %9008 = vmatprep.subr.bf16.mxu1 %v8700_v34  ;;  %v8507_v34 = vld [vmem:[%s11080_s16 + $0x1b0] sm:$0xff] }
 0xbe3   : > { %v8659_v17 = vunpack.c.h.s8.bf16 %v8507_v34  ;;  %v8655_v22 = vunpack.c.l.s8.bf16 %v8507_v34 }
 0xbe4   : > { %8968 = vmatpush1.bf16.msra.mxu0 %v8635_v51  ;;  %v8723_v51 = vunpack.c.h.s8.bf16 %v8539_v13 }
 0xbe5   : > { %9009 = vmatpush1.bf16.msra.mxu1 %v8699_v9  ;;  %8969 = vmatprep.subr.bf16.mxu0 %v8632_v28  ;;  %v8656_v9 = vunpack.c.l.s8.bf16 %v8508_v12  ;;  %v8720_v28 = vunpack.c.l.s8.bf16 %v8540_v56 }
 0xbe6   : > { %9010 = vmatprep.subr.bf16.mxu1 %v8696_v54  ;;  %v8504_v54 = vld [vmem:[%s11080_s16 + $0x198] sm:$0xff] }
 0xbe8   : > { %8970 = vmatpush1.bf16.msra.mxu0 %v8631_v21  ;;  %v8719_v21 = vunpack.c.l.s8.bf16 %v8539_v13 }
 0xbe9   : > { %9011 = vmatpush1.bf16.msra.mxu1 %v8695_v2  ;;  %8971 = vmatprep.subr.bf16.mxu0 %v8628_v1  ;;  %v8652_v2 = vunpack.c.h.s8.bf16 %v8504_v54  ;;  %v8716_v1 = vunpack.c.h.s8.bf16 %v8536_v33 }
 0xbea   : > { %9012 = vmatprep.subr.bf16.mxu1 %v8692_v36  ;;  %v8503_v36 = vld [vmem:[%s11080_s16 + $0x190] sm:$0xff] }
 0xbeb   : > { %v8651_v43 = vunpack.c.h.s8.bf16 %v8503_v36 }
 0xbec   : > { %8972 = vmatpush1.bf16.msra.mxu0 %v8627_v26  ;;  %v8715_v26 = vunpack.c.h.s8.bf16 %v8535_v46 }
 0xbed   : > { %9013 = vmatpush1.bf16.msra.mxu1 %v8691_v44  ;;  %8973 = vmatprep.subr.bf16.mxu0 %v8624_v31  ;;  %v8648_v44 = vunpack.c.l.s8.bf16 %v8504_v54  ;;  %v8712_v31 = vunpack.c.l.s8.bf16 %v8536_v33 }
 0xbee   : > { %9014 = vmatprep.subr.bf16.mxu1 %v8688_v4  ;;  %v8647_v4 = vunpack.c.l.s8.bf16 %v8503_v36 }
 0xbf0   : > { %8974 = vmatpush1.bf16.msra.mxu0 %v8623_v27 }
 0xbf1   : > { %9015 = vmatpush1.bf16.msra.mxu1 %v8687_v53  ;;  %8975 = vmatprep.subr.bf16.mxu0 %v8620_v41 }
 0xbf2   : > { %9016 = vmatprep.subr.bf16.mxu1 %v8684_v24 }
 0xbf4   : > { %8976 = vmatpush1.bf16.msra.mxu0 %v8619_v32 }
 0xbf5   : > { %9017 = vmatpush1.bf16.msra.mxu1 %v8683_v3  ;;  %8977 = vmatprep.subr.bf16.mxu0 %v8616_v39 }
 0xbf6   : > { %9018 = vmatprep.subr.bf16.mxu1 %v8680_v61 }
 0xbf8   : > { %8978 = vmatpush1.bf16.msra.mxu0 %v8615_v60 }
 0xbf9   : > { %9019 = vmatpush1.bf16.msra.mxu1 %v8679_v30  ;;  %8979 = vmatprep.subr.bf16.mxu0 %v8676_v59 }
 0xbfa   : > { %9020 = vmatprep.subr.bf16.mxu1 %v8740_v42 }
 0xbfc   : > { %8980 = vmatpush2.bf16.msra.mxu0 %v8675_v62  ;;  %v10885_v62 = vmov 1983009808  }
 0xbfd   : > { %9021 = vmatpush2.bf16.msra.mxu1 %v8739_v25  ;;  %8981 = vmatprep.subr.bf16.mxu0 %v8672_v6  ;;  %v9052_v25 = vunpack.c.l.s4 %v10885_v62 }
 0xbfe   : > { %9022 = vmatprep.subr.bf16.mxu1 %v8736_v0 }
 0xbff   : > { %v9053_v35 = vunpack.c.0.s8 %v9052_v25 }
 0xc00   : > { %8982 = vmatpush2.bf16.msra.mxu0 %v8671_v7 }
 0xc01   : > { %9023 = vmatpush2.bf16.msra.mxu1 %v8735_v23  ;;  %8983 = vmatprep.subr.bf16.mxu0 %v8668_v52  ;;  %v14659_v38 = vsub.s32 %v9053_v35, %v14525_v45 }
 0xc02   : > { %9024 = vmatprep.subr.bf16.mxu1 %v8732_v50 }
 0xc04   : > { %8984 = vmatpush2.bf16.msra.mxu0 %v8667_v18 }
 0xc05   : > { %9025 = vmatpush2.bf16.msra.mxu1 %v8731_v58  ;;  %8985 = vmatprep.subr.bf16.mxu0 %v8664_v14 }
 0xc06   : > { %9026 = vmatprep.subr.bf16.mxu1 %v8728_v49 }
 0xc08   : > { %8986 = vmatpush2.bf16.msra.mxu0 %v8663_v19 }
 0xc09   : > { %9027 = vmatpush2.bf16.msra.mxu1 %v8727_v47  ;;  %8987 = vmatprep.subr.bf16.mxu0 %v8660_v29  ;;  %v8741_v47 = vld [vmem:[#allocation4] sm:$0xff] }
 0xc0a   : > { %9028 = vmatprep.subr.bf16.mxu1 %v8724_v57 }
 0xc0c   : > { %8988 = vmatpush2.bf16.msra.mxu0 %v8659_v17 }
 0xc0d   : > { %9029 = vmatpush2.bf16.msra.mxu1 %v8723_v51  ;;  %8989 = vmatprep.subr.bf16.mxu0 %v8656_v9 }
 0xc0e   : > { %9030 = vmatprep.subr.bf16.mxu1 %v8720_v28 }
 0xc10   : > { %8990 = vmatpush2.bf16.msra.mxu0 %v8655_v22 }
 0xc11   : > { %9031 = vmatpush2.bf16.msra.mxu1 %v8719_v21  ;;  %8991 = vmatprep.subr.bf16.mxu0 %v8652_v2 }
 0xc12   : > { %9032 = vmatprep.subr.bf16.mxu1 %v8716_v1 }
 0xc14   : > { %8992 = vmatpush2.bf16.msra.mxu0 %v8651_v43 }
 0xc15   : > { %9033 = vmatpush2.bf16.msra.mxu1 %v8715_v26  ;;  %8993 = vmatprep.subr.bf16.mxu0 %v8648_v44 }
 0xc16   : > { %9034 = vmatprep.subr.bf16.mxu1 %v8712_v31 }
 0xc18   : > { %8994 = vmatpush2.bf16.msra.mxu0 %v8647_v4 }
 0xc19   : > { %9035 = vmatpush2.bf16.msra.mxu1 %v8711_v11 }
 0xc1b   : > { %8996 = vmatmul.mubr.bf16.vlgmr.msra.gmra.mxu0 %v14583_v15 }
 0xc1c   : > { %9037 = vmatmul.mubr.bf16.vlgmr.msra.gmra.mxu1 %v14561_v63 }
 0xc5b   : > { %v8833_v16 = vpop.f32.mrf.mxu0 }
 0xc5c   : > { %v8874_v27 = vpop.f32.mrf.mxu1 }
 0xc5d   : > { %v8875_v53 = vadd.f32 %v8874_v27, %v8833_v16  ;;  %v8835_v41 = vpop.f32.mrf.mxu0 }
 0xc5e   : > { %v8876_v24 = vpop.f32.mrf.mxu1 }
 0xc5f   : > { %v8877_v20 = vadd.f32 %v8876_v24, %v8835_v41  ;;  %v8837_v55 = vpop.f32.mrf.mxu0 }
 0xc60   : > { %v8878_v32 = vpop.f32.mrf.mxu1 }
 0xc61   : > { %v8838_v3 = vpop.f32.mrf.mxu0 }
 0xc62   : > { %v8879_v39 = vpop.f32.mrf.mxu1 }
 0xc9b   : > { %v8915_v61 = vpop.f32.mrf.mxu0 }
 0xc9c   : > { %v8956_v37 = vpop.f32.mrf.mxu1  ;;  %v8916_v5 = vadd.f32 %v8915_v61, %v8875_v53 }
 0xc9d   : > { %v8917_v60 = vpop.f32.mrf.mxu0 }
 0xc9e   : > { %v8958_v30 = vpop.f32.mrf.mxu1  ;;  %v8918_v59 = vadd.f32 %v8917_v60, %v8877_v20 }
 0xc9f   : > { %v8919_v42 = vpop.f32.mrf.mxu0 }
 0xca0   : > { %v8960_v15 = vpop.f32.mrf.mxu1  ;;  %v9049_v8 = vcombine.low %v8916_v5, %v8918_v59 }
 0xca1   : > { %v8920_v63 = vpop.f32.mrf.mxu0 }
 0xca2   : > { %v8961_v10 = vpop.f32.mrf.mxu1  ;;  %v9057_v56 = vrot.slane %v9049_v8, %v14659_v38 }
 0xcdb   : > { %v8997_v6 = vpop.f32.mrf.mxu0 }
 0xcdc   : > { %v9038_v0 = vpop.f32.mrf.mxu1  ;;  %v8998_v40 = vadd.f32 %v8997_v6, %v8956_v37 }
 0xcdd   : > { %v8999_v7 = vpop.f32.mrf.mxu0 }
 0xcde   : > { %v9040_v23 = vpop.f32.mrf.mxu1  ;;  %v9000_v52 = vadd.f32 %v8999_v7, %v8958_v30  ;;  %v9039_v18 = vadd.f32 %v9038_v0, %v8998_v40 }
 0xcdf   : > { %v9001_v50 = vpop.f32.mrf.mxu0 }
 0xce0   : > { %v9042_v48 = vpop.f32.mrf.mxu1  ;;  %v9041_v58 = vadd.f32 %v9040_v23, %v9000_v52 }
 0xce1   : > { %v9002_v14 = vpop.f32.mrf.mxu0 }
 0xce2   : > { %v9043_v49 = vpop.f32.mrf.mxu1  ;;  %v9050_v12 = vcombine.low %v9039_v18, %v9041_v58 }
 0xce4   : > { %v9064_v19 = vrot.slane %v9050_v12, %v14659_v38 }
 0xce6   : > { %v9065_v29 = vcombine.low %v9057_v56, %v9064_v19  ;;  %9072 = sbr.rel (%p10424_p5) target bundleno = 3856 (0xf10), region = 84 }
 0xce8   : > { %v9067_v57 = vadd.f32 %v9065_v29, %v8741_v47 }
 0xcea   : > { %9068 = vst [vmem:[#allocation4] sm:$0xff] %v9067_v57 }
 0xceb   : > { %v10648_v34 = vld [vmem:[%s14798_s6 + $0x78] sm:$0xff]   ;;  %v10652_v9 = vld [vmem:[%s14798_s6 + $0x70] sm:$0xff]   ;;  %v10656_v22 = vld [vmem:[%s14798_s6 + $0x68] sm:$0xff]   ;;  %v9078_v32 = vsub.s32 0, %v14525_v45  ;;  %v9082_v39 = vsub.s32 1, %v14525_v45  ;;  %v9086_v37 = vsub.s32 2, %v14525_v45 }
 0xcec   : > { %v10649_v13 = vld [vmem:[%s14798_s6 + $0xf8] sm:$0xff]   ;;  %10467 = vmatprep.subr.bf16.mxu0 %v10648_v34  ;;  %v10653_v28 = vld [vmem:[%s14798_s6 + $0xf0] sm:$0xff]   ;;  %v10657_v21 = vld [vmem:[%s14798_s6 + $0xe8] sm:$0xff]   ;;  %v9090_v60 = vsub.s32 3, %v14525_v45  ;;  %vm9518_vm4 = vcmask 41984   ;;  %vm9531_vm10 = vcmask 50224  }
 0xced   : > { %v10650_v17 = vld [vmem:[%s14798_s6 + $0x38] sm:$0xff]   ;;  %10489 = vmatprep.subr.bf16.mxu1 %v10649_v13  ;;  %v10654_v54 = vld [vmem:[%s14798_s6 + $0x30] sm:$0xff]   ;;  %v10658_v2 = vld [vmem:[%s14798_s6 + $0x28] sm:$0xff]  }
 0xcee   : > { %v10651_v51 = vld [vmem:[%s14798_s6 + $0xb8] sm:$0xff]   ;;  %10468 = vmatpush3.bf16.msra.mxu0 %v10650_v17  ;;  %v10655_v33 = vld [vmem:[%s14798_s6 + $0xb0] sm:$0xff]   ;;  %v10659_v1 = vld [vmem:[%s14798_s6 + $0xa8] sm:$0xff]  }
 0xcef   : > { %10490 = vmatpush3.bf16.msra.mxu1 %v10651_v51  ;;  %10469 = vmatprep.subr.bf16.mxu0 %v10652_v9  ;;  %v10660_v36 = vld [vmem:[%s14798_s6 + $0x60] sm:$0xff]   ;;  %v10664_v44 = vld [vmem:[%s14798_s6 + $0x58] sm:$0xff]   ;;  %v10668_v16 = vld [vmem:[%s14798_s6 + $0x50] sm:$0xff]  }
 0xcf0   : > { %10491 = vmatprep.subr.bf16.mxu1 %v10653_v28  ;;  %v10661_v46 = vld [vmem:[%s14798_s6 + $0xe0] sm:$0xff]   ;;  %v10665_v31 = vld [vmem:[%s14798_s6 + $0xd8] sm:$0xff]   ;;  %v10669_v27 = vld [vmem:[%s14798_s6 + $0xd0] sm:$0xff]  }
 0xcf1   : > { %v10662_v43 = vld [vmem:[%s14798_s6 + $0x20] sm:$0xff]   ;;  %v10666_v4 = vld [vmem:[%s14798_s6 + $0x18] sm:$0xff]   ;;  %v10670_v53 = vld [vmem:[%s14798_s6 + $0x10] sm:$0xff]  }
 0xcf2   : > { %10470 = vmatpush3.bf16.msra.mxu0 %v10654_v54  ;;  %v10663_v26 = vld [vmem:[%s14798_s6 + $0xa0] sm:$0xff]   ;;  %v10667_v11 = vld [vmem:[%s14798_s6 + $0x98] sm:$0xff]   ;;  %v10671_v41 = vld [vmem:[%s14798_s6 + $0x90] sm:$0xff]  }
 0xcf3   : > { %10492 = vmatpush3.bf16.msra.mxu1 %v10655_v33  ;;  %10471 = vmatprep.subr.bf16.mxu0 %v10656_v22  ;;  %v10672_v24 = vld [vmem:[%s14798_s6 + $0x48] sm:$0xff]   ;;  %v10676_v61 = vld [vmem:[%s14798_s6 + $0x40] sm:$0xff]   ;;  %v9073_v48 = vld [vmem:[#allocation4] sm:$0xff] }
 0xcf4   : > { %10493 = vmatprep.subr.bf16.mxu1 %v10657_v21  ;;  %v10673_v20 = vld [vmem:[%s14798_s6 + $0xc8] sm:$0xff]   ;;  %v10677_v5 = vld [vmem:[%s14798_s6 + $0xc0] sm:$0xff]  }
 0xcf5   : > { %v10674_v55 = vld [vmem:[%s14798_s6 + $0x8] sm:$0xff]   ;;  %v10678_v30 = vld [vmem:[%s14798_s6] sm:$0xff]  }
 0xcf6   : > { %10472 = vmatpush3.bf16.msra.mxu0 %v10658_v2  ;;  %v10675_v3 = vld [vmem:[%s14798_s6 + $0x88] sm:$0xff]   ;;  %v10679_v59 = vld [vmem:[%s14798_s6 + $0x80] sm:$0xff]  }
 0xcf7   : > { %10494 = vmatpush3.bf16.msra.mxu1 %v10659_v1  ;;  %10473 = vmatprep.subr.bf16.mxu0 %v10660_v36  ;;  %v9074_v42 = vld [vmem:[#allocation11] sm:$0xf]  ;;  %v9111_v15 = vld [vmem:[#allocation13] sm:$0xf]  ;;  %v10425_v22 = vld [vmem:[#allocation14] ss:$0 sm:$0xff] }
 0xcf8   : > { %10495 = vmatprep.subr.bf16.mxu1 %v10661_v46  ;;  %v9079_v8 = vrot.slane %v9074_v42, %v9078_v32  ;;  %v9083_v63 = vrot.slane %v9074_v42, %v9082_v39  ;;  %v9087_v10 = vrot.slane %v9074_v42, %v9086_v37  ;;  %v9091_v62 = vrot.slane %v9074_v42, %v9090_v60 }
 0xcf9   : > { %v9116_v25 = vrot.slane %v9111_v15, %v9078_v32  ;;  %v9120_v45 = vrot.slane %v9111_v15, %v9082_v39  ;;  %v9124_v6 = vrot.slane %v9111_v15, %v9086_v37  ;;  %v9128_v0 = vrot.slane %v9111_v15, %v9090_v60 }
 0xcfa   : > { %10474 = vmatpush3.bf16.msra.mxu0 %v10662_v43  ;;  %v9092_v35 = vcombine.low %v9079_v8, %v9083_v63  ;;  %v9093_v40 = vcombine.low %v9087_v10, %v9091_v62 }
 0xcfb   : > { %10496 = vmatpush3.bf16.msra.mxu1 %v10663_v26  ;;  %10475 = vmatprep.subr.bf16.mxu0 %v10664_v44  ;;  %v9129_v7 = vcombine.low %v9116_v25, %v9120_v45  ;;  %v9130_v23 = vcombine.low %v9124_v6, %v9128_v0 }
 0xcfc   : > { %10497 = vmatprep.subr.bf16.mxu1 %v10665_v31  ;;  %v9100_v52 = vrot.slane %v9092_v35, %v14659_v38  ;;  %v9107_v50 = vrot.slane %v9093_v40, %v14659_v38 }
 0xcfd   : > { %v9137_v18 = vrot.slane %v9129_v7, %v14659_v38  ;;  %v9144_v58 = vrot.slane %v9130_v23, %v14659_v38 }
 0xcfe   : > { %10476 = vmatpush3.bf16.msra.mxu0 %v10666_v4  ;;  %v9108_v14 = vcombine.low %v9100_v52, %v9107_v50 }
 0xcff   : > { %10498 = vmatpush3.bf16.msra.mxu1 %v10667_v11  ;;  %10477 = vmatprep.subr.bf16.mxu0 %v10668_v16  ;;  %v9145_v49 = vcombine.low %v9137_v18, %v9144_v58 }
 0xd00   : > { %10499 = vmatprep.subr.bf16.mxu1 %v10669_v27  ;;  %v9110_v12 = vmul.f32 %v9108_v14, %v9073_v48 }
 0xd02   : > { %10478 = vmatpush3.bf16.msra.mxu0 %v10670_v53  ;;  %v9147_v56 = vadd.f32 %v9145_v49, %v9110_v12 }
 0xd03   : > { %10500 = vmatpush3.bf16.msra.mxu1 %v10671_v41  ;;  %10479 = vmatprep.subr.bf16.mxu0 %v10672_v24 }
 0xd04   : > { %10501 = vmatprep.subr.bf16.mxu1 %v10673_v20  ;;  %v9148_v19 = vmax.f32 %v9147_v56, 0.0 }
 0xd06   : > { %10480 = vmatpush3.bf16.msra.mxu0 %v10674_v55  ;;  %v9157_v47 = vrot.slane %v9148_v19, %v14659_v38  ;;  %v9150_v29 = vcombine.high %v9148_v19, %v9148_v19 }
 0xd07   : > { %10502 = vmatpush3.bf16.msra.mxu1 %v10675_v3  ;;  %10481 = vmatprep.subr.bf16.mxu0 %v10676_v61 }
 0xd08   : > { %10503 = vmatprep.subr.bf16.mxu1 %v10677_v5  ;;  %v9165_v57 = vcombine.high %v9157_v47, %v9157_v47  ;;  %v9164_v34 = vrot.slane %v9150_v29, %v14659_v38  ;;  %v9171_v13 = vpack.c.bf16 %v9157_v47, %v9157_v47 }
 0xd0a   : > { %10482 = vmatpush3.bf16.msra.mxu0 %v10678_v30  ;;  %v9172_v17 = vpack.c.bf16 %v9165_v57, %v9165_v57  ;;  %v9166_v51 = vcombine.high %v9164_v34, %v9164_v34  ;;  %v9173_v9 = vpack.c.bf16 %v9164_v34, %v9164_v34 }
 0xd0b   : > { %10504 = vmatpush3.bf16.msra.mxu1 %v10679_v59 }
 0xd0c   : > { %9470 = vmatprep.mubr.bf16.mxu0 %v9172_v17  ;;  %v9174_v28 = vpack.c.bf16 %v9166_v51, %v9166_v51 }
 0xd0d   : > { %9471 = vmatmul.mubr.bf16.vlgmr.msra.gmra.mxu0 %v9171_v13 }
 0xd0e   : > { %9510 = vmatprep.mubr.bf16.mxu1 %v9174_v28 }
 0xd0f   : > { %9511 = vmatmul.mubr.bf16.vlgmr.msra.gmra.mxu1 %v9173_v9 }
 0xdcd   : > { %v10483_v54 = vpop.f32.mrf.mxu0 }
 0xdcf   : > { %v10505_v33 = vpop.f32.mrf.mxu1  ;;  %v10484_v21 = vpop.f32.mrf.mxu0 }
 0xdd0   : > { %v10485_v2 = vadd.f32 %v10484_v21, %v10483_v54 }
 0xdd1   : > { %v10506_v1 = vpop.f32.mrf.mxu1  ;;  %v10486_v36 = vpop.f32.mrf.mxu0 }
 0xdd2   : > { %v9473_v46 = vadd.f32 %v10485_v2, %v10425_v22  ;;  %v10507_v43 = vadd.f32 %v10506_v1, %v10505_v33 }
 0xdd3   : > { %v10508_v26 = vpop.f32.mrf.mxu1  ;;  %v10487_v38 = vpop.f32.mrf.mxu0 }
 0xdd4   : > { %v9513_v44 = vadd.f32 %v10507_v43, %v9473_v46 }
 0xdd5   : > { %v10509_v31 = vpop.f32.mrf.mxu1 }
 0xdd6   : > { %v9519_v4 = vsel %vm9518_vm4, %v9513_v44, -inf }
 0xdd7   : > { %9520 = vmax.xlane.f32.xlu0 %v9519_v4 }
 0xe60   : > { %v9521_v11 = vpop.xlane.xlu0 %9520 }
 0xe61   : > { %v9522_v16 = vsub.f32 %v9513_v44, %v9521_v11 }
 0xe63   : > { %v9523_v27 = vmul.f32 1.442695, %v9522_v16 }
 0xe65   : > { %10680 = vpow2.f32 %v9523_v27 }
 0xe72   : > { %v10681_v53 = vpop.eup %10680 }
 0xe73   : > { %v9525_v41 = vsel %vm9518_vm4, %v10681_v53, 0.0 }
 0xe74   : > { %9526 = vadd.xlane.f32.xlu0 %v9525_v41 }
 0xefd   : > { %v9527_v24 = vpop.xlane.xlu0 %9526 }
 0xefe   : > { %10682 = vrcp.f32 %v9527_v24 }
 0xf0b   : > { %v10683_v20 = vpop.eup %10682 }
 0xf0c   : > { %v9529_v55 = vmul.f32 %v10683_v20, %v10681_v53 }
 0xf0e   : > { %9530 = vst.msk [vmem:[%s14800_s8] sm:$0x3] %vm9518_vm4, %v9529_v55 }
 0xf0f   : > { %9532 = vst.msk [vmem:[%s14800_s8] sm:$0x3] %vm9531_vm10, %v9513_v44 }
 0xf10 PF: > { %p22_p8 = scmp.ge.s32.totalorder %s11015_s14, 7   ;;  %s14869_s27 = smov %s10854_s28 }
 0xf11   : > { %s14870_s28 = smov %s10858_s29  ;;  %s14871_s29 = smov %s11026_s22 }
 0xf12   : > { %s14872_s30 = smov %s11015_s14  ;;  %24 = sbr.rel (!%p22_p8) target bundleno = 13 (0xd), region = 122 }
 0xf17   :  { %9544 = vsyncpa [#allocation6], 1 }
 0xf18   :  { %9546 = vsyncpa [#allocation6 + $0x1], 1 }
 0xf19   :  { %9547 = vsyncpa [#allocation12], 1 }
 0xf1a   :  { %9548 = vsyncpa [#allocation15], 1 }
 0xf1b   :  { %9549 = vsyncpa [#allocation7], 1 }
 0xf1c   :  { %9551 = vsyncpa [#allocation7 + $0x1], 1 }
 0xf1d   :  { %9552 = vsyncpa [#allocation9], 1 }

</bundles_post_ra>
